<compile_context>
chip_gen: v6e
topology: v6e:2x2x1
jax: 0.10.0
libtpu: 0.0.40
codegen_flags: <defaults>
</compile_context>

<pallas_src>
import functools

import numpy as np
import jax
import jax.numpy as jnp
from jax import lax
from jax.experimental import pallas as pl
from jax.experimental.pallas import tpu as pltpu

SAMPLE_RATE = 16000
SINC_KERNEL = 251
KP = 256                 # sinc kernel padded to a lane-friendly contraction dim
C1, C2 = 80, 60          # channels after stage 1 / stages 2-3
K23 = 5                  # kernel size of conv2 / conv3
POOL = 3                 # MaxPool1d(3, stride=3)
EPS = 1e-5               # InstanceNorm eps
SLOPE = 0.01             # LeakyReLU default negative_slope

PPT = 512                # pooled rows produced per stage-1 grid step
TL1 = POOL * PPT         # conv rows consumed per stage-1 grid step (1536)
PC = 128                 # pooled rows per stage-2/3 chunk
TC = POOL * PC           # conv rows per stage-2/3 chunk (384)


# ----------------------------------------------------------------------------
# Parameter setup (glue, plain NumPy/JAX)
# ----------------------------------------------------------------------------
# TODO(synk): sinc filter synthesis (asteroid ParamSincFB.filters()) is done
# host-side as deterministic parameter setup, not inside the Pallas kernel.
def make_sinc_filters(n_filters=C1, kernel_size=SINC_KERNEL,
                      sample_rate=SAMPLE_RATE, min_low_hz=50.0, min_band_hz=50.0):
    cutoff = n_filters // 2
    half = kernel_size // 2
    to_mel = lambda hz: 2595.0 * np.log10(1.0 + hz / 700.0)
    to_hz = lambda mel: 700.0 * (10.0 ** (mel / 2595.0) - 1.0)

    low_hz, high_hz = 30.0, sample_rate / 2 - (min_low_hz + min_band_hz)
    mel = np.linspace(to_mel(low_hz), to_mel(high_hz), cutoff + 1)
    hz = to_hz(mel)
    low_hz_ = hz[:-1][:, None]
    band_hz_ = np.diff(hz)[:, None]

    low = min_low_hz + np.abs(low_hz_)
    high = np.clip(low + min_band_hz + np.abs(band_hz_), min_low_hz, sample_rate / 2)
    band = (high - low)[:, 0]

    n_ = 2.0 * np.pi * np.arange(-half, 0.0)[None, :] / sample_rate      # (1, half)
    window_ = np.hamming(kernel_size)[:half][None, :]                    # (1, half)
    ft_low = low @ n_
    ft_high = high @ n_

    bpl = ((np.sin(ft_high) - np.sin(ft_low)) / (n_ / 2.0)) * window_
    cosf = np.concatenate([bpl, 2.0 * band[:, None], np.flip(bpl, axis=1)], axis=1)
    cosf = cosf / (2.0 * band[:, None])
    bps = ((np.cos(ft_low) - np.cos(ft_high)) / (n_ / 2.0)) * window_
    sinf = np.concatenate([bps, np.zeros((cutoff, 1)), -np.flip(bps, axis=1)], axis=1)
    sinf = sinf / (2.0 * band[:, None])

    filt = np.stack([cosf, sinf], axis=1).reshape(2 * cutoff, kernel_size)  # (80, 251)
    return jnp.asarray(filt, jnp.float32)


def init_params(key):
    ks = jax.random.split(key, 10)
    s = 0.1
    return dict(
        sinc_filters=make_sinc_filters(),                                   # (80, 251)
        wav_w=jnp.array([1.0], jnp.float32), wav_b=jnp.array([0.0], jnp.float32),
        n1_w=1.0 + s * jax.random.normal(ks[0], (C1,), jnp.float32),
        n1_b=s * jax.random.normal(ks[1], (C1,), jnp.float32),
        w2=s * jax.random.normal(ks[2], (C2, C1, K23), jnp.float32),        # (60,80,5)
        b2=s * jax.random.normal(ks[3], (C2,), jnp.float32),
        n2_w=1.0 + s * jax.random.normal(ks[4], (C2,), jnp.float32),
        n2_b=s * jax.random.normal(ks[5], (C2,), jnp.float32),
        w3=s * jax.random.normal(ks[6], (C2, C2, K23), jnp.float32),        # (60,60,5)
        b3=s * jax.random.normal(ks[7], (C2,), jnp.float32),
        n3_w=1.0 + s * jax.random.normal(ks[8], (C2,), jnp.float32),
        n3_b=s * jax.random.normal(ks[9], (C2,), jnp.float32),
    )


# ----------------------------------------------------------------------------
# Pallas kernel
#   grid = (batch, stage-1 time tile).  Per tile: MXU sinc conv + fused
#   |.| / MaxPool(3) / streaming norm stats.  The last tile of each batch
#   element finishes the (much lighter) conv2/conv3 stages from the pooled
#   activations held in VMEM scratch.
# ----------------------------------------------------------------------------
def _sincnet_kernel(dims, frames_ref, fsinc_ref,
                    n1w_ref, n1b_ref,
                    w2_ref, b2_ref, n2w_ref, n2b_ref,
                    w3_ref, b3_ref, n3w_ref, n3b_ref,
                    out_ref,
                    h1p_ref, h2p_ref, nbuf2_ref, nbuf3_ref, cbuf_ref,
                    s1_ref, q1_ref, s2_ref, q2_ref, s3_ref, q3_ref):
    P1, P2, P3, NC2, NC3 = dims
    it = pl.program_id(1)

    # -------- per-batch-element init: zero the streaming-stat accumulators
    @pl.when(it == 0)
    def _():
        for r in (s1_ref, q1_ref, s2_ref, q2_ref, s3_ref, q3_ref):
            r[...] = jnp.zeros_like(r)

    # -------- stage 1: sinc conv on the MXU, |.| + MaxPool(3) in registers
    fsinc = fsinc_ref[...]                                             # (KP, C1)
    pooled = jnp.abs(jnp.dot(frames_ref[0, 0, 0], fsinc,
                             preferred_element_type=jnp.float32))
    pooled = jnp.maximum(pooled, jnp.abs(jnp.dot(frames_ref[0, 0, 1], fsinc,
                                                 preferred_element_type=jnp.float32)))
    pooled = jnp.maximum(pooled, jnp.abs(jnp.dot(frames_ref[0, 0, 2], fsinc,
                                                 preferred_element_type=jnp.float32)))

    row0 = pl.multiple_of(it * PPT, 8)
    h1p_ref[pl.ds(row0, PPT), :] = pooled                              # (PPT, C1)

    # streaming InstanceNorm statistics over the valid pooled frames only
    gidx = row0 + lax.broadcasted_iota(jnp.int32, (PPT, 1), 0)
    pm = jnp.where(gidx < P1, pooled, 0.0)
    s1_ref[...] += jnp.sum(pm, axis=0, keepdims=True)
    q1_ref[...] += jnp.sum(pm * pm, axis=0, keepdims=True)

    # -------- last tile of this batch element: norms + conv2/conv3 stages
    @pl.when(it == pl.num_programs(1) - 1)
    def _finish():
        def leaky(v):
            return jnp.where(v >= 0, v, SLOPE * v)

        def affine_from_stats(s_ref_, q_ref_, count, w_ref_, b_ref_):
            mean = s_ref_[...] / count
            var = jnp.maximum(q_ref_[...] / count - mean * mean, 0.0)
            scale = lax.rsqrt(var + EPS) * w_ref_[...]
            shift = b_ref_[...] - mean * scale
            return scale, shift

        def pool3(ref):                       # MaxPool1d(3, 3) over one chunk
            return jnp.maximum(
                jnp.maximum(ref[pl.ds(0, PC, stride=POOL), :],
                            ref[pl.ds(1, PC, stride=POOL), :]),
                ref[pl.ds(2, PC, stride=POOL), :])

        # ---- stage 2: InstanceNorm(80) + LeakyReLU -> Conv1d(80,60,5) -> pool
        sc1, sh1 = affine_from_stats(s1_ref, q1_ref, float(P1), n1w_ref, n1b_ref)

        def chunk2(c, carry):
            r0 = pl.multiple_of(c * TC, 8)
            nbuf2_ref[...] = leaky(h1p_ref[pl.ds(r0, TC + 8), :] * sc1 + sh1)
            acc = jnp.zeros((TC, C2), jnp.float32) + b2_ref[...]
            for k in range(K23):
                acc += jnp.dot(nbuf2_ref[k:k + TC, :], w2_ref[k],
                               preferred_element_type=jnp.float32)
            cbuf_ref[...] = acc
            pooled2 = pool3(cbuf_ref)                                  # (PC, C2)
            p0 = pl.multiple_of(c * PC, 8)
            h2p_ref[pl.ds(p0, PC), :] = pooled2
            g = p0 + lax.broadcasted_iota(jnp.int32, (PC, 1), 0)
            pv = jnp.where(g < P2, pooled2, 0.0)
            s2_ref[...] += jnp.sum(pv, axis=0, keepdims=True)
            q2_ref[...] += jnp.sum(pv * pv, axis=0, keepdims=True)
            return carry

        lax.fori_loop(0, NC2, chunk2, 0)

        # ---- stage 3: InstanceNorm(60) + LeakyReLU -> Conv1d(60,60,5) -> pool
        sc2, sh2 = affine_from_stats(s2_ref, q2_ref, float(P2), n2w_ref, n2b_ref)

        def chunk3(c, carry):
            r0 = pl.multiple_of(c * TC, 8)
            nbuf3_ref[...] = leaky(h2p_ref[pl.ds(r0, TC + 8), :] * sc2 + sh2)
            acc = jnp.zeros((TC, C2), jnp.float32) + b3_ref[...]
            for k in range(K23):
                acc += jnp.dot(nbuf3_ref[k:k + TC, :], w3_ref[k],
                               preferred_element_type=jnp.float32)
            cbuf_ref[...] = acc
            pooled3 = pool3(cbuf_ref)
            p0 = pl.multiple_of(c * PC, 8)
            out_ref[0, pl.ds(p0, PC), :] = pooled3          # staged (pre-norm)
            g = p0 + lax.broadcasted_iota(jnp.int32, (PC, 1), 0)
            pv = jnp.where(g < P3, pooled3, 0.0)
            s3_ref[...] += jnp.sum(pv, axis=0, keepdims=True)
            q3_ref[...] += jnp.sum(pv * pv, axis=0, keepdims=True)
            return carry

        lax.fori_loop(0, NC3, chunk3, 0)

        # ---- final InstanceNorm(60) + LeakyReLU, applied in place
        sc3, sh3 = affine_from_stats(s3_ref, q3_ref, float(P3), n3w_ref, n3b_ref)

        def chunkf(c, carry):
            p0 = pl.multiple_of(c * PC, 8)
            v = out_ref[0, pl.ds(p0, PC), :]
            out_ref[0, pl.ds(p0, PC), :] = leaky(v * sc3 + sh3)
            return carry

        lax.fori_loop(0, NC3, chunkf, 0)


# ----------------------------------------------------------------------------
# Wrapper
# ----------------------------------------------------------------------------
def sincnet_forward(waveforms, params):
    """waveforms: (B, 1, T) float32 -> (B, 60, num_frames) float32 (PyTorch NCW)."""
    B, C, T = waveforms.shape
    assert C == 1 and T >= SINC_KERNEL

    L1 = T - SINC_KERNEL + 1
    P1 = (L1 - POOL) // POOL + 1
    L2 = P1 - K23 + 1
    P2 = (L2 - POOL) // POOL + 1
    L3 = P2 - K23 + 1
    P3 = (L3 - POOL) // POOL + 1
    assert P3 >= 1, "input too short for SincNet"

    NT = pl.cdiv(L1, TL1)
    L1pad = NT * TL1
    P1pad = NT * PPT
    NC2 = pl.cdiv(P2, PC)
    P2pad = NC2 * PC
    NC3 = pl.cdiv(P3, PC)
    P3pad = NC3 * PC

    rup8 = lambda n: ((n + 7) // 8) * 8
    H1ROWS = rup8(max(P1pad, POOL * P2pad + 8))     # pooled stage-1 scratch rows
    H2ROWS = rup8(max(P2pad, POOL * P3pad + 8))     # pooled stage-2 scratch rows

    # ---- wav_norm1d: InstanceNorm1d(1, affine=True), folded into the wrapper
    x = waveforms[:, 0, :].astype(jnp.float32)                         # (B, T)
    m = jnp.mean(x, axis=1, keepdims=True)
    v = jnp.mean((x - m) ** 2, axis=1, keepdims=True)
    xn = (x - m) * lax.rsqrt(v + EPS) * params["wav_w"][0] + params["wav_b"][0]

    # ---- im2col frames, pre-grouped into the three MaxPool(3) phases
    # frames[b, n, d, p, k] == xn[b, (n*PPT + p)*3 + d + k]
    xn_pad = jnp.pad(xn, ((0, 0), (0, L1pad + KP - 1 - T)))
    frames = jnp.stack([xn_pad[:, k:k + L1pad] for k in range(KP)], axis=-1)
    frames = frames.reshape(B, NT, PPT, POOL, KP).transpose(0, 1, 3, 2, 4)

    # ---- parameters in kernel layout (time-major, channels on lanes)
    fsinc = jnp.zeros((KP, C1), jnp.float32).at[:SINC_KERNEL, :].set(
        params["sinc_filters"].T.astype(jnp.float32))                  # (256, 80)
    w2 = jnp.transpose(params["w2"], (2, 1, 0)).astype(jnp.float32)    # (5, 80, 60)
    w3 = jnp.transpose(params["w3"], (2, 1, 0)).astype(jnp.float32)    # (5, 60, 60)
    row = lambda p: p.reshape(1, -1).astype(jnp.float32)

    args = (frames, fsinc,
            row(params["n1_w"]), row(params["n1_b"]),
            w2, row(params["b2"]), row(params["n2_w"]), row(params["n2_b"]),
            w3, row(params["b3"]), row(params["n3_w"]), row(params["n3_b"]))

    def const_spec(a):
        nd = a.ndim
        return pl.BlockSpec(a.shape, lambda b, t, nd=nd: (0,) * nd)

    in_specs = [pl.BlockSpec((1, 1, POOL, PPT, KP), lambda b, t: (b, t, 0, 0, 0))]
    in_specs += [const_spec(a) for a in args[1:]]
    out_spec = pl.BlockSpec((1, P3pad, C2), lambda b, t: (b, 0, 0))

    out = pl.pallas_call(
        functools.partial(_sincnet_kernel, (P1, P2, P3, NC2, NC3)),
        out_shape=jax.ShapeDtypeStruct((B, P3pad, C2), jnp.float32),
        grid_spec=pltpu.PrefetchScalarGridSpec(
            num_scalar_prefetch=0,
            grid=(B, NT),
            in_specs=in_specs,
            out_specs=out_spec,
            scratch_shapes=[
                pltpu.VMEM((H1ROWS, C1), jnp.float32),   # pooled stage-1 activations
                pltpu.VMEM((H2ROWS, C2), jnp.float32),   # pooled stage-2 activations
                pltpu.VMEM((TC + 8, C1), jnp.float32),   # normalized conv-2 input chunk
                pltpu.VMEM((TC + 8, C2), jnp.float32),   # normalized conv-3 input chunk
                pltpu.VMEM((TC, C2), jnp.float32),       # conv-2/3 chunk output (pooling)
                pltpu.VMEM((1, C1), jnp.float32),        # stage-1 sum
                pltpu.VMEM((1, C1), jnp.float32),        # stage-1 sum of squares
                pltpu.VMEM((1, C2), jnp.float32),        # stage-2 sum
                pltpu.VMEM((1, C2), jnp.float32),        # stage-2 sum of squares
                pltpu.VMEM((1, C2), jnp.float32),        # stage-3 sum
                pltpu.VMEM((1, C2), jnp.float32),        # stage-3 sum of squares
            ]),
        compiler_params=pltpu.CompilerParams(
            dimension_semantics=("parallel", "arbitrary"),
            vmem_limit_bytes=64 * 1024 * 1024),
    )(*args)

    return jnp.transpose(out[:, :P3, :], (0, 2, 1))   # (B, 60, P3), PyTorch NCW


# ----------------------------------------------------------------------------
# Pure-JAX reference (for correctness check only)
# ----------------------------------------------------------------------------
def sincnet_ref(waveforms, params):
    def inorm(x, w, b):                             # x: (B, C, L)
        m = jnp.mean(x, axis=-1, keepdims=True)
        v = jnp.mean((x - m) ** 2, axis=-1, keepdims=True)
        return (x - m) / jnp.sqrt(v + EPS) * w[None, :, None] + b[None, :, None]

    def conv1d(x, w, bias=None):                    # x: (B, Ci, L), w: (Co, Ci, K)
        K = w.shape[-1]
        Lo = x.shape[-1] - K + 1
        patches = jnp.stack([x[..., k:k + Lo] for k in range(K)], axis=-1)
        out = jnp.einsum("bclk,ock->bol", patches, w)
        if bias is not None:
            out = out + bias[None, :, None]
        return out

    def pool3(x):
        Bc, Cc, L = x.shape
        P = (L - POOL) // POOL + 1
        return jnp.max(x[..., :P * POOL].reshape(Bc, Cc, P, POOL), axis=-1)

    lrelu = lambda v: jnp.where(v >= 0, v, SLOPE * v)

    x = inorm(waveforms, params["wav_w"], params["wav_b"])
    x = jnp.abs(conv1d(x, params["sinc_filters"][:, None, :]))
    x = lrelu(inorm(pool3(x), params["n1_w"], params["n1_b"]))
    x = conv1d(x, params["w2"], params["b2"])
    x = lrelu(inorm(pool3(x), params["n2_w"], params["n2_b"]))
    x = conv1d(x, params["w3"], params["b3"])
    x = lrelu(inorm(pool3(x), params["n3_w"], params["n3_b"]))
    return x


if __name__ == "__main__":
    key = jax.random.PRNGKey(0)
    kx, kp = jax.random.split(key)

    B, T = 2, 400                                   # 400 samples -> 3 output frames
    waveforms = jax.random.normal(kx, (B, 1, T), jnp.float32)
    params = init_params(kp)

    out = jax.jit(sincnet_forward)(waveforms, params)
    out = jax.block_until_ready(out)

    ref = sincnet_ref(waveforms, params)
    np.testing.assert_allclose(np.asarray(out), np.asarray(ref), rtol=2e-3, atol=2e-3)
    assert out.shape == (B, C2, 3)
    print("KERNEL_OK")
</pallas_src>

<mosaic_0001>
module attributes {stable_mosaic.version = 11 : i64} {
  func.func @_sincnet_kernel(%arg0: i32, %arg1: i32, %arg2: memref<1x1x3x512x256xf32, #tpu.memory_space<vmem>>, %arg3: memref<256x80xf32, #tpu.memory_space<vmem>>, %arg4: memref<1x80xf32, #tpu.memory_space<vmem>>, %arg5: memref<1x80xf32, #tpu.memory_space<vmem>>, %arg6: memref<5x80x60xf32, #tpu.memory_space<vmem>>, %arg7: memref<1x60xf32, #tpu.memory_space<vmem>>, %arg8: memref<1x60xf32, #tpu.memory_space<vmem>>, %arg9: memref<1x60xf32, #tpu.memory_space<vmem>>, %arg10: memref<5x60x60xf32, #tpu.memory_space<vmem>>, %arg11: memref<1x60xf32, #tpu.memory_space<vmem>>, %arg12: memref<1x60xf32, #tpu.memory_space<vmem>>, %arg13: memref<1x60xf32, #tpu.memory_space<vmem>>, %arg14: memref<1x128x60xf32, #tpu.memory_space<vmem>>, %arg15: memref<512x80xf32, #tpu.memory_space<vmem>>, %arg16: memref<392x60xf32, #tpu.memory_space<vmem>>, %arg17: memref<392x80xf32, #tpu.memory_space<vmem>>, %arg18: memref<392x60xf32, #tpu.memory_space<vmem>>, %arg19: memref<384x60xf32, #tpu.memory_space<vmem>>, %arg20: memref<1x80xf32, #tpu.memory_space<vmem>>, %arg21: memref<1x80xf32, #tpu.memory_space<vmem>>, %arg22: memref<1x60xf32, #tpu.memory_space<vmem>>, %arg23: memref<1x60xf32, #tpu.memory_space<vmem>>, %arg24: memref<1x60xf32, #tpu.memory_space<vmem>>, %arg25: memref<1x60xf32, #tpu.memory_space<vmem>>) attributes {dimension_semantics = [#tpu.dimension_semantics<parallel>, #tpu.dimension_semantics<arbitrary>], iteration_bounds = array<i64: 2, 1>, scalar_prefetch = 0 : i64, scratch_operands = 11 : i64, tpu.core_type = #tpu.core_type<tc>, window_params = [{transform_indices = @transform_0, window_bounds = array<i64: 1, 1, 3, 512, 256>}, {pipeline_mode = #tpu.pipeline_mode<synchronous>, transform_indices = @transform_1, window_bounds = array<i64: 256, 80>}, {pipeline_mode = #tpu.pipeline_mode<synchronous>, transform_indices = @transform_2, window_bounds = array<i64: 1, 80>}, {pipeline_mode = #tpu.pipeline_mode<synchronous>, transform_indices = @transform_3, window_bounds = array<i64: 1, 80>}, {pipeline_mode = #tpu.pipeline_mode<synchronous>, transform_indices = @transform_4, window_bounds = array<i64: 5, 80, 60>}, {pipeline_mode = #tpu.pipeline_mode<synchronous>, transform_indices = @transform_5, window_bounds = array<i64: 1, 60>}, {pipeline_mode = #tpu.pipeline_mode<synchronous>, transform_indices = @transform_6, window_bounds = array<i64: 1, 60>}, {pipeline_mode = #tpu.pipeline_mode<synchronous>, transform_indices = @transform_7, window_bounds = array<i64: 1, 60>}, {pipeline_mode = #tpu.pipeline_mode<synchronous>, transform_indices = @transform_8, window_bounds = array<i64: 5, 60, 60>}, {pipeline_mode = #tpu.pipeline_mode<synchronous>, transform_indices = @transform_9, window_bounds = array<i64: 1, 60>}, {pipeline_mode = #tpu.pipeline_mode<synchronous>, transform_indices = @transform_10, window_bounds = array<i64: 1, 60>}, {pipeline_mode = #tpu.pipeline_mode<synchronous>, transform_indices = @transform_11, window_bounds = array<i64: 1, 60>}, {transform_indices = @transform_12, window_bounds = array<i64: 1, 128, 60>}]} {
    %c0_i32 = arith.constant 0 : i32
    %0 = arith.cmpi eq, %arg1, %c0_i32 : i32
    %1 = arith.extui %0 : i1 to i32
    %c0_i32_0 = arith.constant 0 : i32
    %2 = arith.cmpi ne, %1, %c0_i32_0 : i32
    scf.if %2 {
      %cst_31 = arith.constant 0.000000e+00 : f32
      %45 = vector.broadcast %cst_31 : f32 to vector<1x80xf32>
      %c0_32 = arith.constant 0 : index
      %c0_33 = arith.constant 0 : index
      %46 = vector.load %arg20[%c0_32, %c0_33] : memref<1x80xf32, #tpu.memory_space<vmem>>, vector<1x80xf32>
      tpu.vector_store %arg20[%c0_32, %c0_33], %45 {strides = array<i32>} : memref<1x80xf32, #tpu.memory_space<vmem>>, vector<1x80xf32>,
      %cst_34 = arith.constant 0.000000e+00 : f32
      %47 = vector.broadcast %cst_34 : f32 to vector<1x80xf32>
      %c0_35 = arith.constant 0 : index
      %c0_36 = arith.constant 0 : index
      %48 = vector.load %arg21[%c0_35, %c0_36] : memref<1x80xf32, #tpu.memory_space<vmem>>, vector<1x80xf32>
      tpu.vector_store %arg21[%c0_35, %c0_36], %47 {strides = array<i32>} : memref<1x80xf32, #tpu.memory_space<vmem>>, vector<1x80xf32>,
      %cst_37 = arith.constant 0.000000e+00 : f32
      %49 = vector.broadcast %cst_37 : f32 to vector<1x60xf32>
      %c0_38 = arith.constant 0 : index
      %c0_39 = arith.constant 0 : index
      %50 = vector.load %arg22[%c0_38, %c0_39] : memref<1x60xf32, #tpu.memory_space<vmem>>, vector<1x60xf32>
      tpu.vector_store %arg22[%c0_38, %c0_39], %49 {strides = array<i32>} : memref<1x60xf32, #tpu.memory_space<vmem>>, vector<1x60xf32>,
      %cst_40 = arith.constant 0.000000e+00 : f32
      %51 = vector.broadcast %cst_40 : f32 to vector<1x60xf32>
      %c0_41 = arith.constant 0 : index
      %c0_42 = arith.constant 0 : index
      %52 = vector.load %arg23[%c0_41, %c0_42] : memref<1x60xf32, #tpu.memory_space<vmem>>, vector<1x60xf32>
      tpu.vector_store %arg23[%c0_41, %c0_42], %51 {strides = array<i32>} : memref<1x60xf32, #tpu.memory_space<vmem>>, vector<1x60xf32>,
      %cst_43 = arith.constant 0.000000e+00 : f32
      %53 = vector.broadcast %cst_43 : f32 to vector<1x60xf32>
      %c0_44 = arith.constant 0 : index
      %c0_45 = arith.constant 0 : index
      %54 = vector.load %arg24[%c0_44, %c0_45] : memref<1x60xf32, #tpu.memory_space<vmem>>, vector<1x60xf32>
      tpu.vector_store %arg24[%c0_44, %c0_45], %53 {strides = array<i32>} : memref<1x60xf32, #tpu.memory_space<vmem>>, vector<1x60xf32>,
      %cst_46 = arith.constant 0.000000e+00 : f32
      %55 = vector.broadcast %cst_46 : f32 to vector<1x60xf32>
      %c0_47 = arith.constant 0 : index
      %c0_48 = arith.constant 0 : index
      %56 = vector.load %arg25[%c0_47, %c0_48] : memref<1x60xf32, #tpu.memory_space<vmem>>, vector<1x60xf32>
      tpu.vector_store %arg25[%c0_47, %c0_48], %55 {strides = array<i32>} : memref<1x60xf32, #tpu.memory_space<vmem>>, vector<1x60xf32>,
    } else {
    }
    %c0 = arith.constant 0 : index
    %c0_1 = arith.constant 0 : index
    %3 = vector.load %arg3[%c0, %c0_1] : memref<256x80xf32, #tpu.memory_space<vmem>>, vector<256x80xf32>
    %c0_2 = arith.constant 0 : index
    %c0_3 = arith.constant 0 : index
    %c0_4 = arith.constant 0 : index
    %c0_5 = arith.constant 0 : index
    %c0_6 = arith.constant 0 : index
    %4 = vector.load %arg2[%c0_2, %c0_3, %c0_4, %c0_5, %c0_6] : memref<1x1x3x512x256xf32, #tpu.memory_space<vmem>>, vector<1x1x1x512x256xf32>
    %5 = vector.shape_cast %4 : vector<1x1x1x512x256xf32> to vector<512x256xf32>
    %cst = arith.constant dense<0.000000e+00> : vector<512x80xf32>
    %6 = tpu.matmul %5, %3, %cst {dimension_numbers = #tpu.dot_dimension_numbers<[1], [0], [0], [1], [0, 0, 1, 1], [], []>} : vector<512x256xf32>, vector<256x80xf32>, vector<512x80xf32> -> vector<512x80xf32>
    %7 = math.absf %6 : vector<512x80xf32>
    %c0_7 = arith.constant 0 : index
    %c0_8 = arith.constant 0 : index
    %c1 = arith.constant 1 : index
    %c0_9 = arith.constant 0 : index
    %c0_10 = arith.constant 0 : index
    %8 = vector.load %arg2[%c0_7, %c0_8, %c1, %c0_9, %c0_10] : memref<1x1x3x512x256xf32, #tpu.memory_space<vmem>>, vector<1x1x1x512x256xf32>
    %9 = vector.shape_cast %8 : vector<1x1x1x512x256xf32> to vector<512x256xf32>
    %cst_11 = arith.constant dense<0.000000e+00> : vector<512x80xf32>
    %10 = tpu.matmul %9, %3, %cst_11 {dimension_numbers = #tpu.dot_dimension_numbers<[1], [0], [0], [1], [0, 0, 1, 1], [], []>} : vector<512x256xf32>, vector<256x80xf32>, vector<512x80xf32> -> vector<512x80xf32>
    %11 = math.absf %10 : vector<512x80xf32>
    %12 = arith.maximumf %7, %11 : vector<512x80xf32>
    %c0_12 = arith.constant 0 : index
    %c0_13 = arith.constant 0 : index
    %c2 = arith.constant 2 : index
    %c0_14 = arith.constant 0 : index
    %c0_15 = arith.constant 0 : index
    %13 = vector.load %arg2[%c0_12, %c0_13, %c2, %c0_14, %c0_15] : memref<1x1x3x512x256xf32, #tpu.memory_space<vmem>>, vector<1x1x1x512x256xf32>
    %14 = vector.shape_cast %13 : vector<1x1x1x512x256xf32> to vector<512x256xf32>
    %cst_16 = arith.constant dense<0.000000e+00> : vector<512x80xf32>
    %15 = tpu.matmul %14, %3, %cst_16 {dimension_numbers = #tpu.dot_dimension_numbers<[1], [0], [0], [1], [0, 0, 1, 1], [], []>} : vector<512x256xf32>, vector<256x80xf32>, vector<512x80xf32> -> vector<512x80xf32>
    %16 = math.absf %15 : vector<512x80xf32>
    %17 = arith.maximumf %12, %16 : vector<512x80xf32>
    %c512_i32 = arith.constant 512 : i32
    %18 = arith.muli %arg1, %c512_i32 : i32
    %19 = tpu.assume_multiple %18, 8 : i32
    %20 = arith.index_cast %19 : i32 to index
    %c0_17 = arith.constant 0 : index
    %21 = vector.load %arg15[%20, %c0_17] : memref<512x80xf32, #tpu.memory_space<vmem>>, vector<512x80xf32>
    tpu.vector_store %arg15[%20, %c0_17], %17 {strides = array<i32>} : memref<512x80xf32, #tpu.memory_space<vmem>>, vector<512x80xf32>,
    %22 = tpu.iota {dimensions = array<i32: 0>} : vector<512x1xi32>
    %23 = vector.broadcast %19 : i32 to vector<512x1xi32>
    %24 = arith.addi %23, %22 : vector<512x1xi32>
    %c50_i32 = arith.constant 50 : i32
    %25 = vector.broadcast %c50_i32 : i32 to vector<512x1xi32>
    %26 = arith.cmpi slt, %24, %25 : vector<512x1xi32>
    %cst_18 = arith.constant 0.000000e+00 : f32
    %27 = vector.shape_cast %26 : vector<512x1xi1> to vector<512x1xi1>
    %28 = vector.broadcast %27 : vector<512x1xi1> to vector<512x80xi1>
    %29 = vector.broadcast %cst_18 : f32 to vector<512x80xf32>
    %30 = arith.select %28, %17, %29 : vector<512x80xi1>, vector<512x80xf32>
    %c0_19 = arith.constant 0 : index
    %c0_20 = arith.constant 0 : index
    %31 = vector.load %arg20[%c0_19, %c0_20] : memref<1x80xf32, #tpu.memory_space<vmem>>, vector<1x80xf32>
    %cst_21 = arith.constant dense<0.000000e+00> : vector<80xf32>
    %32 = vector.multi_reduction <add>, %30, %cst_21 [0] : vector<512x80xf32> to vector<80xf32>
    %33 = vector.shape_cast %32 : vector<80xf32> to vector<1x80xf32>
    %34 = arith.addf %31, %33 : vector<1x80xf32>
    %c0_22 = arith.constant 0 : index
    %c0_23 = arith.constant 0 : index
    %35 = vector.load %arg20[%c0_22, %c0_23] : memref<1x80xf32, #tpu.memory_space<vmem>>, vector<1x80xf32>
    tpu.vector_store %arg20[%c0_22, %c0_23], %34 {strides = array<i32>} : memref<1x80xf32, #tpu.memory_space<vmem>>, vector<1x80xf32>,
    %c0_24 = arith.constant 0 : index
    %c0_25 = arith.constant 0 : index
    %36 = vector.load %arg21[%c0_24, %c0_25] : memref<1x80xf32, #tpu.memory_space<vmem>>, vector<1x80xf32>
    %37 = arith.mulf %30, %30 : vector<512x80xf32>
    %cst_26 = arith.constant dense<0.000000e+00> : vector<80xf32>
    %38 = vector.multi_reduction <add>, %37, %cst_26 [0] : vector<512x80xf32> to vector<80xf32>
    %39 = vector.shape_cast %38 : vector<80xf32> to vector<1x80xf32>
    %40 = arith.addf %36, %39 : vector<1x80xf32>
    %c0_27 = arith.constant 0 : index
    %c0_28 = arith.constant 0 : index
    %41 = vector.load %arg21[%c0_27, %c0_28] : memref<1x80xf32, #tpu.memory_space<vmem>>, vector<1x80xf32>
    tpu.vector_store %arg21[%c0_27, %c0_28], %40 {strides = array<i32>} : memref<1x80xf32, #tpu.memory_space<vmem>>, vector<1x80xf32>,
    %c0_i32_29 = arith.constant 0 : i32
    %42 = arith.cmpi eq, %arg1, %c0_i32_29 : i32
    %43 = arith.extui %42 : i1 to i32
    %c0_i32_30 = arith.constant 0 : i32
    %44 = arith.cmpi ne, %43, %c0_i32_30 : i32
    scf.if %44 {
      %c0_31 = arith.constant 0 : index
      %c0_32 = arith.constant 0 : index
      %45 = vector.load %arg20[%c0_31, %c0_32] : memref<1x80xf32, #tpu.memory_space<vmem>>, vector<1x80xf32>
      %cst_33 = arith.constant 5.000000e+01 : f32
      %46 = vector.broadcast %cst_33 : f32 to vector<1x80xf32>
      %47 = arith.divf %45, %46 : vector<1x80xf32>
      %c0_34 = arith.constant 0 : index
      %c0_35 = arith.constant 0 : index
      %48 = vector.load %arg21[%c0_34, %c0_35] : memref<1x80xf32, #tpu.memory_space<vmem>>, vector<1x80xf32>
      %cst_36 = arith.constant 5.000000e+01 : f32
      %49 = vector.broadcast %cst_36 : f32 to vector<1x80xf32>
      %50 = arith.divf %48, %49 : vector<1x80xf32>
      %51 = arith.mulf %47, %47 : vector<1x80xf32>
      %52 = arith.subf %50, %51 : vector<1x80xf32>
      %cst_37 = arith.constant 0.000000e+00 : f32
      %53 = vector.broadcast %cst_37 : f32 to vector<1x80xf32>
      %54 = arith.maximumf %52, %53 : vector<1x80xf32>
      %cst_38 = arith.constant 9.99999974E-6 : f32
      %55 = vector.broadcast %cst_38 : f32 to vector<1x80xf32>
      %56 = arith.addf %54, %55 : vector<1x80xf32>
      %57 = math.rsqrt %56 : vector<1x80xf32>
      %c0_39 = arith.constant 0 : index
      %c0_40 = arith.constant 0 : index
      %58 = vector.load %arg4[%c0_39, %c0_40] : memref<1x80xf32, #tpu.memory_space<vmem>>, vector<1x80xf32>
      %59 = arith.mulf %57, %58 : vector<1x80xf32>
      %c0_41 = arith.constant 0 : index
      %c0_42 = arith.constant 0 : index
      %60 = vector.load %arg5[%c0_41, %c0_42] : memref<1x80xf32, #tpu.memory_space<vmem>>, vector<1x80xf32>
      %61 = arith.mulf %47, %59 : vector<1x80xf32>
      %62 = arith.subf %60, %61 : vector<1x80xf32>
      %c0_i32_43 = arith.constant 0 : i32
      %c384_i32 = arith.constant 384 : i32
      %63 = arith.muli %c0_i32_43, %c384_i32 : i32
      %64 = tpu.assume_multiple %63, 8 : i32
      %65 = arith.index_cast %64 : i32 to index
      %c0_44 = arith.constant 0 : index
      %66 = vector.load %arg15[%65, %c0_44] : memref<512x80xf32, #tpu.memory_space<vmem>>, vector<392x80xf32>
      %67 = vector.broadcast %59 : vector<1x80xf32> to vector<392x80xf32>
      %68 = arith.mulf %66, %67 : vector<392x80xf32>
      %69 = vector.broadcast %62 : vector<1x80xf32> to vector<392x80xf32>
      %70 = arith.addf %68, %69 : vector<392x80xf32>
      %cst_45 = arith.constant 0.000000e+00 : f32
      %71 = vector.broadcast %cst_45 : f32 to vector<392x80xf32>
      %72 = arith.cmpf oge, %70, %71 : vector<392x80xf32>
      %cst_46 = arith.constant 0.00999999977 : f32
      %73 = vector.broadcast %cst_46 : f32 to vector<392x80xf32>
      %74 = arith.mulf %73, %70 : vector<392x80xf32>
      %75 = arith.select %72, %70, %74 : vector<392x80xi1>, vector<392x80xf32>
      %c0_47 = arith.constant 0 : index
      %c0_48 = arith.constant 0 : index
      %76 = vector.load %arg17[%c0_47, %c0_48] : memref<392x80xf32, #tpu.memory_space<vmem>>, vector<392x80xf32>
      tpu.vector_store %arg17[%c0_47, %c0_48], %75 {strides = array<i32>} : memref<392x80xf32, #tpu.memory_space<vmem>>, vector<392x80xf32>,
      %cst_49 = arith.constant 0.000000e+00 : f32
      %77 = vector.broadcast %cst_49 : f32 to vector<384x60xf32>
      %c0_50 = arith.constant 0 : index
      %c0_51 = arith.constant 0 : index
      %78 = vector.load %arg7[%c0_50, %c0_51] : memref<1x60xf32, #tpu.memory_space<vmem>>, vector<1x60xf32>
      %79 = vector.broadcast %78 : vector<1x60xf32> to vector<384x60xf32>
      %80 = arith.addf %77, %79 : vector<384x60xf32>
      %c0_52 = arith.constant 0 : index
      %c0_53 = arith.constant 0 : index
      %81 = vector.load %arg17[%c0_52, %c0_53] : memref<392x80xf32, #tpu.memory_space<vmem>>, vector<384x80xf32>
      %c0_54 = arith.constant 0 : index
      %c0_55 = arith.constant 0 : index
      %c0_56 = arith.constant 0 : index
      %82 = vector.load %arg6[%c0_54, %c0_55, %c0_56] : memref<5x80x60xf32, #tpu.memory_space<vmem>>, vector<1x80x60xf32>
      %83 = vector.shape_cast %82 : vector<1x80x60xf32> to vector<80x60xf32>
      %cst_57 = arith.constant dense<0.000000e+00> : vector<384x60xf32>
      %84 = tpu.matmul %81, %83, %cst_57 {dimension_numbers = #tpu.dot_dimension_numbers<[1], [0], [0], [1], [0, 0, 1, 1], [], []>} : vector<384x80xf32>, vector<80x60xf32>, vector<384x60xf32> -> vector<384x60xf32>
      %85 = arith.addf %80, %84 : vector<384x60xf32>
      %c1_58 = arith.constant 1 : index
      %c0_59 = arith.constant 0 : index
      %86 = vector.load %arg17[%c1_58, %c0_59] : memref<392x80xf32, #tpu.memory_space<vmem>>, vector<384x80xf32>
      %c1_60 = arith.constant 1 : index
      %c0_61 = arith.constant 0 : index
      %c0_62 = arith.constant 0 : index
      %87 = vector.load %arg6[%c1_60, %c0_61, %c0_62] : memref<5x80x60xf32, #tpu.memory_space<vmem>>, vector<1x80x60xf32>
      %88 = vector.shape_cast %87 : vector<1x80x60xf32> to vector<80x60xf32>
      %cst_63 = arith.constant dense<0.000000e+00> : vector<384x60xf32>
      %89 = tpu.matmul %86, %88, %cst_63 {dimension_numbers = #tpu.dot_dimension_numbers<[1], [0], [0], [1], [0, 0, 1, 1], [], []>} : vector<384x80xf32>, vector<80x60xf32>, vector<384x60xf32> -> vector<384x60xf32>
      %90 = arith.addf %85, %89 : vector<384x60xf32>
      %c2_64 = arith.constant 2 : index
      %c0_65 = arith.constant 0 : index
      %91 = vector.load %arg17[%c2_64, %c0_65] : memref<392x80xf32, #tpu.memory_space<vmem>>, vector<384x80xf32>
      %c2_66 = arith.constant 2 : index
      %c0_67 = arith.constant 0 : index
      %c0_68 = arith.constant 0 : index
      %92 = vector.load %arg6[%c2_66, %c0_67, %c0_68] : memref<5x80x60xf32, #tpu.memory_space<vmem>>, vector<1x80x60xf32>
      %93 = vector.shape_cast %92 : vector<1x80x60xf32> to vector<80x60xf32>
      %cst_69 = arith.constant dense<0.000000e+00> : vector<384x60xf32>
      %94 = tpu.matmul %91, %93, %cst_69 {dimension_numbers = #tpu.dot_dimension_numbers<[1], [0], [0], [1], [0, 0, 1, 1], [], []>} : vector<384x80xf32>, vector<80x60xf32>, vector<384x60xf32> -> vector<384x60xf32>
      %95 = arith.addf %90, %94 : vector<384x60xf32>
      %c3 = arith.constant 3 : index
      %c0_70 = arith.constant 0 : index
      %96 = vector.load %arg17[%c3, %c0_70] : memref<392x80xf32, #tpu.memory_space<vmem>>, vector<384x80xf32>
      %c3_71 = arith.constant 3 : index
      %c0_72 = arith.constant 0 : index
      %c0_73 = arith.constant 0 : index
      %97 = vector.load %arg6[%c3_71, %c0_72, %c0_73] : memref<5x80x60xf32, #tpu.memory_space<vmem>>, vector<1x80x60xf32>
      %98 = vector.shape_cast %97 : vector<1x80x60xf32> to vector<80x60xf32>
      %cst_74 = arith.constant dense<0.000000e+00> : vector<384x60xf32>
      %99 = tpu.matmul %96, %98, %cst_74 {dimension_numbers = #tpu.dot_dimension_numbers<[1], [0], [0], [1], [0, 0, 1, 1], [], []>} : vector<384x80xf32>, vector<80x60xf32>, vector<384x60xf32> -> vector<384x60xf32>
      %100 = arith.addf %95, %99 : vector<384x60xf32>
      %c4 = arith.constant 4 : index
      %c0_75 = arith.constant 0 : index
      %101 = vector.load %arg17[%c4, %c0_75] : memref<392x80xf32, #tpu.memory_space<vmem>>, vector<384x80xf32>
      %c4_76 = arith.constant 4 : index
      %c0_77 = arith.constant 0 : index
      %c0_78 = arith.constant 0 : index
      %102 = vector.load %arg6[%c4_76, %c0_77, %c0_78] : memref<5x80x60xf32, #tpu.memory_space<vmem>>, vector<1x80x60xf32>
      %103 = vector.shape_cast %102 : vector<1x80x60xf32> to vector<80x60xf32>
      %cst_79 = arith.constant dense<0.000000e+00> : vector<384x60xf32>
      %104 = tpu.matmul %101, %103, %cst_79 {dimension_numbers = #tpu.dot_dimension_numbers<[1], [0], [0], [1], [0, 0, 1, 1], [], []>} : vector<384x80xf32>, vector<80x60xf32>, vector<384x60xf32> -> vector<384x60xf32>
      %105 = arith.addf %100, %104 : vector<384x60xf32>
      %c0_80 = arith.constant 0 : index
      %c0_81 = arith.constant 0 : index
      %106 = vector.load %arg19[%c0_80, %c0_81] : memref<384x60xf32, #tpu.memory_space<vmem>>, vector<384x60xf32>
      tpu.vector_store %arg19[%c0_80, %c0_81], %105 {strides = array<i32>} : memref<384x60xf32, #tpu.memory_space<vmem>>, vector<384x60xf32>,
      %c0_82 = arith.constant 0 : index
      %c0_83 = arith.constant 0 : index
      %107 = tpu.strided_load %arg19[%c0_82, %c0_83] {strides = array<i32: 3, 1>} : memref<384x60xf32, #tpu.memory_space<vmem>>, vector<128x60xf32>
      %c1_84 = arith.constant 1 : index
      %c0_85 = arith.constant 0 : index
      %108 = tpu.strided_load %arg19[%c1_84, %c0_85] {strides = array<i32: 3, 1>} : memref<384x60xf32, #tpu.memory_space<vmem>>, vector<128x60xf32>
      %109 = arith.maximumf %107, %108 : vector<128x60xf32>
      %c2_86 = arith.constant 2 : index
      %c0_87 = arith.constant 0 : index
      %110 = tpu.strided_load %arg19[%c2_86, %c0_87] {strides = array<i32: 3, 1>} : memref<384x60xf32, #tpu.memory_space<vmem>>, vector<128x60xf32>
      %111 = arith.maximumf %109, %110 : vector<128x60xf32>
      %c128_i32 = arith.constant 128 : i32
      %112 = arith.muli %c0_i32_43, %c128_i32 : i32
      %113 = tpu.assume_multiple %112, 8 : i32
      %114 = arith.index_cast %113 : i32 to index
      %c0_88 = arith.constant 0 : index
      %115 = vector.load %arg16[%114, %c0_88] : memref<392x60xf32, #tpu.memory_space<vmem>>, vector<128x60xf32>
      tpu.vector_store %arg16[%114, %c0_88], %111 {strides = array<i32>} : memref<392x60xf32, #tpu.memory_space<vmem>>, vector<128x60xf32>,
      %116 = tpu.iota {dimensions = array<i32: 0>} : vector<128x1xi32>
      %117 = vector.broadcast %113 : i32 to vector<128x1xi32>
      %118 = arith.addi %117, %116 : vector<128x1xi32>
      %c15_i32 = arith.constant 15 : i32
      %119 = vector.broadcast %c15_i32 : i32 to vector<128x1xi32>
      %120 = arith.cmpi slt, %118, %119 : vector<128x1xi32>
      %cst_89 = arith.constant 0.000000e+00 : f32
      %121 = vector.shape_cast %120 : vector<128x1xi1> to vector<128x1xi1>
      %122 = vector.broadcast %121 : vector<128x1xi1> to vector<128x60xi1>
      %123 = vector.broadcast %cst_89 : f32 to vector<128x60xf32>
      %124 = arith.select %122, %111, %123 : vector<128x60xi1>, vector<128x60xf32>
      %c0_90 = arith.constant 0 : index
      %c0_91 = arith.constant 0 : index
      %125 = vector.load %arg22[%c0_90, %c0_91] : memref<1x60xf32, #tpu.memory_space<vmem>>, vector<1x60xf32>
      %cst_92 = arith.constant dense<0.000000e+00> : vector<60xf32>
      %126 = vector.multi_reduction <add>, %124, %cst_92 [0] : vector<128x60xf32> to vector<60xf32>
      %127 = vector.shape_cast %126 : vector<60xf32> to vector<1x60xf32>
      %128 = arith.addf %125, %127 : vector<1x60xf32>
      %c0_93 = arith.constant 0 : index
      %c0_94 = arith.constant 0 : index
      %129 = vector.load %arg22[%c0_93, %c0_94] : memref<1x60xf32, #tpu.memory_space<vmem>>, vector<1x60xf32>
      tpu.vector_store %arg22[%c0_93, %c0_94], %128 {strides = array<i32>} : memref<1x60xf32, #tpu.memory_space<vmem>>, vector<1x60xf32>,
      %c0_95 = arith.constant 0 : index
      %c0_96 = arith.constant 0 : index
      %130 = vector.load %arg23[%c0_95, %c0_96] : memref<1x60xf32, #tpu.memory_space<vmem>>, vector<1x60xf32>
      %131 = arith.mulf %124, %124 : vector<128x60xf32>
      %cst_97 = arith.constant dense<0.000000e+00> : vector<60xf32>
      %132 = vector.multi_reduction <add>, %131, %cst_97 [0] : vector<128x60xf32> to vector<60xf32>
      %133 = vector.shape_cast %132 : vector<60xf32> to vector<1x60xf32>
      %134 = arith.addf %130, %133 : vector<1x60xf32>
      %c0_98 = arith.constant 0 : index
      %c0_99 = arith.constant 0 : index
      %135 = vector.load %arg23[%c0_98, %c0_99] : memref<1x60xf32, #tpu.memory_space<vmem>>, vector<1x60xf32>
      tpu.vector_store %arg23[%c0_98, %c0_99], %134 {strides = array<i32>} : memref<1x60xf32, #tpu.memory_space<vmem>>, vector<1x60xf32>,
      %c1_i32 = arith.constant 1 : i32
      %c0_100 = arith.constant 0 : index
      %c0_101 = arith.constant 0 : index
      %136 = vector.load %arg22[%c0_100, %c0_101] : memref<1x60xf32, #tpu.memory_space<vmem>>, vector<1x60xf32>
      %cst_102 = arith.constant 1.500000e+01 : f32
      %137 = vector.broadcast %cst_102 : f32 to vector<1x60xf32>
      %138 = arith.divf %136, %137 : vector<1x60xf32>
      %c0_103 = arith.constant 0 : index
      %c0_104 = arith.constant 0 : index
      %139 = vector.load %arg23[%c0_103, %c0_104] : memref<1x60xf32, #tpu.memory_space<vmem>>, vector<1x60xf32>
      %cst_105 = arith.constant 1.500000e+01 : f32
      %140 = vector.broadcast %cst_105 : f32 to vector<1x60xf32>
      %141 = arith.divf %139, %140 : vector<1x60xf32>
      %142 = arith.mulf %138, %138 : vector<1x60xf32>
      %143 = arith.subf %141, %142 : vector<1x60xf32>
      %cst_106 = arith.constant 0.000000e+00 : f32
      %144 = vector.broadcast %cst_106 : f32 to vector<1x60xf32>
      %145 = arith.maximumf %143, %144 : vector<1x60xf32>
      %cst_107 = arith.constant 9.99999974E-6 : f32
      %146 = vector.broadcast %cst_107 : f32 to vector<1x60xf32>
      %147 = arith.addf %145, %146 : vector<1x60xf32>
      %148 = math.rsqrt %147 : vector<1x60xf32>
      %c0_108 = arith.constant 0 : index
      %c0_109 = arith.constant 0 : index
      %149 = vector.load %arg8[%c0_108, %c0_109] : memref<1x60xf32, #tpu.memory_space<vmem>>, vector<1x60xf32>
      %150 = arith.mulf %148, %149 : vector<1x60xf32>
      %c0_110 = arith.constant 0 : index
      %c0_111 = arith.constant 0 : index
      %151 = vector.load %arg9[%c0_110, %c0_111] : memref<1x60xf32, #tpu.memory_space<vmem>>, vector<1x60xf32>
      %152 = arith.mulf %138, %150 : vector<1x60xf32>
      %153 = arith.subf %151, %152 : vector<1x60xf32>
      %c0_i32_112 = arith.constant 0 : i32
      %c384_i32_113 = arith.constant 384 : i32
      %154 = arith.muli %c0_i32_112, %c384_i32_113 : i32
      %155 = tpu.assume_multiple %154, 8 : i32
      %156 = arith.index_cast %155 : i32 to index
      %c0_114 = arith.constant 0 : index
      %157 = vector.load %arg16[%156, %c0_114] : memref<392x60xf32, #tpu.memory_space<vmem>>, vector<392x60xf32>
      %158 = vector.broadcast %150 : vector<1x60xf32> to vector<392x60xf32>
      %159 = arith.mulf %157, %158 : vector<392x60xf32>
      %160 = vector.broadcast %153 : vector<1x60xf32> to vector<392x60xf32>
      %161 = arith.addf %159, %160 : vector<392x60xf32>
      %cst_115 = arith.constant 0.000000e+00 : f32
      %162 = vector.broadcast %cst_115 : f32 to vector<392x60xf32>
      %163 = arith.cmpf oge, %161, %162 : vector<392x60xf32>
      %cst_116 = arith.constant 0.00999999977 : f32
      %164 = vector.broadcast %cst_116 : f32 to vector<392x60xf32>
      %165 = arith.mulf %164, %161 : vector<392x60xf32>
      %166 = arith.select %163, %161, %165 : vector<392x60xi1>, vector<392x60xf32>
      %c0_117 = arith.constant 0 : index
      %c0_118 = arith.constant 0 : index
      %167 = vector.load %arg18[%c0_117, %c0_118] : memref<392x60xf32, #tpu.memory_space<vmem>>, vector<392x60xf32>
      tpu.vector_store %arg18[%c0_117, %c0_118], %166 {strides = array<i32>} : memref<392x60xf32, #tpu.memory_space<vmem>>, vector<392x60xf32>,
      %cst_119 = arith.constant 0.000000e+00 : f32
      %168 = vector.broadcast %cst_119 : f32 to vector<384x60xf32>
      %c0_120 = arith.constant 0 : index
      %c0_121 = arith.constant 0 : index
      %169 = vector.load %arg11[%c0_120, %c0_121] : memref<1x60xf32, #tpu.memory_space<vmem>>, vector<1x60xf32>
      %170 = vector.broadcast %169 : vector<1x60xf32> to vector<384x60xf32>
      %171 = arith.addf %168, %170 : vector<384x60xf32>
      %c0_122 = arith.constant 0 : index
      %c0_123 = arith.constant 0 : index
      %172 = vector.load %arg18[%c0_122, %c0_123] : memref<392x60xf32, #tpu.memory_space<vmem>>, vector<384x60xf32>
      %c0_124 = arith.constant 0 : index
      %c0_125 = arith.constant 0 : index
      %c0_126 = arith.constant 0 : index
      %173 = vector.load %arg10[%c0_124, %c0_125, %c0_126] : memref<5x60x60xf32, #tpu.memory_space<vmem>>, vector<1x60x60xf32>
      %174 = vector.shape_cast %173 : vector<1x60x60xf32> to vector<60x60xf32>
      %cst_127 = arith.constant dense<0.000000e+00> : vector<384x60xf32>
      %175 = tpu.matmul %172, %174, %cst_127 {dimension_numbers = #tpu.dot_dimension_numbers<[1], [0], [0], [1], [0, 0, 1, 1], [], []>} : vector<384x60xf32>, vector<60x60xf32>, vector<384x60xf32> -> vector<384x60xf32>
      %176 = arith.addf %171, %175 : vector<384x60xf32>
      %c1_128 = arith.constant 1 : index
      %c0_129 = arith.constant 0 : index
      %177 = vector.load %arg18[%c1_128, %c0_129] : memref<392x60xf32, #tpu.memory_space<vmem>>, vector<384x60xf32>
      %c1_130 = arith.constant 1 : index
      %c0_131 = arith.constant 0 : index
      %c0_132 = arith.constant 0 : index
      %178 = vector.load %arg10[%c1_130, %c0_131, %c0_132] : memref<5x60x60xf32, #tpu.memory_space<vmem>>, vector<1x60x60xf32>
      %179 = vector.shape_cast %178 : vector<1x60x60xf32> to vector<60x60xf32>
      %cst_133 = arith.constant dense<0.000000e+00> : vector<384x60xf32>
      %180 = tpu.matmul %177, %179, %cst_133 {dimension_numbers = #tpu.dot_dimension_numbers<[1], [0], [0], [1], [0, 0, 1, 1], [], []>} : vector<384x60xf32>, vector<60x60xf32>, vector<384x60xf32> -> vector<384x60xf32>
      %181 = arith.addf %176, %180 : vector<384x60xf32>
      %c2_134 = arith.constant 2 : index
      %c0_135 = arith.constant 0 : index
      %182 = vector.load %arg18[%c2_134, %c0_135] : memref<392x60xf32, #tpu.memory_space<vmem>>, vector<384x60xf32>
      %c2_136 = arith.constant 2 : index
      %c0_137 = arith.constant 0 : index
      %c0_138 = arith.constant 0 : index
      %183 = vector.load %arg10[%c2_136, %c0_137, %c0_138] : memref<5x60x60xf32, #tpu.memory_space<vmem>>, vector<1x60x60xf32>
      %184 = vector.shape_cast %183 : vector<1x60x60xf32> to vector<60x60xf32>
      %cst_139 = arith.constant dense<0.000000e+00> : vector<384x60xf32>
      %185 = tpu.matmul %182, %184, %cst_139 {dimension_numbers = #tpu.dot_dimension_numbers<[1], [0], [0], [1], [0, 0, 1, 1], [], []>} : vector<384x60xf32>, vector<60x60xf32>, vector<384x60xf32> -> vector<384x60xf32>
      %186 = arith.addf %181, %185 : vector<384x60xf32>
      %c3_140 = arith.constant 3 : index
      %c0_141 = arith.constant 0 : index
      %187 = vector.load %arg18[%c3_140, %c0_141] : memref<392x60xf32, #tpu.memory_space<vmem>>, vector<384x60xf32>
      %c3_142 = arith.constant 3 : index
      %c0_143 = arith.constant 0 : index
      %c0_144 = arith.constant 0 : index
      %188 = vector.load %arg10[%c3_142, %c0_143, %c0_144] : memref<5x60x60xf32, #tpu.memory_space<vmem>>, vector<1x60x60xf32>
      %189 = vector.shape_cast %188 : vector<1x60x60xf32> to vector<60x60xf32>
      %cst_145 = arith.constant dense<0.000000e+00> : vector<384x60xf32>
      %190 = tpu.matmul %187, %189, %cst_145 {dimension_numbers = #tpu.dot_dimension_numbers<[1], [0], [0], [1], [0, 0, 1, 1], [], []>} : vector<384x60xf32>, vector<60x60xf32>, vector<384x60xf32> -> vector<384x60xf32>
      %191 = arith.addf %186, %190 : vector<384x60xf32>
      %c4_146 = arith.constant 4 : index
      %c0_147 = arith.constant 0 : index
      %192 = vector.load %arg18[%c4_146, %c0_147] : memref<392x60xf32, #tpu.memory_space<vmem>>, vector<384x60xf32>
      %c4_148 = arith.constant 4 : index
      %c0_149 = arith.constant 0 : index
      %c0_150 = arith.constant 0 : index
      %193 = vector.load %arg10[%c4_148, %c0_149, %c0_150] : memref<5x60x60xf32, #tpu.memory_space<vmem>>, vector<1x60x60xf32>
      %194 = vector.shape_cast %193 : vector<1x60x60xf32> to vector<60x60xf32>
      %cst_151 = arith.constant dense<0.000000e+00> : vector<384x60xf32>
      %195 = tpu.matmul %192, %194, %cst_151 {dimension_numbers = #tpu.dot_dimension_numbers<[1], [0], [0], [1], [0, 0, 1, 1], [], []>} : vector<384x60xf32>, vector<60x60xf32>, vector<384x60xf32> -> vector<384x60xf32>
      %196 = arith.addf %191, %195 : vector<384x60xf32>
      %c0_152 = arith.constant 0 : index
      %c0_153 = arith.constant 0 : index
      %197 = vector.load %arg19[%c0_152, %c0_153] : memref<384x60xf32, #tpu.memory_space<vmem>>, vector<384x60xf32>
      tpu.vector_store %arg19[%c0_152, %c0_153], %196 {strides = array<i32>} : memref<384x60xf32, #tpu.memory_space<vmem>>, vector<384x60xf32>,
      %c0_154 = arith.constant 0 : index
      %c0_155 = arith.constant 0 : index
      %198 = tpu.strided_load %arg19[%c0_154, %c0_155] {strides = array<i32: 3, 1>} : memref<384x60xf32, #tpu.memory_space<vmem>>, vector<128x60xf32>
      %c1_156 = arith.constant 1 : index
      %c0_157 = arith.constant 0 : index
      %199 = tpu.strided_load %arg19[%c1_156, %c0_157] {strides = array<i32: 3, 1>} : memref<384x60xf32, #tpu.memory_space<vmem>>, vector<128x60xf32>
      %200 = arith.maximumf %198, %199 : vector<128x60xf32>
      %c2_158 = arith.constant 2 : index
      %c0_159 = arith.constant 0 : index
      %201 = tpu.strided_load %arg19[%c2_158, %c0_159] {strides = array<i32: 3, 1>} : memref<384x60xf32, #tpu.memory_space<vmem>>, vector<128x60xf32>
      %202 = arith.maximumf %200, %201 : vector<128x60xf32>
      %c128_i32_160 = arith.constant 128 : i32
      %203 = arith.muli %c0_i32_112, %c128_i32_160 : i32
      %204 = tpu.assume_multiple %203, 8 : i32
      %c0_161 = arith.constant 0 : index
      %205 = arith.index_cast %204 : i32 to index
      %c0_162 = arith.constant 0 : index
      %206 = vector.load %arg14[%c0_161, %205, %c0_162] : memref<1x128x60xf32, #tpu.memory_space<vmem>>, vector<1x128x60xf32>
      %207 = vector.shape_cast %206 : vector<1x128x60xf32> to vector<128x60xf32>
      %208 = vector.shape_cast %202 : vector<128x60xf32> to vector<1x128x60xf32>
      tpu.vector_store %arg14[%c0_161, %205, %c0_162], %208 {strides = array<i32>} : memref<1x128x60xf32, #tpu.memory_space<vmem>>, vector<1x128x60xf32>,
      %209 = tpu.iota {dimensions = array<i32: 0>} : vector<128x1xi32>
      %210 = vector.broadcast %204 : i32 to vector<128x1xi32>
      %211 = arith.addi %210, %209 : vector<128x1xi32>
      %c3_i32 = arith.constant 3 : i32
      %212 = vector.broadcast %c3_i32 : i32 to vector<128x1xi32>
      %213 = arith.cmpi slt, %211, %212 : vector<128x1xi32>
      %cst_163 = arith.constant 0.000000e+00 : f32
      %214 = vector.shape_cast %213 : vector<128x1xi1> to vector<128x1xi1>
      %215 = vector.broadcast %214 : vector<128x1xi1> to vector<128x60xi1>
      %216 = vector.broadcast %cst_163 : f32 to vector<128x60xf32>
      %217 = arith.select %215, %202, %216 : vector<128x60xi1>, vector<128x60xf32>
      %c0_164 = arith.constant 0 : index
      %c0_165 = arith.constant 0 : index
      %218 = vector.load %arg24[%c0_164, %c0_165] : memref<1x60xf32, #tpu.memory_space<vmem>>, vector<1x60xf32>
      %cst_166 = arith.constant dense<0.000000e+00> : vector<60xf32>
      %219 = vector.multi_reduction <add>, %217, %cst_166 [0] : vector<128x60xf32> to vector<60xf32>
      %220 = vector.shape_cast %219 : vector<60xf32> to vector<1x60xf32>
      %221 = arith.addf %218, %220 : vector<1x60xf32>
      %c0_167 = arith.constant 0 : index
      %c0_168 = arith.constant 0 : index
      %222 = vector.load %arg24[%c0_167, %c0_168] : memref<1x60xf32, #tpu.memory_space<vmem>>, vector<1x60xf32>
      tpu.vector_store %arg24[%c0_167, %c0_168], %221 {strides = array<i32>} : memref<1x60xf32, #tpu.memory_space<vmem>>, vector<1x60xf32>,
      %c0_169 = arith.constant 0 : index
      %c0_170 = arith.constant 0 : index
      %223 = vector.load %arg25[%c0_169, %c0_170] : memref<1x60xf32, #tpu.memory_space<vmem>>, vector<1x60xf32>
      %224 = arith.mulf %217, %217 : vector<128x60xf32>
      %cst_171 = arith.constant dense<0.000000e+00> : vector<60xf32>
      %225 = vector.multi_reduction <add>, %224, %cst_171 [0] : vector<128x60xf32> to vector<60xf32>
      %226 = vector.shape_cast %225 : vector<60xf32> to vector<1x60xf32>
      %227 = arith.addf %223, %226 : vector<1x60xf32>
      %c0_172 = arith.constant 0 : index
      %c0_173 = arith.constant 0 : index
      %228 = vector.load %arg25[%c0_172, %c0_173] : memref<1x60xf32, #tpu.memory_space<vmem>>, vector<1x60xf32>
      tpu.vector_store %arg25[%c0_172, %c0_173], %227 {strides = array<i32>} : memref<1x60xf32, #tpu.memory_space<vmem>>, vector<1x60xf32>,
      %c1_i32_174 = arith.constant 1 : i32
      %c0_175 = arith.constant 0 : index
      %c0_176 = arith.constant 0 : index
      %229 = vector.load %arg24[%c0_175, %c0_176] : memref<1x60xf32, #tpu.memory_space<vmem>>, vector<1x60xf32>
      %cst_177 = arith.constant 3.000000e+00 : f32
      %230 = vector.broadcast %cst_177 : f32 to vector<1x60xf32>
      %231 = arith.divf %229, %230 : vector<1x60xf32>
      %c0_178 = arith.constant 0 : index
      %c0_179 = arith.constant 0 : index
      %232 = vector.load %arg25[%c0_178, %c0_179] : memref<1x60xf32, #tpu.memory_space<vmem>>, vector<1x60xf32>
      %cst_180 = arith.constant 3.000000e+00 : f32
      %233 = vector.broadcast %cst_180 : f32 to vector<1x60xf32>
      %234 = arith.divf %232, %233 : vector<1x60xf32>
      %235 = arith.mulf %231, %231 : vector<1x60xf32>
      %236 = arith.subf %234, %235 : vector<1x60xf32>
      %cst_181 = arith.constant 0.000000e+00 : f32
      %237 = vector.broadcast %cst_181 : f32 to vector<1x60xf32>
      %238 = arith.maximumf %236, %237 : vector<1x60xf32>
      %cst_182 = arith.constant 9.99999974E-6 : f32
      %239 = vector.broadcast %cst_182 : f32 to vector<1x60xf32>
      %240 = arith.addf %238, %239 : vector<1x60xf32>
      %241 = math.rsqrt %240 : vector<1x60xf32>
      %c0_183 = arith.constant 0 : index
      %c0_184 = arith.constant 0 : index
      %242 = vector.load %arg12[%c0_183, %c0_184] : memref<1x60xf32, #tpu.memory_space<vmem>>, vector<1x60xf32>
      %243 = arith.mulf %241, %242 : vector<1x60xf32>
      %c0_185 = arith.constant 0 : index
      %c0_186 = arith.constant 0 : index
      %244 = vector.load %arg13[%c0_185, %c0_186] : memref<1x60xf32, #tpu.memory_space<vmem>>, vector<1x60xf32>
      %245 = arith.mulf %231, %243 : vector<1x60xf32>
      %246 = arith.subf %244, %245 : vector<1x60xf32>
      %c0_i32_187 = arith.constant 0 : i32
      %c128_i32_188 = arith.constant 128 : i32
      %247 = arith.muli %c0_i32_187, %c128_i32_188 : i32
      %248 = tpu.assume_multiple %247, 8 : i32
      %c0_189 = arith.constant 0 : index
      %249 = arith.index_cast %248 : i32 to index
      %c0_190 = arith.constant 0 : index
      %250 = vector.load %arg14[%c0_189, %249, %c0_190] : memref<1x128x60xf32, #tpu.memory_space<vmem>>, vector<1x128x60xf32>
      %251 = vector.shape_cast %250 : vector<1x128x60xf32> to vector<128x60xf32>
      %252 = vector.broadcast %243 : vector<1x60xf32> to vector<128x60xf32>
      %253 = arith.mulf %251, %252 : vector<128x60xf32>
      %254 = vector.broadcast %246 : vector<1x60xf32> to vector<128x60xf32>
      %255 = arith.addf %253, %254 : vector<128x60xf32>
      %cst_191 = arith.constant 0.000000e+00 : f32
      %256 = vector.broadcast %cst_191 : f32 to vector<128x60xf32>
      %257 = arith.cmpf oge, %255, %256 : vector<128x60xf32>
      %cst_192 = arith.constant 0.00999999977 : f32
      %258 = vector.broadcast %cst_192 : f32 to vector<128x60xf32>
      %259 = arith.mulf %258, %255 : vector<128x60xf32>
      %260 = arith.select %257, %255, %259 : vector<128x60xi1>, vector<128x60xf32>
      %c0_193 = arith.constant 0 : index
      %261 = arith.index_cast %248 : i32 to index
      %c0_194 = arith.constant 0 : index
      %262 = vector.load %arg14[%c0_193, %261, %c0_194] : memref<1x128x60xf32, #tpu.memory_space<vmem>>, vector<1x128x60xf32>
      %263 = vector.shape_cast %262 : vector<1x128x60xf32> to vector<128x60xf32>
      %264 = vector.shape_cast %260 : vector<128x60xf32> to vector<1x128x60xf32>
      tpu.vector_store %arg14[%c0_193, %261, %c0_194], %264 {strides = array<i32>} : memref<1x128x60xf32, #tpu.memory_space<vmem>>, vector<1x128x60xf32>,
      %c1_i32_195 = arith.constant 1 : i32
    } else {
    }
    return
  }
  func.func @transform_0(%arg0: i32, %arg1: i32) -> (i32, i32, i32, i32, i32) {
    %c0_i32 = arith.constant 0 : i32
    %c0_i32_0 = arith.constant 0 : i32
    %c0_i32_1 = arith.constant 0 : i32
    %c0_i32_2 = arith.constant 0 : i32
    return %arg0, %arg1, %c0_i32, %c0_i32_0, %c0_i32_1 : i32, i32, i32, i32, i32
  }
  func.func @transform_1(%arg0: i32, %arg1: i32) -> (i32, i32) {
    %c0_i32 = arith.constant 0 : i32
    %c0_i32_0 = arith.constant 0 : i32
    %c0_i32_1 = arith.constant 0 : i32
    return %c0_i32, %c0_i32_0 : i32, i32
  }
  func.func @transform_2(%arg0: i32, %arg1: i32) -> (i32, i32) {
    %c0_i32 = arith.constant 0 : i32
    %c0_i32_0 = arith.constant 0 : i32
    %c0_i32_1 = arith.constant 0 : i32
    return %c0_i32, %c0_i32_0 : i32, i32
  }
  func.func @transform_3(%arg0: i32, %arg1: i32) -> (i32, i32) {
    %c0_i32 = arith.constant 0 : i32
    %c0_i32_0 = arith.constant 0 : i32
    %c0_i32_1 = arith.constant 0 : i32
    return %c0_i32, %c0_i32_0 : i32, i32
  }
  func.func @transform_4(%arg0: i32, %arg1: i32) -> (i32, i32, i32) {
    %c0_i32 = arith.constant 0 : i32
    %c0_i32_0 = arith.constant 0 : i32
    %c0_i32_1 = arith.constant 0 : i32
    %c0_i32_2 = arith.constant 0 : i32
    return %c0_i32, %c0_i32_0, %c0_i32_1 : i32, i32, i32
  }
  func.func @transform_5(%arg0: i32, %arg1: i32) -> (i32, i32) {
    %c0_i32 = arith.constant 0 : i32
    %c0_i32_0 = arith.constant 0 : i32
    %c0_i32_1 = arith.constant 0 : i32
    return %c0_i32, %c0_i32_0 : i32, i32
  }
  func.func @transform_6(%arg0: i32, %arg1: i32) -> (i32, i32) {
    %c0_i32 = arith.constant 0 : i32
    %c0_i32_0 = arith.constant 0 : i32
    %c0_i32_1 = arith.constant 0 : i32
    return %c0_i32, %c0_i32_0 : i32, i32
  }
  func.func @transform_7(%arg0: i32, %arg1: i32) -> (i32, i32) {
    %c0_i32 = arith.constant 0 : i32
    %c0_i32_0 = arith.constant 0 : i32
    %c0_i32_1 = arith.constant 0 : i32
    return %c0_i32, %c0_i32_0 : i32, i32
  }
  func.func @transform_8(%arg0: i32, %arg1: i32) -> (i32, i32, i32) {
    %c0_i32 = arith.constant 0 : i32
    %c0_i32_0 = arith.constant 0 : i32
    %c0_i32_1 = arith.constant 0 : i32
    %c0_i32_2 = arith.constant 0 : i32
    return %c0_i32, %c0_i32_0, %c0_i32_1 : i32, i32, i32
  }
  func.func @transform_9(%arg0: i32, %arg1: i32) -> (i32, i32) {
    %c0_i32 = arith.constant 0 : i32
    %c0_i32_0 = arith.constant 0 : i32
    %c0_i32_1 = arith.constant 0 : i32
    return %c0_i32, %c0_i32_0 : i32, i32
  }
  func.func @transform_10(%arg0: i32, %arg1: i32) -> (i32, i32) {
    %c0_i32 = arith.constant 0 : i32
    %c0_i32_0 = arith.constant 0 : i32
    %c0_i32_1 = arith.constant 0 : i32
    return %c0_i32, %c0_i32_0 : i32, i32
  }
  func.func @transform_11(%arg0: i32, %arg1: i32) -> (i32, i32) {
    %c0_i32 = arith.constant 0 : i32
    %c0_i32_0 = arith.constant 0 : i32
    %c0_i32_1 = arith.constant 0 : i32
    return %c0_i32, %c0_i32_0 : i32, i32
  }
  func.func @transform_12(%arg0: i32, %arg1: i32) -> (i32, i32, i32) {
    %c0_i32 = arith.constant 0 : i32
    %c0_i32_0 = arith.constant 0 : i32
    %c0_i32_1 = arith.constant 0 : i32
    return %arg0, %c0_i32, %c0_i32_0 : i32, i32, i32
  }
}

</mosaic_0001>

<bundles_post_ra>
// kernel: sincnet_forward.1
= control target key start
LH: loop header
LB: loop body
LE: loop exit
PB: predicated region body
PF: predicated region fallthrough
CT: control target
= control target key end

     0   :  { %s12829_s21 = smov 0   ;;  %s12831_s22 = smov 0   ;;  %s16630_s0 = inlined_call_operand.vmem [shape: f32[2,1,3,512,256], index: 0, kind: input, shape index: {}]   ;;  %s16631_s1 = inlined_call_operand.vmem [shape: f32[256,80], index: 1, kind: input, shape index: {}]   ;;  %s16632_s2 = inlined_call_operand.vmem [shape: f32[1,80], index: 2, kind: input, shape index: {}]   ;;  %s16633_s3 = inlined_call_operand.vmem [shape: f32[1,80], index: 3, kind: input, shape index: {}]   ;;  %s16634_s4 = inlined_call_operand.vmem [shape: f32[5,80,60], index: 4, kind: input, shape index: {}]   ;;  %s16635_s5 = inlined_call_operand.vmem [shape: f32[1,60], index: 5, kind: input, shape index: {}]   ;;  %s16636_s6 = inlined_call_operand.vmem [shape: f32[1,60], index: 6, kind: input, shape index: {}]   ;;  %s16637_s7 = inlined_call_operand.vmem [shape: f32[1,60], index: 7, kind: input, shape index: {}]   ;;  %s16638_s8 = inlined_call_operand.vmem [shape: f32[5,60,60], index: 8, kind: input, shape index: {}]   ;;  %s16639_s9 = inlined_call_operand.vmem [shape: f32[1,60], index: 9, kind: input, shape index: {}]   ;;  %s16640_s10 = inlined_call_operand.vmem [shape: f32[1,60], index: 10, kind: input, shape index: {}]   ;;  %s16641_s11 = inlined_call_operand.vmem [shape: f32[1,60], index: 11, kind: input, shape index: {}]   ;;  %s16642_s12 = inlined_call_operand.vmem [shape: f32[2,128,60], index: 12, kind: output, shape index: {}]  }
   0x1   :  { %s12833_s23 = smov 0  }
   0x2 LB: > { %s34_s24 = sadd.s32 1, %s12757_s22  ;;  %p10349_p0 = scmp.ge.s32.totalorder %s12761_s23, 1  ;;  %s12761_s23 = sphi %s12833_s23, %s22_s23   ;;  %s12757_s22 = sphi %s12831_s22, %s16806_s22   ;;  %s12753_s21 = sphi %s12829_s21, %s16805_s21  }
   0x3   : > { %p36_p1 = scmp.ge.s32.totalorder %s34_s24, 2  ;;  %p380_p2 = scmp.lt.s32.totalorder %s12761_s23, 3 }
   0x5   : > { %s16808_s24 = smov (%p36_p1, %s34_s24), 0  ;;  %p381_p3 = pnand %p10349_p0, %p380_p2 }
   0x7   : > { %384 = sbr.rel (%p381_p3) target bundleno = 1745 (0x6d1), region = 68 }
   0xc   : > { %v12852_v0 = vld [vmem:[%s16631_s1 + $0x78] sm:$0xff]  ;;  %v16643_v1 = vmov 0.0   ;;  %v12859_v2 = vld [vmem:[%s16631_s1 + $0x70] sm:$0xff]  ;;  %v12868_v3 = vld [vmem:[%s16631_s1 + $0x68] sm:$0xff]  ;;  %p426_p4 = scmp.lt.s32.totalorder %s12753_s21, 1  ;;  %vm444_vm0 = vcmask 647168  }
   0xd   : > { %612 = vmatprep.subr.mxu0 %v16643_v1  ;;  %1190 = vmatprep.subr.mxu1 %v16643_v1  ;;  %v12877_v4 = vld [vmem:[%s16631_s1 + $0x60] sm:$0xff]  ;;  %v12886_v5 = vld [vmem:[%s16631_s1 + $0x58] sm:$0xff]  ;;  %v12895_v6 = vld [vmem:[%s16631_s1 + $0x50] sm:$0xff]  ;;  %445 = vst.msk [vmem:[#allocation7] sm:$0x1] %vm444_vm0, %v16643_v1  ;;  %vm2347_vm1 = vcmask 654336  }
   0xe   : > { %613 = vmatpush1.msra.mxu0 %v12852_v0  ;;  %1191 = vmatpush1.msra.mxu1 %v12852_v0  ;;  %v12904_v7 = vld [vmem:[%s16631_s1 + $0x48] sm:$0xff]  ;;  %v12913_v8 = vld [vmem:[%s16631_s1 + $0x40] sm:$0xff]  ;;  %v12922_v9 = vld [vmem:[%s16631_s1 + $0x38] sm:$0xff]  ;;  %s16810_s21 = smov (!%p426_p4, %s12753_s21), 1  ;;  %446 = vst.msk [vmem:[#allocation8] sm:$0x1] %vm444_vm0, %v16643_v1 }
   0xf   : > { %614 = vmatprep.subr.mxu0 %v16643_v1  ;;  %1192 = vmatprep.subr.mxu1 %v16643_v1  ;;  %v12931_v10 = vld [vmem:[%s16631_s1 + $0x30] sm:$0xff]  ;;  %v12940_v11 = vld [vmem:[%s16631_s1 + $0x28] sm:$0xff]  ;;  %v12949_v12 = vld [vmem:[%s16631_s1 + $0x20] sm:$0xff]  ;;  %s12705_s25 = smul.u32 3072, %s16810_s21 }
  0x10   : > { %615 = vmatpush1.msra.mxu0 %v12859_v2  ;;  %1193 = vmatpush1.msra.mxu1 %v12859_v2  ;;  %v12958_v13 = vld [vmem:[%s16631_s1 + $0x18] sm:$0xff]  ;;  %v12967_v14 = vld [vmem:[%s16631_s1 + $0x10] sm:$0xff]  ;;  %v12976_v15 = vld [vmem:[%s16631_s1 + $0x8] sm:$0xff] }
  0x11   : > { %616 = vmatprep.subr.mxu0 %v16643_v1  ;;  %1194 = vmatprep.subr.mxu1 %v16643_v1  ;;  %v12985_v16 = vld [vmem:[%s16631_s1] sm:$0xff]  ;;  %v12994_v17 = vld [vmem:[%s16631_s1 + $0xf8] sm:$0xff]  ;;  %v13003_v18 = vld [vmem:[%s16631_s1 + $0xf0] sm:$0xff]  ;;  %s13123_s14 = scalar_lea.vmem %s16630_s0, %s12705_s25 }
  0x12   : > { %617 = vmatpush1.msra.mxu0 %v12868_v3  ;;  %1195 = vmatpush1.msra.mxu1 %v12868_v3  ;;  %v13012_v19 = vld [vmem:[%s16631_s1 + $0xe8] sm:$0xff]  ;;  %v13021_v20 = vld [vmem:[%s16631_s1 + $0xe0] sm:$0xff]  ;;  %v13030_v21 = vld [vmem:[%s16631_s1 + $0xd8] sm:$0xff] }
  0x13   : > { %618 = vmatprep.subr.mxu0 %v16643_v1  ;;  %1196 = vmatprep.subr.mxu1 %v16643_v1  ;;  %v13039_v22 = vld [vmem:[%s16631_s1 + $0xd0] sm:$0xff]  ;;  %v13048_v23 = vld [vmem:[%s16631_s1 + $0xc8] sm:$0xff]  ;;  %v13057_v24 = vld [vmem:[%s16631_s1 + $0xc0] sm:$0xff] }
  0x14   : > { %619 = vmatpush1.msra.mxu0 %v12877_v4  ;;  %1197 = vmatpush1.msra.mxu1 %v12877_v4  ;;  %v13067_v25 = vld [vmem:[%s16631_s1 + $0xb8] sm:$0xff]  ;;  %v13076_v26 = vld [vmem:[%s16631_s1 + $0xb0] sm:$0xff]  ;;  %v13088_v27 = vld [vmem:[%s16631_s1 + $0xa8] sm:$0xff] }
  0x15   : > { %620 = vmatprep.subr.mxu0 %v16643_v1  ;;  %1198 = vmatprep.subr.mxu1 %v16643_v1  ;;  %v13097_v28 = vld [vmem:[%s16631_s1 + $0xa0] sm:$0xff]  ;;  %v13107_v29 = vld [vmem:[%s16631_s1 + $0x98] sm:$0xff]  ;;  %v13116_v30 = vld [vmem:[%s16631_s1 + $0x90] sm:$0xff] }
  0x16   : > { %621 = vmatpush1.msra.mxu0 %v12886_v5  ;;  %1199 = vmatpush1.msra.mxu1 %v12886_v5  ;;  %v13130_v31 = vld [vmem:[%s16631_s1 + $0x88] sm:$0xff]  ;;  %v13139_v32 = vld [vmem:[%s16631_s1 + $0x80] sm:$0xff]  ;;  %v487_v37 = vld [vmem:[%s13123_s14 + $0x18] sm:$0xff] }
  0x17   : > { %622 = vmatprep.subr.mxu0 %v16643_v1  ;;  %1200 = vmatprep.subr.mxu1 %v16643_v1  ;;  %v485_v33 = vld [vmem:[%s13123_s14 + $0x8] sm:$0xff]  ;;  %v484_v35 = vld [vmem:[%s13123_s14] sm:$0xff]  ;;  %v10356_v38 = vld [vmem:[%s13123_s14 + $0x418] sm:$0xff] }
  0x18   : > { %623 = vmatpush1.msra.mxu0 %v12895_v6  ;;  %1201 = vmatpush1.msra.mxu1 %v12895_v6  ;;  %v10354_v34 = vld [vmem:[%s13123_s14 + $0x408] sm:$0xff]  ;;  %v10353_v36 = vld [vmem:[%s13123_s14 + $0x400] sm:$0xff]  ;;  %v486_v39 = vld [vmem:[%s13123_s14 + $0x10] sm:$0xff] }
  0x19   : > { %624 = vmatprep.subr.mxu0 %v16643_v1  ;;  %1202 = vmatprep.subr.mxu1 %v16643_v1  ;;  %v10355_v40 = vld [vmem:[%s13123_s14 + $0x410] sm:$0xff]  ;;  %v489_v41 = vld [vmem:[%s13123_s14 + $0x28] sm:$0xff]  ;;  %v488_v43 = vld [vmem:[%s13123_s14 + $0x20] sm:$0xff] }
  0x1a   : > { %625 = vmatpush1.msra.mxu0 %v12904_v7  ;;  %1203 = vmatpush1.msra.mxu1 %v12904_v7  ;;  %v10358_v42 = vld [vmem:[%s13123_s14 + $0x428] sm:$0xff]  ;;  %v10357_v44 = vld [vmem:[%s13123_s14 + $0x420] sm:$0xff]  ;;  %v491_v45 = vld [vmem:[%s13123_s14 + $0x38] sm:$0xff] }
  0x1b   : > { %626 = vmatprep.subr.mxu0 %v16643_v1  ;;  %1204 = vmatprep.subr.mxu1 %v16643_v1  ;;  %v10360_v46 = vld [vmem:[%s13123_s14 + $0x438] sm:$0xff]  ;;  %v490_v47 = vld [vmem:[%s13123_s14 + $0x30] sm:$0xff]  ;;  %v493_v49 = vld [vmem:[%s13123_s14 + $0x48] sm:$0xff] }
  0x1c   : > { %627 = vmatpush1.msra.mxu0 %v12913_v8  ;;  %1205 = vmatpush1.msra.mxu1 %v12913_v8  ;;  %v10359_v48 = vld [vmem:[%s13123_s14 + $0x430] sm:$0xff]  ;;  %v10362_v50 = vld [vmem:[%s13123_s14 + $0x448] sm:$0xff]  ;;  %v492_v51 = vld [vmem:[%s13123_s14 + $0x40] sm:$0xff] }
  0x1d   : > { %628 = vmatprep.subr.mxu0 %v16643_v1  ;;  %1206 = vmatprep.subr.mxu1 %v16643_v1  ;;  %v10361_v52 = vld [vmem:[%s13123_s14 + $0x440] sm:$0xff]  ;;  %v495_v53 = vld [vmem:[%s13123_s14 + $0x58] sm:$0xff]  ;;  %v494_v55 = vld [vmem:[%s13123_s14 + $0x50] sm:$0xff] }
  0x1e   : > { %629 = vmatpush1.msra.mxu0 %v12922_v9  ;;  %1207 = vmatpush1.msra.mxu1 %v12922_v9  ;;  %v10364_v54 = vld [vmem:[%s13123_s14 + $0x458] sm:$0xff]  ;;  %v10363_v56 = vld [vmem:[%s13123_s14 + $0x450] sm:$0xff]  ;;  %v497_v57 = vld [vmem:[%s13123_s14 + $0x68] sm:$0xff] }
  0x1f   : > { %630 = vmatprep.subr.mxu0 %v16643_v1  ;;  %1208 = vmatprep.subr.mxu1 %v16643_v1  ;;  %v10366_v58 = vld [vmem:[%s13123_s14 + $0x468] sm:$0xff]  ;;  %v496_v59 = vld [vmem:[%s13123_s14 + $0x60] sm:$0xff]  ;;  %v499_v61 = vld [vmem:[%s13123_s14 + $0x78] sm:$0xff] }
  0x20   : > { %631 = vmatpush1.msra.mxu0 %v12931_v10  ;;  %1209 = vmatpush1.msra.mxu1 %v12931_v10  ;;  %v10365_v60 = vld [vmem:[%s13123_s14 + $0x460] sm:$0xff]  ;;  %v10368_v62 = vld [vmem:[%s13123_s14 + $0x478] sm:$0xff]  ;;  %v498_v63 = vld [vmem:[%s13123_s14 + $0x70] sm:$0xff] }
  0x21   : > { %632 = vmatprep.subr.mxu0 %v16643_v1  ;;  %1210 = vmatprep.subr.mxu1 %v16643_v1 }
  0x22   : > { %633 = vmatpush1.msra.mxu0 %v12940_v11  ;;  %1211 = vmatpush1.msra.mxu1 %v12940_v11 }
  0x23   : > { %634 = vmatprep.subr.mxu0 %v16643_v1  ;;  %1212 = vmatprep.subr.mxu1 %v16643_v1 }
  0x24   : > { %635 = vmatpush1.msra.mxu0 %v12949_v12  ;;  %1213 = vmatpush1.msra.mxu1 %v12949_v12 }
  0x25   : > { %636 = vmatprep.subr.mxu0 %v16643_v1  ;;  %1214 = vmatprep.subr.mxu1 %v16643_v1 }
  0x26   : > { %637 = vmatpush1.msra.mxu0 %v12958_v13  ;;  %1215 = vmatpush1.msra.mxu1 %v12958_v13 }
  0x27   : > { %638 = vmatprep.subr.mxu0 %v16643_v1  ;;  %1216 = vmatprep.subr.mxu1 %v16643_v1 }
  0x28   : > { %639 = vmatpush1.msra.mxu0 %v12967_v14  ;;  %1217 = vmatpush1.msra.mxu1 %v12967_v14 }
  0x29   : > { %640 = vmatprep.subr.mxu0 %v16643_v1  ;;  %1218 = vmatprep.subr.mxu1 %v16643_v1 }
  0x2a   : > { %641 = vmatpush1.msra.mxu0 %v12976_v15  ;;  %1219 = vmatpush1.msra.mxu1 %v12976_v15 }
  0x2b   : > { %642 = vmatprep.subr.mxu0 %v16643_v1  ;;  %1220 = vmatprep.subr.mxu1 %v16643_v1 }
  0x2c   : > { %643 = vmatpush1.msra.mxu0 %v12985_v16  ;;  %1221 = vmatpush1.msra.mxu1 %v12985_v16 }
  0x2d   : > { %644 = vmatprep.subr.mxu0 %v16643_v1  ;;  %1222 = vmatprep.subr.mxu1 %v16643_v1 }
  0x2e   : > { %645 = vmatpush2.msra.mxu0 %v12994_v17  ;;  %1223 = vmatpush2.msra.mxu1 %v12994_v17 }
  0x2f   : > { %646 = vmatprep.subr.mxu0 %v16643_v1  ;;  %1224 = vmatprep.subr.mxu1 %v16643_v1 }
  0x30   : > { %647 = vmatpush2.msra.mxu0 %v13003_v18  ;;  %1225 = vmatpush2.msra.mxu1 %v13003_v18 }
  0x31   : > { %648 = vmatprep.subr.mxu0 %v16643_v1  ;;  %1226 = vmatprep.subr.mxu1 %v16643_v1 }
  0x32   : > { %649 = vmatpush2.msra.mxu0 %v13012_v19  ;;  %1227 = vmatpush2.msra.mxu1 %v13012_v19 }
  0x33   : > { %650 = vmatprep.subr.mxu0 %v16643_v1  ;;  %1228 = vmatprep.subr.mxu1 %v16643_v1 }
  0x34   : > { %651 = vmatpush2.msra.mxu0 %v13021_v20  ;;  %1229 = vmatpush2.msra.mxu1 %v13021_v20 }
  0x35   : > { %652 = vmatprep.subr.mxu0 %v16643_v1  ;;  %1230 = vmatprep.subr.mxu1 %v16643_v1 }
  0x36   : > { %653 = vmatpush2.msra.mxu0 %v13030_v21  ;;  %1231 = vmatpush2.msra.mxu1 %v13030_v21 }
  0x37   : > { %654 = vmatprep.subr.mxu0 %v16643_v1  ;;  %1232 = vmatprep.subr.mxu1 %v16643_v1 }
  0x38   : > { %655 = vmatpush2.msra.mxu0 %v13039_v22  ;;  %1233 = vmatpush2.msra.mxu1 %v13039_v22 }
  0x39   : > { %656 = vmatprep.subr.mxu0 %v16643_v1  ;;  %1234 = vmatprep.subr.mxu1 %v16643_v1 }
  0x3a   : > { %657 = vmatpush2.msra.mxu0 %v13048_v23  ;;  %1235 = vmatpush2.msra.mxu1 %v13048_v23 }
  0x3b   : > { %658 = vmatprep.subr.mxu0 %v16643_v1  ;;  %1236 = vmatprep.subr.mxu1 %v16643_v1 }
  0x3c   : > { %659 = vmatpush2.msra.mxu0 %v13057_v24  ;;  %1237 = vmatpush2.msra.mxu1 %v13057_v24 }
  0x3d   : > { %660 = vmatprep.subr.mxu0 %v16643_v1  ;;  %1238 = vmatprep.subr.mxu1 %v16643_v1 }
  0x3e   : > { %661 = vmatpush2.msra.mxu0 %v13067_v25  ;;  %1239 = vmatpush2.msra.mxu1 %v13067_v25 }
  0x3f   : > { %662 = vmatprep.subr.mxu0 %v16643_v1  ;;  %1240 = vmatprep.subr.mxu1 %v16643_v1 }
  0x40   : > { %663 = vmatpush2.msra.mxu0 %v13076_v26  ;;  %1241 = vmatpush2.msra.mxu1 %v13076_v26 }
  0x41   : > { %664 = vmatprep.subr.mxu0 %v16643_v1  ;;  %1242 = vmatprep.subr.mxu1 %v16643_v1 }
  0x42   : > { %665 = vmatpush2.msra.mxu0 %v13088_v27  ;;  %1243 = vmatpush2.msra.mxu1 %v13088_v27 }
  0x43   : > { %666 = vmatprep.subr.mxu0 %v16643_v1  ;;  %1244 = vmatprep.subr.mxu1 %v16643_v1 }
  0x44   : > { %667 = vmatpush2.msra.mxu0 %v13097_v28  ;;  %1245 = vmatpush2.msra.mxu1 %v13097_v28 }
  0x45   : > { %668 = vmatprep.subr.mxu0 %v16643_v1  ;;  %1246 = vmatprep.subr.mxu1 %v16643_v1 }
  0x46   : > { %669 = vmatpush2.msra.mxu0 %v13107_v29  ;;  %1247 = vmatpush2.msra.mxu1 %v13107_v29 }
  0x47   : > { %670 = vmatprep.subr.mxu0 %v16643_v1  ;;  %1248 = vmatprep.subr.mxu1 %v16643_v1 }
  0x48   : > { %671 = vmatpush2.msra.mxu0 %v13116_v30  ;;  %1249 = vmatpush2.msra.mxu1 %v13116_v30 }
  0x49   : > { %672 = vmatprep.subr.mxu0 %v16643_v1  ;;  %1250 = vmatprep.subr.mxu1 %v16643_v1 }
  0x4a   : > { %673 = vmatpush2.msra.mxu0 %v13130_v31  ;;  %1251 = vmatpush2.msra.mxu1 %v13130_v31 }
  0x4b   : > { %674 = vmatprep.subr.mxu0 %v16643_v1  ;;  %1252 = vmatprep.subr.mxu1 %v16643_v1 }
  0x4c   : > { %675 = vmatpush2.msra.mxu0 %v13139_v32  ;;  %676 = vmatprep.mubr.f32.mxu0 %v485_v33  ;;  %v503_v33 = vld [vmem:[%s13123_s14 + $0x98] sm:$0xff] }
  0x4d   : > { %1253 = vmatpush2.msra.mxu1 %v13139_v32  ;;  %1254 = vmatprep.mubr.f32.mxu1 %v10354_v34  ;;  %v10372_v34 = vld [vmem:[%s13123_s14 + $0x498] sm:$0xff] }
  0x4e   : > { %677 = vmatmul.mubr.f32.vlgmr.msra.gmra.mxu0 %v484_v35  ;;  %1255 = vmatmul.mubr.f32.vlgmr.msra.gmra.mxu1 %v10353_v36  ;;  %v10371_v35 = vld [vmem:[%s13123_s14 + $0x490] sm:$0xff]  ;;  %v505_v36 = vld [vmem:[%s13123_s14 + $0xa8] sm:$0xff] }
  0x4f   : > { %1832 = vmatprep.subr.mxu0 %v16643_v1  ;;  %681 = vmatprep.mubr.f32.mxu0 %v487_v37  ;;  %v10374_v37 = vld [vmem:[%s13123_s14 + $0x4a8] sm:$0xff] }
  0x50   : > { %1833 = vmatpush1.msra.mxu0 %v12852_v0  ;;  %1259 = vmatprep.mubr.f32.mxu1 %v10356_v38  ;;  %v10373_v38 = vld [vmem:[%s13123_s14 + $0x4a0] sm:$0xff] }
  0x51   : > { %1834 = vmatprep.subr.mxu0 %v16643_v1  ;;  %12641 = vmatprep.subr.mxu1 %v16643_v1 }
  0x52   : > { %682 = vmatmul.mubr.f32.gmra.mxu0 %v486_v39  ;;  %1260 = vmatmul.mubr.f32.gmra.mxu1 %v10355_v40  ;;  %v507_v39 = vld [vmem:[%s13123_s14 + $0xb8] sm:$0xff] }
  0x53   : > { %686 = vmatprep.mubr.f32.mxu0 %v489_v41  ;;  %1264 = vmatprep.mubr.f32.mxu1 %v10358_v42  ;;  %v10376_v40 = vld [vmem:[%s13123_s14 + $0x4b8] sm:$0xff]  ;;  %v10375_v41 = vld [vmem:[%s13123_s14 + $0x4b0] sm:$0xff]  ;;  %v509_v42 = vld [vmem:[%s13123_s14 + $0xc8] sm:$0xff] }
  0x54   : > { %1835 = vmatpush1.msra.mxu0 %v12859_v2  ;;  %12673 = vmatpush1.msra.mxu1 %v12852_v0  ;;  %v10367_v0 = vld [vmem:[%s13123_s14 + $0x470] sm:$0xff] }
  0x55   : > { %1836 = vmatprep.subr.mxu0 %v16643_v1  ;;  %12642 = vmatprep.subr.mxu1 %v16643_v1 }
  0x56   : > { %687 = vmatmul.mubr.f32.gmra.mxu0 %v488_v43  ;;  %1265 = vmatmul.mubr.f32.gmra.mxu1 %v10357_v44  ;;  %v10378_v43 = vld [vmem:[%s13123_s14 + $0x4c8] sm:$0xff]  ;;  %v10377_v44 = vld [vmem:[%s13123_s14 + $0x4c0] sm:$0xff] }
  0x57   : > { %691 = vmatprep.mubr.f32.mxu0 %v491_v45  ;;  %1269 = vmatprep.mubr.f32.mxu1 %v10360_v46  ;;  %v511_v45 = vld [vmem:[%s13123_s14 + $0xd8] sm:$0xff] }
  0x58   : > { %1837 = vmatpush1.msra.mxu0 %v12868_v3  ;;  %12674 = vmatpush1.msra.mxu1 %v12859_v2  ;;  %v501_v2 = vld [vmem:[%s13123_s14 + $0x88] sm:$0xff]  ;;  %v10380_v46 = vld [vmem:[%s13123_s14 + $0x4d8] sm:$0xff] }
  0x59   : > { %1838 = vmatprep.subr.mxu0 %v16643_v1  ;;  %12643 = vmatprep.subr.mxu1 %v16643_v1 }
  0x5a   : > { %692 = vmatmul.mubr.f32.gmra.mxu0 %v490_v47  ;;  %1270 = vmatmul.mubr.f32.gmra.mxu1 %v10359_v48  ;;  %v10379_v47 = vld [vmem:[%s13123_s14 + $0x4d0] sm:$0xff]  ;;  %v513_v48 = vld [vmem:[%s13123_s14 + $0xe8] sm:$0xff] }
  0x5b   : > { %696 = vmatprep.mubr.f32.mxu0 %v493_v49  ;;  %1274 = vmatprep.mubr.f32.mxu1 %v10362_v50  ;;  %v10382_v49 = vld [vmem:[%s13123_s14 + $0x4e8] sm:$0xff]  ;;  %v10381_v50 = vld [vmem:[%s13123_s14 + $0x4e0] sm:$0xff] }
  0x5c   : > { %1839 = vmatpush1.msra.mxu0 %v12877_v4  ;;  %12675 = vmatpush1.msra.mxu1 %v12868_v3  ;;  %v10370_v3 = vld [vmem:[%s13123_s14 + $0x488] sm:$0xff] }
  0x5d   : > { %1840 = vmatprep.subr.mxu0 %v16643_v1  ;;  %12644 = vmatprep.subr.mxu1 %v16643_v1 }
  0x5e   : > { %697 = vmatmul.mubr.f32.gmra.mxu0 %v492_v51  ;;  %1275 = vmatmul.mubr.f32.gmra.mxu1 %v10361_v52  ;;  %v515_v51 = vld [vmem:[%s13123_s14 + $0xf8] sm:$0xff] }
  0x5f   : > { %701 = vmatprep.mubr.f32.mxu0 %v495_v53  ;;  %1279 = vmatprep.mubr.f32.mxu1 %v10364_v54  ;;  %v10384_v52 = vld [vmem:[%s13123_s14 + $0x4f8] sm:$0xff]  ;;  %v10383_v53 = vld [vmem:[%s13123_s14 + $0x4f0] sm:$0xff]  ;;  %v517_v54 = vld [vmem:[%s13123_s14 + $0x108] sm:$0xff] }
  0x60   : > { %1841 = vmatpush1.msra.mxu0 %v12886_v5  ;;  %12676 = vmatpush1.msra.mxu1 %v12877_v4  ;;  %v500_v4 = vld [vmem:[%s13123_s14 + $0x80] sm:$0xff] }
  0x61   : > { %1842 = vmatprep.subr.mxu0 %v16643_v1  ;;  %12645 = vmatprep.subr.mxu1 %v16643_v1 }
  0x62   : > { %702 = vmatmul.mubr.f32.gmra.mxu0 %v494_v55  ;;  %1280 = vmatmul.mubr.f32.gmra.mxu1 %v10363_v56  ;;  %v10386_v55 = vld [vmem:[%s13123_s14 + $0x508] sm:$0xff]  ;;  %v10385_v56 = vld [vmem:[%s13123_s14 + $0x500] sm:$0xff] }
  0x63   : > { %706 = vmatprep.mubr.f32.mxu0 %v497_v57  ;;  %1284 = vmatprep.mubr.f32.mxu1 %v10366_v58  ;;  %v519_v57 = vld [vmem:[%s13123_s14 + $0x118] sm:$0xff] }
  0x64   : > { %1843 = vmatpush1.msra.mxu0 %v12895_v6  ;;  %12677 = vmatpush1.msra.mxu1 %v12886_v5  ;;  %v10369_v5 = vld [vmem:[%s13123_s14 + $0x480] sm:$0xff]  ;;  %v10388_v58 = vld [vmem:[%s13123_s14 + $0x518] sm:$0xff] }
  0x65   : > { %1844 = vmatprep.subr.mxu0 %v16643_v1  ;;  %12646 = vmatprep.subr.mxu1 %v16643_v1 }
  0x66   : > { %707 = vmatmul.mubr.f32.gmra.mxu0 %v496_v59  ;;  %1285 = vmatmul.mubr.f32.gmra.mxu1 %v10365_v60  ;;  %v10387_v59 = vld [vmem:[%s13123_s14 + $0x510] sm:$0xff]  ;;  %v521_v60 = vld [vmem:[%s13123_s14 + $0x128] sm:$0xff] }
  0x67   : > { %711 = vmatprep.mubr.f32.mxu0 %v499_v61  ;;  %1289 = vmatprep.mubr.f32.mxu1 %v10368_v62  ;;  %v10390_v61 = vld [vmem:[%s13123_s14 + $0x528] sm:$0xff]  ;;  %v10389_v62 = vld [vmem:[%s13123_s14 + $0x520] sm:$0xff] }
  0x68   : > { %1845 = vmatpush1.msra.mxu0 %v12904_v7  ;;  %12678 = vmatpush1.msra.mxu1 %v12895_v6  ;;  %v502_v6 = vld [vmem:[%s13123_s14 + $0x90] sm:$0xff] }
  0x69   : > { %1846 = vmatprep.subr.mxu0 %v16643_v1  ;;  %12647 = vmatprep.subr.mxu1 %v16643_v1 }
  0x6a   : > { %712 = vmatmul.mubr.f32.gmra.mxu0 %v498_v63  ;;  %1290 = vmatmul.mubr.f32.gmra.mxu1 %v10367_v0  ;;  %v523_v63 = vld [vmem:[%s13123_s14 + $0x138] sm:$0xff] }
  0x6b   : > { %716 = vmatprep.mubr.f32.mxu0 %v501_v2  ;;  %1294 = vmatprep.mubr.f32.mxu1 %v10370_v3  ;;  %v10392_v0 = vld [vmem:[%s13123_s14 + $0x538] sm:$0xff]  ;;  %v10391_v2 = vld [vmem:[%s13123_s14 + $0x530] sm:$0xff]  ;;  %v525_v3 = vld [vmem:[%s13123_s14 + $0x148] sm:$0xff] }
  0x6c   : > { %1847 = vmatpush1.msra.mxu0 %v12913_v8  ;;  %12679 = vmatpush1.msra.mxu1 %v12904_v7  ;;  %v504_v7 = vld [vmem:[%s13123_s14 + $0xa0] sm:$0xff] }
  0x6d   : > { %1848 = vmatprep.subr.mxu0 %v16643_v1  ;;  %12648 = vmatprep.subr.mxu1 %v16643_v1 }
  0x6e   : > { %717 = vmatmul.mubr.f32.gmra.mxu0 %v500_v4  ;;  %1295 = vmatmul.mubr.f32.gmra.mxu1 %v10369_v5  ;;  %v10394_v4 = vld [vmem:[%s13123_s14 + $0x548] sm:$0xff]  ;;  %v10393_v5 = vld [vmem:[%s13123_s14 + $0x540] sm:$0xff] }
  0x6f   : > { %721 = vmatprep.mubr.f32.mxu0 %v503_v33  ;;  %1299 = vmatprep.mubr.f32.mxu1 %v10372_v34  ;;  %v527_v33 = vld [vmem:[%s13123_s14 + $0x158] sm:$0xff] }
  0x70   : > { %1849 = vmatpush1.msra.mxu0 %v12922_v9  ;;  %12680 = vmatpush1.msra.mxu1 %v12913_v8  ;;  %v506_v8 = vld [vmem:[%s13123_s14 + $0xb0] sm:$0xff]  ;;  %v10396_v34 = vld [vmem:[%s13123_s14 + $0x558] sm:$0xff] }
  0x71   : > { %1850 = vmatprep.subr.mxu0 %v16643_v1  ;;  %12649 = vmatprep.subr.mxu1 %v16643_v1 }
  0x72   : > { %722 = vmatmul.mubr.f32.gmra.mxu0 %v502_v6  ;;  %1300 = vmatmul.mubr.f32.gmra.mxu1 %v10371_v35  ;;  %v10395_v6 = vld [vmem:[%s13123_s14 + $0x550] sm:$0xff]  ;;  %v529_v35 = vld [vmem:[%s13123_s14 + $0x168] sm:$0xff] }
  0x73   : > { %726 = vmatprep.mubr.f32.mxu0 %v505_v36  ;;  %1304 = vmatprep.mubr.f32.mxu1 %v10374_v37  ;;  %v10398_v36 = vld [vmem:[%s13123_s14 + $0x568] sm:$0xff]  ;;  %v10397_v37 = vld [vmem:[%s13123_s14 + $0x560] sm:$0xff] }
  0x74   : > { %1851 = vmatpush1.msra.mxu0 %v12931_v10  ;;  %12681 = vmatpush1.msra.mxu1 %v12922_v9  ;;  %v508_v9 = vld [vmem:[%s13123_s14 + $0xc0] sm:$0xff] }
  0x75   : > { %1852 = vmatprep.subr.mxu0 %v16643_v1  ;;  %12650 = vmatprep.subr.mxu1 %v16643_v1 }
  0x76   : > { %727 = vmatmul.mubr.f32.gmra.mxu0 %v504_v7  ;;  %1305 = vmatmul.mubr.f32.gmra.mxu1 %v10373_v38  ;;  %v531_v7 = vld [vmem:[%s13123_s14 + $0x178] sm:$0xff] }
  0x77   : > { %731 = vmatprep.mubr.f32.mxu0 %v507_v39  ;;  %1309 = vmatprep.mubr.f32.mxu1 %v10376_v40  ;;  %v10400_v38 = vld [vmem:[%s13123_s14 + $0x578] sm:$0xff]  ;;  %v10399_v39 = vld [vmem:[%s13123_s14 + $0x570] sm:$0xff]  ;;  %v533_v40 = vld [vmem:[%s13123_s14 + $0x188] sm:$0xff] }
  0x78   : > { %1853 = vmatpush1.msra.mxu0 %v12940_v11  ;;  %12682 = vmatpush1.msra.mxu1 %v12931_v10  ;;  %v510_v10 = vld [vmem:[%s13123_s14 + $0xd0] sm:$0xff] }
  0x79   : > { %1854 = vmatprep.subr.mxu0 %v16643_v1  ;;  %12651 = vmatprep.subr.mxu1 %v16643_v1 }
  0x7a   : > { %732 = vmatmul.mubr.f32.gmra.mxu0 %v506_v8  ;;  %1310 = vmatmul.mubr.f32.gmra.mxu1 %v10375_v41  ;;  %v10402_v8 = vld [vmem:[%s13123_s14 + $0x588] sm:$0xff]  ;;  %v10401_v41 = vld [vmem:[%s13123_s14 + $0x580] sm:$0xff] }
  0x7b   : > { %736 = vmatprep.mubr.f32.mxu0 %v509_v42  ;;  %1314 = vmatprep.mubr.f32.mxu1 %v10378_v43  ;;  %v535_v42 = vld [vmem:[%s13123_s14 + $0x198] sm:$0xff] }
  0x7c   : > { %1855 = vmatpush1.msra.mxu0 %v12949_v12  ;;  %12683 = vmatpush1.msra.mxu1 %v12940_v11  ;;  %v512_v11 = vld [vmem:[%s13123_s14 + $0xe0] sm:$0xff]  ;;  %v10404_v43 = vld [vmem:[%s13123_s14 + $0x598] sm:$0xff] }
  0x7d   : > { %1856 = vmatprep.subr.mxu0 %v16643_v1  ;;  %12652 = vmatprep.subr.mxu1 %v16643_v1 }
  0x7e   : > { %737 = vmatmul.mubr.f32.gmra.mxu0 %v508_v9  ;;  %1315 = vmatmul.mubr.f32.gmra.mxu1 %v10377_v44  ;;  %v10403_v9 = vld [vmem:[%s13123_s14 + $0x590] sm:$0xff]  ;;  %v537_v44 = vld [vmem:[%s13123_s14 + $0x1a8] sm:$0xff] }
  0x7f   : > { %741 = vmatprep.mubr.f32.mxu0 %v511_v45  ;;  %1319 = vmatprep.mubr.f32.mxu1 %v10380_v46  ;;  %v10406_v45 = vld [vmem:[%s13123_s14 + $0x5a8] sm:$0xff]  ;;  %v10405_v46 = vld [vmem:[%s13123_s14 + $0x5a0] sm:$0xff] }
  0x80   : > { %1857 = vmatpush1.msra.mxu0 %v12958_v13  ;;  %12684 = vmatpush1.msra.mxu1 %v12949_v12  ;;  %v514_v12 = vld [vmem:[%s13123_s14 + $0xf0] sm:$0xff] }
  0x81   : > { %1858 = vmatprep.subr.mxu0 %v16643_v1  ;;  %12653 = vmatprep.subr.mxu1 %v16643_v1 }
  0x82   : > { %742 = vmatmul.mubr.f32.gmra.mxu0 %v510_v10  ;;  %1320 = vmatmul.mubr.f32.gmra.mxu1 %v10379_v47  ;;  %v539_v10 = vld [vmem:[%s13123_s14 + $0x1b8] sm:$0xff] }
  0x83   : > { %746 = vmatprep.mubr.f32.mxu0 %v513_v48  ;;  %1324 = vmatprep.mubr.f32.mxu1 %v10382_v49  ;;  %v10408_v47 = vld [vmem:[%s13123_s14 + $0x5b8] sm:$0xff]  ;;  %v10407_v48 = vld [vmem:[%s13123_s14 + $0x5b0] sm:$0xff]  ;;  %v541_v49 = vld [vmem:[%s13123_s14 + $0x1c8] sm:$0xff] }
  0x84   : > { %1859 = vmatpush1.msra.mxu0 %v12967_v14  ;;  %12685 = vmatpush1.msra.mxu1 %v12958_v13  ;;  %v516_v13 = vld [vmem:[%s13123_s14 + $0x100] sm:$0xff] }
  0x85   : > { %1860 = vmatprep.subr.mxu0 %v16643_v1  ;;  %12654 = vmatprep.subr.mxu1 %v16643_v1 }
  0x86   : > { %747 = vmatmul.mubr.f32.gmra.mxu0 %v512_v11  ;;  %1325 = vmatmul.mubr.f32.gmra.mxu1 %v10381_v50  ;;  %v10410_v11 = vld [vmem:[%s13123_s14 + $0x5c8] sm:$0xff]  ;;  %v10409_v50 = vld [vmem:[%s13123_s14 + $0x5c0] sm:$0xff] }
  0x87   : > { %751 = vmatprep.mubr.f32.mxu0 %v515_v51  ;;  %1329 = vmatprep.mubr.f32.mxu1 %v10384_v52  ;;  %v543_v51 = vld [vmem:[%s13123_s14 + $0x1d8] sm:$0xff] }
  0x88   : > { %1861 = vmatpush1.msra.mxu0 %v12976_v15  ;;  %12686 = vmatpush1.msra.mxu1 %v12967_v14  ;;  %v518_v14 = vld [vmem:[%s13123_s14 + $0x110] sm:$0xff]  ;;  %v10412_v52 = vld [vmem:[%s13123_s14 + $0x5d8] sm:$0xff] }
  0x89   : > { %1862 = vmatprep.subr.mxu0 %v16643_v1  ;;  %12655 = vmatprep.subr.mxu1 %v16643_v1 }
  0x8a   : > { %752 = vmatmul.mubr.f32.gmra.mxu0 %v514_v12  ;;  %1330 = vmatmul.mubr.f32.gmra.mxu1 %v10383_v53  ;;  %v10411_v12 = vld [vmem:[%s13123_s14 + $0x5d0] sm:$0xff]  ;;  %v545_v53 = vld [vmem:[%s13123_s14 + $0x1e8] sm:$0xff] }
  0x8b   : > { %756 = vmatprep.mubr.f32.mxu0 %v517_v54  ;;  %1334 = vmatprep.mubr.f32.mxu1 %v10386_v55  ;;  %v10414_v54 = vld [vmem:[%s13123_s14 + $0x5e8] sm:$0xff]  ;;  %v10413_v55 = vld [vmem:[%s13123_s14 + $0x5e0] sm:$0xff] }
  0x8c   : > { %1863 = vmatpush1.msra.mxu0 %v12985_v16  ;;  %12687 = vmatpush1.msra.mxu1 %v12976_v15  ;;  %v520_v15 = vld [vmem:[%s13123_s14 + $0x120] sm:$0xff] }
  0x8d   : > { %1864 = vmatprep.subr.mxu0 %v16643_v1  ;;  %12656 = vmatprep.subr.mxu1 %v16643_v1 }
  0x8e   : > { %757 = vmatmul.mubr.f32.gmra.mxu0 %v516_v13  ;;  %1335 = vmatmul.mubr.f32.gmra.mxu1 %v10385_v56  ;;  %v547_v13 = vld [vmem:[%s13123_s14 + $0x1f8] sm:$0xff] }
  0x8f   : > { %761 = vmatprep.mubr.f32.mxu0 %v519_v57  ;;  %1339 = vmatprep.mubr.f32.mxu1 %v10388_v58  ;;  %v10416_v56 = vld [vmem:[%s13123_s14 + $0x5f8] sm:$0xff]  ;;  %v10415_v57 = vld [vmem:[%s13123_s14 + $0x5f0] sm:$0xff]  ;;  %v549_v58 = vld [vmem:[%s13123_s14 + $0x208] sm:$0xff] }
  0x90   : > { %1865 = vmatpush2.msra.mxu0 %v12994_v17  ;;  %12688 = vmatpush1.msra.mxu1 %v12985_v16  ;;  %v522_v16 = vld [vmem:[%s13123_s14 + $0x130] sm:$0xff] }
  0x91   : > { %1866 = vmatprep.subr.mxu0 %v16643_v1  ;;  %12657 = vmatprep.subr.mxu1 %v16643_v1 }
  0x92   : > { %762 = vmatmul.mubr.f32.gmra.mxu0 %v518_v14  ;;  %1340 = vmatmul.mubr.f32.gmra.mxu1 %v10387_v59  ;;  %v10418_v14 = vld [vmem:[%s13123_s14 + $0x608] sm:$0xff]  ;;  %v10417_v59 = vld [vmem:[%s13123_s14 + $0x600] sm:$0xff] }
  0x93   : > { %766 = vmatprep.mubr.f32.mxu0 %v521_v60  ;;  %1344 = vmatprep.mubr.f32.mxu1 %v10390_v61  ;;  %v551_v60 = vld [vmem:[%s13123_s14 + $0x218] sm:$0xff] }
  0x94   : > { %1867 = vmatpush2.msra.mxu0 %v13003_v18  ;;  %12689 = vmatpush2.msra.mxu1 %v12994_v17  ;;  %v524_v17 = vld [vmem:[%s13123_s14 + $0x140] sm:$0xff]  ;;  %v10420_v61 = vld [vmem:[%s13123_s14 + $0x618] sm:$0xff] }
  0x95   : > { %1868 = vmatprep.subr.mxu0 %v16643_v1  ;;  %12658 = vmatprep.subr.mxu1 %v16643_v1 }
  0x96   : > { %767 = vmatmul.mubr.f32.gmra.mxu0 %v520_v15  ;;  %1345 = vmatmul.mubr.f32.gmra.mxu1 %v10389_v62  ;;  %v10419_v15 = vld [vmem:[%s13123_s14 + $0x610] sm:$0xff]  ;;  %v553_v62 = vld [vmem:[%s13123_s14 + $0x228] sm:$0xff] }
  0x97   : > { %771 = vmatprep.mubr.f32.mxu0 %v523_v63  ;;  %1349 = vmatprep.mubr.f32.mxu1 %v10392_v0  ;;  %v10422_v63 = vld [vmem:[%s13123_s14 + $0x628] sm:$0xff]  ;;  %v10421_v0 = vld [vmem:[%s13123_s14 + $0x620] sm:$0xff] }
  0x98   : > { %1869 = vmatpush2.msra.mxu0 %v13012_v19  ;;  %12690 = vmatpush2.msra.mxu1 %v13003_v18  ;;  %v526_v18 = vld [vmem:[%s13123_s14 + $0x150] sm:$0xff] }
  0x99   : > { %1870 = vmatprep.subr.mxu0 %v16643_v1  ;;  %12659 = vmatprep.subr.mxu1 %v16643_v1 }
  0x9a   : > { %772 = vmatmul.mubr.f32.gmra.mxu0 %v522_v16  ;;  %1350 = vmatmul.mubr.f32.gmra.mxu1 %v10391_v2  ;;  %v555_v16 = vld [vmem:[%s13123_s14 + $0x238] sm:$0xff] }
  0x9b   : > { %776 = vmatprep.mubr.f32.mxu0 %v525_v3  ;;  %1354 = vmatprep.mubr.f32.mxu1 %v10394_v4  ;;  %v10424_v2 = vld [vmem:[%s13123_s14 + $0x638] sm:$0xff]  ;;  %v554_v3 = vld [vmem:[%s13123_s14 + $0x230] sm:$0xff]  ;;  %v557_v4 = vld [vmem:[%s13123_s14 + $0x248] sm:$0xff] }
  0x9c   : > { %1871 = vmatpush2.msra.mxu0 %v13021_v20  ;;  %12691 = vmatpush2.msra.mxu1 %v13012_v19  ;;  %v528_v19 = vld [vmem:[%s13123_s14 + $0x160] sm:$0xff] }
  0x9d   : > { %1872 = vmatprep.subr.mxu0 %v16643_v1  ;;  %12660 = vmatprep.subr.mxu1 %v16643_v1 }
  0x9e   : > { %777 = vmatmul.mubr.f32.gmra.mxu0 %v524_v17  ;;  %1355 = vmatmul.mubr.f32.gmra.mxu1 %v10393_v5  ;;  %v10426_v17 = vld [vmem:[%s13123_s14 + $0x648] sm:$0xff]  ;;  %v556_v5 = vld [vmem:[%s13123_s14 + $0x240] sm:$0xff] }
  0x9f   : > { %781 = vmatprep.mubr.f32.mxu0 %v527_v33  ;;  %1359 = vmatprep.mubr.f32.mxu1 %v10396_v34  ;;  %v10425_v33 = vld [vmem:[%s13123_s14 + $0x640] sm:$0xff]  ;;  %v559_v34 = vld [vmem:[%s13123_s14 + $0x258] sm:$0xff] }
  0xa0   : > { %1873 = vmatpush2.msra.mxu0 %v13030_v21  ;;  %12692 = vmatpush2.msra.mxu1 %v13021_v20  ;;  %v530_v20 = vld [vmem:[%s13123_s14 + $0x170] sm:$0xff] }
  0xa1   : > { %1874 = vmatprep.subr.mxu0 %v16643_v1  ;;  %12661 = vmatprep.subr.mxu1 %v16643_v1 }
  0xa2   : > { %782 = vmatmul.mubr.f32.gmra.mxu0 %v526_v18  ;;  %1360 = vmatmul.mubr.f32.gmra.mxu1 %v10395_v6  ;;  %v10428_v18 = vld [vmem:[%s13123_s14 + $0x658] sm:$0xff]  ;;  %v558_v6 = vld [vmem:[%s13123_s14 + $0x250] sm:$0xff] }
  0xa3   : > { %786 = vmatprep.mubr.f32.mxu0 %v529_v35  ;;  %1364 = vmatprep.mubr.f32.mxu1 %v10398_v36  ;;  %v10427_v35 = vld [vmem:[%s13123_s14 + $0x650] sm:$0xff]  ;;  %v561_v36 = vld [vmem:[%s13123_s14 + $0x268] sm:$0xff] }
  0xa4   : > { %1875 = vmatpush2.msra.mxu0 %v13039_v22  ;;  %12693 = vmatpush2.msra.mxu1 %v13030_v21  ;;  %v532_v21 = vld [vmem:[%s13123_s14 + $0x180] sm:$0xff] }
  0xa5   : > { %1876 = vmatprep.subr.mxu0 %v16643_v1  ;;  %12662 = vmatprep.subr.mxu1 %v16643_v1 }
  0xa6   : > { %787 = vmatmul.mubr.f32.gmra.mxu0 %v528_v19  ;;  %1365 = vmatmul.mubr.f32.gmra.mxu1 %v10397_v37  ;;  %v10430_v19 = vld [vmem:[%s13123_s14 + $0x668] sm:$0xff]  ;;  %v560_v37 = vld [vmem:[%s13123_s14 + $0x260] sm:$0xff] }
  0xa7   : > { %791 = vmatprep.mubr.f32.mxu0 %v531_v7  ;;  %1369 = vmatprep.mubr.f32.mxu1 %v10400_v38  ;;  %v10429_v7 = vld [vmem:[%s13123_s14 + $0x660] sm:$0xff]  ;;  %v563_v38 = vld [vmem:[%s13123_s14 + $0x278] sm:$0xff] }
  0xa8   : > { %1877 = vmatpush2.msra.mxu0 %v13048_v23  ;;  %12694 = vmatpush2.msra.mxu1 %v13039_v22  ;;  %v534_v22 = vld [vmem:[%s13123_s14 + $0x190] sm:$0xff] }
  0xa9   : > { %1878 = vmatprep.subr.mxu0 %v16643_v1  ;;  %12663 = vmatprep.subr.mxu1 %v16643_v1 }
  0xaa   : > { %792 = vmatmul.mubr.f32.gmra.mxu0 %v530_v20  ;;  %1370 = vmatmul.mubr.f32.gmra.mxu1 %v10399_v39  ;;  %v10432_v20 = vld [vmem:[%s13123_s14 + $0x678] sm:$0xff]  ;;  %v562_v39 = vld [vmem:[%s13123_s14 + $0x270] sm:$0xff] }
  0xab   : > { %796 = vmatprep.mubr.f32.mxu0 %v533_v40  ;;  %1374 = vmatprep.mubr.f32.mxu1 %v10402_v8  ;;  %v10431_v40 = vld [vmem:[%s13123_s14 + $0x670] sm:$0xff]  ;;  %v565_v8 = vld [vmem:[%s13123_s14 + $0x288] sm:$0xff] }
  0xac   : > { %1879 = vmatpush2.msra.mxu0 %v13057_v24  ;;  %12695 = vmatpush2.msra.mxu1 %v13048_v23  ;;  %v536_v23 = vld [vmem:[%s13123_s14 + $0x1a0] sm:$0xff] }
  0xad   : > { %1880 = vmatprep.subr.mxu0 %v16643_v1  ;;  %12664 = vmatprep.subr.mxu1 %v16643_v1 }
  0xae   : > { %797 = vmatmul.mubr.f32.gmra.mxu0 %v532_v21  ;;  %1375 = vmatmul.mubr.f32.gmra.mxu1 %v10401_v41  ;;  %v10434_v21 = vld [vmem:[%s13123_s14 + $0x688] sm:$0xff]  ;;  %v564_v41 = vld [vmem:[%s13123_s14 + $0x280] sm:$0xff] }
  0xaf   : > { %801 = vmatprep.mubr.f32.mxu0 %v535_v42  ;;  %1379 = vmatprep.mubr.f32.mxu1 %v10404_v43  ;;  %v10433_v42 = vld [vmem:[%s13123_s14 + $0x680] sm:$0xff]  ;;  %v567_v43 = vld [vmem:[%s13123_s14 + $0x298] sm:$0xff] }
  0xb0   : > { %1881 = vmatpush2.msra.mxu0 %v13067_v25  ;;  %12696 = vmatpush2.msra.mxu1 %v13057_v24  ;;  %v538_v24 = vld [vmem:[%s13123_s14 + $0x1b0] sm:$0xff] }
  0xb1   : > { %1882 = vmatprep.subr.mxu0 %v16643_v1  ;;  %12665 = vmatprep.subr.mxu1 %v16643_v1 }
  0xb2   : > { %802 = vmatmul.mubr.f32.gmra.mxu0 %v534_v22  ;;  %1380 = vmatmul.mubr.f32.gmra.mxu1 %v10403_v9  ;;  %v10436_v22 = vld [vmem:[%s13123_s14 + $0x698] sm:$0xff]  ;;  %v566_v9 = vld [vmem:[%s13123_s14 + $0x290] sm:$0xff] }
  0xb3   : > { %806 = vmatprep.mubr.f32.mxu0 %v537_v44  ;;  %1384 = vmatprep.mubr.f32.mxu1 %v10406_v45  ;;  %v10435_v44 = vld [vmem:[%s13123_s14 + $0x690] sm:$0xff]  ;;  %v569_v45 = vld [vmem:[%s13123_s14 + $0x2a8] sm:$0xff] }
  0xb4   : > { %1883 = vmatpush2.msra.mxu0 %v13076_v26  ;;  %12697 = vmatpush2.msra.mxu1 %v13067_v25  ;;  %v540_v25 = vld [vmem:[%s13123_s14 + $0x1c0] sm:$0xff] }
  0xb5   : > { %1884 = vmatprep.subr.mxu0 %v16643_v1  ;;  %12666 = vmatprep.subr.mxu1 %v16643_v1 }
  0xb6   : > { %807 = vmatmul.mubr.f32.gmra.mxu0 %v536_v23  ;;  %1385 = vmatmul.mubr.f32.gmra.mxu1 %v10405_v46  ;;  %v10438_v23 = vld [vmem:[%s13123_s14 + $0x6a8] sm:$0xff]  ;;  %v568_v46 = vld [vmem:[%s13123_s14 + $0x2a0] sm:$0xff] }
  0xb7   : > { %811 = vmatprep.mubr.f32.mxu0 %v539_v10  ;;  %1389 = vmatprep.mubr.f32.mxu1 %v10408_v47  ;;  %v10437_v10 = vld [vmem:[%s13123_s14 + $0x6a0] sm:$0xff]  ;;  %v571_v47 = vld [vmem:[%s13123_s14 + $0x2b8] sm:$0xff] }
  0xb8   : > { %1885 = vmatpush2.msra.mxu0 %v13088_v27  ;;  %12698 = vmatpush2.msra.mxu1 %v13076_v26  ;;  %v542_v26 = vld [vmem:[%s13123_s14 + $0x1d0] sm:$0xff] }
  0xb9   : > { %1886 = vmatprep.subr.mxu0 %v16643_v1  ;;  %12667 = vmatprep.subr.mxu1 %v16643_v1 }
  0xba   : > { %812 = vmatmul.mubr.f32.gmra.mxu0 %v538_v24  ;;  %1390 = vmatmul.mubr.f32.gmra.mxu1 %v10407_v48  ;;  %v10440_v24 = vld [vmem:[%s13123_s14 + $0x6b8] sm:$0xff]  ;;  %v570_v48 = vld [vmem:[%s13123_s14 + $0x2b0] sm:$0xff] }
  0xbb   : > { %816 = vmatprep.mubr.f32.mxu0 %v541_v49  ;;  %1394 = vmatprep.mubr.f32.mxu1 %v10410_v11  ;;  %v10439_v49 = vld [vmem:[%s13123_s14 + $0x6b0] sm:$0xff]  ;;  %v573_v11 = vld [vmem:[%s13123_s14 + $0x2c8] sm:$0xff] }
  0xbc   : > { %1887 = vmatpush2.msra.mxu0 %v13097_v28  ;;  %12699 = vmatpush2.msra.mxu1 %v13088_v27  ;;  %v544_v27 = vld [vmem:[%s13123_s14 + $0x1e0] sm:$0xff] }
  0xbd   : > { %1888 = vmatprep.subr.mxu0 %v16643_v1  ;;  %12668 = vmatprep.subr.mxu1 %v16643_v1 }
  0xbe   : > { %817 = vmatmul.mubr.f32.gmra.mxu0 %v540_v25  ;;  %1395 = vmatmul.mubr.f32.gmra.mxu1 %v10409_v50  ;;  %v10442_v25 = vld [vmem:[%s13123_s14 + $0x6c8] sm:$0xff]  ;;  %v572_v50 = vld [vmem:[%s13123_s14 + $0x2c0] sm:$0xff] }
  0xbf   : > { %821 = vmatprep.mubr.f32.mxu0 %v543_v51  ;;  %1399 = vmatprep.mubr.f32.mxu1 %v10412_v52  ;;  %v10441_v51 = vld [vmem:[%s13123_s14 + $0x6c0] sm:$0xff]  ;;  %v575_v52 = vld [vmem:[%s13123_s14 + $0x2d8] sm:$0xff] }
  0xc0   : > { %1889 = vmatpush2.msra.mxu0 %v13107_v29  ;;  %12700 = vmatpush2.msra.mxu1 %v13097_v28  ;;  %v546_v28 = vld [vmem:[%s13123_s14 + $0x1f0] sm:$0xff] }
  0xc1   : > { %1890 = vmatprep.subr.mxu0 %v16643_v1  ;;  %12669 = vmatprep.subr.mxu1 %v16643_v1 }
  0xc2   : > { %822 = vmatmul.mubr.f32.gmra.mxu0 %v542_v26  ;;  %1400 = vmatmul.mubr.f32.gmra.mxu1 %v10411_v12  ;;  %v10444_v26 = vld [vmem:[%s13123_s14 + $0x6d8] sm:$0xff]  ;;  %v574_v12 = vld [vmem:[%s13123_s14 + $0x2d0] sm:$0xff] }
  0xc3   : > { %826 = vmatprep.mubr.f32.mxu0 %v545_v53  ;;  %1404 = vmatprep.mubr.f32.mxu1 %v10414_v54  ;;  %v10443_v53 = vld [vmem:[%s13123_s14 + $0x6d0] sm:$0xff]  ;;  %v577_v54 = vld [vmem:[%s13123_s14 + $0x2e8] sm:$0xff] }
  0xc4   : > { %1891 = vmatpush2.msra.mxu0 %v13116_v30  ;;  %12701 = vmatpush2.msra.mxu1 %v13107_v29  ;;  %v548_v29 = vld [vmem:[%s13123_s14 + $0x200] sm:$0xff] }
  0xc5   : > { %1892 = vmatprep.subr.mxu0 %v16643_v1  ;;  %12670 = vmatprep.subr.mxu1 %v16643_v1 }
  0xc6   : > { %827 = vmatmul.mubr.f32.gmra.mxu0 %v544_v27  ;;  %1405 = vmatmul.mubr.f32.gmra.mxu1 %v10413_v55  ;;  %v10446_v27 = vld [vmem:[%s13123_s14 + $0x6e8] sm:$0xff]  ;;  %v576_v55 = vld [vmem:[%s13123_s14 + $0x2e0] sm:$0xff] }
  0xc7   : > { %831 = vmatprep.mubr.f32.mxu0 %v547_v13  ;;  %1409 = vmatprep.mubr.f32.mxu1 %v10416_v56  ;;  %v10445_v13 = vld [vmem:[%s13123_s14 + $0x6e0] sm:$0xff]  ;;  %v579_v56 = vld [vmem:[%s13123_s14 + $0x2f8] sm:$0xff] }
  0xc8   : > { %1893 = vmatpush2.msra.mxu0 %v13130_v31  ;;  %12702 = vmatpush2.msra.mxu1 %v13116_v30  ;;  %v550_v30 = vld [vmem:[%s13123_s14 + $0x210] sm:$0xff] }
  0xc9   : > { %1894 = vmatprep.subr.mxu0 %v16643_v1  ;;  %12671 = vmatprep.subr.mxu1 %v16643_v1 }
  0xca   : > { %832 = vmatmul.mubr.f32.gmra.mxu0 %v546_v28  ;;  %1410 = vmatmul.mubr.f32.gmra.mxu1 %v10415_v57  ;;  %v10448_v28 = vld [vmem:[%s13123_s14 + $0x6f8] sm:$0xff]  ;;  %v578_v57 = vld [vmem:[%s13123_s14 + $0x2f0] sm:$0xff] }
  0xcb   : > { %836 = vmatprep.mubr.f32.mxu0 %v549_v58  ;;  %1414 = vmatprep.mubr.f32.mxu1 %v10418_v14  ;;  %v10447_v58 = vld [vmem:[%s13123_s14 + $0x6f0] sm:$0xff]  ;;  %v581_v14 = vld [vmem:[%s13123_s14 + $0x308] sm:$0xff] }
  0xcc   : > { %1895 = vmatpush2.msra.mxu0 %v13139_v32  ;;  %12703 = vmatpush2.msra.mxu1 %v13130_v31  ;;  %v552_v31 = vld [vmem:[%s13123_s14 + $0x220] sm:$0xff] }
  0xcd   : > { %12672 = vmatprep.subr.mxu1 %v16643_v1  ;;  %v10552_v1 = vld [vmem:[%s13123_s14 + $0xa38] sm:$0xff] }
  0xce   : > { %837 = vmatmul.mubr.f32.gmra.mxu0 %v548_v29  ;;  %1415 = vmatmul.mubr.f32.gmra.mxu1 %v10417_v59  ;;  %v10450_v29 = vld [vmem:[%s13123_s14 + $0x708] sm:$0xff]  ;;  %v580_v59 = vld [vmem:[%s13123_s14 + $0x300] sm:$0xff] }
  0xcf   : > { %841 = vmatprep.mubr.f32.mxu0 %v551_v60  ;;  %1419 = vmatprep.mubr.f32.mxu1 %v10420_v61  ;;  %v10449_v60 = vld [vmem:[%s13123_s14 + $0x700] sm:$0xff]  ;;  %v583_v61 = vld [vmem:[%s13123_s14 + $0x318] sm:$0xff] }
  0xd0   : > { %12704 = vmatpush2.msra.mxu1 %v13139_v32  ;;  %v10423_v32 = vld [vmem:[%s13123_s14 + $0x630] sm:$0xff] }
  0xd2   : > { %842 = vmatmul.mubr.f32.gmra.mxu0 %v550_v30  ;;  %1420 = vmatmul.mubr.f32.gmra.mxu1 %v10419_v15  ;;  %v10452_v30 = vld [vmem:[%s13123_s14 + $0x718] sm:$0xff] }
  0xd3   : > { %846 = vmatprep.mubr.f32.mxu0 %v553_v62  ;;  %1424 = vmatprep.mubr.f32.mxu1 %v10422_v63 }
  0xd6   : > { %847 = vmatmul.mubr.f32.gmra.mxu0 %v552_v31  ;;  %1425 = vmatmul.mubr.f32.gmra.mxu1 %v10421_v0  ;;  %v582_v0 = vld [vmem:[%s13123_s14 + $0x310] sm:$0xff] }
  0xd7   : > { %851 = vmatprep.mubr.f32.mxu0 %v555_v16  ;;  %1429 = vmatprep.mubr.f32.mxu1 %v10424_v2  ;;  %v10451_v16 = vld [vmem:[%s13123_s14 + $0x710] sm:$0xff] }
  0xda   : > { %852 = vmatmul.mubr.f32.gmra.mxu0 %v554_v3  ;;  %1430 = vmatmul.mubr.f32.gmra.mxu1 %v10423_v32  ;;  %v585_v32 = vld [vmem:[%s13123_s14 + $0x328] sm:$0xff] }
  0xdb   : > { %856 = vmatprep.mubr.f32.mxu0 %v557_v4  ;;  %1434 = vmatprep.mubr.f32.mxu1 %v10426_v17  ;;  %v10454_v4 = vld [vmem:[%s13123_s14 + $0x728] sm:$0xff] }
  0xde   : > { %857 = vmatmul.mubr.f32.gmra.mxu0 %v556_v5  ;;  %1435 = vmatmul.mubr.f32.gmra.mxu1 %v10425_v33 }
  0xdf   : > { %861 = vmatprep.mubr.f32.mxu0 %v559_v34  ;;  %1439 = vmatprep.mubr.f32.mxu1 %v10428_v18 }
  0xe2   : > { %862 = vmatmul.mubr.f32.gmra.mxu0 %v558_v6  ;;  %1440 = vmatmul.mubr.f32.gmra.mxu1 %v10427_v35  ;;  %v584_v6 = vld [vmem:[%s13123_s14 + $0x320] sm:$0xff] }
  0xe3   : > { %866 = vmatprep.mubr.f32.mxu0 %v561_v36  ;;  %1444 = vmatprep.mubr.f32.mxu1 %v10430_v19  ;;  %v10453_v35 = vld [vmem:[%s13123_s14 + $0x720] sm:$0xff] }
  0xe6   : > { %867 = vmatmul.mubr.f32.gmra.mxu0 %v560_v37  ;;  %1445 = vmatmul.mubr.f32.gmra.mxu1 %v10429_v7  ;;  %v587_v37 = vld [vmem:[%s13123_s14 + $0x338] sm:$0xff] }
  0xe7   : > { %871 = vmatprep.mubr.f32.mxu0 %v563_v38  ;;  %1449 = vmatprep.mubr.f32.mxu1 %v10432_v20  ;;  %v10456_v7 = vld [vmem:[%s13123_s14 + $0x738] sm:$0xff] }
  0xea   : > { %872 = vmatmul.mubr.f32.gmra.mxu0 %v562_v39  ;;  %1450 = vmatmul.mubr.f32.gmra.mxu1 %v10431_v40 }
  0xeb   : > { %876 = vmatprep.mubr.f32.mxu0 %v565_v8  ;;  %1454 = vmatprep.mubr.f32.mxu1 %v10434_v21  ;;  %v586_v21 = vld [vmem:[%s13123_s14 + $0x330] sm:$0xff] }
  0xee   : > { %877 = vmatmul.mubr.f32.gmra.mxu0 %v564_v41  ;;  %1455 = vmatmul.mubr.f32.gmra.mxu1 %v10433_v42  ;;  %v10455_v41 = vld [vmem:[%s13123_s14 + $0x730] sm:$0xff] }
  0xef   : > { %881 = vmatprep.mubr.f32.mxu0 %v567_v43  ;;  %1459 = vmatprep.mubr.f32.mxu1 %v10436_v22  ;;  %v589_v22 = vld [vmem:[%s13123_s14 + $0x348] sm:$0xff] }
  0xf2   : > { %882 = vmatmul.mubr.f32.gmra.mxu0 %v566_v9  ;;  %1460 = vmatmul.mubr.f32.gmra.mxu1 %v10435_v44  ;;  %v10458_v9 = vld [vmem:[%s13123_s14 + $0x748] sm:$0xff] }
  0xf3   : > { %886 = vmatprep.mubr.f32.mxu0 %v569_v45  ;;  %1464 = vmatprep.mubr.f32.mxu1 %v10438_v23 }
  0xf6   : > { %887 = vmatmul.mubr.f32.gmra.mxu0 %v568_v46  ;;  %1465 = vmatmul.mubr.f32.gmra.mxu1 %v10437_v10 }
  0xf7   : > { %891 = vmatprep.mubr.f32.mxu0 %v571_v47  ;;  %1469 = vmatprep.mubr.f32.mxu1 %v10440_v24  ;;  %v588_v47 = vld [vmem:[%s13123_s14 + $0x340] sm:$0xff] }
  0xf8   : > { %v10457_v24 = vld [vmem:[%s13123_s14 + $0x740] sm:$0xff] }
  0xfa   : > { %892 = vmatmul.mubr.f32.gmra.mxu0 %v570_v48  ;;  %1470 = vmatmul.mubr.f32.gmra.mxu1 %v10439_v49 }
  0xfb   : > { %896 = vmatprep.mubr.f32.mxu0 %v573_v11  ;;  %1474 = vmatprep.mubr.f32.mxu1 %v10442_v25  ;;  %v591_v11 = vld [vmem:[%s13123_s14 + $0x358] sm:$0xff] }
  0xfc   : > { %v10460_v25 = vld [vmem:[%s13123_s14 + $0x758] sm:$0xff] }
  0xfe   : > { %897 = vmatmul.mubr.f32.gmra.mxu0 %v572_v50  ;;  %1475 = vmatmul.mubr.f32.gmra.mxu1 %v10441_v51 }
  0xff   : > { %901 = vmatprep.mubr.f32.mxu0 %v575_v52  ;;  %1479 = vmatprep.mubr.f32.mxu1 %v10444_v26 }
 0x102   : > { %902 = vmatmul.mubr.f32.gmra.mxu0 %v574_v12  ;;  %1480 = vmatmul.mubr.f32.gmra.mxu1 %v10443_v53  ;;  %v590_v53 = vld [vmem:[%s13123_s14 + $0x350] sm:$0xff] }
 0x103   : > { %906 = vmatprep.mubr.f32.mxu0 %v577_v54  ;;  %1484 = vmatprep.mubr.f32.mxu1 %v10446_v27  ;;  %v10459_v54 = vld [vmem:[%s13123_s14 + $0x750] sm:$0xff] }
 0x106   : > { %907 = vmatmul.mubr.f32.gmra.mxu0 %v576_v55  ;;  %1485 = vmatmul.mubr.f32.gmra.mxu1 %v10445_v13  ;;  %v593_v13 = vld [vmem:[%s13123_s14 + $0x368] sm:$0xff] }
 0x107   : > { %911 = vmatprep.mubr.f32.mxu0 %v579_v56  ;;  %1489 = vmatprep.mubr.f32.mxu1 %v10448_v28  ;;  %v10462_v56 = vld [vmem:[%s13123_s14 + $0x768] sm:$0xff] }
 0x10a   : > { %912 = vmatmul.mubr.f32.gmra.mxu0 %v578_v57  ;;  %1490 = vmatmul.mubr.f32.gmra.mxu1 %v10447_v58 }
 0x10b   : > { %916 = vmatprep.mubr.f32.mxu0 %v581_v14  ;;  %1494 = vmatprep.mubr.f32.mxu1 %v10450_v29 }
 0x10e   : > { %v678_v15 = vpop.f32.mrf.mxu0  ;;  %917 = vmatmul.mubr.f32.gmra.mxu0 %v580_v59  ;;  %v1256_v62 = vpop.f32.mrf.mxu1  ;;  %1495 = vmatmul.mubr.f32.gmra.mxu1 %v10449_v60  ;;  %v592_v59 = vld [vmem:[%s13123_s14 + $0x360] sm:$0xff] }
 0x10f   : > { %v997_v63 = vand.u32 2147483647, %v678_v15  ;;  %v1575_v31 = vand.u32 2147483647, %v1256_v62  ;;  %921 = vmatprep.mubr.f32.mxu0 %v583_v61  ;;  %1499 = vmatprep.mubr.f32.mxu1 %v10452_v30  ;;  %v10461_v60 = vld [vmem:[%s13123_s14 + $0x760] sm:$0xff]  ;;  %v595_v15 = vld [vmem:[%s13123_s14 + $0x378] sm:$0xff] }
 0x110   : > { %v680_v2 = vpop.f32.mrf.mxu0  ;;  %v1258_v3 = vpop.f32.mrf.mxu1  ;;  %v10464_v62 = vld [vmem:[%s13123_s14 + $0x778] sm:$0xff] }
 0x111   : > { %v13477_v17 = vmax.f32.f32 %v997_v63, %v1575_v31  ;;  %v594_v3 = vld [vmem:[%s13123_s14 + $0x370] sm:$0xff] }
 0x112   : > { %v683_v5 = vpop.f32.mrf.mxu0  ;;  %922 = vmatmul.mubr.f32.gmra.mxu0 %v582_v0  ;;  %v1261_v33 = vpop.f32.mrf.mxu1  ;;  %1500 = vmatmul.mubr.f32.gmra.mxu1 %v10451_v16 }
 0x113   : > { %v998_v34 = vand.u32 2147483647, %v683_v5  ;;  %v1576_v18 = vand.u32 2147483647, %v1261_v33  ;;  %926 = vmatprep.mubr.f32.mxu0 %v585_v32  ;;  %1504 = vmatprep.mubr.f32.mxu1 %v10454_v4  ;;  %v10463_v32 = vld [vmem:[%s13123_s14 + $0x770] sm:$0xff]  ;;  %v597_v33 = vld [vmem:[%s13123_s14 + $0x388] sm:$0xff] }
 0x114   : > { %v685_v36 = vpop.f32.mrf.mxu0  ;;  %v1263_v19 = vpop.f32.mrf.mxu1 }
 0x115   : > { %v13483_v38 = vmax.f32.f32 %v998_v34, %v1576_v18  ;;  %v10466_v34 = vld [vmem:[%s13123_s14 + $0x788] sm:$0xff] }
 0x116   : > { %v688_v20 = vpop.f32.mrf.mxu0  ;;  %927 = vmatmul.mubr.f32.gmra.mxu0 %v584_v6  ;;  %v1266_v39 = vpop.f32.mrf.mxu1  ;;  %1505 = vmatmul.mubr.f32.gmra.mxu1 %v10453_v35 }
 0x117   : > { %v999_v40 = vand.u32 2147483647, %v688_v20  ;;  %v1577_v8 = vand.u32 2147483647, %v1266_v39  ;;  %931 = vmatprep.mubr.f32.mxu0 %v587_v37  ;;  %1509 = vmatprep.mubr.f32.mxu1 %v10456_v7  ;;  %v596_v37 = vld [vmem:[%s13123_s14 + $0x380] sm:$0xff] }
 0x118   : > { %v690_v42 = vpop.f32.mrf.mxu0  ;;  %v1268_v43 = vpop.f32.mrf.mxu1  ;;  %v10465_v7 = vld [vmem:[%s13123_s14 + $0x780] sm:$0xff] }
 0x119   : > { %v13489_v44 = vmax.f32.f32 %v999_v40, %v1577_v8  ;;  %v599_v40 = vld [vmem:[%s13123_s14 + $0x398] sm:$0xff] }
 0x11a   : > { %v693_v45 = vpop.f32.mrf.mxu0  ;;  %932 = vmatmul.mubr.f32.gmra.mxu0 %v586_v21  ;;  %v1271_v23 = vpop.f32.mrf.mxu1  ;;  %1510 = vmatmul.mubr.f32.gmra.mxu1 %v10455_v41  ;;  %v10468_v8 = vld [vmem:[%s13123_s14 + $0x798] sm:$0xff] }
 0x11b   : > { %v1000_v46 = vand.u32 2147483647, %v693_v45  ;;  %v1578_v10 = vand.u32 2147483647, %v1271_v23  ;;  %936 = vmatprep.mubr.f32.mxu0 %v589_v22  ;;  %1514 = vmatprep.mubr.f32.mxu1 %v10458_v9  ;;  %v598_v9 = vld [vmem:[%s13123_s14 + $0x390] sm:$0xff] }
 0x11c   : > { %v695_v48 = vpop.f32.mrf.mxu0  ;;  %v1273_v49 = vpop.f32.mrf.mxu1  ;;  %v10467_v45 = vld [vmem:[%s13123_s14 + $0x790] sm:$0xff] }
 0x11d   : > { %v13495_v50 = vmax.f32.f32 %v1000_v46, %v1578_v10  ;;  %v601_v10 = vld [vmem:[%s13123_s14 + $0x3a8] sm:$0xff] }
 0x11e   : > { %v698_v51 = vpop.f32.mrf.mxu0  ;;  %937 = vmatmul.mubr.f32.gmra.mxu0 %v588_v47  ;;  %v1276_v52 = vpop.f32.mrf.mxu1  ;;  %1515 = vmatmul.mubr.f32.gmra.mxu1 %v10457_v24  ;;  %v10470_v47 = vld [vmem:[%s13123_s14 + $0x7a8] sm:$0xff] }
 0x11f   : > { %v1001_v26 = vand.u32 2147483647, %v698_v51  ;;  %v1579_v12 = vand.u32 2147483647, %v1276_v52  ;;  %941 = vmatprep.mubr.f32.mxu0 %v591_v11  ;;  %1519 = vmatprep.mubr.f32.mxu1 %v10460_v25  ;;  %v600_v51 = vld [vmem:[%s13123_s14 + $0x3a0] sm:$0xff] }
 0x120   : > { %v700_v27 = vpop.f32.mrf.mxu0  ;;  %v1278_v55 = vpop.f32.mrf.mxu1  ;;  %v10469_v52 = vld [vmem:[%s13123_s14 + $0x7a0] sm:$0xff] }
 0x121   : > { %v13501_v28 = vmax.f32.f32 %v1001_v26, %v1579_v12 }
 0x122   : > { %v703_v57 = vpop.f32.mrf.mxu0  ;;  %942 = vmatmul.mubr.f32.gmra.mxu0 %v590_v53  ;;  %v1281_v58 = vpop.f32.mrf.mxu1  ;;  %1520 = vmatmul.mubr.f32.gmra.mxu1 %v10459_v54  ;;  %v603_v53 = vld [vmem:[%s13123_s14 + $0x3b8] sm:$0xff] }
 0x123   : > { %v1002_v14 = vand.u32 2147483647, %v703_v57  ;;  %v1580_v29 = vand.u32 2147483647, %v1281_v58  ;;  %946 = vmatprep.mubr.f32.mxu0 %v593_v13  ;;  %1524 = vmatprep.mubr.f32.mxu1 %v10462_v56  ;;  %v10472_v54 = vld [vmem:[%s13123_s14 + $0x7b8] sm:$0xff]  ;;  %v602_v58 = vld [vmem:[%s13123_s14 + $0x3b0] sm:$0xff] }
 0x124   : > { %v705_v61 = vpop.f32.mrf.mxu0  ;;  %v1283_v30 = vpop.f32.mrf.mxu1 }
 0x125   : > { %v13507_v63 = vmax.f32.f32 %v1002_v14, %v1580_v29  ;;  %v10471_v14 = vld [vmem:[%s13123_s14 + $0x7b0] sm:$0xff]  ;;  %v10474_v61 = vld [vmem:[%s13123_s14 + $0x7c8] sm:$0xff] }
 0x126   : > { %v708_v31 = vpop.f32.mrf.mxu0  ;;  %947 = vmatmul.mubr.f32.gmra.mxu0 %v592_v59  ;;  %v1286_v0 = vpop.f32.mrf.mxu1  ;;  %1525 = vmatmul.mubr.f32.gmra.mxu1 %v10461_v60  ;;  %v605_v60 = vld [vmem:[%s13123_s14 + $0x3c8] sm:$0xff] }
 0x127   : > { %v1003_v16 = vand.u32 2147483647, %v708_v31  ;;  %v1581_v2 = vand.u32 2147483647, %v1286_v0  ;;  %951 = vmatprep.mubr.f32.mxu0 %v595_v15  ;;  %1529 = vmatprep.mubr.f32.mxu1 %v10464_v62 }
 0x128   : > { %v710_v4 = vpop.f32.mrf.mxu0  ;;  %v1288_v5 = vpop.f32.mrf.mxu1 }
 0x129   : > { %v13513_v18 = vmax.f32.f32 %v1003_v16, %v1581_v2  ;;  %v604_v16 = vld [vmem:[%s13123_s14 + $0x3c0] sm:$0xff]  ;;  %v607_v4 = vld [vmem:[%s13123_s14 + $0x3d8] sm:$0xff] }
 0x12a   : > { %v713_v6 = vpop.f32.mrf.mxu0  ;;  %952 = vmatmul.mubr.f32.gmra.mxu0 %v594_v3  ;;  %v1291_v35 = vpop.f32.mrf.mxu1  ;;  %1530 = vmatmul.mubr.f32.gmra.mxu1 %v10463_v32  ;;  %v10473_v2 = vld [vmem:[%s13123_s14 + $0x7c0] sm:$0xff]  ;;  %v10476_v5 = vld [vmem:[%s13123_s14 + $0x7d8] sm:$0xff] }
 0x12b   : > { %v1004_v36 = vand.u32 2147483647, %v713_v6  ;;  %v1582_v19 = vand.u32 2147483647, %v1291_v35  ;;  %956 = vmatprep.mubr.f32.mxu0 %v597_v33  ;;  %1534 = vmatprep.mubr.f32.mxu1 %v10466_v34 }
 0x12c   : > { %v715_v20 = vpop.f32.mrf.mxu0  ;;  %v1293_v39 = vpop.f32.mrf.mxu1 }
 0x12d   : > { %v13519_v21 = vmax.f32.f32 %v1004_v36, %v1582_v19  ;;  %v606_v19 = vld [vmem:[%s13123_s14 + $0x3d0] sm:$0xff]  ;;  %v609_v39 = vld [vmem:[%s13123_s14 + $0x3e8] sm:$0xff] }
 0x12e   : > { %v718_v41 = vpop.f32.mrf.mxu0  ;;  %957 = vmatmul.mubr.f32.gmra.mxu0 %v596_v37  ;;  %v1296_v42 = vpop.f32.mrf.mxu1  ;;  %1535 = vmatmul.mubr.f32.gmra.mxu1 %v10465_v7  ;;  %v10475_v37 = vld [vmem:[%s13123_s14 + $0x7d0] sm:$0xff] }
 0x12f   : > { %v1005_v43 = vand.u32 2147483647, %v718_v41  ;;  %v1583_v22 = vand.u32 2147483647, %v1296_v42  ;;  %961 = vmatprep.mubr.f32.mxu0 %v599_v40  ;;  %1539 = vmatprep.mubr.f32.mxu1 %v10468_v8  ;;  %v10478_v40 = vld [vmem:[%s13123_s14 + $0x7e8] sm:$0xff] }
 0x130   : > { %v720_v23 = vpop.f32.mrf.mxu0  ;;  %v1298_v46 = vpop.f32.mrf.mxu1 }
 0x131   : > { %v13525_v24 = vmax.f32.f32 %v1005_v43, %v1583_v22 }
 0x132   : > { %v723_v48 = vpop.f32.mrf.mxu0  ;;  %962 = vmatmul.mubr.f32.gmra.mxu0 %v598_v9  ;;  %v1301_v49 = vpop.f32.mrf.mxu1  ;;  %1540 = vmatmul.mubr.f32.gmra.mxu1 %v10467_v45  ;;  %v608_v9 = vld [vmem:[%s13123_s14 + $0x3e0] sm:$0xff] }
 0x133   : > { %v1006_v11 = vand.u32 2147483647, %v723_v48  ;;  %v1584_v25 = vand.u32 2147483647, %v1301_v49  ;;  %966 = vmatprep.mubr.f32.mxu0 %v601_v10  ;;  %1544 = vmatprep.mubr.f32.mxu1 %v10470_v47  ;;  %v10477_v45 = vld [vmem:[%s13123_s14 + $0x7e0] sm:$0xff]  ;;  %v611_v10 = vld [vmem:[%s13123_s14 + $0x3f8] sm:$0xff] }
 0x134   : > { %v725_v26 = vpop.f32.mrf.mxu0  ;;  %v1303_v12 = vpop.f32.mrf.mxu1  ;;  %v10480_v47 = vld [vmem:[%s13123_s14 + $0x7f8] sm:$0xff] }
 0x135   : > { %v13531_v27 = vmax.f32.f32 %v1006_v11, %v1584_v25  ;;  %v10479_v26 = vld [vmem:[%s13123_s14 + $0x7f0] sm:$0xff] }
 0x136   : > { %v728_v55 = vpop.f32.mrf.mxu0  ;;  %967 = vmatmul.mubr.f32.gmra.mxu0 %v600_v51  ;;  %v1306_v13 = vpop.f32.mrf.mxu1  ;;  %1545 = vmatmul.mubr.f32.gmra.mxu1 %v10469_v52  ;;  %v610_v52 = vld [vmem:[%s13123_s14 + $0x3f0] sm:$0xff] }
 0x137   : > { %v1007_v56 = vand.u32 2147483647, %v728_v55  ;;  %v1585_v57 = vand.u32 2147483647, %v1306_v13  ;;  %971 = vmatprep.mubr.f32.mxu0 %v603_v53  ;;  %1549 = vmatprep.mubr.f32.mxu1 %v10472_v54  ;;  %v10482_v54 = vld [vmem:[%s13123_s14 + $0x808] sm:$0xff] }
 0x138   : > { %v730_v29 = vpop.f32.mrf.mxu0  ;;  %v1308_v59 = vpop.f32.mrf.mxu1  ;;  %v10594_v55 = vld [vmem:[%s13123_s14 + $0xb88] sm:$0xff] }
 0x139   : > { %v13537_v30 = vmax.f32.f32 %v1007_v56, %v1585_v57  ;;  %v10481_v29 = vld [vmem:[%s13123_s14 + $0x800] sm:$0xff] }
 0x13a   : > { %v733_v15 = vpop.f32.mrf.mxu0  ;;  %972 = vmatmul.mubr.f32.gmra.mxu0 %v602_v58  ;;  %v1311_v62 = vpop.f32.mrf.mxu1  ;;  %1550 = vmatmul.mubr.f32.gmra.mxu1 %v10471_v14  ;;  %v10593_v59 = vld [vmem:[%s13123_s14 + $0xb80] sm:$0xff] }
 0x13b   : > { %v1008_v31 = vand.u32 2147483647, %v733_v15  ;;  %v1586_v0 = vand.u32 2147483647, %v1311_v62  ;;  %976 = vmatprep.mubr.f32.mxu0 %v605_v60  ;;  %1554 = vmatprep.mubr.f32.mxu1 %v10474_v61  ;;  %v10484_v15 = vld [vmem:[%s13123_s14 + $0x818] sm:$0xff] }
 0x13c   : > { %v735_v3 = vpop.f32.mrf.mxu0  ;;  %v1313_v32 = vpop.f32.mrf.mxu1  ;;  %v10596_v62 = vld [vmem:[%s13123_s14 + $0xb98] sm:$0xff] }
 0x13d   : > { %v13543_v33 = vmax.f32.f32 %v1008_v31, %v1586_v0  ;;  %v10483_v32 = vld [vmem:[%s13123_s14 + $0x810] sm:$0xff] }
 0x13e   : > { %v738_v34 = vpop.f32.mrf.mxu0  ;;  %977 = vmatmul.mubr.f32.gmra.mxu0 %v604_v16  ;;  %v1316_v6 = vpop.f32.mrf.mxu1  ;;  %1555 = vmatmul.mubr.f32.gmra.mxu1 %v10473_v2 }
 0x13f   : > { %v1009_v35 = vand.u32 2147483647, %v738_v34  ;;  %v1587_v36 = vand.u32 2147483647, %v1316_v6  ;;  %981 = vmatprep.mubr.f32.mxu0 %v607_v4  ;;  %1559 = vmatprep.mubr.f32.mxu1 %v10476_v5  ;;  %v10595_v4 = vld [vmem:[%s13123_s14 + $0xb90] sm:$0xff]  ;;  %v10486_v6 = vld [vmem:[%s13123_s14 + $0x828] sm:$0xff] }
 0x140   : > { %v740_v7 = vpop.f32.mrf.mxu0  ;;  %v1318_v20 = vpop.f32.mrf.mxu1 }
 0x141   : > { %v13549_v8 = vmax.f32.f32 %v1009_v35, %v1587_v36  ;;  %v10598_v35 = vld [vmem:[%s13123_s14 + $0xba8] sm:$0xff] }
 0x142   : > { %v743_v41 = vpop.f32.mrf.mxu0  ;;  %982 = vmatmul.mubr.f32.gmra.mxu0 %v606_v19  ;;  %v1321_v42 = vpop.f32.mrf.mxu1  ;;  %1560 = vmatmul.mubr.f32.gmra.mxu1 %v10475_v37 }
 0x143   : > { %v1010_v43 = vand.u32 2147483647, %v743_v41  ;;  %v1588_v22 = vand.u32 2147483647, %v1321_v42  ;;  %986 = vmatprep.mubr.f32.mxu0 %v609_v39  ;;  %1564 = vmatprep.mubr.f32.mxu1 %v10478_v40  ;;  %v10485_v39 = vld [vmem:[%s13123_s14 + $0x820] sm:$0xff] }
 0x144   : > { %v745_v23 = vpop.f32.mrf.mxu0  ;;  %v1323_v46 = vpop.f32.mrf.mxu1  ;;  %v10597_v40 = vld [vmem:[%s13123_s14 + $0xba0] sm:$0xff] }
 0x145   : > { %v13555_v48 = vmax.f32.f32 %v1010_v43, %v1588_v22  ;;  %v10488_v43 = vld [vmem:[%s13123_s14 + $0x838] sm:$0xff] }
 0x146   : > { %v748_v49 = vpop.f32.mrf.mxu0  ;;  %987 = vmatmul.mubr.f32.gmra.mxu0 %v608_v9  ;;  %v1326_v11 = vpop.f32.mrf.mxu1  ;;  %1565 = vmatmul.mubr.f32.gmra.mxu1 %v10477_v45  ;;  %v10600_v22 = vld [vmem:[%s13123_s14 + $0xbb8] sm:$0xff] }
 0x147   : > { %v1011_v25 = vand.u32 2147483647, %v748_v49  ;;  %v1589_v51 = vand.u32 2147483647, %v1326_v11  ;;  %991 = vmatprep.mubr.f32.mxu0 %v611_v10  ;;  %1569 = vmatprep.mubr.f32.mxu1 %v10480_v47  ;;  %v10487_v47 = vld [vmem:[%s13123_s14 + $0x830] sm:$0xff] }
 0x148   : > { %v750_v12 = vpop.f32.mrf.mxu0  ;;  %v1328_v53 = vpop.f32.mrf.mxu1  ;;  %v10599_v49 = vld [vmem:[%s13123_s14 + $0xbb0] sm:$0xff] }
 0x149   : > { %v13561_v13 = vmax.f32.f32 %v1011_v25, %v1589_v51  ;;  %v10490_v51 = vld [vmem:[%s13123_s14 + $0x848] sm:$0xff] }
 0x14a   : > { %v753_v56 = vpop.f32.mrf.mxu0  ;;  %992 = vmatmul.mubr.f32.gmra.mxu0 %v610_v52  ;;  %v1331_v57 = vpop.f32.mrf.mxu1  ;;  %1570 = vmatmul.mubr.f32.gmra.mxu1 %v10479_v26  ;;  %v10602_v52 = vld [vmem:[%s13123_s14 + $0xbc8] sm:$0xff] }
 0x14b   : > { %v1012_v58 = vand.u32 2147483647, %v753_v56  ;;  %v1590_v14 = vand.u32 2147483647, %v1331_v57  ;;  %1896 = vmatprep.mubr.f32.mxu0 %v10482_v54  ;;  %2176 = vmatprep.mubr.f32.mxu1 %v10594_v55  ;;  %v10489_v56 = vld [vmem:[%s13123_s14 + $0x840] sm:$0xff] }
 0x14c   : > { %v755_v60 = vpop.f32.mrf.mxu0  ;;  %v1333_v61 = vpop.f32.mrf.mxu1  ;;  %v10601_v57 = vld [vmem:[%s13123_s14 + $0xbc0] sm:$0xff] }
 0x14d   : > { %v13567_v31 = vmax.f32.f32 %v1012_v58, %v1590_v14 }
 0x14e   : > { %v758_v0 = vpop.f32.mrf.mxu0  ;;  %v1336_v16 = vpop.f32.mrf.mxu1  ;;  %1897 = vmatmul.mubr.f32.vlgmr.msra.gmra.mxu0 %v10481_v29  ;;  %2177 = vmatmul.mubr.f32.vlgmr.msra.gmra.mxu1 %v10593_v59  ;;  %v10492_v29 = vld [vmem:[%s13123_s14 + $0x858] sm:$0xff] }
 0x14f   : > { %v1013_v2 = vand.u32 2147483647, %v758_v0  ;;  %v1591_v3 = vand.u32 2147483647, %v1336_v16  ;;  %1901 = vmatprep.mubr.f32.mxu0 %v10484_v15  ;;  %2181 = vmatprep.mubr.f32.mxu1 %v10596_v62  ;;  %v10604_v59 = vld [vmem:[%s13123_s14 + $0xbd8] sm:$0xff]  ;;  %v10491_v16 = vld [vmem:[%s13123_s14 + $0x850] sm:$0xff] }
 0x150   : > { %v760_v5 = vpop.f32.mrf.mxu0  ;;  %v1338_v34 = vpop.f32.mrf.mxu1 }
 0x151   : > { %v13573_v36 = vmax.f32.f32 %v1013_v2, %v1591_v3  ;;  %v10603_v2 = vld [vmem:[%s13123_s14 + $0xbd0] sm:$0xff]  ;;  %v10606_v5 = vld [vmem:[%s13123_s14 + $0xbe8] sm:$0xff] }
 0x152   : > { %v763_v19 = vpop.f32.mrf.mxu0  ;;  %v1341_v37 = vpop.f32.mrf.mxu1  ;;  %1902 = vmatmul.mubr.f32.gmra.mxu0 %v10483_v32  ;;  %2182 = vmatmul.mubr.f32.gmra.mxu1 %v10595_v4  ;;  %v10494_v4 = vld [vmem:[%s13123_s14 + $0x868] sm:$0xff] }
 0x153   : > { %v1014_v7 = vand.u32 2147483647, %v763_v19  ;;  %v1592_v20 = vand.u32 2147483647, %v1341_v37  ;;  %1906 = vmatprep.mubr.f32.mxu0 %v10486_v6  ;;  %2186 = vmatprep.mubr.f32.mxu1 %v10598_v35 }
 0x154   : > { %v765_v41 = vpop.f32.mrf.mxu0  ;;  %v1343_v42 = vpop.f32.mrf.mxu1 }
 0x155   : > { %v13579_v9 = vmax.f32.f32 %v1014_v7, %v1592_v20  ;;  %v10493_v7 = vld [vmem:[%s13123_s14 + $0x860] sm:$0xff]  ;;  %v10496_v41 = vld [vmem:[%s13123_s14 + $0x878] sm:$0xff] }
 0x156   : > { %v768_v45 = vpop.f32.mrf.mxu0  ;;  %v1346_v23 = vpop.f32.mrf.mxu1  ;;  %1907 = vmatmul.mubr.f32.gmra.mxu0 %v10485_v39  ;;  %2187 = vmatmul.mubr.f32.gmra.mxu1 %v10597_v40  ;;  %v10605_v20 = vld [vmem:[%s13123_s14 + $0xbe0] sm:$0xff]  ;;  %v10608_v42 = vld [vmem:[%s13123_s14 + $0xbf8] sm:$0xff] }
 0x157   : > { %v1015_v46 = vand.u32 2147483647, %v768_v45  ;;  %v1593_v10 = vand.u32 2147483647, %v1346_v23  ;;  %1911 = vmatprep.mubr.f32.mxu0 %v10488_v43  ;;  %2191 = vmatprep.mubr.f32.mxu1 %v10600_v22 }
 0x158   : > { %v770_v11 = vpop.f32.mrf.mxu0  ;;  %v1348_v25 = vpop.f32.mrf.mxu1 }
 0x159   : > { %v13585_v26 = vmax.f32.f32 %v1015_v46, %v1593_v10  ;;  %v10495_v10 = vld [vmem:[%s13123_s14 + $0x870] sm:$0xff]  ;;  %v10498_v25 = vld [vmem:[%s13123_s14 + $0x888] sm:$0xff] }
 0x15a   : > { %v773_v12 = vpop.f32.mrf.mxu0  ;;  %v1351_v53 = vpop.f32.mrf.mxu1  ;;  %1912 = vmatmul.mubr.f32.gmra.mxu0 %v10487_v47  ;;  %2192 = vmatmul.mubr.f32.gmra.mxu1 %v10599_v49  ;;  %v10607_v47 = vld [vmem:[%s13123_s14 + $0xbf0] sm:$0xff] }
 0x15b   : > { %v1016_v54 = vand.u32 2147483647, %v773_v12  ;;  %v1594_v55 = vand.u32 2147483647, %v1351_v53  ;;  %1916 = vmatprep.mubr.f32.mxu0 %v10490_v51  ;;  %2196 = vmatprep.mubr.f32.mxu1 %v10602_v52 }
 0x15c   : > { %v775_v58 = vpop.f32.mrf.mxu0  ;;  %v1353_v14 = vpop.f32.mrf.mxu1 }
 0x15d   : > { %v13591_v60 = vmax.f32.f32 %v1016_v54, %v1594_v55  ;;  %v10497_v55 = vld [vmem:[%s13123_s14 + $0x880] sm:$0xff]  ;;  %v10500_v58 = vld [vmem:[%s13123_s14 + $0x898] sm:$0xff] }
 0x15e   : > { %v778_v61 = vpop.f32.mrf.mxu0  ;;  %v1356_v15 = vpop.f32.mrf.mxu1  ;;  %1917 = vmatmul.mubr.f32.gmra.mxu0 %v10489_v56  ;;  %2197 = vmatmul.mubr.f32.gmra.mxu1 %v10601_v57 }
 0x15f   : > { %v1017_v62 = vand.u32 2147483647, %v778_v61  ;;  %v1595_v0 = vand.u32 2147483647, %v1356_v15  ;;  %1921 = vmatprep.mubr.f32.mxu0 %v10492_v29  ;;  %2201 = vmatprep.mubr.f32.mxu1 %v10604_v59 }
 0x160   : > { %v780_v3 = vpop.f32.mrf.mxu0  ;;  %v1358_v32 = vpop.f32.mrf.mxu1 }
 0x161   : > { %v13597_v34 = vmax.f32.f32 %v1017_v62, %v1595_v0  ;;  %v10499_v62 = vld [vmem:[%s13123_s14 + $0x890] sm:$0xff] }
 0x162   : > { %v783_v6 = vpop.f32.mrf.mxu0  ;;  %v1361_v35 = vpop.f32.mrf.mxu1  ;;  %1922 = vmatmul.mubr.f32.gmra.mxu0 %v10491_v16  ;;  %2202 = vmatmul.mubr.f32.gmra.mxu1 %v10603_v2  ;;  %v10502_v2 = vld [vmem:[%s13123_s14 + $0x8a8] sm:$0xff] }
 0x163   : > { %v1018_v19 = vand.u32 2147483647, %v783_v6  ;;  %v1596_v37 = vand.u32 2147483647, %v1361_v35  ;;  %1926 = vmatprep.mubr.f32.mxu0 %v10494_v4  ;;  %2206 = vmatprep.mubr.f32.mxu1 %v10606_v5  ;;  %v10501_v35 = vld [vmem:[%s13123_s14 + $0x8a0] sm:$0xff] }
 0x164   : > { %v785_v39 = vpop.f32.mrf.mxu0  ;;  %v1363_v40 = vpop.f32.mrf.mxu1 }
 0x165   : > { %v13603_v43 = vmax.f32.f32 %v1018_v19, %v1596_v37 }
 0x166   : > { %v788_v22 = vpop.f32.mrf.mxu0  ;;  %v1366_v45 = vpop.f32.mrf.mxu1  ;;  %1927 = vmatmul.mubr.f32.gmra.mxu0 %v10493_v7  ;;  %2207 = vmatmul.mubr.f32.gmra.mxu1 %v10605_v20  ;;  %v10504_v7 = vld [vmem:[%s13123_s14 + $0x8b8] sm:$0xff] }
 0x167   : > { %v1019_v23 = vand.u32 2147483647, %v788_v22  ;;  %v1597_v46 = vand.u32 2147483647, %v1366_v45  ;;  %1931 = vmatprep.mubr.f32.mxu0 %v10496_v41  ;;  %2211 = vmatprep.mubr.f32.mxu1 %v10608_v42  ;;  %v10503_v22 = vld [vmem:[%s13123_s14 + $0x8b0] sm:$0xff] }
 0x168   : > { %v790_v49 = vpop.f32.mrf.mxu0  ;;  %v1368_v11 = vpop.f32.mrf.mxu1 }
 0x169   : > { %v13608_v51 = vmax.f32.f32 %v1019_v23, %v1597_v46  ;;  %v10506_v46 = vld [vmem:[%s13123_s14 + $0x8c8] sm:$0xff] }
 0x16a   : > { %v793_v52 = vpop.f32.mrf.mxu0  ;;  %v1371_v12 = vpop.f32.mrf.mxu1  ;;  %1932 = vmatmul.mubr.f32.gmra.mxu0 %v10495_v10  ;;  %2212 = vmatmul.mubr.f32.gmra.mxu1 %v10607_v47 }
 0x16b   : > { %v1020_v53 = vand.u32 2147483647, %v793_v52  ;;  %v1598_v54 = vand.u32 2147483647, %v1371_v12  ;;  %1936 = vmatprep.mubr.f32.mxu0 %v10498_v25  ;;  %v10505_v52 = vld [vmem:[%s13123_s14 + $0x8c0] sm:$0xff] }
 0x16c   : > { %v795_v56 = vpop.f32.mrf.mxu0  ;;  %v1373_v57 = vpop.f32.mrf.mxu1 }
 0x16d   : > { %v13612_v14 = vmax.f32.f32 %v1020_v53, %v1598_v54  ;;  %v10508_v54 = vld [vmem:[%s13123_s14 + $0x8d8] sm:$0xff] }
 0x16e   : > { %v798_v29 = vpop.f32.mrf.mxu0  ;;  %v1376_v59 = vpop.f32.mrf.mxu1  ;;  %1937 = vmatmul.mubr.f32.gmra.mxu0 %v10497_v55 }
 0x16f   : > { %v1021_v61 = vand.u32 2147483647, %v798_v29  ;;  %v1599_v15 = vand.u32 2147483647, %v1376_v59  ;;  %1941 = vmatprep.mubr.f32.mxu0 %v10500_v58  ;;  %v10507_v59 = vld [vmem:[%s13123_s14 + $0x8d0] sm:$0xff] }
 0x170   : > { %v800_v0 = vpop.f32.mrf.mxu0  ;;  %v1378_v16 = vpop.f32.mrf.mxu1 }
 0x171   : > { %v13616_v3 = vmax.f32.f32 %v1021_v61, %v1599_v15 }
 0x172   : > { %v803_v32 = vpop.f32.mrf.mxu0  ;;  %v1381_v4 = vpop.f32.mrf.mxu1  ;;  %1942 = vmatmul.mubr.f32.gmra.mxu0 %v10499_v62  ;;  %v10510_v62 = vld [vmem:[%s13123_s14 + $0x8e8] sm:$0xff] }
 0x173   : > { %v1022_v5 = vand.u32 2147483647, %v803_v32  ;;  %v1600_v6 = vand.u32 2147483647, %v1381_v4  ;;  %1946 = vmatprep.mubr.f32.mxu0 %v10502_v2 }
 0x174   : > { %v805_v19 = vpop.f32.mrf.mxu0  ;;  %v1383_v37 = vpop.f32.mrf.mxu1 }
 0x175   : > { %v13620_v20 = vmax.f32.f32 %v1022_v5, %v1600_v6  ;;  %v10509_v5 = vld [vmem:[%s13123_s14 + $0x8e0] sm:$0xff]  ;;  %v10512_v19 = vld [vmem:[%s13123_s14 + $0x8f8] sm:$0xff] }
 0x176   : > { %v808_v39 = vpop.f32.mrf.mxu0  ;;  %v1386_v40 = vpop.f32.mrf.mxu1  ;;  %1947 = vmatmul.mubr.f32.gmra.mxu0 %v10501_v35 }
 0x177   : > { %v1023_v41 = vand.u32 2147483647, %v808_v39  ;;  %v1601_v42 = vand.u32 2147483647, %v1386_v40  ;;  %1951 = vmatprep.mubr.f32.mxu0 %v10504_v7 }
 0x178   : > { %v810_v45 = vpop.f32.mrf.mxu0  ;;  %v1388_v23 = vpop.f32.mrf.mxu1 }
 0x179   : > { %v13624_v10 = vmax.f32.f32 %v1023_v41, %v1601_v42  ;;  %v10511_v42 = vld [vmem:[%s13123_s14 + $0x8f0] sm:$0xff]  ;;  %v10514_v23 = vld [vmem:[%s13123_s14 + $0x908] sm:$0xff] }
 0x17a   : > { %v813_v47 = vpop.f32.mrf.mxu0  ;;  %v1391_v49 = vpop.f32.mrf.mxu1  ;;  %1952 = vmatmul.mubr.f32.gmra.mxu0 %v10503_v22 }
 0x17b   : > { %v1024_v11 = vand.u32 2147483647, %v813_v47  ;;  %v1602_v25 = vand.u32 2147483647, %v1391_v49  ;;  %1956 = vmatprep.mubr.f32.mxu0 %v10506_v46 }
 0x17c   : > { %v815_v12 = vpop.f32.mrf.mxu0  ;;  %v1393_v53 = vpop.f32.mrf.mxu1 }
 0x17d   : > { %v13628_v55 = vmax.f32.f32 %v1024_v11, %v1602_v25 }
 0x17e   : > { %v818_v56 = vpop.f32.mrf.mxu0  ;;  %v1396_v57 = vpop.f32.mrf.mxu1  ;;  %1957 = vmatmul.mubr.f32.gmra.mxu0 %v10505_v52  ;;  %v10513_v52 = vld [vmem:[%s13123_s14 + $0x900] sm:$0xff] }
 0x17f   : > { %v1025_v58 = vand.u32 2147483647, %v818_v56  ;;  %v1603_v29 = vand.u32 2147483647, %v1396_v57  ;;  %1961 = vmatprep.mubr.f32.mxu0 %v10508_v54  ;;  %v10516_v54 = vld [vmem:[%s13123_s14 + $0x918] sm:$0xff] }
 0x180   : > { %v820_v61 = vpop.f32.mrf.mxu0  ;;  %v1398_v15 = vpop.f32.mrf.mxu1 }
 0x181   : > { %v13632_v0 = vmax.f32.f32 %v1025_v58, %v1603_v29  ;;  %v10515_v61 = vld [vmem:[%s13123_s14 + $0x910] sm:$0xff] }
 0x182   : > { %v823_v16 = vpop.f32.mrf.mxu0  ;;  %v1401_v2 = vpop.f32.mrf.mxu1  ;;  %1962 = vmatmul.mubr.f32.gmra.mxu0 %v10507_v59 }
 0x183   : > { %v1026_v32 = vand.u32 2147483647, %v823_v16  ;;  %v1604_v4 = vand.u32 2147483647, %v1401_v2  ;;  %1966 = vmatprep.mubr.f32.mxu0 %v10510_v62  ;;  %v10518_v16 = vld [vmem:[%s13123_s14 + $0x928] sm:$0xff] }
 0x184   : > { %v825_v6 = vpop.f32.mrf.mxu0  ;;  %v1403_v35 = vpop.f32.mrf.mxu1 }
 0x185   : > { %v13636_v37 = vmax.f32.f32 %v1026_v32, %v1604_v4  ;;  %v10517_v35 = vld [vmem:[%s13123_s14 + $0x920] sm:$0xff] }
 0x186   : > { %v828_v7 = vpop.f32.mrf.mxu0  ;;  %v1406_v39 = vpop.f32.mrf.mxu1  ;;  %1967 = vmatmul.mubr.f32.gmra.mxu0 %v10509_v5 }
 0x187   : > { %v1027_v40 = vand.u32 2147483647, %v828_v7  ;;  %v1605_v41 = vand.u32 2147483647, %v1406_v39  ;;  %1971 = vmatprep.mubr.f32.mxu0 %v10512_v19  ;;  %v10520_v39 = vld [vmem:[%s13123_s14 + $0x938] sm:$0xff] }
 0x188   : > { %v830_v22 = vpop.f32.mrf.mxu0  ;;  %v1408_v45 = vpop.f32.mrf.mxu1 }
 0x189   : > { %v13640_v46 = vmax.f32.f32 %v1027_v40, %v1605_v41 }
 0x18a   : > { %v833_v47 = vpop.f32.mrf.mxu0  ;;  %v1411_v49 = vpop.f32.mrf.mxu1  ;;  %1972 = vmatmul.mubr.f32.gmra.mxu0 %v10511_v42 }
 0x18b   : > { %v1028_v11 = vand.u32 2147483647, %v833_v47  ;;  %v1606_v25 = vand.u32 2147483647, %v1411_v49  ;;  %1976 = vmatprep.mubr.f32.mxu0 %v10514_v23  ;;  %v10519_v23 = vld [vmem:[%s13123_s14 + $0x930] sm:$0xff] }
 0x18c   : > { %v835_v12 = vpop.f32.mrf.mxu0  ;;  %v1413_v53 = vpop.f32.mrf.mxu1 }
 0x18d   : > { %v13644_v56 = vmax.f32.f32 %v1028_v11, %v1606_v25  ;;  %v10522_v11 = vld [vmem:[%s13123_s14 + $0x948] sm:$0xff] }
 0x18e   : > { %v838_v57 = vpop.f32.mrf.mxu0  ;;  %v1416_v58 = vpop.f32.mrf.mxu1  ;;  %1977 = vmatmul.mubr.f32.gmra.mxu0 %v10513_v52 }
 0x18f   : > { %v1029_v29 = vand.u32 2147483647, %v838_v57  ;;  %v1607_v59 = vand.u32 2147483647, %v1416_v58  ;;  %1981 = vmatprep.mubr.f32.mxu0 %v10516_v54  ;;  %v10521_v57 = vld [vmem:[%s13123_s14 + $0x940] sm:$0xff] }
 0x190   : > { %v840_v15 = vpop.f32.mrf.mxu0  ;;  %v1418_v62 = vpop.f32.mrf.mxu1 }
 0x191   : > { %v13648_v2 = vmax.f32.f32 %v1029_v29, %v1607_v59  ;;  %v10524_v59 = vld [vmem:[%s13123_s14 + $0x958] sm:$0xff] }
 0x192   : > { %v843_v32 = vpop.f32.mrf.mxu0  ;;  %v1421_v4 = vpop.f32.mrf.mxu1  ;;  %1982 = vmatmul.mubr.f32.gmra.mxu0 %v10515_v61 }
 0x193   : > { %v1030_v5 = vand.u32 2147483647, %v843_v32  ;;  %v1608_v6 = vand.u32 2147483647, %v1421_v4  ;;  %1986 = vmatprep.mubr.f32.mxu0 %v10518_v16  ;;  %v10523_v4 = vld [vmem:[%s13123_s14 + $0x950] sm:$0xff] }
 0x194   : > { %v845_v19 = vpop.f32.mrf.mxu0  ;;  %v1423_v7 = vpop.f32.mrf.mxu1 }
 0x195   : > { %v13652_v40 = vmax.f32.f32 %v1030_v5, %v1608_v6 }
 0x196   : > { %v848_v41 = vpop.f32.mrf.mxu0  ;;  %v1426_v42 = vpop.f32.mrf.mxu1  ;;  %1987 = vmatmul.mubr.f32.gmra.mxu0 %v10517_v35  ;;  %v10526_v35 = vld [vmem:[%s13123_s14 + $0x968] sm:$0xff] }
 0x197   : > { %v1031_v22 = vand.u32 2147483647, %v848_v41  ;;  %v1609_v45 = vand.u32 2147483647, %v1426_v42  ;;  %1991 = vmatprep.mubr.f32.mxu0 %v10520_v39 }
 0x198   : > { %v850_v47 = vpop.f32.mrf.mxu0  ;;  %v1428_v49 = vpop.f32.mrf.mxu1 }
 0x199   : > { %v13656_v25 = vmax.f32.f32 %v1031_v22, %v1609_v45  ;;  %v10525_v22 = vld [vmem:[%s13123_s14 + $0x960] sm:$0xff]  ;;  %v10528_v47 = vld [vmem:[%s13123_s14 + $0x978] sm:$0xff] }
 0x19a   : > { %v853_v52 = vpop.f32.mrf.mxu0  ;;  %v1431_v12 = vpop.f32.mrf.mxu1  ;;  %1992 = vmatmul.mubr.f32.gmra.mxu0 %v10519_v23 }
 0x19b   : > { %v1032_v53 = vand.u32 2147483647, %v853_v52  ;;  %v1610_v54 = vand.u32 2147483647, %v1431_v12  ;;  %1996 = vmatprep.mubr.f32.mxu0 %v10522_v11 }
 0x19c   : > { %v855_v58 = vpop.f32.mrf.mxu0  ;;  %v1433_v29 = vpop.f32.mrf.mxu1 }
 0x19d   : > { %v13660_v61 = vmax.f32.f32 %v1032_v53, %v1610_v54  ;;  %v10527_v54 = vld [vmem:[%s13123_s14 + $0x970] sm:$0xff]  ;;  %v10530_v29 = vld [vmem:[%s13123_s14 + $0x988] sm:$0xff] }
 0x19e   : > { %v858_v15 = vpop.f32.mrf.mxu0  ;;  %v1436_v62 = vpop.f32.mrf.mxu1  ;;  %1997 = vmatmul.mubr.f32.gmra.mxu0 %v10521_v57 }
 0x19f   : > { %v1033_v16 = vand.u32 2147483647, %v858_v15  ;;  %v1611_v32 = vand.u32 2147483647, %v1436_v62  ;;  %2001 = vmatprep.mubr.f32.mxu0 %v10524_v59 }
 0x1a0   : > { %v860_v5 = vpop.f32.mrf.mxu0  ;;  %v1438_v6 = vpop.f32.mrf.mxu1 }
 0x1a1   : > { %v13664_v19 = vmax.f32.f32 %v1033_v16, %v1611_v32 }
 0x1a2   : > { %v863_v7 = vpop.f32.mrf.mxu0  ;;  %v1441_v39 = vpop.f32.mrf.mxu1  ;;  %2002 = vmatmul.mubr.f32.gmra.mxu0 %v10523_v4  ;;  %v10529_v4 = vld [vmem:[%s13123_s14 + $0x980] sm:$0xff] }
 0x1a3   : > { %v1034_v41 = vand.u32 2147483647, %v863_v7  ;;  %v1612_v42 = vand.u32 2147483647, %v1441_v39  ;;  %2006 = vmatprep.mubr.f32.mxu0 %v10526_v35  ;;  %v10532_v35 = vld [vmem:[%s13123_s14 + $0x998] sm:$0xff] }
 0x1a4   : > { %v865_v45 = vpop.f32.mrf.mxu0  ;;  %v1443_v23 = vpop.f32.mrf.mxu1 }
 0x1a5   : > { %v13668_v49 = vmax.f32.f32 %v1034_v41, %v1612_v42  ;;  %v10531_v45 = vld [vmem:[%s13123_s14 + $0x990] sm:$0xff] }
 0x1a6   : > { %v868_v11 = vpop.f32.mrf.mxu0  ;;  %v1446_v52 = vpop.f32.mrf.mxu1  ;;  %2007 = vmatmul.mubr.f32.gmra.mxu0 %v10525_v22 }
 0x1a7   : > { %v1035_v12 = vand.u32 2147483647, %v868_v11  ;;  %v1613_v53 = vand.u32 2147483647, %v1446_v52  ;;  %2011 = vmatprep.mubr.f32.mxu0 %v10528_v47  ;;  %v10534_v11 = vld [vmem:[%s13123_s14 + $0x9a8] sm:$0xff] }
 0x1a8   : > { %v870_v57 = vpop.f32.mrf.mxu0  ;;  %v1448_v58 = vpop.f32.mrf.mxu1 }
 0x1a9   : > { %v13672_v59 = vmax.f32.f32 %v1035_v12, %v1613_v53  ;;  %v10533_v58 = vld [vmem:[%s13123_s14 + $0x9a0] sm:$0xff] }
 0x1aa   : > { %v873_v15 = vpop.f32.mrf.mxu0  ;;  %v1451_v62 = vpop.f32.mrf.mxu1  ;;  %2012 = vmatmul.mubr.f32.gmra.mxu0 %v10527_v54 }
 0x1ab   : > { %v1036_v16 = vand.u32 2147483647, %v873_v15  ;;  %v1614_v32 = vand.u32 2147483647, %v1451_v62  ;;  %2016 = vmatprep.mubr.f32.mxu0 %v10530_v29  ;;  %v10536_v62 = vld [vmem:[%s13123_s14 + $0x9b8] sm:$0xff] }
 0x1ac   : > { %v875_v5 = vpop.f32.mrf.mxu0  ;;  %v1453_v6 = vpop.f32.mrf.mxu1 }
 0x1ad   : > { %v13676_v7 = vmax.f32.f32 %v1036_v16, %v1614_v32 }
 0x1ae   : > { %v878_v39 = vpop.f32.mrf.mxu0  ;;  %v1456_v41 = vpop.f32.mrf.mxu1  ;;  %2017 = vmatmul.mubr.f32.gmra.mxu0 %v10529_v4 }
 0x1af   : > { %v1037_v42 = vand.u32 2147483647, %v878_v39  ;;  %v1615_v22 = vand.u32 2147483647, %v1456_v41  ;;  %2021 = vmatprep.mubr.f32.mxu0 %v10532_v35  ;;  %v10535_v35 = vld [vmem:[%s13123_s14 + $0x9b0] sm:$0xff] }
 0x1b0   : > { %v880_v23 = vpop.f32.mrf.mxu0  ;;  %v1458_v47 = vpop.f32.mrf.mxu1 }
 0x1b1   : > { %v13684_v52 = vmax.f32.f32 %v1037_v42, %v1615_v22  ;;  %v10538_v42 = vld [vmem:[%s13123_s14 + $0x9c8] sm:$0xff] }
 0x1b2   : > { %v883_v12 = vpop.f32.mrf.mxu0  ;;  %v1461_v53 = vpop.f32.mrf.mxu1  ;;  %2022 = vmatmul.mubr.f32.gmra.mxu0 %v10531_v45 }
 0x1b3   : > { %v1038_v54 = vand.u32 2147483647, %v883_v12  ;;  %v1616_v57 = vand.u32 2147483647, %v1461_v53  ;;  %2026 = vmatprep.mubr.f32.mxu0 %v10534_v11  ;;  %v10537_v12 = vld [vmem:[%s13123_s14 + $0x9c0] sm:$0xff] }
 0x1b4   : > { %v885_v29 = vpop.f32.mrf.mxu0  ;;  %v1463_v15 = vpop.f32.mrf.mxu1 }
 0x1b5   : > { %v13688_v16 = vmax.f32.f32 %v1038_v54, %v1616_v57  ;;  %v10540_v57 = vld [vmem:[%s13123_s14 + $0x9d8] sm:$0xff] }
 0x1b6   : > { %v888_v32 = vpop.f32.mrf.mxu0  ;;  %v1466_v4 = vpop.f32.mrf.mxu1  ;;  %2027 = vmatmul.mubr.f32.gmra.mxu0 %v10533_v58 }
 0x1b7   : > { %v1039_v5 = vand.u32 2147483647, %v888_v32  ;;  %v1617_v6 = vand.u32 2147483647, %v1466_v4  ;;  %2031 = vmatprep.mubr.f32.mxu0 %v10536_v62  ;;  %v10539_v4 = vld [vmem:[%s13123_s14 + $0x9d0] sm:$0xff] }
 0x1b8   : > { %v890_v39 = vpop.f32.mrf.mxu0  ;;  %v1468_v41 = vpop.f32.mrf.mxu1 }
 0x1b9   : > { %v13692_v22 = vmax.f32.f32 %v1039_v5, %v1617_v6 }
 0x1ba   : > { %v893_v45 = vpop.f32.mrf.mxu0  ;;  %v1471_v23 = vpop.f32.mrf.mxu1  ;;  %2032 = vmatmul.mubr.f32.gmra.mxu0 %v10535_v35  ;;  %v10542_v35 = vld [vmem:[%s13123_s14 + $0x9e8] sm:$0xff] }
 0x1bb   : > { %v1040_v47 = vand.u32 2147483647, %v893_v45  ;;  %v1618_v11 = vand.u32 2147483647, %v1471_v23  ;;  %2036 = vmatprep.mubr.f32.mxu0 %v10538_v42 }
 0x1bc   : > { %v895_v53 = vpop.f32.mrf.mxu0  ;;  %v1473_v54 = vpop.f32.mrf.mxu1 }
 0x1bd   : > { %v13696_v58 = vmax.f32.f32 %v1040_v47, %v1618_v11  ;;  %v10541_v47 = vld [vmem:[%s13123_s14 + $0x9e0] sm:$0xff]  ;;  %v10544_v53 = vld [vmem:[%s13123_s14 + $0x9f8] sm:$0xff] }
 0x1be   : > { %v898_v29 = vpop.f32.mrf.mxu0  ;;  %v1476_v15 = vpop.f32.mrf.mxu1  ;;  %2037 = vmatmul.mubr.f32.gmra.mxu0 %v10537_v12 }
 0x1bf   : > { %v1041_v62 = vand.u32 2147483647, %v898_v29  ;;  %v1619_v32 = vand.u32 2147483647, %v1476_v15  ;;  %2041 = vmatprep.mubr.f32.mxu0 %v10540_v57 }
 0x1c0   : > { %v900_v5 = vpop.f32.mrf.mxu0  ;;  %v1478_v6 = vpop.f32.mrf.mxu1 }
 0x1c1   : > { %v13700_v39 = vmax.f32.f32 %v1041_v62, %v1619_v32  ;;  %v10543_v32 = vld [vmem:[%s13123_s14 + $0x9f0] sm:$0xff]  ;;  %v10546_v6 = vld [vmem:[%s13123_s14 + $0xa08] sm:$0xff] }
 0x1c2   : > { %v903_v41 = vpop.f32.mrf.mxu0  ;;  %v1481_v42 = vpop.f32.mrf.mxu1  ;;  %2042 = vmatmul.mubr.f32.gmra.mxu0 %v10539_v4 }
 0x1c3   : > { %v1042_v45 = vand.u32 2147483647, %v903_v41  ;;  %v1620_v23 = vand.u32 2147483647, %v1481_v42  ;;  %2046 = vmatprep.mubr.f32.mxu0 %v10542_v35 }
 0x1c4   : > { %v905_v11 = vpop.f32.mrf.mxu0  ;;  %v1483_v12 = vpop.f32.mrf.mxu1 }
 0x1c5   : > { %v13704_v54 = vmax.f32.f32 %v1042_v45, %v1620_v23  ;;  %v10545_v11 = vld [vmem:[%s13123_s14 + $0xa00] sm:$0xff] }
 0x1c6   : > { %v908_v57 = vpop.f32.mrf.mxu0  ;;  %v1486_v29 = vpop.f32.mrf.mxu1  ;;  %2047 = vmatmul.mubr.f32.gmra.mxu0 %v10541_v47 }
 0x1c7   : > { %v1043_v15 = vand.u32 2147483647, %v908_v57  ;;  %v1621_v62 = vand.u32 2147483647, %v1486_v29  ;;  %2051 = vmatprep.mubr.f32.mxu0 %v10544_v53  ;;  %v10548_v57 = vld [vmem:[%s13123_s14 + $0xa18] sm:$0xff] }
 0x1c8   : > { %v910_v4 = vpop.f32.mrf.mxu0  ;;  %v1488_v5 = vpop.f32.mrf.mxu1 }
 0x1c9   : > { %v13708_v41 = vmax.f32.f32 %v1043_v15, %v1621_v62  ;;  %v10547_v5 = vld [vmem:[%s13123_s14 + $0xa10] sm:$0xff] }
 0x1ca   : > { %v913_v35 = vpop.f32.mrf.mxu0  ;;  %v1491_v42 = vpop.f32.mrf.mxu1  ;;  %2052 = vmatmul.mubr.f32.gmra.mxu0 %v10543_v32 }
 0x1cb   : > { %16649 = vst [vmem:[#allocation13_spill] sm:$0xff] %v13708_v41  ;;  %v1044_v45 = vand.u32 2147483647, %v913_v35  ;;  %v1622_v23 = vand.u32 2147483647, %v1491_v42  ;;  %2056 = vmatprep.mubr.f32.mxu0 %v10546_v6  ;;  %v10550_v42 = vld [vmem:[%s13123_s14 + $0xa28] sm:$0xff] }
 0x1cc   : > { %v915_v47 = vpop.f32.mrf.mxu0  ;;  %v1493_v12 = vpop.f32.mrf.mxu1  ;;  %v10590_v41 = vld [vmem:[%s13123_s14 + $0xb68] sm:$0xff] }
 0x1cd   : > { %v13712_v29 = vmax.f32.f32 %v1044_v45, %v1622_v23  ;;  %v10549_v45 = vld [vmem:[%s13123_s14 + $0xa20] sm:$0xff] }
 0x1ce   : > { %v918_v53 = vpop.f32.mrf.mxu0  ;;  %v1496_v4 = vpop.f32.mrf.mxu1  ;;  %2057 = vmatmul.mubr.f32.gmra.mxu0 %v10545_v11 }
 0x1cf   : > { %16650 = vst [vmem:[#allocation14_spill] sm:$0xff] %v13712_v29  ;;  %v1045_v15 = vand.u32 2147483647, %v918_v53  ;;  %v1623_v62 = vand.u32 2147483647, %v1496_v4  ;;  %2061 = vmatprep.mubr.f32.mxu0 %v10548_v57  ;;  %v10551_v4 = vld [vmem:[%s13123_s14 + $0xa30] sm:$0xff] }
 0x1d0   : > { %v920_v32 = vpop.f32.mrf.mxu0  ;;  %v1498_v35 = vpop.f32.mrf.mxu1 }
 0x1d1   : > { %v13716_v6 = vmax.f32.f32 %v1045_v15, %v1623_v62  ;;  %v10554_v62 = vld [vmem:[%s13123_s14 + $0xa48] sm:$0xff] }
 0x1d2   : > { %v923_v47 = vpop.f32.mrf.mxu0  ;;  %v1501_v12 = vpop.f32.mrf.mxu1  ;;  %2062 = vmatmul.mubr.f32.gmra.mxu0 %v10547_v5  ;;  %v10553_v5 = vld [vmem:[%s13123_s14 + $0xa40] sm:$0xff] }
 0x1d3   : > { %16651 = vst [vmem:[#allocation15_spill] sm:$0xff] %v13716_v6  ;;  %2066 = vmatprep.mubr.f32.mxu0 %v10550_v42 }
 0x1d4   : > { %v925_v23 = vpop.f32.mrf.mxu0  ;;  %v1503_v11 = vpop.f32.mrf.mxu1 }
 0x1d5   : > { %v10556_v23 = vld [vmem:[%s13123_s14 + $0xa58] sm:$0xff] }
 0x1d6   : > { %v928_v53 = vpop.f32.mrf.mxu0  ;;  %v1506_v57 = vpop.f32.mrf.mxu1  ;;  %2067 = vmatmul.mubr.f32.gmra.mxu0 %v10549_v45 }
 0x1d7   : > { %2071 = vmatprep.mubr.f32.mxu0 %v10552_v1  ;;  %v10555_v1 = vld [vmem:[%s13123_s14 + $0xa50] sm:$0xff] }
 0x1d8   : > { %v930_v32 = vpop.f32.mrf.mxu0  ;;  %v1508_v15 = vpop.f32.mrf.mxu1 }
 0x1d9   : > { %v10558_v32 = vld [vmem:[%s13123_s14 + $0xa68] sm:$0xff] }
 0x1da   : > { %v933_v35 = vpop.f32.mrf.mxu0  ;;  %v1511_v47 = vpop.f32.mrf.mxu1  ;;  %2072 = vmatmul.mubr.f32.gmra.mxu0 %v10551_v4  ;;  %v10557_v4 = vld [vmem:[%s13123_s14 + $0xa60] sm:$0xff] }
 0x1db   : > { %2076 = vmatprep.mubr.f32.mxu0 %v10554_v62 }
 0x1dc   : > { %v935_v42 = vpop.f32.mrf.mxu0  ;;  %v1513_v12 = vpop.f32.mrf.mxu1 }
 0x1dd   : > { %v10560_v42 = vld [vmem:[%s13123_s14 + $0xa78] sm:$0xff] }
 0x1de   : > { %v938_v11 = vpop.f32.mrf.mxu0  ;;  %v1516_v53 = vpop.f32.mrf.mxu1  ;;  %2077 = vmatmul.mubr.f32.gmra.mxu0 %v10553_v5  ;;  %v3573_v5 = vld [vmem:[%s16634_s4 + $0x48] sm:$0xff] }
 0x1df   : > { %2081 = vmatprep.mubr.f32.mxu0 %v10556_v23  ;;  %v10783_v23 = vld [vmem:[%s16634_s4 + $0x138] sm:$0xff]  ;;  %v10559_v11 = vld [vmem:[%s13123_s14 + $0xa70] sm:$0xff]  ;;  %11741 = vmatprep.subr.mxu1 %v3573_v5 }
 0x1e0   : > { %v940_v45 = vpop.f32.mrf.mxu0  ;;  %v1518_v57 = vpop.f32.mrf.mxu1  ;;  %12017 = vmatprep.subr.mxu0 %v10783_v23  ;;  %11742 = vmatpush3.msra.mxu1 %v3573_v5  ;;  %v3570_v5 = vld [vmem:[%s16634_s4 + $0x30] sm:$0xff] }
 0x1e1   : > { %v10562_v45 = vld [vmem:[%s13123_s14 + $0xa88] sm:$0xff]  ;;  %v10782_v57 = vld [vmem:[%s16634_s4 + $0x130] sm:$0xff]  ;;  %12018 = vmatpush3.msra.mxu0 %v10783_v23  ;;  %v10780_v23 = vld [vmem:[%s16634_s4 + $0x120] sm:$0xff] }
 0x1e2   : > { %v943_v15 = vpop.f32.mrf.mxu0  ;;  %v1521_v35 = vpop.f32.mrf.mxu1  ;;  %2082 = vmatmul.mubr.f32.gmra.mxu0 %v10555_v1  ;;  %12019 = vmatprep.subr.mxu0 %v10782_v57 }
 0x1e3   : > { %2086 = vmatprep.mubr.f32.mxu0 %v10558_v32  ;;  %v3571_v35 = vld [vmem:[%s16634_s4 + $0x38] sm:$0xff]  ;;  %12020 = vmatpush3.msra.mxu0 %v10782_v57 }
 0x1e4   : > { %v945_v62 = vpop.f32.mrf.mxu0  ;;  %v1523_v47 = vpop.f32.mrf.mxu1 }
 0x1e5   : > { %v10561_v62 = vld [vmem:[%s13123_s14 + $0xa80] sm:$0xff] }
 0x1e6   : > { %v948_v12 = vpop.f32.mrf.mxu0  ;;  %v1526_v6 = vpop.f32.mrf.mxu1  ;;  %2087 = vmatmul.mubr.f32.gmra.mxu0 %v10557_v4  ;;  %v10781_v4 = vld [vmem:[%s16634_s4 + $0x128] sm:$0xff] }
 0x1e7   : > { %2091 = vmatprep.mubr.f32.mxu0 %v10560_v42  ;;  %v3572_v6 = vld [vmem:[%s16634_s4 + $0x40] sm:$0xff]  ;;  %v10564_v12 = vld [vmem:[%s13123_s14 + $0xa98] sm:$0xff]  ;;  %12021 = vmatprep.subr.mxu0 %v10781_v4 }
 0x1e8   : > { %v950_v53 = vpop.f32.mrf.mxu0  ;;  %v1528_v1 = vpop.f32.mrf.mxu1  ;;  %11743 = vmatprep.subr.mxu1 %v3572_v6  ;;  %12022 = vmatpush3.msra.mxu0 %v10781_v4  ;;  %v10778_v4 = vld [vmem:[%s16634_s4 + $0x110] sm:$0xff] }
 0x1e9   : > { %11744 = vmatpush3.msra.mxu1 %v3572_v6  ;;  %v3569_v1 = vld [vmem:[%s16634_s4 + $0x28] sm:$0xff]  ;;  %v10779_v6 = vld [vmem:[%s16634_s4 + $0x118] sm:$0xff]  ;;  %12023 = vmatprep.subr.mxu0 %v10780_v23 }
 0x1ea   : > { %v953_v32 = vpop.f32.mrf.mxu0  ;;  %v1531_v15 = vpop.f32.mrf.mxu1  ;;  %2092 = vmatmul.mubr.f32.gmra.mxu0 %v10559_v11  ;;  %11745 = vmatprep.subr.mxu1 %v3571_v35 }
 0x1eb   : > { %2096 = vmatprep.mubr.f32.mxu0 %v10562_v45  ;;  %11746 = vmatpush3.msra.mxu1 %v3571_v35  ;;  %v10563_v45 = vld [vmem:[%s13123_s14 + $0xa90] sm:$0xff]  ;;  %v10566_v15 = vld [vmem:[%s13123_s14 + $0xaa8] sm:$0xff]  ;;  %v3568_v35 = vld [vmem:[%s16634_s4 + $0x20] sm:$0xff] }
 0x1ec   : > { %v955_v47 = vpop.f32.mrf.mxu0  ;;  %v1533_v42 = vpop.f32.mrf.mxu1  ;;  %11747 = vmatprep.subr.mxu1 %v3570_v5  ;;  %12024 = vmatpush3.msra.mxu0 %v10780_v23 }
 0x1ed   : > { %11748 = vmatpush3.msra.mxu1 %v3570_v5  ;;  %12025 = vmatprep.subr.mxu0 %v10779_v6  ;;  %v10565_v42 = vld [vmem:[%s13123_s14 + $0xaa0] sm:$0xff] }
 0x1ee   : > { %v958_v11 = vpop.f32.mrf.mxu0  ;;  %v1536_v53 = vpop.f32.mrf.mxu1  ;;  %2097 = vmatmul.mubr.f32.gmra.mxu0 %v10561_v62  ;;  %11749 = vmatprep.subr.mxu1 %v3569_v1 }
 0x1ef   : > { %2101 = vmatprep.mubr.f32.mxu0 %v10564_v12  ;;  %11750 = vmatpush3.msra.mxu1 %v3569_v1  ;;  %v3567_v12 = vld [vmem:[%s16634_s4 + $0x18] sm:$0xff]  ;;  %v10777_v53 = vld [vmem:[%s16634_s4 + $0x108] sm:$0xff]  ;;  %v3566_v1 = vld [vmem:[%s16634_s4 + $0x10] sm:$0xff] }
 0x1f0   : > { %v960_v57 = vpop.f32.mrf.mxu0  ;;  %v1538_v32 = vpop.f32.mrf.mxu1  ;;  %v10568_v11 = vld [vmem:[%s13123_s14 + $0xab8] sm:$0xff]  ;;  %12026 = vmatpush3.msra.mxu0 %v10779_v6  ;;  %11751 = vmatprep.subr.mxu1 %v3568_v35  ;;  %v10776_v6 = vld [vmem:[%s16634_s4 + $0x100] sm:$0xff] }
 0x1f1   : > { %12027 = vmatprep.subr.mxu0 %v10778_v4  ;;  %11752 = vmatpush3.msra.mxu1 %v3568_v35  ;;  %v10567_v32 = vld [vmem:[%s13123_s14 + $0xab0] sm:$0xff] }
 0x1f2   : > { %v963_v62 = vpop.f32.mrf.mxu0  ;;  %v1541_v47 = vpop.f32.mrf.mxu1  ;;  %2102 = vmatmul.mubr.f32.gmra.mxu0 %v10563_v45  ;;  %11753 = vmatprep.subr.mxu1 %v3567_v12 }
 0x1f3   : > { %2106 = vmatprep.mubr.f32.mxu0 %v10566_v15  ;;  %12028 = vmatpush3.msra.mxu0 %v10778_v4  ;;  %v10570_v62 = vld [vmem:[%s13123_s14 + $0xac8] sm:$0xff]  ;;  %v10775_v4 = vld [vmem:[%s16634_s4 + $0xf8] sm:$0xff] }
 0x1f4   : > { %v965_v5 = vpop.f32.mrf.mxu0  ;;  %v1543_v23 = vpop.f32.mrf.mxu1  ;;  %12029 = vmatprep.subr.mxu0 %v10777_v53  ;;  %11754 = vmatpush3.msra.mxu1 %v3567_v12  ;;  %v3565_v47 = vld [vmem:[%s16634_s4 + $0x8] sm:$0xff]  ;;  %v3564_v12 = vld [vmem:[%s16634_s4] sm:$0xff] }
 0x1f5   : > { %12030 = vmatpush3.msra.mxu0 %v10777_v53  ;;  %11755 = vmatprep.subr.mxu1 %v3566_v1  ;;  %v10569_v23 = vld [vmem:[%s13123_s14 + $0xac0] sm:$0xff] }
 0x1f6   : > { %v968_v45 = vpop.f32.mrf.mxu0  ;;  %v1546_v57 = vpop.f32.mrf.mxu1  ;;  %2107 = vmatmul.mubr.f32.gmra.mxu0 %v10565_v42  ;;  %12031 = vmatprep.subr.mxu0 %v10776_v6 }
 0x1f7   : > { %2111 = vmatprep.mubr.f32.mxu0 %v10568_v11  ;;  %11756 = vmatpush3.msra.mxu1 %v3566_v1  ;;  %v10572_v45 = vld [vmem:[%s13123_s14 + $0xad8] sm:$0xff]  ;;  %v10774_v57 = vld [vmem:[%s16634_s4 + $0xf0] sm:$0xff] }
 0x1f8   : > { %v970_v15 = vpop.f32.mrf.mxu0  ;;  %v1548_v35 = vpop.f32.mrf.mxu1  ;;  %12032 = vmatpush3.msra.mxu0 %v10776_v6  ;;  %11757 = vmatprep.subr.mxu1 %v3565_v47  ;;  %v10571_v1 = vld [vmem:[%s13123_s14 + $0xad0] sm:$0xff] }
 0x1f9   : > { %12033 = vmatprep.subr.mxu0 %v10775_v4  ;;  %11758 = vmatpush3.msra.mxu1 %v3565_v47 }
 0x1fa   : > { %v973_v42 = vpop.f32.mrf.mxu0  ;;  %v1551_v5 = vpop.f32.mrf.mxu1  ;;  %2112 = vmatmul.mubr.f32.gmra.mxu0 %v10567_v32  ;;  %11759 = vmatprep.subr.mxu1 %v3564_v12 }
 0x1fb   : > { %2116 = vmatprep.mubr.f32.mxu0 %v10570_v62  ;;  %12034 = vmatpush3.msra.mxu0 %v10775_v4  ;;  %v10574_v42 = vld [vmem:[%s13123_s14 + $0xae8] sm:$0xff]  ;;  %v10573_v5 = vld [vmem:[%s13123_s14 + $0xae0] sm:$0xff] }
 0x1fc   : > { %v975_v11 = vpop.f32.mrf.mxu0  ;;  %v1553_v53 = vpop.f32.mrf.mxu1  ;;  %12035 = vmatprep.subr.mxu0 %v10774_v57  ;;  %11760 = vmatpush3.msra.mxu1 %v3564_v12 }
 0x1fd   : > { %12036 = vmatpush3.msra.mxu0 %v10774_v57  ;;  %v10576_v53 = vld [vmem:[%s13123_s14 + $0xaf8] sm:$0xff]  ;;  %v10578_v57 = vld [vmem:[%s13123_s14 + $0xb08] sm:$0xff] }
 0x1fe   : > { %v978_v32 = vpop.f32.mrf.mxu0  ;;  %v1556_v15 = vpop.f32.mrf.mxu1  ;;  %2117 = vmatmul.mubr.f32.gmra.mxu0 %v10569_v23 }
 0x1ff   : > { %2121 = vmatprep.mubr.f32.mxu0 %v10572_v45  ;;  %v10575_v32 = vld [vmem:[%s13123_s14 + $0xaf0] sm:$0xff] }
 0x200   : > { %v980_v35 = vpop.f32.mrf.mxu0  ;;  %v1558_v62 = vpop.f32.mrf.mxu1 }
 0x202   : > { %v983_v6 = vpop.f32.mrf.mxu0  ;;  %v1561_v47 = vpop.f32.mrf.mxu1  ;;  %2122 = vmatmul.mubr.f32.gmra.mxu0 %v10571_v1  ;;  %v10577_v1 = vld [vmem:[%s13123_s14 + $0xb00] sm:$0xff] }
 0x203   : > { %2126 = vmatprep.mubr.f32.mxu0 %v10574_v42  ;;  %v10580_v47 = vld [vmem:[%s13123_s14 + $0xb18] sm:$0xff] }
 0x204   : > { %v985_v23 = vpop.f32.mrf.mxu0  ;;  %v1563_v11 = vpop.f32.mrf.mxu1 }
 0x206   : > { %v988_v45 = vpop.f32.mrf.mxu0  ;;  %v1566_v4 = vpop.f32.mrf.mxu1  ;;  %2127 = vmatmul.mubr.f32.gmra.mxu0 %v10573_v5  ;;  %v10579_v5 = vld [vmem:[%s13123_s14 + $0xb10] sm:$0xff] }
 0x207   : > { %2131 = vmatprep.mubr.f32.mxu0 %v10576_v53 }
 0x208   : > { %v990_v15 = vpop.f32.mrf.mxu0  ;;  %v1568_v12 = vpop.f32.mrf.mxu1 }
 0x209   : > { %v10582_v15 = vld [vmem:[%s13123_s14 + $0xb28] sm:$0xff] }
 0x20a   : > { %v993_v35 = vpop.f32.mrf.mxu0  ;;  %v1571_v62 = vpop.f32.mrf.mxu1  ;;  %2132 = vmatmul.mubr.f32.gmra.mxu0 %v10575_v32 }
 0x20b   : > { %2136 = vmatprep.mubr.f32.mxu0 %v10578_v57  ;;  %v10581_v62 = vld [vmem:[%s13123_s14 + $0xb20] sm:$0xff] }
 0x20c   : > { %v995_v42 = vpop.f32.mrf.mxu0  ;;  %v1573_v6 = vpop.f32.mrf.mxu1 }
 0x20d   : > { %v10584_v6 = vld [vmem:[%s13123_s14 + $0xb38] sm:$0xff] }
 0x20e   : > { %v1898_v23 = vpop.f32.mrf.mxu0  ;;  %2137 = vmatmul.mubr.f32.gmra.mxu0 %v10577_v1  ;;  %v2178_v11 = vpop.f32.mrf.mxu1 }
 0x20f   : > { %v2217_v53 = vand.u32 2147483647, %v1898_v23  ;;  %2141 = vmatprep.mubr.f32.mxu0 %v10580_v47 }
 0x210   : > { %v1900_v45 = vpop.f32.mrf.mxu0  ;;  %v2180_v4 = vpop.f32.mrf.mxu1 }
 0x211   : > { %v2281_v12 = vmax.f32.f32 %v13477_v17, %v2217_v53 }
 0x212   : > { %v1903_v32 = vpop.f32.mrf.mxu0  ;;  %2142 = vmatmul.mubr.f32.gmra.mxu0 %v10579_v5  ;;  %v2183_v57 = vpop.f32.mrf.mxu1 }
 0x213   : > { %2348 = vst.msk [vmem:[#allocation2] sm:$0xff] %vm2347_vm1, %v2281_v12  ;;  %v2218_v35 = vand.u32 2147483647, %v1903_v32  ;;  %2146 = vmatprep.mubr.f32.mxu0 %v10582_v15  ;;  %v2936_v47 = vmul.f32 %v2281_v12, %v2281_v12  ;;  %v2799_v11 = vsel %vm2347_vm1, %v2281_v12, 0.0  ;;  %v10583_v15 = vld [vmem:[%s13123_s14 + $0xb30] sm:$0xff] }
 0x214   : > { %v1905_v1 = vpop.f32.mrf.mxu0  ;;  %v2185_v42 = vpop.f32.mrf.mxu1 }
 0x215   : > { %v2282_v23 = vmax.f32.f32 %v13483_v38, %v2218_v35  ;;  %v10586_v42 = vld [vmem:[%s13123_s14 + $0xb48] sm:$0xff]  ;;  %v3000_v38 = vsel %vm2347_vm1, %v2936_v47, 0.0 }
 0x216   : > { %v1908_v45 = vpop.f32.mrf.mxu0  ;;  %2147 = vmatmul.mubr.f32.gmra.mxu0 %v10581_v62  ;;  %v2188_v17 = vpop.f32.mrf.mxu1  ;;  %v13826_v62 = vld [vmem:[%s16634_s4 + $0x98] sm:$0xff] }
 0x217   : > { %2349 = vst.msk [vmem:[#allocation2 + $0x8] sm:$0xff] %vm2347_vm1, %v2282_v23  ;;  %v2800_v5 = vsel %vm2347_vm1, %v2282_v23, 0.0  ;;  %v2937_v53 = vmul.f32 %v2282_v23, %v2282_v23  ;;  %v2219_v4 = vand.u32 2147483647, %v1908_v45  ;;  %2151 = vmatprep.mubr.f32.mxu0 %v10584_v6  ;;  %11833 = vmatprep.subr.mxu1 %v13826_v62 }
 0x218   : > { %v2801_v32 = vadd.f32 %v2800_v5, %v2799_v11  ;;  %v1910_v57 = vpop.f32.mrf.mxu0  ;;  %v2190_v1 = vpop.f32.mrf.mxu1 }
 0x219   : > { %v3001_v12 = vsel %vm2347_vm1, %v2937_v53, 0.0  ;;  %v2283_v35 = vmax.f32.f32 %v13489_v44, %v2219_v4  ;;  %v10585_v44 = vld [vmem:[%s13123_s14 + $0xb40] sm:$0xff]  ;;  %v10588_v57 = vld [vmem:[%s13123_s14 + $0xb58] sm:$0xff]  ;;  %v2412_v1 = vlaneseq }
 0x21a   : > { %v3002_v23 = vadd.f32 %v3001_v12, %v3000_v38  ;;  %v1913_v6 = vpop.f32.mrf.mxu0  ;;  %2152 = vmatmul.mubr.f32.gmra.mxu0 %v10583_v15  ;;  %v2193_v11 = vpop.f32.mrf.mxu1 }
 0x21b   : > { %2350 = vst.msk [vmem:[#allocation2 + $0x10] sm:$0xff] %vm2347_vm1, %v2283_v35  ;;  %v2802_v47 = vsel %vm2347_vm1, %v2283_v35, 0.0  ;;  %v2938_v45 = vmul.f32 %v2283_v35, %v2283_v35  ;;  %v2220_v17 = vand.u32 2147483647, %v1913_v6  ;;  %2156 = vmatprep.mubr.f32.mxu0 %v10586_v42  ;;  %v10587_v6 = vld [vmem:[%s13123_s14 + $0xb50] sm:$0xff] }
 0x21c   : > { %v2803_v5 = vadd.f32 %v2802_v47, %v2801_v32  ;;  %v1915_v53 = vpop.f32.mrf.mxu0  ;;  %v2195_v4 = vpop.f32.mrf.mxu1 }
 0x21d   : > { %v3003_v15 = vsel %vm2347_vm1, %v2938_v45, 0.0  ;;  %v2284_v38 = vmax.f32.f32 %v13495_v50, %v2220_v17  ;;  %v13839_v45 = vshrl.u32 %v2412_v1, 7 }
 0x21e   : > { %v3004_v12 = vadd.f32 %v3003_v15, %v3002_v23  ;;  %v1918_v11 = vpop.f32.mrf.mxu0  ;;  %2157 = vmatmul.mubr.f32.gmra.mxu0 %v10585_v44  ;;  %v2198_v29 = vpop.f32.mrf.mxu1 }
 0x21f   : > { %2351 = vst.msk [vmem:[#allocation2 + $0x18] sm:$0xff] %vm2347_vm1, %v2284_v38  ;;  %v2804_v42 = vsel %vm2347_vm1, %v2284_v38, 0.0  ;;  %v2939_v35 = vmul.f32 %v2284_v38, %v2284_v38  ;;  %v2221_v32 = vand.u32 2147483647, %v1918_v11  ;;  %2161 = vmatprep.mubr.f32.mxu0 %v10588_v57  ;;  %16652 = vst [vmem:[#allocation16_spill] sm:$0xff] %v13839_v45  ;;  %v10589_v38 = vld [vmem:[%s13123_s14 + $0xb60] sm:$0xff] }
 0x220   : > { %v2805_v47 = vadd.f32 %v2804_v42, %v2803_v5  ;;  %v1920_v53 = vpop.f32.mrf.mxu0  ;;  %v2200_v4 = vpop.f32.mrf.mxu1 }
 0x221   : > { %v3005_v50 = vsel %vm2347_vm1, %v2939_v35, 0.0  ;;  %v2285_v29 = vmax.f32.f32 %v13501_v28, %v2221_v32  ;;  %v2419_v35 = vadd.s32 48, %v13839_v45  ;;  %v10592_v53 = vld [vmem:[%s13123_s14 + $0xb78] sm:$0xff] }
 0x222   : > { %v3006_v23 = vadd.f32 %v3005_v50, %v3004_v12  ;;  %v1923_v17 = vpop.f32.mrf.mxu0  ;;  %2162 = vmatmul.mubr.f32.gmra.mxu0 %v10587_v6  ;;  %v2203_v44 = vpop.f32.mrf.mxu1 }
 0x223   : > { %2352 = vst.msk [vmem:[#allocation2 + $0x20] sm:$0xff] %vm2347_vm1, %v2285_v29  ;;  %v2806_v57 = vsel %vm2347_vm1, %v2285_v29, 0.0  ;;  %v2940_v5 = vmul.f32 %v2285_v29, %v2285_v29  ;;  %v2222_v15 = vand.u32 2147483647, %v1923_v17  ;;  %2166 = vmatprep.mubr.f32.mxu0 %v10590_v41  ;;  %v10591_v29 = vld [vmem:[%s13123_s14 + $0xb70] sm:$0xff]  ;;  %vm2548_vm2 = vcmp.lt.s32.totalorder %v2419_v35, 50 }
 0x224   : > { %v2807_v11 = vadd.f32 %v2806_v57, %v2805_v47  ;;  %v1925_v1 = vpop.f32.mrf.mxu0  ;;  %v2205_v42 = vpop.f32.mrf.mxu1  ;;  %s11170_s14 = sshll.u32 %s16810_s21, 7 }
 0x225   : > { %v3007_v28 = vsel %vm2347_vm1, %v2940_v5, 0.0  ;;  %v2286_v12 = vmax.f32.f32 %v13507_v63, %v2222_v15  ;;  %s16335_s28 = scalar_lea.vmem %s16642_s12, %s11170_s14 }
 0x226   : > { %v3008_v32 = vadd.f32 %v3007_v28, %v3006_v23  ;;  %v1928_v6 = vpop.f32.mrf.mxu0  ;;  %2167 = vmatmul.mubr.f32.gmra.mxu0 %v10589_v38  ;;  %v2208_v4 = vpop.f32.mrf.mxu1 }
 0x227   : > { %2353 = vst.msk [vmem:[#allocation2 + $0x28] sm:$0xff] %vm2347_vm1, %v2286_v12  ;;  %v2808_v41 = vsel %vm2347_vm1, %v2286_v12, 0.0  ;;  %v2941_v50 = vmul.f32 %v2286_v12, %v2286_v12  ;;  %v2223_v47 = vand.u32 2147483647, %v1928_v6  ;;  %2171 = vmatprep.mubr.f32.mxu0 %v10592_v53 }
 0x228   : > { %v2809_v17 = vadd.f32 %v2808_v41, %v2807_v11  ;;  %v1930_v44 = vpop.f32.mrf.mxu0  ;;  %v2210_v57 = vpop.f32.mrf.mxu1 }
 0x229   : > { %v3009_v5 = vsel %vm2347_vm1, %v2941_v50, 0.0  ;;  %v2287_v63 = vmax.f32.f32 %v13513_v18, %v2223_v47 }
 0x22a   : > { %v3010_v23 = vadd.f32 %v3009_v5, %v3008_v32  ;;  %v1933_v15 = vpop.f32.mrf.mxu0  ;;  %2172 = vmatmul.mubr.f32.gmra.mxu0 %v10591_v29  ;;  %v2213_v38 = vpop.f32.mrf.mxu1 }
 0x22b   : > { %2354 = vst.msk [vmem:[#allocation2 + $0x30] sm:$0xff] %vm2347_vm1, %v2287_v63  ;;  %v2740_v1 = vsel %vm2548_vm2, %v2287_v63, 0.0  ;;  %v2224_v42 = vand.u32 2147483647, %v1933_v15 }
 0x22c   : > { %v2810_v28 = vsel %vm2347_vm1, %v2740_v1, 0.0  ;;  %v2942_v53 = vmul.f32 %v2740_v1, %v2740_v1  ;;  %v1935_v12 = vpop.f32.mrf.mxu0  ;;  %v2215_v11 = vpop.f32.mrf.mxu1 }
 0x22d   : > { %v2811_v35 = vadd.f32 %v2810_v28, %v2809_v17  ;;  %v2288_v6 = vmax.f32.f32 %v13519_v21, %v2224_v42  ;;  %v2798_v11 = vld [vmem:[#allocation7] sm:$0x1] }
 0x22e   : > { %v3011_v4 = vsel %vm2347_vm1, %v2942_v53, 0.0  ;;  %v1938_v41 = vpop.f32.mrf.mxu0 }
 0x22f   : > { %v2926_v18 = vrot.slane %v2811_v35, 4  ;;  %v3012_v32 = vadd.f32 %v3011_v4, %v3010_v23  ;;  %2355 = vst.msk [vmem:[#allocation2 + $0x38] sm:$0xff] %vm2347_vm1, %v2288_v6  ;;  %v2225_v50 = vand.u32 2147483647, %v1938_v41  ;;  %v2935_v41 = vld [vmem:[#allocation8] sm:$0x1] }
 0x230   : > { %v1940_v47 = vpop.f32.mrf.mxu0 }
 0x231   : > { %v2927_v29 = vadd.f32 %v2926_v18, %v2811_v35  ;;  %v3127_v44 = vrot.slane %v3012_v32, 4  ;;  %v2289_v57 = vmax.f32.f32 %v13525_v24, %v2225_v50 }
 0x232   : > { %v1943_v5 = vpop.f32.mrf.mxu0 }
 0x233   : > { %v2928_v63 = vrot.slane %v2927_v29, 2  ;;  %v3128_v15 = vadd.f32 %v3127_v44, %v3012_v32  ;;  %2356 = vst.msk [vmem:[#allocation2 + $0x40] sm:$0xff] %vm2347_vm1, %v2289_v57  ;;  %v2226_v17 = vand.u32 2147483647, %v1943_v5 }
 0x234   : > { %v1945_v21 = vpop.f32.mrf.mxu0 }
 0x235   : > { %v2929_v38 = vadd.f32 %v2928_v63, %v2927_v29  ;;  %v3129_v1 = vrot.slane %v3128_v15, 2  ;;  %v2290_v42 = vmax.f32.f32 %v13531_v27, %v2226_v17 }
 0x236   : > { %v1948_v23 = vpop.f32.mrf.mxu0 }
 0x237   : > { %v2930_v28 = vrot.slane %v2929_v38, 1  ;;  %v3130_v53 = vadd.f32 %v3129_v1, %v3128_v15  ;;  %2357 = vst.msk [vmem:[#allocation2 + $0x48] sm:$0xff] %vm2347_vm1, %v2290_v42  ;;  %v2227_v12 = vand.u32 2147483647, %v1948_v23 }
 0x238   : > { %v1950_v35 = vpop.f32.mrf.mxu0 }
 0x239   : > { %v2931_v24 = vadd.f32 %v2930_v28, %v2929_v38  ;;  %v3131_v6 = vrot.slane %v3130_v53, 1  ;;  %v2291_v4 = vmax.f32.f32 %v13537_v30, %v2227_v12 }
 0x23a   : > { %v1953_v18 = vpop.f32.mrf.mxu0 }
 0x23b   : > { %v2932_v32 = vadd.f32 %v2931_v24, %v2798_v11  ;;  %v3132_v50 = vadd.f32 %v3131_v6, %v3130_v53  ;;  %2358 = vst.msk [vmem:[#allocation2 + $0x50] sm:$0xff] %vm2347_vm1, %v2291_v4  ;;  %v2228_v47 = vand.u32 2147483647, %v1953_v18 }
 0x23c   : > { %v1955_v27 = vpop.f32.mrf.mxu0 }
 0x23d   : > { %2934 = vst.msk [vmem:[#allocation7] sm:$0x1] %vm444_vm0, %v2932_v32  ;;  %v3133_v29 = vadd.f32 %v3132_v50, %v2935_v41  ;;  %v2292_v44 = vmax.f32.f32 %v13543_v33, %v2228_v47 }
 0x23e   : > { %v1958_v57 = vpop.f32.mrf.mxu0 }
 0x23f   : > { %3134 = vst.msk [vmem:[#allocation8] sm:$0x1] %vm444_vm0, %v3133_v29  ;;  %v2229_v5 = vand.u32 2147483647, %v1958_v57 }
 0x240   : > { %2359 = vst.msk [vmem:[#allocation2 + $0x58] sm:$0xff] %vm2347_vm1, %v2292_v44  ;;  %v1960_v30 = vpop.f32.mrf.mxu0 }
 0x241   : > { %v2293_v63 = vmax.f32.f32 %v13549_v8, %v2229_v5 }
 0x242   : > { %v1963_v15 = vpop.f32.mrf.mxu0 }
 0x243   : > { %2360 = vst.msk [vmem:[#allocation2 + $0x60] sm:$0xff] %vm2347_vm1, %v2293_v63  ;;  %v2230_v17 = vand.u32 2147483647, %v1963_v15  ;;  %v3148_v15 = vld [vmem:[%s16632_s2] sm:$0x1] }
 0x244   : > { %v3138_v21 = vld [vmem:[#allocation7] sm:$0x1]  ;;  %v1965_v38 = vpop.f32.mrf.mxu0 }
 0x245   : > { %v3140_v1 = vmul.f32 0.02, %v3138_v21  ;;  %v2294_v42 = vmax.f32.f32 %v13555_v48, %v2230_v17 }
 0x246   : > { %v3141_v23 = vld [vmem:[#allocation8] sm:$0x1]  ;;  %v1968_v33 = vpop.f32.mrf.mxu0 }
 0x247   : > { %v3142_v28 = vmul.f32 0.02, %v3141_v23  ;;  %v3143_v53 = vmul.f32 %v3140_v1, %v3140_v1  ;;  %2361 = vst.msk [vmem:[#allocation2 + $0x68] sm:$0xff] %vm2347_vm1, %v2294_v42  ;;  %v2231_v12 = vand.u32 2147483647, %v1968_v33 }
 0x248   : > { %v1970_v11 = vpop.f32.mrf.mxu0 }
 0x249   : > { %v3144_v35 = vsub.f32 %v3142_v28, %v3143_v53  ;;  %v2295_v8 = vmax.f32.f32 %v13561_v13, %v2231_v12  ;;  %v3153_v12 = vld [vmem:[#allocation2] sm:$0xff] }
 0x24a   : > { %v1973_v24 = vpop.f32.mrf.mxu0 }
 0x24b   : > { %v3145_v6 = vmax.f32 %v3144_v35, 0.0  ;;  %2362 = vst.msk [vmem:[#allocation2 + $0x70] sm:$0xff] %vm2347_vm1, %v2295_v8  ;;  %v2232_v4 = vand.u32 2147483647, %v1973_v24  ;;  %v3154_v35 = vld [vmem:[#allocation2 + $0x8] sm:$0xff]  ;;  %v3155_v8 = vld [vmem:[#allocation2 + $0x10] sm:$0xff] }
 0x24c   : > { %v1975_v41 = vpop.f32.mrf.mxu0 }
 0x24d   : > { %v3146_v18 = vadd.f32 1e-05, %v3145_v6  ;;  %v2296_v48 = vmax.f32.f32 %v13567_v31, %v2232_v4  ;;  %v3159_v6 = vld [vmem:[#allocation2 + $0x30] sm:$0xff]  ;;  %v3156_v4 = vld [vmem:[#allocation2 + $0x18] sm:$0xff]  ;;  %v3157_v41 = vld [vmem:[#allocation2 + $0x20] sm:$0xff] }
 0x24e   : > { %v1978_v32 = vpop.f32.mrf.mxu0 }
 0x24f   : > { %12731 = vrsqrt.f32 %v3146_v18  ;;  %2363 = vst.msk [vmem:[#allocation2 + $0x78] sm:$0xff] %vm2347_vm1, %v2296_v48  ;;  %v2233_v50 = vand.u32 2147483647, %v1978_v32 }
 0x250   : > { %v1980_v47 = vpop.f32.mrf.mxu0 }
 0x251   : > { %v2297_v27 = vmax.f32.f32 %v13573_v36, %v2233_v50  ;;  %v13887_v36 = vsub.s32 0, %v13839_v45 }
 0x252   : > { %v1983_v29 = vpop.f32.mrf.mxu0 }
 0x253   : > { %2364 = vst.msk [vmem:[#allocation2 + $0x80] sm:$0xff] %vm2347_vm1, %v2297_v27  ;;  %v2234_v13 = vand.u32 2147483647, %v1983_v29  ;;  %16653 = vst [vmem:[#allocation17_spill] sm:$0xff] %v13887_v36 }
 0x254   : > { %v1985_v44 = vpop.f32.mrf.mxu0 }
 0x255   : > { %v2298_v57 = vmax.f32.f32 %v13579_v9, %v2234_v13  ;;  %v3160_v44 = vld [vmem:[#allocation2 + $0x38] sm:$0xff] }
 0x256   : > { %v1988_v5 = vpop.f32.mrf.mxu0 }
 0x257   : > { %2365 = vst.msk [vmem:[#allocation2 + $0x88] sm:$0xff] %vm2347_vm1, %v2298_v57  ;;  %v2235_v30 = vand.u32 2147483647, %v1988_v5  ;;  %v3161_v57 = vld [vmem:[#allocation2 + $0x40] sm:$0xff]  ;;  %v3162_v5 = vld [vmem:[#allocation2 + $0x48] sm:$0xff] }
 0x258   : > { %v1990_v31 = vpop.f32.mrf.mxu0 }
 0x259   : > { %v2299_v63 = vmax.f32.f32 %v13585_v26, %v2235_v30  ;;  %v3150_v26 = vld [vmem:[%s16633_s3] sm:$0x1] }
 0x25a   : > { %v1993_v17 = vpop.f32.mrf.mxu0 }
 0x25b   : > { %2366 = vst.msk [vmem:[#allocation2 + $0x90] sm:$0xff] %vm2347_vm1, %v2299_v63  ;;  %v2236_v21 = vand.u32 2147483647, %v1993_v17  ;;  %v3163_v17 = vld [vmem:[#allocation2 + $0x50] sm:$0xff] }
 0x25c   : > { %v12732_v38 = vpop.eup %12731  ;;  %v1995_v9 = vpop.f32.mrf.mxu0 }
 0x25d   : > { %v3149_v42 = vmul.f32 %v12732_v38, %v3148_v15  ;;  %v2300_v23 = vmax.f32.f32 %v13591_v60, %v2236_v21  ;;  %v3158_v60 = vld [vmem:[#allocation2 + $0x28] sm:$0xff]  ;;  %v3164_v21 = vld [vmem:[#allocation2 + $0x58] sm:$0xff]  ;;  %v3165_v38 = vld [vmem:[#allocation2 + $0x60] sm:$0xff] }
 0x25e   : > { %v1998_v33 = vpop.f32.mrf.mxu0 }
 0x25f   : > { %v3151_v28 = vmul.f32 %v3149_v42, %v3140_v1  ;;  %v13895_v53 = vrot.slane %v3149_v42, %v13887_v36  ;;  %2367 = vst.msk [vmem:[#allocation2 + $0x98] sm:$0xff] %vm2347_vm1, %v2300_v23  ;;  %v2237_v32 = vand.u32 2147483647, %v1998_v33 }
 0x260   : > { %v2000_v11 = vpop.f32.mrf.mxu0 }
 0x261   : > { %v3152_v24 = vsub.f32 %v3150_v26, %v3151_v28  ;;  %v3214_v18 = vmul.f32 %v13895_v53, %v3159_v6  ;;  %v3208_v48 = vmul.f32 %v13895_v53, %v3153_v12  ;;  %v3209_v1 = vmul.f32 %v13895_v53, %v3154_v35  ;;  %v3166_v28 = vld [vmem:[#allocation2 + $0x68] sm:$0xff] }
 0x262   : > { %v2003_v50 = vpop.f32.mrf.mxu0  ;;  %v3210_v27 = vmul.f32 %v13895_v53, %v3155_v8  ;;  %v3211_v29 = vmul.f32 %v13895_v53, %v3156_v4  ;;  %v3212_v13 = vmul.f32 %v13895_v53, %v3157_v41  ;;  %v13908_v30 = vmul.f32 %v13895_v53, %v3158_v60 }
 0x263   : > { %v13902_v47 = vrot.slane %v3152_v24, %v13887_v36  ;;  %v3215_v31 = vmul.f32 %v13895_v53, %v3160_v44  ;;  %v3216_v63 = vmul.f32 %v13895_v53, %v3161_v57  ;;  %v3217_v15 = vmul.f32 %v13895_v53, %v3162_v5  ;;  %v3167_v5 = vld [vmem:[#allocation2 + $0x70] sm:$0xff] }
 0x264   : > { %v2005_v9 = vpop.f32.mrf.mxu0  ;;  %v3218_v23 = vmul.f32 %v13895_v53, %v3163_v17  ;;  %v3219_v26 = vmul.f32 %v13895_v53, %v3164_v21  ;;  %v3220_v33 = vmul.f32 %v13895_v53, %v3165_v38  ;;  %v3221_v8 = vmul.f32 %v13895_v53, %v3166_v28  ;;  %v3169_v21 = vld [vmem:[#allocation2 + $0x80] sm:$0xff]  ;;  %v3170_v38 = vld [vmem:[#allocation2 + $0x88] sm:$0xff] }
 0x265   : > { %v3265_v42 = vadd.f32 %v13902_v47, %v3210_v27  ;;  %v13918_v12 = vadd.f32 %v13902_v47, %v3214_v18  ;;  %v3267_v11 = vadd.f32 %v13902_v47, %v3212_v13  ;;  %v13922_v35 = vadd.f32 %v13902_v47, %v3215_v31  ;;  %v3171_v18 = vld [vmem:[#allocation2 + $0x90] sm:$0xff]  ;;  %v3168_v31 = vld [vmem:[#allocation2 + $0x78] sm:$0xff] }
 0x266   : > { %v2008_v24 = vpop.f32.mrf.mxu0  ;;  %v13926_v6 = vadd.f32 %v13902_v47, %v3216_v63  ;;  %v13929_v4 = vadd.f32 %v13902_v47, %v3217_v15  ;;  %v13932_v41 = vadd.f32 %v13902_v47, %v3218_v23  ;;  %v13935_v60 = vadd.f32 %v13902_v47, %v3219_v26  ;;  %v3172_v27 = vld [vmem:[#allocation2 + $0x98] sm:$0xff] }
 0x267   : > { %vm3314_vm3 = vcmp.ge.f32.partialorder %v3265_v42, 0.0  ;;  %v3363_v13 = vmul.f32 0.01, %v3265_v42  ;;  %v13938_v44 = vadd.f32 %v13902_v47, %v3220_v33  ;;  %v13941_v57 = vadd.f32 %v13902_v47, %v3221_v8 }
 0x268   : > { %v2010_v63 = vpop.f32.mrf.mxu0  ;;  %v3222_v15 = vmul.f32 %v13895_v53, %v3167_v5  ;;  %v3223_v17 = vmul.f32 %v13895_v53, %v3168_v31  ;;  %v2301_v9 = vmax.f32.f32 %v13597_v34, %v2237_v32  ;;  %v2238_v23 = vand.u32 2147483647, %v2003_v50 }
 0x269   : > { %v3224_v26 = vmul.f32 %v13895_v53, %v3169_v21  ;;  %v3225_v33 = vmul.f32 %v13895_v53, %v3170_v38  ;;  %v13949_v28 = vmul.f32 %v13895_v53, %v3171_v18  ;;  %v13952_v8 = vmul.f32 %v13895_v53, %v3172_v27 }
 0x26a   : > { %v2013_v63 = vpop.f32.mrf.mxu0  ;;  %v13955_v5 = vadd.f32 %v13902_v47, %v3222_v15  ;;  %v13958_v31 = vadd.f32 %v13902_v47, %v3223_v17  ;;  %2368 = vst.msk [vmem:[#allocation2 + $0xa0] sm:$0xff] %vm2347_vm1, %v2301_v9  ;;  %v2302_v34 = vmax.f32.f32 %v13603_v43, %v2238_v23  ;;  %v2239_v32 = vand.u32 2147483647, %v2008_v24 }
 0x26b   : > { %v2240_v50 = vand.u32 2147483647, %v2013_v63  ;;  %v3263_v18 = vadd.f32 %v13902_v47, %v3208_v48  ;;  %v3264_v38 = vadd.f32 %v13902_v47, %v3209_v1  ;;  %v3412_v27 = vsel %vm3314_vm3, %v3265_v42, %v3363_v13 }
 0x26c   : > { %v2015_v21 = vpop.f32.mrf.mxu0  ;;  %2369 = vst.msk [vmem:[#allocation2 + $0xa8] sm:$0xff] %vm2347_vm1, %v2302_v34  ;;  %v2303_v15 = vmax.f32.f32 %v13608_v51, %v2239_v32  ;;  %3461 = vst.msk [vmem:[#allocation4 + $0x10] sm:$0xff] %vm2347_vm1, %v3412_v27  ;;  %v3266_v17 = vadd.f32 %v13902_v47, %v3211_v29  ;;  %vm3316_vm4 = vcmp.ge.f32.partialorder %v3267_v11, 0.0  ;;  %v3365_v9 = vmul.f32 0.01, %v3267_v11 }
 0x26d   : > { %v2304_v43 = vmax.f32.f32 %v13612_v14, %v2240_v50  ;;  %vm3312_vm5 = vcmp.ge.f32.partialorder %v3263_v18, 0.0  ;;  %v3361_v23 = vmul.f32 0.01, %v3263_v18  ;;  %vm3313_vm6 = vcmp.ge.f32.partialorder %v3264_v38, 0.0 }
 0x26e   : > { %v2018_v24 = vpop.f32.mrf.mxu0  ;;  %2370 = vst.msk [vmem:[#allocation2 + $0xb0] sm:$0xff] %vm2347_vm1, %v2303_v15  ;;  %v3362_v1 = vmul.f32 0.01, %v3264_v38  ;;  %vm3315_vm7 = vcmp.ge.f32.partialorder %v3266_v17, 0.0  ;;  %v3414_v42 = vsel %vm3316_vm4, %v3267_v11, %v3365_v9  ;;  %v3364_v63 = vmul.f32 0.01, %v3266_v17 }
 0x26f   : > { %v2241_v48 = vand.u32 2147483647, %v2018_v24  ;;  %2371 = vst.msk [vmem:[#allocation2 + $0xb8] sm:$0xff] %vm2347_vm1, %v2304_v43  ;;  %v3410_v13 = vsel %vm3312_vm5, %v3263_v18, %v3361_v23  ;;  %3463 = vst.msk [vmem:[#allocation4 + $0x20] sm:$0xff] %vm2347_vm1, %v3414_v42  ;;  %v3268_v14 = vadd.f32 %v13902_v47, %v13908_v30  ;;  %vm3318_vm8 = vcmp.ge.f32.partialorder %v13918_v12, 0.0 }
 0x270   : > { %v2020_v51 = vpop.f32.mrf.mxu0  ;;  %3459 = vst.msk [vmem:[#allocation4] sm:$0xff] %vm2347_vm1, %v3410_v13  ;;  %v3411_v34 = vsel %vm3313_vm6, %v3264_v38, %v3362_v1  ;;  %v3367_v32 = vmul.f32 0.01, %v13918_v12  ;;  %vm3319_vm9 = vcmp.ge.f32.partialorder %v13922_v35, 0.0  ;;  %v3413_v21 = vsel %vm3315_vm7, %v3266_v17, %v3364_v63 }
 0x271   : > { %v2305_v29 = vmax.f32.f32 %v13616_v3, %v2241_v48  ;;  %v3173_v11 = vld [vmem:[#allocation2 + $0xa0] sm:$0xff]  ;;  %3460 = vst.msk [vmem:[#allocation4 + $0x8] sm:$0xff] %vm2347_vm1, %v3411_v34  ;;  %vm3317_vm10 = vcmp.ge.f32.partialorder %v3268_v14, 0.0  ;;  %v3366_v18 = vmul.f32 0.01, %v3268_v14  ;;  %v13984_v27 = vadd.f32 %v13902_v47, %v3224_v26  ;;  %3462 = vst.msk [vmem:[#allocation4 + $0x18] sm:$0xff] %vm2347_vm1, %v3413_v21 }
 0x272   : > { %v2023_v50 = vpop.f32.mrf.mxu0  ;;  %v3368_v30 = vmul.f32 0.01, %v13922_v35  ;;  %v3416_v38 = vsel %vm3318_vm8, %v13918_v12, %v3367_v32  ;;  %vm3320_vm11 = vcmp.ge.f32.partialorder %v13926_v6, 0.0  ;;  %v3369_v9 = vmul.f32 0.01, %v13926_v6 }
 0x273   : > { %2372 = vst.msk [vmem:[#allocation2 + $0xc0] sm:$0xff] %vm2347_vm1, %v2305_v29  ;;  %v2242_v3 = vand.u32 2147483647, %v2023_v50  ;;  %v3415_v17 = vsel %vm3317_vm10, %v3268_v14, %v3366_v18  ;;  %3465 = vst.msk [vmem:[#allocation4 + $0x30] sm:$0xff] %vm2347_vm1, %v3416_v38  ;;  %vm3321_vm12 = vcmp.ge.f32.partialorder %v13929_v4, 0.0  ;;  %v13999_v43 = vadd.f32 %v13902_v47, %v3225_v33  ;;  %v3174_v12 = vld [vmem:[#allocation2 + $0xa8] sm:$0xff] }
 0x274   : > { %v2025_v15 = vpop.f32.mrf.mxu0  ;;  %v3417_v26 = vsel %vm3319_vm9, %v13922_v35, %v3368_v30  ;;  %v3228_v24 = vmul.f32 %v13895_v53, %v3173_v11  ;;  %3464 = vst.msk [vmem:[#allocation4 + $0x28] sm:$0xff] %vm2347_vm1, %v3415_v17  ;;  %v3370_v48 = vmul.f32 0.01, %v13929_v4  ;;  %v14008_v35 = vadd.f32 %v13902_v47, %v13949_v28  ;;  %v10666_v17 = vld [vmem:[%s16634_s4 + $0x90] sm:$0xff] }
 0x275   : > { %v2306_v23 = vmax.f32.f32 %v13620_v20, %v2242_v3  ;;  %3466 = vst.msk [vmem:[#allocation4 + $0x38] sm:$0xff] %vm2347_vm1, %v3417_v26  ;;  %v3418_v33 = vsel %vm3320_vm11, %v13926_v6, %v3369_v9  ;;  %vm3322_vm13 = vcmp.ge.f32.partialorder %v13932_v41, 0.0  ;;  %v3371_v42 = vmul.f32 0.01, %v13932_v41  ;;  %v3175_v51 = vld [vmem:[#allocation2 + $0xb0] sm:$0xff]  ;;  %v3518_v3 = vld [vmem:[#allocation4 + $0x10] sm:$0xff] }
 0x276   : > { %v2028_v1 = vpop.f32.mrf.mxu0  ;;  %v14017_v20 = vadd.f32 %v13902_v47, %v13952_v8  ;;  %3467 = vst.msk [vmem:[#allocation4 + $0x40] sm:$0xff] %vm2347_vm1, %v3418_v33  ;;  %v3419_v28 = vsel %vm3321_vm12, %v13929_v4, %v3370_v48  ;;  %vm3323_vm14 = vcmp.ge.f32.partialorder %v13935_v60, 0.0  ;;  %v3229_v6 = vmul.f32 %v13895_v53, %v3174_v12  ;;  %v3176_v63 = vld [vmem:[#allocation2 + $0xb8] sm:$0xff] }
 0x277   : > { %2373 = vst.msk [vmem:[#allocation2 + $0xc8] sm:$0xff] %vm2347_vm1, %v2306_v23  ;;  %v2243_v13 = vand.u32 2147483647, %v2028_v1  ;;  %v3516_v14 = vld [vmem:[#allocation4] sm:$0xff]  ;;  %3468 = vst.msk [vmem:[#allocation4 + $0x48] sm:$0xff] %vm2347_vm1, %v3419_v28  ;;  %v3420_v8 = vsel %vm3322_vm13, %v13932_v41, %v3371_v42  ;;  %vm3324_vm15 = vcmp.ge.f32.partialorder %v13938_v44, 0.0  ;;  %v14031_v32 = vadd.f32 %v13902_v47, %v3228_v24 }
 0x278   : > { %v2030_v29 = vpop.f32.mrf.mxu0  ;;  %v3372_v34 = vmul.f32 0.01, %v13935_v60  ;;  %11761 = vmatprep.mubr.msk.f32.mxu1 %vm2347_vm1, %v3516_v14  ;;  %v5183_v4 = vld [vmem:[#allocation4 + $0x3] sm:$0xff]  ;;  %v5184_v50 = vld [vmem:[#allocation4 + $0xb] sm:$0xff]  ;;  %3469 = vst.msk [vmem:[#allocation4 + $0x50] sm:$0xff] %vm2347_vm1, %v3420_v8  ;;  %vm3325_vm0 = vcmp.ge.f32.partialorder %v13941_v57, 0.0  ;;  %v3230_v41 = vmul.f32 %v13895_v53, %v3175_v51  ;;  %v3231_v26 = vmul.f32 %v13895_v53, %v3176_v63 }
 0x279   : > { %v3517_v11 = vld [vmem:[#allocation4 + $0x8] sm:$0xff]  ;;  %v2307_v21 = vmax.f32.f32 %v13624_v10, %v2243_v13  ;;  %v3373_v18 = vmul.f32 0.01, %v13938_v44  ;;  %12037 = vmatprep.mubr.msk.f32.mxu0 %vm2347_vm1, %v5183_v4  ;;  %v3374_v10 = vmul.f32 0.01, %v13941_v57  ;;  %vm3326_vm2 = vcmp.ge.f32.partialorder %v13955_v5, 0.0 }
 0x27a   : > { %v3177_v30 = vld [vmem:[#allocation2 + $0xc0] sm:$0xff]  ;;  %11762 = vmatmul.mubr.msk.f32.vlgmr.msra.gmra.mxu1 %vm2347_vm1, %v3517_v11  ;;  %v2033_v38 = vpop.f32.mrf.mxu0  ;;  %v3421_v15 = vsel %vm3323_vm14, %v13935_v60, %v3372_v34  ;;  %12038 = vmatmul.mubr.msk.f32.vlgmr.msra.gmra.mxu0 %vm2347_vm1, %v5184_v50  ;;  %v3375_v12 = vmul.f32 0.01, %v13955_v5  ;;  %v14059_v23 = vadd.f32 %v13902_v47, %v3229_v6  ;;  %vm3327_vm3 = vcmp.ge.f32.partialorder %v13958_v31, 0.0  ;;  %v3520_v6 = vld [vmem:[#allocation4 + $0x20] sm:$0xff] }
 0x27b   : > { %11764 = vmatprep.mubr.msk.f32.mxu1 %vm2347_vm1, %v3518_v3  ;;  %v5185_v9 = vld [vmem:[#allocation4 + $0x13] sm:$0xff]  ;;  %2374 = vst.msk [vmem:[#allocation2 + $0xd0] sm:$0xff] %vm2347_vm1, %v2307_v21  ;;  %v2244_v24 = vand.u32 2147483647, %v2033_v38  ;;  %3470 = vst.msk [vmem:[#allocation4 + $0x58] sm:$0xff] %vm2347_vm1, %v3421_v15  ;;  %v3422_v60 = vsel %vm3324_vm15, %v13938_v44, %v3373_v18  ;;  %v3423_v1 = vsel %vm3325_vm0, %v13941_v57, %v3374_v10  ;;  %11834 = vmatpush3.msra.mxu1 %v13826_v62  ;;  %v10665_v62 = vld [vmem:[%s16634_s4 + $0x88] sm:$0xff] }
 0x27c   : > { %12040 = vmatprep.mubr.msk.f32.mxu0 %vm2347_vm1, %v5185_v9  ;;  %v2035_v48 = vpop.f32.mrf.mxu0  ;;  %3471 = vst.msk [vmem:[#allocation4 + $0x60] sm:$0xff] %vm2347_vm1, %v3422_v60  ;;  %v3376_v44 = vmul.f32 0.01, %v13958_v31  ;;  %v3232_v33 = vmul.f32 %v13895_v53, %v3177_v30  ;;  %v3519_v42 = vld [vmem:[#allocation4 + $0x18] sm:$0xff]  ;;  %3472 = vst.msk [vmem:[#allocation4 + $0x68] sm:$0xff] %vm2347_vm1, %v3423_v1  ;;  %v3424_v13 = vsel %vm3326_vm2, %v13955_v5, %v3375_v12  ;;  %vm3328_vm4 = vcmp.ge.f32.partialorder %v13984_v27, 0.0 }
 0x27d   : > { %v2308_v51 = vmax.f32.f32 %v13628_v55, %v2244_v24  ;;  %11835 = vmatprep.subr.mxu1 %v10666_v17  ;;  %v14080_v57 = vadd.f32 %v13902_v47, %v3230_v41  ;;  %v5186_v55 = vld [vmem:[#allocation4 + $0x1b] sm:$0xff]  ;;  %3473 = vst.msk [vmem:[#allocation4 + $0x70] sm:$0xff] %vm2347_vm1, %v3424_v13  ;;  %v3377_v14 = vmul.f32 0.01, %v13984_v27  ;;  %vm3329_vm5 = vcmp.ge.f32.partialorder %v13999_v43, 0.0  ;;  %v5187_v34 = vld [vmem:[#allocation4 + $0x23] sm:$0xff] }
 0x27e   : > { %v3178_v28 = vld [vmem:[#allocation2 + $0xc8] sm:$0xff]  ;;  %11765 = vmatmul.mubr.msk.f32.gmra.mxu1 %vm2347_vm1, %v3519_v42  ;;  %v2038_v63 = vpop.f32.mrf.mxu0  ;;  %v3425_v5 = vsel %vm3327_vm3, %v13958_v31, %v3376_v44  ;;  %v14090_v29 = vadd.f32 %v13902_v47, %v3231_v26  ;;  %12041 = vmatmul.mubr.msk.f32.gmra.mxu0 %vm2347_vm1, %v5186_v55  ;;  %v3378_v31 = vmul.f32 0.01, %v13999_v43  ;;  %vm3330_vm6 = vcmp.ge.f32.partialorder %v14008_v35, 0.0  ;;  %v3521_v41 = vld [vmem:[#allocation4 + $0x28] sm:$0xff]  ;;  %v10664_v38 = vld [vmem:[%s16634_s4 + $0x80] sm:$0xff] }
 0x27f   : > { %v3233_v8 = vmul.f32 %v13895_v53, %v3178_v28  ;;  %11767 = vmatprep.mubr.msk.f32.mxu1 %vm2347_vm1, %v3520_v6  ;;  %2375 = vst.msk [vmem:[#allocation2 + $0xd8] sm:$0xff] %vm2347_vm1, %v2308_v51  ;;  %v2245_v4 = vand.u32 2147483647, %v2038_v63  ;;  %3474 = vst.msk [vmem:[#allocation4 + $0x78] sm:$0xff] %vm2347_vm1, %v3425_v5  ;;  %12043 = vmatprep.mubr.msk.f32.mxu0 %vm2347_vm1, %v5187_v34  ;;  %v3426_v50 = vsel %vm3328_vm4, %v13984_v27, %v3377_v14  ;;  %v5189_v60 = vld [vmem:[#allocation4 + $0x33] sm:$0xff]  ;;  %v3524_v55 = vld [vmem:[#allocation4 + $0x40] sm:$0xff] }
 0x280   : > { %v2040_v11 = vpop.f32.mrf.mxu0  ;;  %v3379_v21 = vmul.f32 0.01, %v14008_v35  ;;  %vm3331_vm7 = vcmp.ge.f32.partialorder %v14017_v20, 0.0  ;;  %11836 = vmatpush3.msra.mxu1 %v10666_v17  ;;  %v14106_v18 = vadd.f32 %v13902_v47, %v3232_v33  ;;  %3475 = vst.msk [vmem:[#allocation4 + $0x80] sm:$0xff] %vm2347_vm1, %v3426_v50  ;;  %v3427_v3 = vsel %vm3329_vm5, %v13999_v43, %v3378_v31  ;;  %v3522_v17 = vld [vmem:[#allocation4 + $0x30] sm:$0xff]  ;;  %v3523_v42 = vld [vmem:[#allocation4 + $0x38] sm:$0xff] }
 0x281   : > { %v2309_v30 = vmax.f32.f32 %v13632_v0, %v2245_v4  ;;  %v3380_v27 = vmul.f32 0.01, %v14017_v20  ;;  %11837 = vmatprep.subr.mxu1 %v10665_v62  ;;  %v14118_v15 = vadd.f32 %v13902_v47, %v3233_v8  ;;  %v5188_v0 = vld [vmem:[#allocation4 + $0x2b] sm:$0xff]  ;;  %3476 = vst.msk [vmem:[#allocation4 + $0x88] sm:$0xff] %vm2347_vm1, %v3427_v3  ;;  %vm3332_vm8 = vcmp.ge.f32.partialorder %v14031_v32, 0.0  ;;  %v5191_v14 = vld [vmem:[#allocation4 + $0x43] sm:$0xff] }
 0x282   : > { %v3179_v10 = vld [vmem:[#allocation2 + $0xd0] sm:$0xff]  ;;  %11768 = vmatmul.mubr.msk.f32.gmra.mxu1 %vm2347_vm1, %v3521_v41  ;;  %v2043_v26 = vpop.f32.mrf.mxu0  ;;  %v3428_v43 = vsel %vm3330_vm6, %v14008_v35, %v3379_v21  ;;  %v3381_v9 = vmul.f32 0.01, %v14031_v32  ;;  %12044 = vmatmul.mubr.msk.f32.gmra.mxu0 %vm2347_vm1, %v5188_v0  ;;  %vm3333_vm9 = vcmp.ge.f32.partialorder %v14059_v23, 0.0  ;;  %v3382_v44 = vmul.f32 0.01, %v14059_v23 }
 0x283   : > { %v3234_v24 = vmul.f32 %v13895_v53, %v3179_v10  ;;  %11770 = vmatprep.mubr.msk.f32.mxu1 %vm2347_vm1, %v3522_v17  ;;  %2376 = vst.msk [vmem:[#allocation2 + $0xe0] sm:$0xff] %vm2347_vm1, %v2309_v30  ;;  %v2246_v12 = vand.u32 2147483647, %v2043_v26  ;;  %3477 = vst.msk [vmem:[#allocation4 + $0x90] sm:$0xff] %vm2347_vm1, %v3428_v43  ;;  %v3429_v35 = vsel %vm3331_vm7, %v14017_v20, %v3380_v27  ;;  %12046 = vmatprep.mubr.msk.f32.mxu0 %vm2347_vm1, %v5189_v60  ;;  %v3525_v50 = vld [vmem:[#allocation4 + $0x48] sm:$0xff]  ;;  %v3526_v3 = vld [vmem:[#allocation4 + $0x50] sm:$0xff] }
 0x284   : > { %v2045_v48 = vpop.f32.mrf.mxu0  ;;  %3478 = vst.msk [vmem:[#allocation4 + $0x98] sm:$0xff] %vm2347_vm1, %v3429_v35  ;;  %v3430_v1 = vsel %vm3332_vm8, %v14031_v32, %v3381_v9  ;;  %vm3334_vm10 = vcmp.ge.f32.partialorder %v14080_v57, 0.0  ;;  %vm3335_vm11 = vcmp.ge.f32.partialorder %v14090_v29, 0.0  ;;  %11838 = vmatpush3.msra.mxu1 %v10665_v62  ;;  %v3383_v51 = vmul.f32 0.01, %v14080_v57  ;;  %v10663_v32 = vld [vmem:[%s16634_s4 + $0x78] sm:$0xff] }
 0x285   : > { %v3289_v33 = vadd.f32 %v13902_v47, %v3234_v24  ;;  %v2310_v20 = vmax.f32.f32 %v13636_v37, %v2246_v12  ;;  %3479 = vst.msk [vmem:[#allocation4 + $0xa0] sm:$0xff] %vm2347_vm1, %v3430_v1  ;;  %v3384_v13 = vmul.f32 0.01, %v14090_v29  ;;  %11839 = vmatprep.subr.mxu1 %v10664_v38  ;;  %v5190_v62 = vld [vmem:[#allocation4 + $0x3b] sm:$0xff]  ;;  %v3431_v37 = vsel %vm3333_vm9, %v14059_v23, %v3382_v44  ;;  %v10662_v41 = vld [vmem:[%s16634_s4 + $0x70] sm:$0xff]  ;;  %v5193_v10 = vld [vmem:[#allocation4 + $0x53] sm:$0xff] }
 0x286   : > { %v3180_v28 = vld [vmem:[#allocation2 + $0xd8] sm:$0xff]  ;;  %11771 = vmatmul.mubr.msk.f32.gmra.mxu1 %vm2347_vm1, %v3523_v42  ;;  %v2048_v6 = vpop.f32.mrf.mxu0  ;;  %vm3336_vm12 = vcmp.ge.f32.partialorder %v14106_v18, 0.0  ;;  %v3385_v63 = vmul.f32 0.01, %v14106_v18  ;;  %12047 = vmatmul.mubr.msk.f32.gmra.mxu0 %vm2347_vm1, %v5190_v62  ;;  %3480 = vst.msk [vmem:[#allocation4 + $0xa8] sm:$0xff] %vm2347_vm1, %v3431_v37  ;;  %v3432_v23 = vsel %vm3334_vm10, %v14080_v57, %v3383_v51  ;;  %vm3337_vm13 = vcmp.ge.f32.partialorder %v14118_v15, 0.0 }
 0x287   : > { %v3235_v5 = vmul.f32 %v13895_v53, %v3180_v28  ;;  %11773 = vmatprep.mubr.msk.f32.mxu1 %vm2347_vm1, %v3524_v55  ;;  %2377 = vst.msk [vmem:[#allocation2 + $0xe8] sm:$0xff] %vm2347_vm1, %v2310_v20  ;;  %v2247_v8 = vand.u32 2147483647, %v2048_v6  ;;  %v3433_v34 = vsel %vm3335_vm11, %v14090_v29, %v3384_v13  ;;  %12049 = vmatprep.mubr.msk.f32.mxu0 %vm2347_vm1, %v5191_v14  ;;  %3481 = vst.msk [vmem:[#allocation4 + $0xb0] sm:$0xff] %vm2347_vm1, %v3432_v23  ;;  %v5192_v30 = vld [vmem:[#allocation4 + $0x4b] sm:$0xff]  ;;  %v3527_v9 = vld [vmem:[#allocation4 + $0x58] sm:$0xff] }
 0x288   : > { %v2050_v4 = vpop.f32.mrf.mxu0  ;;  %3482 = vst.msk [vmem:[#allocation4 + $0xb8] sm:$0xff] %vm2347_vm1, %v3433_v34  ;;  %v3434_v31 = vsel %vm3336_vm12, %v14106_v18, %v3385_v63  ;;  %v3386_v11 = vmul.f32 0.01, %v14118_v15  ;;  %vm3338_vm14 = vcmp.ge.f32.partialorder %v3289_v33, 0.0  ;;  %11840 = vmatpush3.msra.mxu1 %v10664_v38  ;;  %v3387_v21 = vmul.f32 0.01, %v3289_v33 }
 0x289   : > { %v3290_v57 = vadd.f32 %v13902_v47, %v3235_v5  ;;  %v2311_v29 = vmax.f32.f32 %v13640_v46, %v2247_v8  ;;  %3483 = vst.msk [vmem:[#allocation4 + $0xc0] sm:$0xff] %vm2347_vm1, %v3434_v31  ;;  %11841 = vmatprep.subr.mxu1 %v10663_v32  ;;  %v10661_v60 = vld [vmem:[%s16634_s4 + $0x68] sm:$0xff]  ;;  %v10660_v62 = vld [vmem:[%s16634_s4 + $0x60] sm:$0xff]  ;;  %v5196_v6 = vld [vmem:[#allocation4 + $0x6b] sm:$0xff] }
 0x28a   : > { %v3181_v18 = vld [vmem:[#allocation2 + $0xe0] sm:$0xff]  ;;  %11774 = vmatmul.mubr.msk.f32.gmra.mxu1 %vm2347_vm1, %v3525_v50  ;;  %v2053_v27 = vpop.f32.mrf.mxu0  ;;  %v3435_v38 = vsel %vm3337_vm13, %v14118_v15, %v3386_v11  ;;  %12050 = vmatmul.mubr.msk.f32.gmra.mxu0 %vm2347_vm1, %v5192_v30  ;;  %v3436_v17 = vsel %vm3338_vm14, %v3289_v33, %v3387_v21  ;;  %v3528_v48 = vld [vmem:[#allocation4 + $0x60] sm:$0xff]  ;;  %v3530_v37 = vld [vmem:[#allocation4 + $0x70] sm:$0xff] }
 0x28b   : > { %v3236_v46 = vmul.f32 %v13895_v53, %v3181_v18  ;;  %11776 = vmatprep.mubr.msk.f32.mxu1 %vm2347_vm1, %v3526_v3  ;;  %2378 = vst.msk [vmem:[#allocation2 + $0xf0] sm:$0xff] %vm2347_vm1, %v2311_v29  ;;  %v2248_v0 = vand.u32 2147483647, %v2053_v27  ;;  %3484 = vst.msk [vmem:[#allocation4 + $0xc8] sm:$0xff] %vm2347_vm1, %v3435_v38  ;;  %vm3339_vm15 = vcmp.ge.f32.partialorder %v3290_v57, 0.0  ;;  %12052 = vmatprep.mubr.msk.f32.mxu0 %vm2347_vm1, %v5193_v10  ;;  %v5194_v35 = vld [vmem:[#allocation4 + $0x5b] sm:$0xff] }
 0x28c   : > { %v2055_v26 = vpop.f32.mrf.mxu0  ;;  %3485 = vst.msk [vmem:[#allocation4 + $0xd0] sm:$0xff] %vm2347_vm1, %v3436_v17  ;;  %v3388_v15 = vmul.f32 0.01, %v3290_v57  ;;  %11842 = vmatpush3.msra.mxu1 %v10663_v32  ;;  %v3529_v32 = vld [vmem:[#allocation4 + $0x68] sm:$0xff]  ;;  %v5197_v8 = vld [vmem:[#allocation4 + $0x73] sm:$0xff]  ;;  %v5198_v29 = vld [vmem:[#allocation4 + $0x7b] sm:$0xff] }
 0x28d   : > { %v3291_v43 = vadd.f32 %v13902_v47, %v3236_v46  ;;  %v2312_v24 = vmax.f32.f32 %v13644_v56, %v2248_v0  ;;  %11843 = vmatprep.subr.mxu1 %v10662_v41  ;;  %v5195_v56 = vld [vmem:[#allocation4 + $0x63] sm:$0xff]  ;;  %v3531_v31 = vld [vmem:[#allocation4 + $0x78] sm:$0xff] }
 0x28e   : > { %v3182_v12 = vld [vmem:[#allocation2 + $0xe8] sm:$0xff]  ;;  %11777 = vmatmul.mubr.msk.f32.gmra.mxu1 %vm2347_vm1, %v3527_v9  ;;  %v2058_v1 = vpop.f32.mrf.mxu0  ;;  %v3437_v44 = vsel %vm3339_vm15, %v3290_v57, %v3388_v15  ;;  %12053 = vmatmul.mubr.msk.f32.gmra.mxu0 %vm2347_vm1, %v5194_v35  ;;  %v10659_v57 = vld [vmem:[%s16634_s4 + $0x58] sm:$0xff]  ;;  %v3533_v10 = vld [vmem:[#allocation4 + $0x88] sm:$0xff] }
 0x28f   : > { %v3237_v33 = vmul.f32 %v13895_v53, %v3182_v12  ;;  %11779 = vmatprep.mubr.msk.f32.mxu1 %vm2347_vm1, %v3528_v48  ;;  %2379 = vst.msk [vmem:[#allocation2 + $0xf8] sm:$0xff] %vm2347_vm1, %v2312_v24  ;;  %v2249_v42 = vand.u32 2147483647, %v2058_v1  ;;  %3486 = vst.msk [vmem:[#allocation4 + $0xd8] sm:$0xff] %vm2347_vm1, %v3437_v44  ;;  %vm3340_vm0 = vcmp.ge.f32.partialorder %v3291_v43, 0.0  ;;  %12055 = vmatprep.mubr.msk.f32.mxu0 %vm2347_vm1, %v5195_v56  ;;  %v3532_v21 = vld [vmem:[#allocation4 + $0x80] sm:$0xff] }
 0x290   : > { %v2060_v20 = vpop.f32.mrf.mxu0  ;;  %v3389_v51 = vmul.f32 0.01, %v3291_v43  ;;  %11844 = vmatpush3.msra.mxu1 %v10662_v41  ;;  %v5199_v3 = vld [vmem:[#allocation4 + $0x83] sm:$0xff]  ;;  %v3534_v9 = vld [vmem:[#allocation4 + $0x90] sm:$0xff]  ;;  %v3535_v44 = vld [vmem:[#allocation4 + $0x98] sm:$0xff] }
 0x291   : > { %v3292_v13 = vadd.f32 %v13902_v47, %v3237_v33  ;;  %v2313_v28 = vmax.f32.f32 %v13648_v2, %v2249_v42  ;;  %11845 = vmatprep.subr.mxu1 %v10661_v60  ;;  %v10658_v26 = vld [vmem:[%s16634_s4 + $0x50] sm:$0xff]  ;;  %v14245_v42 = vld [vmem:[%s16634_s4 + $0xe8] sm:$0xff] }
 0x292   : > { %v3183_v55 = vld [vmem:[#allocation2 + $0xf0] sm:$0xff]  ;;  %11780 = vmatmul.mubr.msk.f32.gmra.mxu1 %vm2347_vm1, %v3529_v32  ;;  %v2063_v63 = vpop.f32.mrf.mxu0  ;;  %v3438_v5 = vsel %vm3340_vm0, %v3291_v43, %v3389_v51  ;;  %12056 = vmatmul.mubr.msk.f32.gmra.mxu0 %vm2347_vm1, %v5196_v6  ;;  %v5202_v51 = vld [vmem:[#allocation4 + $0x9b] sm:$0xff] }
 0x293   : > { %v3238_v14 = vmul.f32 %v13895_v53, %v3183_v55  ;;  %11782 = vmatprep.mubr.msk.f32.mxu1 %vm2347_vm1, %v3530_v37  ;;  %2380 = vst.msk [vmem:[#allocation2 + $0x100] sm:$0xff] %vm2347_vm1, %v2313_v28  ;;  %v2250_v2 = vand.u32 2147483647, %v2063_v63  ;;  %3487 = vst.msk [vmem:[#allocation4 + $0xe0] sm:$0xff] %vm2347_vm1, %v3438_v5  ;;  %vm3341_vm2 = vcmp.ge.f32.partialorder %v3292_v13, 0.0  ;;  %12058 = vmatprep.mubr.msk.f32.mxu0 %vm2347_vm1, %v5197_v8  ;;  %v5200_v43 = vld [vmem:[#allocation4 + $0x8b] sm:$0xff] }
 0x294   : > { %v2065_v23 = vpop.f32.mrf.mxu0  ;;  %v3390_v34 = vmul.f32 0.01, %v3292_v13  ;;  %11846 = vmatpush3.msra.mxu1 %v10661_v60  ;;  %v3537_v63 = vld [vmem:[#allocation4 + $0xa8] sm:$0xff] }
 0x295   : > { %v3293_v4 = vadd.f32 %v13902_v47, %v3238_v14  ;;  %v2314_v11 = vmax.f32.f32 %v13652_v40, %v2250_v2  ;;  %11847 = vmatprep.subr.mxu1 %v10660_v62  ;;  %v5204_v2 = vld [vmem:[#allocation4 + $0xab] sm:$0xff] }
 0x296   : > { %v3184_v50 = vld [vmem:[#allocation2 + $0xf8] sm:$0xff]  ;;  %11783 = vmatmul.mubr.msk.f32.gmra.mxu1 %vm2347_vm1, %v3531_v31  ;;  %v2068_v41 = vpop.f32.mrf.mxu0  ;;  %v3439_v18 = vsel %vm3341_vm2, %v3292_v13, %v3390_v34  ;;  %12059 = vmatmul.mubr.msk.f32.gmra.mxu0 %vm2347_vm1, %v5198_v29  ;;  %v3536_v13 = vld [vmem:[#allocation4 + $0xa0] sm:$0xff]  ;;  %v3539_v29 = vld [vmem:[#allocation4 + $0xb8] sm:$0xff] }
 0x297   : > { %v3239_v30 = vmul.f32 %v13895_v53, %v3184_v50  ;;  %11785 = vmatprep.mubr.msk.f32.mxu1 %vm2347_vm1, %v3532_v21  ;;  %2381 = vst.msk [vmem:[#allocation2 + $0x108] sm:$0xff] %vm2347_vm1, %v2314_v11  ;;  %v2251_v40 = vand.u32 2147483647, %v2068_v41  ;;  %3488 = vst.msk [vmem:[#allocation4 + $0xe8] sm:$0xff] %vm2347_vm1, %v3439_v18  ;;  %vm3342_vm3 = vcmp.ge.f32.partialorder %v3293_v4, 0.0  ;;  %12061 = vmatprep.mubr.msk.f32.mxu0 %vm2347_vm1, %v5199_v3  ;;  %v3538_v23 = vld [vmem:[#allocation4 + $0xb0] sm:$0xff] }
 0x298   : > { %v3391_v27 = vmul.f32 0.01, %v3293_v4  ;;  %v2070_v38 = vpop.f32.mrf.mxu0  ;;  %11848 = vmatpush3.msra.mxu1 %v10660_v62  ;;  %v5205_v31 = vld [vmem:[#allocation4 + $0xb3] sm:$0xff]  ;;  %v3540_v3 = vld [vmem:[#allocation4 + $0xc0] sm:$0xff] }
 0x299   : > { %v3294_v46 = vadd.f32 %v13902_v47, %v3239_v30  ;;  %v2315_v0 = vmax.f32.f32 %v13656_v25, %v2251_v40  ;;  %11849 = vmatprep.subr.mxu1 %v10659_v57  ;;  %v5201_v25 = vld [vmem:[#allocation4 + $0x93] sm:$0xff]  ;;  %v5206_v30 = vld [vmem:[#allocation4 + $0xbb] sm:$0xff]  ;;  %v5207_v38 = vld [vmem:[#allocation4 + $0xc3] sm:$0xff] }
 0x29a   : > { %v3440_v17 = vsel %vm3342_vm3, %v3293_v4, %v3391_v27  ;;  %v3185_v15 = vld [vmem:[#allocation2 + $0x100] sm:$0xff]  ;;  %11786 = vmatmul.mubr.msk.f32.gmra.mxu1 %vm2347_vm1, %v3533_v10  ;;  %v2073_v24 = vpop.f32.mrf.mxu0  ;;  %12062 = vmatmul.mubr.msk.f32.gmra.mxu0 %vm2347_vm1, %v5200_v43 }
 0x29b   : > { %3489 = vst.msk [vmem:[#allocation4 + $0xf0] sm:$0xff] %vm2347_vm1, %v3440_v17  ;;  %v3240_v60 = vmul.f32 %v13895_v53, %v3185_v15  ;;  %11788 = vmatprep.mubr.msk.f32.mxu1 %vm2347_vm1, %v3534_v9  ;;  %2382 = vst.msk [vmem:[#allocation2 + $0x110] sm:$0xff] %vm2347_vm1, %v2315_v0  ;;  %v2252_v12 = vand.u32 2147483647, %v2073_v24  ;;  %vm3343_vm4 = vcmp.ge.f32.partialorder %v3294_v46, 0.0  ;;  %12064 = vmatprep.mubr.msk.f32.mxu0 %vm2347_vm1, %v5201_v25  ;;  %v3541_v17 = vld [vmem:[#allocation4 + $0xc8] sm:$0xff] }
 0x29c   : > { %v3392_v35 = vmul.f32 0.01, %v3294_v46  ;;  %v2075_v48 = vpop.f32.mrf.mxu0  ;;  %11850 = vmatpush3.msra.mxu1 %v10659_v57  ;;  %v5208_v9 = vld [vmem:[#allocation4 + $0xcb] sm:$0xff] }
 0x29d   : > { %v3295_v1 = vadd.f32 %v13902_v47, %v3240_v60  ;;  %v2316_v33 = vmax.f32.f32 %v13660_v61, %v2252_v12  ;;  %11851 = vmatprep.subr.mxu1 %v10658_v26  ;;  %v5203_v61 = vld [vmem:[#allocation4 + $0xa3] sm:$0xff]  ;;  %v3542_v24 = vld [vmem:[#allocation4 + $0xd0] sm:$0xff] }
 0x29e   : > { %v3441_v56 = vsel %vm3343_vm4, %v3294_v46, %v3392_v35  ;;  %v3186_v20 = vld [vmem:[#allocation2 + $0x108] sm:$0xff]  ;;  %11789 = vmatmul.mubr.msk.f32.gmra.mxu1 %vm2347_vm1, %v3535_v44  ;;  %v2078_v32 = vpop.f32.mrf.mxu0  ;;  %12065 = vmatmul.mubr.msk.f32.gmra.mxu0 %vm2347_vm1, %v5202_v51  ;;  %v5209_v12 = vld [vmem:[#allocation4 + $0xd3] sm:$0xff] }
 0x29f   : > { %3490 = vst.msk [vmem:[#allocation4 + $0xf8] sm:$0xff] %vm2347_vm1, %v3441_v56  ;;  %v3241_v28 = vmul.f32 %v13895_v53, %v3186_v20  ;;  %11791 = vmatprep.mubr.msk.f32.mxu1 %vm2347_vm1, %v3536_v13  ;;  %2383 = vst.msk [vmem:[#allocation2 + $0x118] sm:$0xff] %vm2347_vm1, %v2316_v33  ;;  %v2253_v62 = vand.u32 2147483647, %v2078_v32  ;;  %vm3344_vm5 = vcmp.ge.f32.partialorder %v3295_v1, 0.0  ;;  %12067 = vmatprep.mubr.msk.f32.mxu0 %vm2347_vm1, %v5203_v61  ;;  %v3543_v44 = vld [vmem:[#allocation4 + $0xd8] sm:$0xff] }
 0x2a0   : > { %v3393_v55 = vmul.f32 0.01, %v3295_v1  ;;  %v2080_v6 = vpop.f32.mrf.mxu0  ;;  %11852 = vmatpush3.msra.mxu1 %v10658_v26  ;;  %v5210_v51 = vld [vmem:[#allocation4 + $0xdb] sm:$0xff]  ;;  %v5211_v61 = vld [vmem:[#allocation4 + $0xe3] sm:$0xff] }
 0x2a1   : > { %v3296_v37 = vadd.f32 %v13902_v47, %v3241_v28  ;;  %v2317_v5 = vmax.f32.f32 %v13664_v19, %v2253_v62  ;;  %11925 = vmatprep.subr.mxu1 %v14245_v42  ;;  %v3544_v13 = vld [vmem:[#allocation4 + $0xe0] sm:$0xff] }
 0x2a2   : > { %v3442_v14 = vsel %vm3344_vm5, %v3295_v1, %v3393_v55  ;;  %v3187_v8 = vld [vmem:[#allocation2 + $0x110] sm:$0xff]  ;;  %11792 = vmatmul.mubr.msk.f32.gmra.mxu1 %vm2347_vm1, %v3537_v63  ;;  %v2083_v34 = vpop.f32.mrf.mxu0  ;;  %12068 = vmatmul.mubr.msk.f32.gmra.mxu0 %vm2347_vm1, %v5204_v2  ;;  %v3546_v2 = vld [vmem:[#allocation4 + $0xf0] sm:$0xff] }
 0x2a3   : > { %3491 = vst.msk [vmem:[#allocation4 + $0x100] sm:$0xff] %vm2347_vm1, %v3442_v14  ;;  %v3242_v4 = vmul.f32 %v13895_v53, %v3187_v8  ;;  %11794 = vmatprep.mubr.msk.f32.mxu1 %vm2347_vm1, %v3538_v23  ;;  %2384 = vst.msk [vmem:[#allocation2 + $0x120] sm:$0xff] %vm2347_vm1, %v2317_v5  ;;  %v2254_v19 = vand.u32 2147483647, %v2083_v34  ;;  %vm3345_vm6 = vcmp.ge.f32.partialorder %v3296_v37, 0.0  ;;  %12070 = vmatprep.mubr.msk.f32.mxu0 %vm2347_vm1, %v5205_v31  ;;  %v5212_v8 = vld [vmem:[#allocation4 + $0xeb] sm:$0xff] }
 0x2a4   : > { %v3394_v11 = vmul.f32 0.01, %v3296_v37  ;;  %v2085_v57 = vpop.f32.mrf.mxu0 }
 0x2a5   : > { %v3297_v50 = vadd.f32 %v13902_v47, %v3242_v4  ;;  %v2318_v21 = vmax.f32.f32 %v13668_v49, %v2254_v19 }
 0x2a6   : > { %v3443_v41 = vsel %vm3345_vm6, %v3296_v37, %v3394_v11  ;;  %v3188_v18 = vld [vmem:[#allocation2 + $0x118] sm:$0xff]  ;;  %11795 = vmatmul.mubr.msk.f32.gmra.mxu1 %vm2347_vm1, %v3539_v29  ;;  %v2088_v40 = vpop.f32.mrf.mxu0  ;;  %12071 = vmatmul.mubr.msk.f32.gmra.mxu0 %vm2347_vm1, %v5206_v30  ;;  %v3545_v37 = vld [vmem:[#allocation4 + $0xe8] sm:$0xff]  ;;  %v3547_v57 = vld [vmem:[#allocation4 + $0xf8] sm:$0xff] }
 0x2a7   : > { %3492 = vst.msk [vmem:[#allocation4 + $0x108] sm:$0xff] %vm2347_vm1, %v3443_v41  ;;  %v3243_v27 = vmul.f32 %v13895_v53, %v3188_v18  ;;  %11797 = vmatprep.mubr.msk.f32.mxu1 %vm2347_vm1, %v3540_v3  ;;  %2385 = vst.msk [vmem:[#allocation2 + $0x128] sm:$0xff] %vm2347_vm1, %v2318_v21  ;;  %v2255_v46 = vand.u32 2147483647, %v2088_v40  ;;  %vm3346_vm7 = vcmp.ge.f32.partialorder %v3297_v50, 0.0  ;;  %12073 = vmatprep.mubr.msk.f32.mxu0 %vm2347_vm1, %v5207_v38  ;;  %v5213_v4 = vld [vmem:[#allocation4 + $0xf3] sm:$0xff] }
 0x2a8   : > { %v3395_v49 = vmul.f32 0.01, %v3297_v50  ;;  %v2090_v10 = vpop.f32.mrf.mxu0 }
 0x2a9   : > { %v3298_v0 = vadd.f32 %v13902_v47, %v3243_v27  ;;  %v2319_v26 = vmax.f32.f32 %v13672_v59, %v2255_v46 }
 0x2aa   : > { %v3444_v15 = vsel %vm3346_vm7, %v3297_v50, %v3395_v49  ;;  %v3189_v43 = vld [vmem:[#allocation2 + $0x120] sm:$0xff]  ;;  %11798 = vmatmul.mubr.msk.f32.gmra.mxu1 %vm2347_vm1, %v3541_v17  ;;  %v2093_v60 = vpop.f32.mrf.mxu0  ;;  %12074 = vmatmul.mubr.msk.f32.gmra.mxu0 %vm2347_vm1, %v5208_v9  ;;  %v3548_v18 = vld [vmem:[#allocation4 + $0x100] sm:$0xff]  ;;  %vm7243_vm7 = vcmask 1043456  }
 0x2ab   : > { %3493 = vst.msk [vmem:[#allocation4 + $0x110] sm:$0xff] %vm2347_vm1, %v3444_v15  ;;  %v3244_v25 = vmul.f32 %v13895_v53, %v3189_v43  ;;  %11800 = vmatprep.mubr.msk.f32.mxu1 %vm2347_vm1, %v3542_v24  ;;  %2386 = vst.msk [vmem:[#allocation2 + $0x130] sm:$0xff] %vm2347_vm1, %v2319_v26  ;;  %v2256_v35 = vand.u32 2147483647, %v2093_v60  ;;  %vm3347_vm8 = vcmp.ge.f32.partialorder %v3298_v0, 0.0  ;;  %12076 = vmatprep.mubr.msk.f32.mxu0 %vm2347_vm1, %v5209_v12  ;;  %v5214_v41 = vld [vmem:[#allocation4 + $0xfb] sm:$0xff] }
 0x2ac   : > { %v3396_v59 = vmul.f32 0.01, %v3298_v0  ;;  %v2095_v48 = vpop.f32.mrf.mxu0 }
 0x2ad   : > { %v3299_v1 = vadd.f32 %v13902_v47, %v3244_v25  ;;  %v2320_v33 = vmax.f32.f32 %v13676_v7, %v2256_v35 }
 0x2ae   : > { %v3445_v56 = vsel %vm3347_vm8, %v3298_v0, %v3396_v59  ;;  %v3190_v20 = vld [vmem:[#allocation2 + $0x128] sm:$0xff]  ;;  %11801 = vmatmul.mubr.msk.f32.gmra.mxu1 %vm2347_vm1, %v3543_v44  ;;  %v2098_v32 = vpop.f32.mrf.mxu0  ;;  %12077 = vmatmul.mubr.msk.f32.gmra.mxu0 %vm2347_vm1, %v5210_v51  ;;  %v3549_v10 = vld [vmem:[#allocation4 + $0x108] sm:$0xff]  ;;  %vm447_vm8 = vcmask 483328  }
 0x2af   : > { %3494 = vst.msk [vmem:[#allocation4 + $0x118] sm:$0xff] %vm2347_vm1, %v3445_v56  ;;  %v3245_v28 = vmul.f32 %v13895_v53, %v3190_v20  ;;  %11803 = vmatprep.mubr.msk.f32.mxu1 %vm2347_vm1, %v3544_v13  ;;  %2387 = vst.msk [vmem:[#allocation2 + $0x138] sm:$0xff] %vm2347_vm1, %v2320_v33  ;;  %v2257_v62 = vand.u32 2147483647, %v2098_v32  ;;  %vm3348_vm9 = vcmp.ge.f32.partialorder %v3299_v1, 0.0  ;;  %12079 = vmatprep.mubr.msk.f32.mxu0 %vm2347_vm1, %v5211_v61  ;;  %v5215_v40 = vld [vmem:[#allocation4 + $0x103] sm:$0xff] }
 0x2b0   : > { %v3397_v7 = vmul.f32 0.01, %v3299_v1  ;;  %v2100_v55 = vpop.f32.mrf.mxu0 }
 0x2b1   : > { %v3300_v6 = vadd.f32 %v13902_v47, %v3245_v28  ;;  %v2321_v63 = vmax.f32.f32 %v13684_v52, %v2257_v62 }
 0x2b2   : > { %v3446_v5 = vsel %vm3348_vm9, %v3299_v1, %v3397_v7  ;;  %v3191_v14 = vld [vmem:[#allocation2 + $0x130] sm:$0xff]  ;;  %11804 = vmatmul.mubr.msk.f32.gmra.mxu1 %vm2347_vm1, %v3545_v37  ;;  %v2103_v23 = vpop.f32.mrf.mxu0  ;;  %12080 = vmatmul.mubr.msk.f32.gmra.mxu0 %vm2347_vm1, %v5212_v8  ;;  %v3550_v43 = vld [vmem:[#allocation4 + $0x110] sm:$0xff] }
 0x2b3   : > { %3495 = vst.msk [vmem:[#allocation4 + $0x120] sm:$0xff] %vm2347_vm1, %v3446_v5  ;;  %v3246_v34 = vmul.f32 %v13895_v53, %v3191_v14  ;;  %11806 = vmatprep.mubr.msk.f32.mxu1 %vm2347_vm1, %v3546_v2  ;;  %2388 = vst.msk [vmem:[#allocation2 + $0x140] sm:$0xff] %vm2347_vm1, %v2321_v63  ;;  %v2258_v31 = vand.u32 2147483647, %v2103_v23  ;;  %vm3349_vm10 = vcmp.ge.f32.partialorder %v3300_v6, 0.0  ;;  %12082 = vmatprep.mubr.msk.f32.mxu0 %vm2347_vm1, %v5213_v4  ;;  %v5216_v38 = vld [vmem:[#allocation4 + $0x10b] sm:$0xff] }
 0x2b4   : > { %v3398_v52 = vmul.f32 0.01, %v3300_v6  ;;  %v2105_v19 = vpop.f32.mrf.mxu0 }
 0x2b5   : > { %v3301_v11 = vadd.f32 %v13902_v47, %v3246_v34  ;;  %v2322_v50 = vmax.f32.f32 %v13688_v16, %v2258_v31 }
 0x2b6   : > { %v3447_v29 = vsel %vm3349_vm10, %v3300_v6, %v3398_v52  ;;  %v3192_v21 = vld [vmem:[#allocation2 + $0x138] sm:$0xff]  ;;  %11807 = vmatmul.mubr.msk.f32.gmra.mxu1 %vm2347_vm1, %v3547_v57  ;;  %v2108_v30 = vpop.f32.mrf.mxu0  ;;  %12083 = vmatmul.mubr.msk.f32.gmra.mxu0 %vm2347_vm1, %v5214_v41  ;;  %v3551_v60 = vld [vmem:[#allocation4 + $0x118] sm:$0xff] }
 0x2b7   : > { %3496 = vst.msk [vmem:[#allocation4 + $0x128] sm:$0xff] %vm2347_vm1, %v3447_v29  ;;  %v3247_v3 = vmul.f32 %v13895_v53, %v3192_v21  ;;  %11809 = vmatprep.mubr.msk.f32.mxu1 %vm2347_vm1, %v3548_v18  ;;  %2389 = vst.msk [vmem:[#allocation2 + $0x148] sm:$0xff] %vm2347_vm1, %v2322_v50  ;;  %v2259_v27 = vand.u32 2147483647, %v2108_v30  ;;  %vm3350_vm11 = vcmp.ge.f32.partialorder %v3301_v11, 0.0  ;;  %12085 = vmatprep.mubr.msk.f32.mxu0 %vm2347_vm1, %v5215_v40  ;;  %v5217_v17 = vld [vmem:[#allocation4 + $0x113] sm:$0xff] }
 0x2b8   : > { %v3399_v16 = vmul.f32 0.01, %v3301_v11  ;;  %v2110_v46 = vpop.f32.mrf.mxu0  ;;  %v16654_v21 = vld [vmem:[#allocation13_spill] sm:$0xff] }
 0x2b9   : > { %v3302_v49 = vadd.f32 %v13902_v47, %v3247_v3  ;;  %v2323_v0 = vmax.f32.f32 %v13692_v22, %v2259_v27 }
 0x2ba   : > { %v3448_v26 = vsel %vm3350_vm11, %v3301_v11, %v3399_v16  ;;  %v3193_v15 = vld [vmem:[#allocation2 + $0x140] sm:$0xff]  ;;  %11810 = vmatmul.mubr.msk.f32.gmra.mxu1 %vm2347_vm1, %v3549_v10  ;;  %v2113_v9 = vpop.f32.mrf.mxu0  ;;  %12086 = vmatmul.mubr.msk.f32.gmra.mxu0 %vm2347_vm1, %v5216_v38  ;;  %v3552_v12 = vld [vmem:[#allocation4 + $0x120] sm:$0xff] }
 0x2bb   : > { %3497 = vst.msk [vmem:[#allocation4 + $0x130] sm:$0xff] %vm2347_vm1, %v3448_v26  ;;  %v3248_v24 = vmul.f32 %v13895_v53, %v3193_v15  ;;  %11812 = vmatprep.mubr.msk.f32.mxu1 %vm2347_vm1, %v3550_v43  ;;  %2390 = vst.msk [vmem:[#allocation2 + $0x150] sm:$0xff] %vm2347_vm1, %v2323_v0  ;;  %v2260_v25 = vand.u32 2147483647, %v2113_v9  ;;  %vm3351_vm12 = vcmp.ge.f32.partialorder %v3302_v49, 0.0  ;;  %12088 = vmatprep.mubr.msk.f32.mxu0 %vm2347_vm1, %v5217_v17  ;;  %v5218_v35 = vld [vmem:[#allocation4 + $0x11b] sm:$0xff] }
 0x2bc   : > { %v3400_v22 = vmul.f32 0.01, %v3302_v49  ;;  %v2115_v59 = vpop.f32.mrf.mxu0  ;;  %v16655_v0 = vld [vmem:[#allocation14_spill] sm:$0xff] }
 0x2bd   : > { %v3303_v48 = vadd.f32 %v13902_v47, %v3248_v24  ;;  %v2324_v1 = vmax.f32.f32 %v13696_v58, %v2260_v25  ;;  %v16656_v59 = vld [vmem:[#allocation15_spill] sm:$0xff] }
 0x2be   : > { %v5219_v44 = vld [vmem:[#allocation4 + $0x123] sm:$0xff]  ;;  %v3449_v33 = vsel %vm3351_vm12, %v3302_v49, %v3400_v22  ;;  %11813 = vmatmul.mubr.msk.f32.gmra.mxu1 %vm2347_vm1, %v3551_v60  ;;  %v2118_v20 = vpop.f32.mrf.mxu0  ;;  %12089 = vmatmul.mubr.msk.f32.gmra.mxu0 %vm2347_vm1, %v5218_v35 }
 0x2bf   : > { %v3194_v56 = vld [vmem:[#allocation2 + $0x148] sm:$0xff]  ;;  %3498 = vst.msk [vmem:[#allocation4 + $0x138] sm:$0xff] %vm2347_vm1, %v3449_v33  ;;  %2391 = vst.msk [vmem:[#allocation2 + $0x158] sm:$0xff] %vm2347_vm1, %v2324_v1  ;;  %11815 = vmatprep.mubr.msk.f32.mxu1 %vm2347_vm1, %v3552_v12  ;;  %v2261_v13 = vand.u32 2147483647, %v2118_v20  ;;  %v3553_v32 = vld [vmem:[#allocation4 + $0x128] sm:$0xff]  ;;  %12091 = vmatprep.mubr.msk.f32.mxu0 %vm2347_vm1, %v5219_v44 }
 0x2c0   : > { %v3249_v51 = vmul.f32 %v13895_v53, %v3194_v56  ;;  %vm3352_vm13 = vcmp.ge.f32.partialorder %v3303_v48, 0.0  ;;  %v3401_v58 = vmul.f32 0.01, %v3303_v48  ;;  %v2120_v28 = vpop.f32.mrf.mxu0 }
 0x2c1   : > { %v2325_v62 = vmax.f32.f32 %v13700_v39, %v2261_v13 }
 0x2c2   : > { %v3304_v61 = vadd.f32 %v13902_v47, %v3249_v51  ;;  %v3554_v7 = vld [vmem:[#allocation4 + $0x130] sm:$0xff]  ;;  %v3450_v6 = vsel %vm3352_vm13, %v3303_v48, %v3401_v58  ;;  %v3195_v37 = vld [vmem:[#allocation2 + $0x150] sm:$0xff]  ;;  %11816 = vmatmul.mubr.msk.f32.gmra.mxu1 %vm2347_vm1, %v3553_v32  ;;  %v2123_v63 = vpop.f32.mrf.mxu0 }
 0x2c3   : > { %v5220_v55 = vld [vmem:[#allocation4 + $0x12b] sm:$0xff]  ;;  %3499 = vst.msk [vmem:[#allocation4 + $0x140] sm:$0xff] %vm2347_vm1, %v3450_v6  ;;  %v3250_v5 = vmul.f32 %v13895_v53, %v3195_v37  ;;  %2392 = vst.msk [vmem:[#allocation2 + $0x160] sm:$0xff] %vm2347_vm1, %v2325_v62  ;;  %v2262_v14 = vand.u32 2147483647, %v2123_v63  ;;  %11818 = vmatprep.mubr.msk.f32.mxu1 %vm2347_vm1, %v3554_v7 }
 0x2c4   : > { %12092 = vmatmul.mubr.msk.f32.gmra.mxu0 %vm2347_vm1, %v5220_v55  ;;  %vm3353_vm14 = vcmp.ge.f32.partialorder %v3304_v61, 0.0  ;;  %v3402_v39 = vmul.f32 0.01, %v3304_v61  ;;  %v2125_v8 = vpop.f32.mrf.mxu0 }
 0x2c5   : > { %v3305_v2 = vadd.f32 %v13902_v47, %v3250_v5  ;;  %v2326_v23 = vmax.f32.f32 %v13704_v54, %v2262_v14 }
 0x2c6   : > { %v3555_v34 = vld [vmem:[#allocation4 + $0x138] sm:$0xff]  ;;  %v3451_v31 = vsel %vm3353_vm14, %v3304_v61, %v3402_v39  ;;  %v3196_v52 = vld [vmem:[#allocation2 + $0x158] sm:$0xff]  ;;  %v2128_v19 = vpop.f32.mrf.mxu0 }
 0x2c7   : > { %v5221_v4 = vld [vmem:[#allocation4 + $0x133] sm:$0xff]  ;;  %11819 = vmatmul.mubr.msk.f32.gmra.mxu1 %vm2347_vm1, %v3555_v34  ;;  %3500 = vst.msk [vmem:[#allocation4 + $0x148] sm:$0xff] %vm2347_vm1, %v3451_v31  ;;  %v3251_v11 = vmul.f32 %v13895_v53, %v3196_v52  ;;  %2393 = vst.msk [vmem:[#allocation2 + $0x168] sm:$0xff] %vm2347_vm1, %v2326_v23  ;;  %v2263_v57 = vand.u32 2147483647, %v2128_v19  ;;  %vm3354_vm15 = vcmp.ge.f32.partialorder %v3305_v2, 0.0 }
 0x2c8   : > { %12094 = vmatprep.mubr.msk.f32.mxu0 %vm2347_vm1, %v5221_v4  ;;  %v3403_v50 = vmul.f32 0.01, %v3305_v2  ;;  %v2130_v29 = vpop.f32.mrf.mxu0 }
 0x2c9   : > { %v3306_v54 = vadd.f32 %v13902_v47, %v3251_v11  ;;  %v2327_v41 = vmax.f32.f32 %v16654_v21, %v2263_v57 }
 0x2ca   : > { %v3556_v18 = vld [vmem:[#allocation4 + $0x140] sm:$0xff]  ;;  %v3452_v3 = vsel %vm3354_vm15, %v3305_v2, %v3403_v50  ;;  %v3197_v40 = vld [vmem:[#allocation2 + $0x160] sm:$0xff]  ;;  %v2133_v27 = vpop.f32.mrf.mxu0 }
 0x2cb   : > { %v5222_v30 = vld [vmem:[#allocation4 + $0x13b] sm:$0xff]  ;;  %11821 = vmatprep.mubr.msk.f32.mxu1 %vm2347_vm1, %v3556_v18  ;;  %3501 = vst.msk [vmem:[#allocation4 + $0x150] sm:$0xff] %vm2347_vm1, %v3452_v3  ;;  %v3252_v16 = vmul.f32 %v13895_v53, %v3197_v40  ;;  %2394 = vst.msk [vmem:[#allocation2 + $0x170] sm:$0xff] %vm2347_vm1, %v2327_v41  ;;  %v2264_v38 = vand.u32 2147483647, %v2133_v27  ;;  %vm3355_vm0 = vcmp.ge.f32.partialorder %v3306_v54, 0.0 }
 0x2cc   : > { %12095 = vmatmul.mubr.msk.f32.gmra.mxu0 %vm2347_vm1, %v5222_v30  ;;  %v3404_v46 = vmul.f32 0.01, %v3306_v54  ;;  %v2135_v49 = vpop.f32.mrf.mxu0  ;;  %v4071_v27 = vld [vmem:[#allocation4 + $0x1] sm:$0xff] }
 0x2cd   : > { %v3307_v10 = vadd.f32 %v13902_v47, %v3252_v16  ;;  %v2328_v17 = vmax.f32.f32 %v16655_v0, %v2264_v38  ;;  %v4072_v38 = vld [vmem:[#allocation4 + $0x9] sm:$0xff]  ;;  %v10724_v49 = vld [vmem:[%s16634_s4 + $0xe0] sm:$0xff] }
 0x2ce   : > { %v3557_v26 = vld [vmem:[#allocation4 + $0x148] sm:$0xff]  ;;  %v3453_v43 = vsel %vm3355_vm0, %v3306_v54, %v3404_v46  ;;  %v3198_v9 = vld [vmem:[#allocation2 + $0x168] sm:$0xff]  ;;  %v2138_v24 = vpop.f32.mrf.mxu0  ;;  %v4073_v0 = vld [vmem:[#allocation4 + $0x11] sm:$0xff] }
 0x2cf   : > { %v5223_v15 = vld [vmem:[#allocation4 + $0x143] sm:$0xff]  ;;  %11822 = vmatmul.mubr.msk.f32.gmra.mxu1 %vm2347_vm1, %v3557_v26  ;;  %3502 = vst.msk [vmem:[#allocation4 + $0x158] sm:$0xff] %vm2347_vm1, %v3453_v43  ;;  %v3253_v60 = vmul.f32 %v13895_v53, %v3198_v9  ;;  %2395 = vst.msk [vmem:[#allocation2 + $0x178] sm:$0xff] %vm2347_vm1, %v2328_v17  ;;  %v2265_v25 = vand.u32 2147483647, %v2138_v24  ;;  %vm3356_vm2 = vcmp.ge.f32.partialorder %v3307_v10, 0.0 }
 0x2d0   : > { %12097 = vmatprep.mubr.msk.f32.mxu0 %vm2347_vm1, %v5223_v15  ;;  %v3405_v22 = vmul.f32 0.01, %v3307_v10  ;;  %v2140_v12 = vpop.f32.mrf.mxu0  ;;  %v10723_v17 = vld [vmem:[%s16634_s4 + $0xd8] sm:$0xff]  ;;  %v4074_v15 = vld [vmem:[#allocation4 + $0x19] sm:$0xff]  ;;  %v10722_v43 = vld [vmem:[%s16634_s4 + $0xd0] sm:$0xff] }
 0x2d1   : > { %v3308_v35 = vadd.f32 %v13902_v47, %v3253_v60  ;;  %v2329_v48 = vmax.f32.f32 %v16656_v59, %v2265_v25  ;;  %v4075_v9 = vld [vmem:[#allocation4 + $0x21] sm:$0xff]  ;;  %v4076_v24 = vld [vmem:[#allocation4 + $0x29] sm:$0xff]  ;;  %v10720_v60 = vld [vmem:[%s16634_s4 + $0xc0] sm:$0xff] }
 0x2d2   : > { %v3558_v1 = vld [vmem:[#allocation4 + $0x150] sm:$0xff]  ;;  %v3454_v33 = vsel %vm3356_vm2, %v3307_v10, %v3405_v22  ;;  %v3199_v56 = vld [vmem:[#allocation2 + $0x170] sm:$0xff]  ;;  %v2143_v20 = vpop.f32.mrf.mxu0  ;;  %v4078_v12 = vld [vmem:[#allocation4 + $0x39] sm:$0xff] }
 0x2d3   : > { %v5224_v44 = vld [vmem:[#allocation4 + $0x14b] sm:$0xff]  ;;  %11824 = vmatprep.mubr.msk.f32.mxu1 %vm2347_vm1, %v3558_v1  ;;  %3503 = vst.msk [vmem:[#allocation4 + $0x160] sm:$0xff] %vm2347_vm1, %v3454_v33  ;;  %v3254_v51 = vmul.f32 %v13895_v53, %v3199_v56  ;;  %2396 = vst.msk [vmem:[#allocation2 + $0x180] sm:$0xff] %vm2347_vm1, %v2329_v48  ;;  %vm3357_vm3 = vcmp.ge.f32.partialorder %v3308_v35, 0.0  ;;  %v3406_v13 = vmul.f32 0.01, %v3308_v35 }
 0x2d4   : > { %12098 = vmatmul.mubr.msk.f32.gmra.mxu0 %vm2347_vm1, %v5224_v44  ;;  %v2145_v32 = vpop.f32.mrf.mxu0  ;;  %v4077_v25 = vld [vmem:[#allocation4 + $0x31] sm:$0xff]  ;;  %v4079_v59 = vld [vmem:[#allocation4 + $0x41] sm:$0xff]  ;;  %v4080_v1 = vld [vmem:[#allocation4 + $0x49] sm:$0xff] }
 0x2d5   : > { %v3309_v58 = vadd.f32 %v13902_v47, %v3254_v51  ;;  %v3455_v62 = vsel %vm3357_vm3, %v3308_v35, %v3406_v13  ;;  %v10719_v22 = vld [vmem:[%s16634_s4 + $0xb8] sm:$0xff]  ;;  %v10718_v35 = vld [vmem:[%s16634_s4 + $0xb0] sm:$0xff]  ;;  %v10717_v48 = vld [vmem:[%s16634_s4 + $0xa8] sm:$0xff] }
 0x2d6   : > { %v3559_v28 = vld [vmem:[#allocation4 + $0x158] sm:$0xff]  ;;  %v3200_v7 = vld [vmem:[#allocation2 + $0x178] sm:$0xff]  ;;  %v2148_v55 = vpop.f32.mrf.mxu0  ;;  %3504 = vst.msk [vmem:[#allocation4 + $0x168] sm:$0xff] %vm2347_vm1, %v3455_v62  ;;  %v14425_v56 = vld [vmem:[%s16634_s4 + $0x188] sm:$0xff] }
 0x2d7   : > { %v5225_v61 = vld [vmem:[#allocation4 + $0x153] sm:$0xff]  ;;  %11825 = vmatmul.mubr.msk.f32.gmra.mxu1 %vm2347_vm1, %v3559_v28  ;;  %v3255_v6 = vmul.f32 %v13895_v53, %v3200_v7  ;;  %vm3358_vm4 = vcmp.ge.f32.partialorder %v3309_v58, 0.0  ;;  %v3407_v37 = vmul.f32 0.01, %v3309_v58  ;;  %v4083_v51 = vld [vmem:[#allocation4 + $0x61] sm:$0xff]  ;;  %v4084_v13 = vld [vmem:[#allocation4 + $0x69] sm:$0xff] }
 0x2d8   : > { %12100 = vmatprep.mubr.msk.f32.mxu0 %vm2347_vm1, %v5225_v61  ;;  %v2150_v63 = vpop.f32.mrf.mxu0  ;;  %v10716_v44 = vld [vmem:[%s16634_s4 + $0xa0] sm:$0xff]  ;;  %v4087_v28 = vld [vmem:[#allocation4 + $0x81] sm:$0xff]  ;;  %v4088_v61 = vld [vmem:[#allocation4 + $0x89] sm:$0xff] }
 0x2d9   : > { %v3310_v5 = vadd.f32 %v13902_v47, %v3255_v6  ;;  %v3456_v8 = vsel %vm3358_vm4, %v3309_v58, %v3407_v37  ;;  %v4081_v33 = vld [vmem:[#allocation4 + $0x51] sm:$0xff]  ;;  %v4082_v20 = vld [vmem:[#allocation4 + $0x59] sm:$0xff]  ;;  %v4091_v55 = vld [vmem:[#allocation4 + $0xa1] sm:$0xff] }
 0x2da   : > { %v3560_v14 = vld [vmem:[#allocation4 + $0x160] sm:$0xff]  ;;  %v3201_v2 = vld [vmem:[#allocation2 + $0x180] sm:$0xff]  ;;  %v2153_v23 = vpop.f32.mrf.mxu0  ;;  %3505 = vst.msk [vmem:[#allocation4 + $0x170] sm:$0xff] %vm2347_vm1, %v3456_v8  ;;  %v4092_v6 = vld [vmem:[#allocation4 + $0xa9] sm:$0xff] }
 0x2db   : > { %v5226_v39 = vld [vmem:[#allocation4 + $0x15b] sm:$0xff]  ;;  %11827 = vmatprep.mubr.msk.f32.mxu1 %vm2347_vm1, %v3560_v14  ;;  %v3256_v34 = vmul.f32 %v13895_v53, %v3201_v2  ;;  %vm3359_vm5 = vcmp.ge.f32.partialorder %v3310_v5, 0.0  ;;  %v3408_v4 = vmul.f32 0.01, %v3310_v5  ;;  %v4085_v32 = vld [vmem:[#allocation4 + $0x71] sm:$0xff]  ;;  %v4096_v14 = vld [vmem:[#allocation4 + $0xc9] sm:$0xff] }
 0x2dc   : > { %12101 = vmatmul.mubr.msk.f32.gmra.mxu0 %vm2347_vm1, %v5226_v39  ;;  %v2155_v31 = vpop.f32.mrf.mxu0  ;;  %v4086_v58 = vld [vmem:[#allocation4 + $0x79] sm:$0xff]  ;;  %v4089_v62 = vld [vmem:[#allocation4 + $0x91] sm:$0xff]  ;;  %v4099_v2 = vld [vmem:[#allocation4 + $0xe1] sm:$0xff] }
 0x2dd   : > { %v3311_v52 = vadd.f32 %v13902_v47, %v3256_v34  ;;  %v3561_v19 = vld [vmem:[#allocation4 + $0x168] sm:$0xff]  ;;  %v3457_v57 = vsel %vm3359_vm5, %v3310_v5, %v3408_v4  ;;  %v4090_v7 = vld [vmem:[#allocation4 + $0x99] sm:$0xff]  ;;  %v4093_v37 = vld [vmem:[#allocation4 + $0xb1] sm:$0xff] }
 0x2de   : > { %v5227_v11 = vld [vmem:[#allocation4 + $0x163] sm:$0xff]  ;;  %v2158_v50 = vpop.f32.mrf.mxu0  ;;  %11828 = vmatmul.mubr.msk.f32.gmra.mxu1 %vm2347_vm1, %v3561_v19  ;;  %3506 = vst.msk [vmem:[#allocation4 + $0x178] sm:$0xff] %vm2347_vm1, %v3457_v57  ;;  %v4094_v63 = vld [vmem:[#allocation4 + $0xb9] sm:$0xff]  ;;  %v4097_v39 = vld [vmem:[#allocation4 + $0xd1] sm:$0xff] }
 0x2df   : > { %12103 = vmatprep.mubr.msk.f32.mxu0 %vm2347_vm1, %v5227_v11  ;;  %vm3360_vm6 = vcmp.ge.f32.partialorder %v3311_v52, 0.0  ;;  %v3409_v29 = vmul.f32 0.01, %v3311_v52  ;;  %v4095_v5 = vld [vmem:[#allocation4 + $0xc1] sm:$0xff]  ;;  %v4098_v8 = vld [vmem:[#allocation4 + $0xd9] sm:$0xff]  ;;  %v4100_v23 = vld [vmem:[#allocation4 + $0xe9] sm:$0xff] }
 0x2e0   : > { %v2160_v54 = vpop.f32.mrf.mxu0  ;;  %v4101_v34 = vld [vmem:[#allocation4 + $0xf1] sm:$0xff]  ;;  %v4102_v4 = vld [vmem:[#allocation4 + $0xf9] sm:$0xff]  ;;  %v4103_v31 = vld [vmem:[#allocation4 + $0x101] sm:$0xff] }
 0x2e1   : > { %v3562_v21 = vld [vmem:[#allocation4 + $0x170] sm:$0xff]  ;;  %v3458_v41 = vsel %vm3360_vm6, %v3311_v52, %v3409_v29  ;;  %v4106_v11 = vld [vmem:[#allocation4 + $0x119] sm:$0xff]  ;;  %v4107_v57 = vld [vmem:[#allocation4 + $0x121] sm:$0xff] }
 0x2e2   : > { %v5228_v53 = vld [vmem:[#allocation4 + $0x16b] sm:$0xff]  ;;  %v2163_v18 = vpop.f32.mrf.mxu0  ;;  %11830 = vmatprep.mubr.msk.f32.mxu1 %vm2347_vm1, %v3562_v21  ;;  %3507 = vst.msk [vmem:[#allocation4 + $0x180] sm:$0xff] %vm2347_vm1, %v3458_v41  ;;  %v4110_v54 = vld [vmem:[#allocation4 + $0x139] sm:$0xff]  ;;  %v4111_v21 = vld [vmem:[#allocation4 + $0x141] sm:$0xff] }
 0x2e3   : > { %12104 = vmatmul.mubr.msk.f32.gmra.mxu0 %vm2347_vm1, %v5228_v53  ;;  %v4104_v52 = vld [vmem:[#allocation4 + $0x109] sm:$0xff]  ;;  %v4105_v19 = vld [vmem:[#allocation4 + $0x111] sm:$0xff] }
 0x2e4   : > { %v2165_v47 = vpop.f32.mrf.mxu0  ;;  %v4108_v50 = vld [vmem:[#allocation4 + $0x129] sm:$0xff]  ;;  %v4109_v29 = vld [vmem:[#allocation4 + $0x131] sm:$0xff] }
 0x2e5   : > { %v3563_v30 = vld [vmem:[#allocation4 + $0x178] sm:$0xff]  ;;  %v4112_v53 = vld [vmem:[#allocation4 + $0x149] sm:$0xff] }
 0x2e6   : > { %v5229_v3 = vld [vmem:[#allocation4 + $0x173] sm:$0xff]  ;;  %v2168_v40 = vpop.f32.mrf.mxu0  ;;  %11831 = vmatmul.mubr.msk.f32.gmra.mxu1 %vm2347_vm1, %v3563_v30  ;;  %v5783_v36 = vld [vmem:[#allocation4 + $0x164] sm:$0xff] }
 0x2e7   : > { %12106 = vmatprep.mubr.msk.f32.mxu0 %vm2347_vm1, %v5229_v3  ;;  %11853 = vmatprep.mubr.msk.f32.mxu1 %vm2347_vm1, %v4071_v27  ;;  %v4113_v18 = vld [vmem:[#allocation4 + $0x151] sm:$0xff]  ;;  %v4114_v30 = vld [vmem:[#allocation4 + $0x159] sm:$0xff]  ;;  %v4115_v40 = vld [vmem:[#allocation4 + $0x161] sm:$0xff] }
 0x2e8   : > { %v2170_v16 = vpop.f32.mrf.mxu0 }
 0x2e9   : > { %v5230_v46 = vld [vmem:[#allocation4 + $0x17b] sm:$0xff]  ;;  %v4116_v16 = vld [vmem:[#allocation4 + $0x169] sm:$0xff] }
 0x2ea   : > { %v2173_v10 = vpop.f32.mrf.mxu0  ;;  %11854 = vmatmul.mubr.msk.f32.vlgmr.msra.gmra.mxu1 %vm2347_vm1, %v4072_v38  ;;  %12107 = vmatmul.mubr.msk.f32.gmra.mxu0 %vm2347_vm1, %v5230_v46  ;;  %v4117_v46 = vld [vmem:[#allocation4 + $0x171] sm:$0xff] }
 0x2eb   : > { %11856 = vmatprep.mubr.msk.f32.mxu1 %vm2347_vm1, %v4073_v0  ;;  %11926 = vmatpush3.msra.mxu1 %v14245_v42  ;;  %v10721_v42 = vld [vmem:[%s16634_s4 + $0xc8] sm:$0xff] }
 0x2ec   : > { %11927 = vmatprep.subr.mxu1 %v10724_v49  ;;  %v2175_v26 = vpop.f32.mrf.mxu0  ;;  %v4118_v10 = vld [vmem:[#allocation4 + $0x179] sm:$0xff] }
 0x2ed   : > { %11928 = vmatpush3.msra.mxu1 %v10724_v49 }
 0x2ee   : > { %11857 = vmatmul.mubr.msk.f32.gmra.mxu1 %vm2347_vm1, %v4074_v15  ;;  %11929 = vmatprep.subr.mxu1 %v10723_v17  ;;  %v4628_v15 = vld [vmem:[#allocation4 + $0xa] sm:$0xff] }
 0x2ef   : > { %11859 = vmatprep.mubr.msk.f32.mxu1 %vm2347_vm1, %v4075_v9  ;;  %11930 = vmatpush3.msra.mxu1 %v10723_v17  ;;  %v4627_v17 = vld [vmem:[#allocation4 + $0x2] sm:$0xff] }
 0x2f0   : > { %11931 = vmatprep.subr.mxu1 %v10722_v43 }
 0x2f1   : > { %11932 = vmatpush3.msra.mxu1 %v10722_v43  ;;  %v10840_v43 = vld [vmem:[%s16634_s4 + $0x180] sm:$0xff] }
 0x2f2   : > { %11860 = vmatmul.mubr.msk.f32.gmra.mxu1 %vm2347_vm1, %v4076_v24  ;;  %11933 = vmatprep.subr.mxu1 %v10721_v42  ;;  %v10839_v24 = vld [vmem:[%s16634_s4 + $0x178] sm:$0xff] }
 0x2f3   : > { %11862 = vmatprep.mubr.msk.f32.mxu1 %vm2347_vm1, %v4077_v25  ;;  %11934 = vmatpush3.msra.mxu1 %v10721_v42  ;;  %v4629_v42 = vld [vmem:[#allocation4 + $0x12] sm:$0xff]  ;;  %v4630_v25 = vld [vmem:[#allocation4 + $0x1a] sm:$0xff] }
 0x2f4   : > { %11935 = vmatprep.subr.mxu1 %v10720_v60 }
 0x2f5   : > { %11936 = vmatpush3.msra.mxu1 %v10720_v60 }
 0x2f6   : > { %11863 = vmatmul.mubr.msk.f32.gmra.mxu1 %vm2347_vm1, %v4078_v12  ;;  %11937 = vmatprep.subr.mxu1 %v10719_v22 }
 0x2f7   : > { %11865 = vmatprep.mubr.msk.f32.mxu1 %vm2347_vm1, %v4079_v59  ;;  %11938 = vmatpush3.msra.mxu1 %v10719_v22  ;;  %v10838_v22 = vld [vmem:[%s16634_s4 + $0x170] sm:$0xff]  ;;  %v10837_v59 = vld [vmem:[%s16634_s4 + $0x168] sm:$0xff] }
 0x2f8   : > { %11939 = vmatprep.subr.mxu1 %v10718_v35 }
 0x2f9   : > { %11940 = vmatpush3.msra.mxu1 %v10718_v35  ;;  %v4631_v35 = vld [vmem:[#allocation4 + $0x22] sm:$0xff] }
 0x2fa   : > { %11866 = vmatmul.mubr.msk.f32.gmra.mxu1 %vm2347_vm1, %v4080_v1  ;;  %11941 = vmatprep.subr.mxu1 %v10717_v48  ;;  %v4632_v1 = vld [vmem:[#allocation4 + $0x2a] sm:$0xff] }
 0x2fb   : > { %11868 = vmatprep.mubr.msk.f32.mxu1 %vm2347_vm1, %v4081_v33  ;;  %11942 = vmatpush3.msra.mxu1 %v10717_v48 }
 0x2fc   : > { %11943 = vmatprep.subr.mxu1 %v10716_v44 }
 0x2fd   : > { %11944 = vmatpush3.msra.mxu1 %v10716_v44  ;;  %v10836_v44 = vld [vmem:[%s16634_s4 + $0x160] sm:$0xff] }
 0x2fe   : > { %11869 = vmatmul.mubr.msk.f32.gmra.mxu1 %vm2347_vm1, %v4082_v20  ;;  %12109 = vmatprep.subr.mxu1 %v14425_v56  ;;  %v10835_v20 = vld [vmem:[%s16634_s4 + $0x158] sm:$0xff] }
 0x2ff   : > { %11871 = vmatprep.mubr.msk.f32.mxu1 %vm2347_vm1, %v4083_v51 }
 0x302   : > { %11872 = vmatmul.mubr.msk.f32.gmra.mxu1 %vm2347_vm1, %v4084_v13  ;;  %v4634_v13 = vld [vmem:[#allocation4 + $0x3a] sm:$0xff] }
 0x303   : > { %11874 = vmatprep.mubr.msk.f32.mxu1 %vm2347_vm1, %v4085_v32  ;;  %v10834_v32 = vld [vmem:[%s16634_s4 + $0x150] sm:$0xff] }
 0x306   : > { %11875 = vmatmul.mubr.msk.f32.gmra.mxu1 %vm2347_vm1, %v4086_v58 }
 0x307   : > { %11877 = vmatprep.mubr.msk.f32.mxu1 %vm2347_vm1, %v4087_v28  ;;  %v4635_v28 = vld [vmem:[#allocation4 + $0x42] sm:$0xff] }
 0x30a   : > { %11878 = vmatmul.mubr.msk.f32.gmra.mxu1 %vm2347_vm1, %v4088_v61  ;;  %v10833_v61 = vld [vmem:[%s16634_s4 + $0x148] sm:$0xff] }
 0x30b   : > { %11880 = vmatprep.mubr.msk.f32.mxu1 %vm2347_vm1, %v4089_v62 }
 0x30e   : > { %11881 = vmatmul.mubr.msk.f32.gmra.mxu1 %vm2347_vm1, %v4090_v7  ;;  %v4636_v7 = vld [vmem:[#allocation4 + $0x4a] sm:$0xff] }
 0x30f   : > { %11883 = vmatprep.mubr.msk.f32.mxu1 %vm2347_vm1, %v4091_v55  ;;  %v10832_v55 = vld [vmem:[%s16634_s4 + $0x140] sm:$0xff] }
 0x312   : > { %11884 = vmatmul.mubr.msk.f32.gmra.mxu1 %vm2347_vm1, %v4092_v6 }
 0x313   : > { %11886 = vmatprep.mubr.msk.f32.mxu1 %vm2347_vm1, %v4093_v37  ;;  %v4637_v37 = vld [vmem:[#allocation4 + $0x52] sm:$0xff] }
 0x316   : > { %11887 = vmatmul.mubr.msk.f32.gmra.mxu1 %vm2347_vm1, %v4094_v63 }
 0x317   : > { %11889 = vmatprep.mubr.msk.f32.mxu1 %vm2347_vm1, %v4095_v5  ;;  %v4638_v5 = vld [vmem:[#allocation4 + $0x5a] sm:$0xff] }
 0x31a   : > { %11890 = vmatmul.mubr.msk.f32.gmra.mxu1 %vm2347_vm1, %v4096_v14 }
 0x31b   : > { %11892 = vmatprep.mubr.msk.f32.mxu1 %vm2347_vm1, %v4097_v39  ;;  %v4639_v39 = vld [vmem:[#allocation4 + $0x62] sm:$0xff] }
 0x31e   : > { %11893 = vmatmul.mubr.msk.f32.gmra.mxu1 %vm2347_vm1, %v4098_v8 }
 0x31f   : > { %11895 = vmatprep.mubr.msk.f32.mxu1 %vm2347_vm1, %v4099_v2  ;;  %v4640_v2 = vld [vmem:[#allocation4 + $0x6a] sm:$0xff] }
 0x322   : > { %11896 = vmatmul.mubr.msk.f32.gmra.mxu1 %vm2347_vm1, %v4100_v23 }
 0x323   : > { %11898 = vmatprep.mubr.msk.f32.mxu1 %vm2347_vm1, %v4101_v34  ;;  %v4641_v34 = vld [vmem:[#allocation4 + $0x72] sm:$0xff] }
 0x326   : > { %11899 = vmatmul.mubr.msk.f32.gmra.mxu1 %vm2347_vm1, %v4102_v4 }
 0x327   : > { %11901 = vmatprep.mubr.msk.f32.mxu1 %vm2347_vm1, %v4103_v31  ;;  %v4642_v31 = vld [vmem:[#allocation4 + $0x7a] sm:$0xff] }
 0x32a   : > { %11902 = vmatmul.mubr.msk.f32.gmra.mxu1 %vm2347_vm1, %v4104_v52 }
 0x32b   : > { %11904 = vmatprep.mubr.msk.f32.mxu1 %vm2347_vm1, %v4105_v19  ;;  %v4643_v19 = vld [vmem:[#allocation4 + $0x82] sm:$0xff] }
 0x32e   : > { %11905 = vmatmul.mubr.msk.f32.gmra.mxu1 %vm2347_vm1, %v4106_v11 }
 0x32f   : > { %11907 = vmatprep.mubr.msk.f32.mxu1 %vm2347_vm1, %v4107_v57  ;;  %v4644_v57 = vld [vmem:[#allocation4 + $0x8a] sm:$0xff] }
 0x332   : > { %11908 = vmatmul.mubr.msk.f32.gmra.mxu1 %vm2347_vm1, %v4108_v50 }
 0x333   : > { %11910 = vmatprep.mubr.msk.f32.mxu1 %vm2347_vm1, %v4109_v29  ;;  %v4645_v29 = vld [vmem:[#allocation4 + $0x92] sm:$0xff] }
 0x336   : > { %11911 = vmatmul.mubr.msk.f32.gmra.mxu1 %vm2347_vm1, %v4110_v54 }
 0x337   : > { %11913 = vmatprep.mubr.msk.f32.mxu1 %vm2347_vm1, %v4111_v21  ;;  %v4646_v21 = vld [vmem:[#allocation4 + $0x9a] sm:$0xff] }
 0x33a   : > { %v14458_v41 = vpop.f32.mrf.mxu1  ;;  %11914 = vmatmul.mubr.msk.f32.gmra.mxu1 %vm2347_vm1, %v4112_v53 }
 0x33b   : > { %11916 = vmatprep.mubr.msk.f32.mxu1 %vm2347_vm1, %v4113_v18  ;;  %v4647_v18 = vld [vmem:[#allocation4 + $0xa2] sm:$0xff] }
 0x33c   : > { %v14462_v47 = vpop.f32.mrf.mxu1 }
 0x33e   : > { %v14464_v3 = vpop.f32.mrf.mxu1  ;;  %11917 = vmatmul.mubr.msk.f32.gmra.mxu1 %vm2347_vm1, %v4114_v30 }
 0x33f   : > { %11919 = vmatprep.mubr.msk.f32.mxu1 %vm2347_vm1, %v4115_v40  ;;  %v4648_v40 = vld [vmem:[#allocation4 + $0xaa] sm:$0xff] }
 0x340   : > { %v14468_v27 = vpop.f32.mrf.mxu1 }
 0x342   : > { %v14470_v38 = vpop.f32.mrf.mxu1  ;;  %11920 = vmatmul.mubr.msk.f32.gmra.mxu1 %vm2347_vm1, %v4116_v16 }
 0x343   : > { %11922 = vmatprep.mubr.msk.f32.mxu1 %vm2347_vm1, %v4117_v46  ;;  %v4649_v46 = vld [vmem:[#allocation4 + $0xb2] sm:$0xff] }
 0x344   : > { %v14474_v49 = vpop.f32.mrf.mxu1 }
 0x346   : > { %v14476_v0 = vpop.f32.mrf.mxu1  ;;  %11923 = vmatmul.mubr.msk.f32.gmra.mxu1 %vm2347_vm1, %v4118_v10 }
 0x347   : > { %11945 = vmatprep.mubr.msk.f32.mxu1 %vm2347_vm1, %v4627_v17  ;;  %v4650_v17 = vld [vmem:[#allocation4 + $0xba] sm:$0xff] }
 0x348   : > { %v14480_v26 = vpop.f32.mrf.mxu1 }
 0x34a   : > { %v14485_v9 = vpop.f32.mrf.mxu1  ;;  %11946 = vmatmul.mubr.msk.f32.vlgmr.msra.gmra.mxu1 %vm2347_vm1, %v4628_v15 }
 0x34b   : > { %11948 = vmatprep.mubr.msk.f32.mxu1 %vm2347_vm1, %v4629_v42  ;;  %12110 = vmatpush3.msra.mxu1 %v14425_v56  ;;  %v4633_v56 = vld [vmem:[#allocation4 + $0x32] sm:$0xff] }
 0x34c   : > { %v14493_v60 = vpop.f32.mrf.mxu1  ;;  %12111 = vmatprep.subr.mxu1 %v10840_v43 }
 0x34d   : > { %12112 = vmatpush3.msra.mxu1 %v10840_v43  ;;  %v4651_v43 = vld [vmem:[#allocation4 + $0xc2] sm:$0xff] }
 0x34e   : > { %v14498_v12 = vpop.f32.mrf.mxu1  ;;  %11949 = vmatmul.mubr.msk.f32.gmra.mxu1 %vm2347_vm1, %v4630_v25  ;;  %12113 = vmatprep.subr.mxu1 %v10839_v24 }
 0x34f   : > { %11951 = vmatprep.mubr.msk.f32.mxu1 %vm2347_vm1, %v4631_v35  ;;  %12114 = vmatpush3.msra.mxu1 %v10839_v24  ;;  %v4652_v24 = vld [vmem:[#allocation4 + $0xca] sm:$0xff]  ;;  %v4654_v35 = vld [vmem:[#allocation4 + $0xda] sm:$0xff] }
 0x350   : > { %v14505_v48 = vpop.f32.mrf.mxu1  ;;  %12115 = vmatprep.subr.mxu1 %v10838_v22 }
 0x351   : > { %12116 = vmatpush3.msra.mxu1 %v10838_v22  ;;  %v4653_v22 = vld [vmem:[#allocation4 + $0xd2] sm:$0xff] }
 0x352   : > { %v14510_v33 = vpop.f32.mrf.mxu1  ;;  %11952 = vmatmul.mubr.msk.f32.gmra.mxu1 %vm2347_vm1, %v4632_v1  ;;  %12117 = vmatprep.subr.mxu1 %v10837_v59  ;;  %v4655_v1 = vld [vmem:[#allocation4 + $0xe2] sm:$0xff] }
 0x353   : > { %11954 = vmatprep.mubr.msk.f32.mxu1 %vm2347_vm1, %v4633_v56  ;;  %12118 = vmatpush3.msra.mxu1 %v10837_v59 }
 0x354   : > { %v14517_v51 = vpop.f32.mrf.mxu1  ;;  %12119 = vmatprep.subr.mxu1 %v10836_v44 }
 0x355   : > { %12120 = vmatpush3.msra.mxu1 %v10836_v44  ;;  %v4656_v44 = vld [vmem:[#allocation4 + $0xea] sm:$0xff] }
 0x356   : > { %v14522_v58 = vpop.f32.mrf.mxu1  ;;  %11955 = vmatmul.mubr.msk.f32.gmra.mxu1 %vm2347_vm1, %v4634_v13  ;;  %12121 = vmatprep.subr.mxu1 %v10835_v20  ;;  %v4658_v13 = vld [vmem:[#allocation4 + $0xfa] sm:$0xff] }
 0x357   : > { %11957 = vmatprep.mubr.msk.f32.mxu1 %vm2347_vm1, %v4635_v28  ;;  %12122 = vmatpush3.msra.mxu1 %v10835_v20  ;;  %v4657_v20 = vld [vmem:[#allocation4 + $0xf2] sm:$0xff]  ;;  %v4659_v28 = vld [vmem:[#allocation4 + $0x102] sm:$0xff] }
 0x358   : > { %v14529_v62 = vpop.f32.mrf.mxu1  ;;  %12123 = vmatprep.subr.mxu1 %v10834_v32 }
 0x359   : > { %12124 = vmatpush3.msra.mxu1 %v10834_v32 }
 0x35a   : > { %v14534_v6 = vpop.f32.mrf.mxu1  ;;  %11958 = vmatmul.mubr.msk.f32.gmra.mxu1 %vm2347_vm1, %v4636_v7  ;;  %12125 = vmatprep.subr.mxu1 %v10833_v61  ;;  %v4660_v7 = vld [vmem:[#allocation4 + $0x10a] sm:$0xff] }
 0x35b   : > { %11960 = vmatprep.mubr.msk.f32.mxu1 %vm2347_vm1, %v4637_v37  ;;  %12126 = vmatpush3.msra.mxu1 %v10833_v61 }
 0x35c   : > { %v14538_v63 = vpop.f32.mrf.mxu1  ;;  %12127 = vmatprep.subr.mxu1 %v10832_v55 }
 0x35d   : > { %12128 = vmatpush3.msra.mxu1 %v10832_v55  ;;  %v4661_v55 = vld [vmem:[#allocation4 + $0x112] sm:$0xff] }
 0x35e   : > { %v14540_v14 = vpop.f32.mrf.mxu1  ;;  %11961 = vmatmul.mubr.msk.f32.gmra.mxu1 %vm2347_vm1, %v4638_v5  ;;  %v4662_v5 = vld [vmem:[#allocation4 + $0x11a] sm:$0xff] }
 0x35f   : > { %11963 = vmatprep.mubr.msk.f32.mxu1 %vm2347_vm1, %v4639_v39 }
 0x360   : > { %v14544_v8 = vpop.f32.mrf.mxu1 }
 0x362   : > { %v14546_v23 = vpop.f32.mrf.mxu1  ;;  %11964 = vmatmul.mubr.msk.f32.gmra.mxu1 %vm2347_vm1, %v4640_v2  ;;  %v4663_v2 = vld [vmem:[#allocation4 + $0x122] sm:$0xff] }
 0x363   : > { %11966 = vmatprep.mubr.msk.f32.mxu1 %vm2347_vm1, %v4641_v34  ;;  %v4664_v34 = vld [vmem:[#allocation4 + $0x12a] sm:$0xff] }
 0x364   : > { %v14550_v4 = vpop.f32.mrf.mxu1 }
 0x366   : > { %v14552_v52 = vpop.f32.mrf.mxu1  ;;  %11967 = vmatmul.mubr.msk.f32.gmra.mxu1 %vm2347_vm1, %v4642_v31 }
 0x367   : > { %11969 = vmatprep.mubr.msk.f32.mxu1 %vm2347_vm1, %v4643_v19  ;;  %v4665_v19 = vld [vmem:[#allocation4 + $0x132] sm:$0xff] }
 0x368   : > { %v14556_v11 = vpop.f32.mrf.mxu1 }
 0x36a   : > { %v14558_v50 = vpop.f32.mrf.mxu1  ;;  %11970 = vmatmul.mubr.msk.f32.gmra.mxu1 %vm2347_vm1, %v4644_v57 }
 0x36b   : > { %11972 = vmatprep.mubr.msk.f32.mxu1 %vm2347_vm1, %v4645_v29  ;;  %v4666_v29 = vld [vmem:[#allocation4 + $0x13a] sm:$0xff] }
 0x36c   : > { %v14562_v54 = vpop.f32.mrf.mxu1 }
 0x36e   : > { %v14564_v53 = vpop.f32.mrf.mxu1  ;;  %11973 = vmatmul.mubr.msk.f32.gmra.mxu1 %vm2347_vm1, %v4646_v21  ;;  %v4667_v21 = vld [vmem:[#allocation4 + $0x142] sm:$0xff] }
 0x36f   : > { %11975 = vmatprep.mubr.msk.f32.mxu1 %vm2347_vm1, %v4647_v18 }
 0x370   : > { %v14568_v30 = vpop.f32.mrf.mxu1 }
 0x372   : > { %v14570_v16 = vpop.f32.mrf.mxu1  ;;  %11976 = vmatmul.mubr.msk.f32.gmra.mxu1 %vm2347_vm1, %v4648_v40  ;;  %v4668_v40 = vld [vmem:[#allocation4 + $0x14a] sm:$0xff] }
 0x373   : > { %11978 = vmatprep.mubr.msk.f32.mxu1 %vm2347_vm1, %v4649_v46 }
 0x374   : > { %v14574_v10 = vpop.f32.mrf.mxu1 }
 0x376   : > { %v14576_v15 = vpop.f32.mrf.mxu1  ;;  %11979 = vmatmul.mubr.msk.f32.gmra.mxu1 %vm2347_vm1, %v4650_v17  ;;  %v4669_v17 = vld [vmem:[#allocation4 + $0x152] sm:$0xff] }
 0x377   : > { %11981 = vmatprep.mubr.msk.f32.mxu1 %vm2347_vm1, %v4651_v43  ;;  %v4670_v43 = vld [vmem:[#allocation4 + $0x15a] sm:$0xff] }
 0x378   : > { %v14580_v42 = vpop.f32.mrf.mxu1 }
 0x37a   : > { %v14582_v25 = vpop.f32.mrf.mxu1  ;;  %11982 = vmatmul.mubr.msk.f32.gmra.mxu1 %vm2347_vm1, %v4652_v24 }
 0x37b   : > { %11984 = vmatprep.mubr.msk.f32.mxu1 %vm2347_vm1, %v4653_v22  ;;  %v4671_v22 = vld [vmem:[#allocation4 + $0x162] sm:$0xff] }
 0x37c   : > { %v14586_v59 = vpop.f32.mrf.mxu1 }
 0x37d   : > { %16657 = vst [vmem:[#allocation13_spill] sm:$0xff] %v14586_v59 }
 0x37e   : > { %11985 = vmatmul.mubr.msk.f32.gmra.mxu1 %vm2347_vm1, %v4654_v35  ;;  %v14590_v56 = vpop.f32.mrf.mxu1 }
 0x37f   : > { %11987 = vmatprep.mubr.msk.f32.mxu1 %vm2347_vm1, %v4655_v1  ;;  %v4672_v1 = vld [vmem:[#allocation4 + $0x16a] sm:$0xff] }
 0x380   : > { %v14594_v32 = vpop.f32.mrf.mxu1 }
 0x381   : > { %16658 = vst [vmem:[#allocation14_spill] sm:$0xff] %v14594_v32 }
 0x382   : > { %11988 = vmatmul.mubr.msk.f32.gmra.mxu1 %vm2347_vm1, %v4656_v44  ;;  %v14598_v61 = vpop.f32.mrf.mxu1  ;;  %v4673_v44 = vld [vmem:[#allocation4 + $0x172] sm:$0xff] }
 0x383   : > { %11990 = vmatprep.mubr.msk.f32.mxu1 %vm2347_vm1, %v4657_v20 }
 0x384   : > { %v14602_v37 = vpop.f32.mrf.mxu1 }
 0x385   : > { %16659 = vst [vmem:[#allocation15_spill] sm:$0xff] %v14602_v37 }
 0x386   : > { %11991 = vmatmul.mubr.msk.f32.gmra.mxu1 %vm2347_vm1, %v4658_v13  ;;  %v4674_v13 = vld [vmem:[#allocation4 + $0x17a] sm:$0xff] }
 0x387   : > { %11993 = vmatprep.mubr.msk.f32.mxu1 %vm2347_vm1, %v4659_v28  ;;  %v14604_v39 = vpop.f32.mrf.mxu1  ;;  %v14635_v28 = vld [vmem:[%s16635_s5] ss:$0 sm:$0xff] }
 0x389   : > { %v14608_v31 = vpop.f32.mrf.mxu1 }
 0x38a   : > { %11994 = vmatmul.mubr.msk.f32.gmra.mxu1 %vm2347_vm1, %v4660_v7  ;;  %16660 = vst [vmem:[#allocation18_spill] sm:$0xff] %v14608_v31 }
 0x38b   : > { %11996 = vmatprep.mubr.msk.f32.mxu1 %vm2347_vm1, %v4661_v55  ;;  %v5739_v55 = vld [vmem:[#allocation4 + $0x4] sm:$0xff] }
 0x38e   : > { %11997 = vmatmul.mubr.msk.f32.gmra.mxu1 %vm2347_vm1, %v4662_v5 }
 0x38f   : > { %11999 = vmatprep.mubr.msk.f32.mxu1 %vm2347_vm1, %v4663_v2  ;;  %v14612_v57 = vpop.f32.mrf.mxu1  ;;  %v4024_v2 = vadd.f32 %v14458_v41, %v14635_v28 }
 0x391   : > { %v14616_v18 = vpop.f32.mrf.mxu1 }
 0x392   : > { %12000 = vmatmul.mubr.msk.f32.gmra.mxu1 %vm2347_vm1, %v4664_v34  ;;  %16661 = vst [vmem:[#allocation19_spill] sm:$0xff] %v14616_v18  ;;  %v5740_v34 = vld [vmem:[#allocation4 + $0xc] sm:$0xff] }
 0x393   : > { %12002 = vmatprep.mubr.msk.f32.mxu1 %vm2347_vm1, %v4665_v19 }
 0x396   : > { %12003 = vmatmul.mubr.msk.f32.gmra.mxu1 %vm2347_vm1, %v4666_v29  ;;  %v5741_v29 = vld [vmem:[#allocation4 + $0x14] sm:$0xff] }
 0x397   : > { %12005 = vmatprep.mubr.msk.f32.mxu1 %vm2347_vm1, %v4667_v21  ;;  %v14618_v46 = vpop.f32.mrf.mxu1  ;;  %v4023_v21 = vadd.f32 %v14635_v28, %v14462_v47 }
 0x399   : > { %v14622_v24 = vpop.f32.mrf.mxu1 }
 0x39a   : > { %12006 = vmatmul.mubr.msk.f32.gmra.mxu1 %vm2347_vm1, %v4668_v40  ;;  %16662 = vst [vmem:[#allocation20_spill] sm:$0xff] %v14622_v24 }
 0x39b   : > { %12008 = vmatprep.mubr.msk.f32.mxu1 %vm2347_vm1, %v4669_v17 }
 0x39e   : > { %12009 = vmatmul.mubr.msk.f32.gmra.mxu1 %vm2347_vm1, %v4670_v43  ;;  %v14626_v35 = vpop.f32.mrf.mxu1  ;;  %v4026_v43 = vadd.f32 %v14464_v3, %v14635_v28  ;;  %v5744_v3 = vld [vmem:[#allocation4 + $0x2c] sm:$0xff] }
 0x39f   : > { %12011 = vmatprep.mubr.msk.f32.mxu1 %vm2347_vm1, %v4671_v22 }
 0x3a0   : > { %v14630_v20 = vpop.f32.mrf.mxu1 }
 0x3a1   : > { %16663 = vst [vmem:[#allocation21_spill] sm:$0xff] %v14630_v20 }
 0x3a2   : > { %12012 = vmatmul.mubr.msk.f32.gmra.mxu1 %vm2347_vm1, %v4672_v1  ;;  %v5742_v1 = vld [vmem:[#allocation4 + $0x1c] sm:$0xff] }
 0x3a3   : > { %12014 = vmatprep.mubr.msk.f32.mxu1 %vm2347_vm1, %v4673_v44  ;;  %v5743_v44 = vld [vmem:[#allocation4 + $0x24] sm:$0xff] }
 0x3a6   : > { %v14637_v7 = vpop.f32.mrf.mxu1  ;;  %12015 = vmatmul.mubr.msk.f32.gmra.mxu1 %vm2347_vm1, %v4674_v13  ;;  %v4025_v13 = vadd.f32 %v14635_v28, %v14468_v27 }
 0x3a7   : > { %12129 = vmatprep.mubr.msk.f32.mxu1 %vm2347_vm1, %v5739_v55 }
 0x3a8   : > { %v14641_v5 = vpop.f32.mrf.mxu1 }
 0x3a9   : > { %16664 = vst [vmem:[#allocation22_spill] sm:$0xff] %v14641_v5 }
 0x3aa   : > { %v11855_v19 = vpop.f32.mrf.mxu1  ;;  %12130 = vmatmul.mubr.msk.f32.vlgmr.msra.gmra.mxu1 %vm2347_vm1, %v5740_v34 }
 0x3ab   : > { %v14648_v40 = vadd.f32 %v11855_v19, %v4024_v2  ;;  %12132 = vmatprep.mubr.msk.f32.mxu1 %vm2347_vm1, %v5741_v29  ;;  %v4028_v2 = vadd.f32 %v14470_v38, %v14635_v28  ;;  %v5745_v29 = vld [vmem:[#allocation4 + $0x34] sm:$0xff]  ;;  %v5746_v38 = vld [vmem:[#allocation4 + $0x3c] sm:$0xff] }
 0x3ac   : > { %v4340_v17 = vpop.f32.mrf.mxu1 }
 0x3ad   : > { %v14653_v22 = vadd.f32 %v4340_v17, %v4023_v21  ;;  %v4027_v21 = vadd.f32 %v14635_v28, %v14474_v49 }
 0x3ae   : > { %v11858_v41 = vpop.f32.mrf.mxu1  ;;  %12133 = vmatmul.mubr.msk.f32.gmra.mxu1 %vm2347_vm1, %v5742_v1 }
 0x3af   : > { %v14658_v55 = vadd.f32 %v11858_v41, %v4026_v43  ;;  %12135 = vmatprep.mubr.msk.f32.mxu1 %vm2347_vm1, %v5743_v44  ;;  %v4030_v43 = vadd.f32 %v14476_v0, %v14635_v28  ;;  %v5747_v44 = vld [vmem:[#allocation4 + $0x44] sm:$0xff]  ;;  %v5748_v0 = vld [vmem:[#allocation4 + $0x4c] sm:$0xff] }
 0x3b0   : > { %v4350_v47 = vpop.f32.mrf.mxu1 }
 0x3b1   : > { %v14663_v34 = vadd.f32 %v4350_v47, %v4025_v13  ;;  %v4029_v13 = vadd.f32 %v14635_v28, %v14480_v26 }
 0x3b2   : > { %v11861_v19 = vpop.f32.mrf.mxu1  ;;  %12136 = vmatmul.mubr.msk.f32.gmra.mxu1 %vm2347_vm1, %v5744_v3 }
 0x3b3   : > { %v14668_v17 = vadd.f32 %v11861_v19, %v4028_v2  ;;  %12138 = vmatprep.mubr.msk.f32.mxu1 %vm2347_vm1, %v5745_v29  ;;  %v4032_v2 = vadd.f32 %v14485_v9, %v14635_v28  ;;  %v5749_v29 = vld [vmem:[#allocation4 + $0x54] sm:$0xff]  ;;  %v5750_v9 = vld [vmem:[#allocation4 + $0x5c] sm:$0xff] }
 0x3b4   : > { %v4360_v27 = vpop.f32.mrf.mxu1 }
 0x3b5   : > { %v14673_v1 = vadd.f32 %v4360_v27, %v4027_v21  ;;  %v4031_v21 = vadd.f32 %v14635_v28, %v14493_v60 }
 0x3b6   : > { %v11864_v41 = vpop.f32.mrf.mxu1  ;;  %12139 = vmatmul.mubr.msk.f32.gmra.mxu1 %vm2347_vm1, %v5746_v38 }
 0x3b7   : > { %v14678_v47 = vadd.f32 %v11864_v41, %v4030_v43  ;;  %12141 = vmatprep.mubr.msk.f32.mxu1 %vm2347_vm1, %v5747_v44  ;;  %v4034_v43 = vadd.f32 %v14498_v12, %v14635_v28  ;;  %v5751_v44 = vld [vmem:[#allocation4 + $0x64] sm:$0xff]  ;;  %v5752_v12 = vld [vmem:[#allocation4 + $0x6c] sm:$0xff] }
 0x3b8   : > { %v4370_v49 = vpop.f32.mrf.mxu1 }
 0x3b9   : > { %v14683_v3 = vadd.f32 %v4370_v49, %v4029_v13  ;;  %v4033_v13 = vadd.f32 %v14635_v28, %v14505_v48 }
 0x3ba   : > { %v11867_v19 = vpop.f32.mrf.mxu1  ;;  %12142 = vmatmul.mubr.msk.f32.gmra.mxu1 %vm2347_vm1, %v5748_v0 }
 0x3bb   : > { %v14688_v27 = vadd.f32 %v11867_v19, %v4032_v2  ;;  %12144 = vmatprep.mubr.msk.f32.mxu1 %vm2347_vm1, %v5749_v29  ;;  %v4036_v2 = vadd.f32 %v14510_v33, %v14635_v28  ;;  %v5753_v29 = vld [vmem:[#allocation4 + $0x74] sm:$0xff]  ;;  %v5754_v33 = vld [vmem:[#allocation4 + $0x7c] sm:$0xff] }
 0x3bc   : > { %v4380_v26 = vpop.f32.mrf.mxu1 }
 0x3bd   : > { %v14693_v38 = vadd.f32 %v4380_v26, %v4031_v21  ;;  %v4035_v21 = vadd.f32 %v14635_v28, %v14517_v51 }
 0x3be   : > { %v11870_v41 = vpop.f32.mrf.mxu1  ;;  %12145 = vmatmul.mubr.msk.f32.gmra.mxu1 %vm2347_vm1, %v5750_v9 }
 0x3bf   : > { %v14698_v49 = vadd.f32 %v11870_v41, %v4034_v43  ;;  %12147 = vmatprep.mubr.msk.f32.mxu1 %vm2347_vm1, %v5751_v44  ;;  %v4038_v43 = vadd.f32 %v14522_v58, %v14635_v28  ;;  %v5755_v44 = vld [vmem:[#allocation4 + $0x84] sm:$0xff]  ;;  %v5756_v58 = vld [vmem:[#allocation4 + $0x8c] sm:$0xff] }
 0x3c0   : > { %v4390_v60 = vpop.f32.mrf.mxu1 }
 0x3c1   : > { %v14703_v0 = vadd.f32 %v4390_v60, %v4033_v13  ;;  %v4037_v13 = vadd.f32 %v14635_v28, %v14529_v62 }
 0x3c2   : > { %v11873_v19 = vpop.f32.mrf.mxu1  ;;  %12148 = vmatmul.mubr.msk.f32.gmra.mxu1 %vm2347_vm1, %v5752_v12 }
 0x3c3   : > { %v14708_v26 = vadd.f32 %v11873_v19, %v4036_v2  ;;  %12150 = vmatprep.mubr.msk.f32.mxu1 %vm2347_vm1, %v5753_v29  ;;  %v4040_v2 = vadd.f32 %v14534_v6, %v14635_v28  ;;  %v5757_v29 = vld [vmem:[#allocation4 + $0x94] sm:$0xff]  ;;  %v5758_v6 = vld [vmem:[#allocation4 + $0x9c] sm:$0xff] }
 0x3c4   : > { %v4400_v48 = vpop.f32.mrf.mxu1 }
 0x3c5   : > { %v14713_v9 = vadd.f32 %v4400_v48, %v4035_v21  ;;  %v4039_v21 = vadd.f32 %v14635_v28, %v14538_v63 }
 0x3c6   : > { %v11876_v41 = vpop.f32.mrf.mxu1  ;;  %12151 = vmatmul.mubr.msk.f32.gmra.mxu1 %vm2347_vm1, %v5754_v33 }
 0x3c7   : > { %v14718_v60 = vadd.f32 %v11876_v41, %v4038_v43  ;;  %12153 = vmatprep.mubr.msk.f32.mxu1 %vm2347_vm1, %v5755_v44  ;;  %v4042_v43 = vadd.f32 %v14540_v14, %v14635_v28  ;;  %v5759_v44 = vld [vmem:[#allocation4 + $0xa4] sm:$0xff]  ;;  %v5760_v14 = vld [vmem:[#allocation4 + $0xac] sm:$0xff] }
 0x3c8   : > { %v4410_v51 = vpop.f32.mrf.mxu1 }
 0x3c9   : > { %v14723_v12 = vadd.f32 %v4410_v51, %v4037_v13  ;;  %v4041_v13 = vadd.f32 %v14635_v28, %v14544_v8 }
 0x3ca   : > { %v11879_v19 = vpop.f32.mrf.mxu1  ;;  %12154 = vmatmul.mubr.msk.f32.gmra.mxu1 %vm2347_vm1, %v5756_v58 }
 0x3cb   : > { %v14728_v48 = vadd.f32 %v11879_v19, %v4040_v2  ;;  %12156 = vmatprep.mubr.msk.f32.mxu1 %vm2347_vm1, %v5757_v29  ;;  %v4044_v2 = vadd.f32 %v14546_v23, %v14635_v28  ;;  %v5761_v29 = vld [vmem:[#allocation4 + $0xb4] sm:$0xff]  ;;  %v5762_v23 = vld [vmem:[#allocation4 + $0xbc] sm:$0xff] }
 0x3cc   : > { %v4420_v62 = vpop.f32.mrf.mxu1 }
 0x3cd   : > { %v14733_v33 = vadd.f32 %v4420_v62, %v4039_v21  ;;  %v4043_v21 = vadd.f32 %v14635_v28, %v14550_v4 }
 0x3ce   : > { %v11882_v41 = vpop.f32.mrf.mxu1  ;;  %12157 = vmatmul.mubr.msk.f32.gmra.mxu1 %vm2347_vm1, %v5758_v6 }
 0x3cf   : > { %v14738_v51 = vadd.f32 %v11882_v41, %v4042_v43  ;;  %12159 = vmatprep.mubr.msk.f32.mxu1 %vm2347_vm1, %v5759_v44  ;;  %v4046_v43 = vadd.f32 %v14552_v52, %v14635_v28  ;;  %v5763_v44 = vld [vmem:[#allocation4 + $0xc4] sm:$0xff]  ;;  %v5764_v52 = vld [vmem:[#allocation4 + $0xcc] sm:$0xff] }
 0x3d0   : > { %v4430_v63 = vpop.f32.mrf.mxu1 }
 0x3d1   : > { %v14743_v58 = vadd.f32 %v4430_v63, %v4041_v13  ;;  %v4045_v13 = vadd.f32 %v14635_v28, %v14556_v11 }
 0x3d2   : > { %v11885_v19 = vpop.f32.mrf.mxu1  ;;  %12160 = vmatmul.mubr.msk.f32.gmra.mxu1 %vm2347_vm1, %v5760_v14 }
 0x3d3   : > { %16665 = vst [vmem:[#allocation23_spill] sm:$0xff] %v14743_v58  ;;  %v14748_v62 = vadd.f32 %v11885_v19, %v4044_v2  ;;  %12162 = vmatprep.mubr.msk.f32.mxu1 %vm2347_vm1, %v5761_v29  ;;  %v4048_v2 = vadd.f32 %v14558_v50, %v14635_v28  ;;  %v5765_v29 = vld [vmem:[#allocation4 + $0xd4] sm:$0xff]  ;;  %v5766_v50 = vld [vmem:[#allocation4 + $0xdc] sm:$0xff] }
 0x3d4   : > { %v4440_v8 = vpop.f32.mrf.mxu1 }
 0x3d5   : > { %v14753_v6 = vadd.f32 %v4440_v8, %v4043_v21  ;;  %v4047_v21 = vadd.f32 %v14635_v28, %v14562_v54 }
 0x3d6   : > { %v11888_v41 = vpop.f32.mrf.mxu1  ;;  %12163 = vmatmul.mubr.msk.f32.gmra.mxu1 %vm2347_vm1, %v5762_v23 }
 0x3d7   : > { %16666 = vst [vmem:[#allocation24_spill] sm:$0xff] %v14753_v6  ;;  %v14758_v63 = vadd.f32 %v11888_v41, %v4046_v43  ;;  %12165 = vmatprep.mubr.msk.f32.mxu1 %vm2347_vm1, %v5763_v44  ;;  %v4050_v43 = vadd.f32 %v14564_v53, %v14635_v28  ;;  %v5767_v44 = vld [vmem:[#allocation4 + $0xe4] sm:$0xff]  ;;  %v5768_v53 = vld [vmem:[#allocation4 + $0xec] sm:$0xff] }
 0x3d8   : > { %v4450_v4 = vpop.f32.mrf.mxu1 }
 0x3d9   : > { %v14763_v14 = vadd.f32 %v4450_v4, %v4045_v13  ;;  %v4049_v13 = vadd.f32 %v14635_v28, %v14568_v30 }
 0x3da   : > { %v11891_v19 = vpop.f32.mrf.mxu1  ;;  %12166 = vmatmul.mubr.msk.f32.gmra.mxu1 %vm2347_vm1, %v5764_v52 }
 0x3db   : > { %16667 = vst [vmem:[#allocation25_spill] sm:$0xff] %v14763_v14  ;;  %v14768_v8 = vadd.f32 %v11891_v19, %v4048_v2  ;;  %12168 = vmatprep.mubr.msk.f32.mxu1 %vm2347_vm1, %v5765_v29  ;;  %v4052_v2 = vadd.f32 %v14570_v16, %v14635_v28  ;;  %v5769_v29 = vld [vmem:[#allocation4 + $0xf4] sm:$0xff]  ;;  %v5770_v16 = vld [vmem:[#allocation4 + $0xfc] sm:$0xff] }
 0x3dc   : > { %v4460_v11 = vpop.f32.mrf.mxu1 }
 0x3dd   : > { %v14773_v23 = vadd.f32 %v4460_v11, %v4047_v21  ;;  %v4051_v21 = vadd.f32 %v14635_v28, %v14574_v10 }
 0x3de   : > { %v11894_v41 = vpop.f32.mrf.mxu1  ;;  %12169 = vmatmul.mubr.msk.f32.gmra.mxu1 %vm2347_vm1, %v5766_v50 }
 0x3df   : > { %16668 = vst [vmem:[#allocation26_spill] sm:$0xff] %v14773_v23  ;;  %v14778_v4 = vadd.f32 %v11894_v41, %v4050_v43  ;;  %12171 = vmatprep.mubr.msk.f32.mxu1 %vm2347_vm1, %v5767_v44  ;;  %v4054_v43 = vadd.f32 %v14576_v15, %v14635_v28  ;;  %v5771_v44 = vld [vmem:[#allocation4 + $0x104] sm:$0xff]  ;;  %v5772_v15 = vld [vmem:[#allocation4 + $0x10c] sm:$0xff] }
 0x3e0   : > { %v4470_v54 = vpop.f32.mrf.mxu1 }
 0x3e1   : > { %v14783_v52 = vadd.f32 %v4470_v54, %v4049_v13  ;;  %v4053_v13 = vadd.f32 %v14635_v28, %v14580_v42 }
 0x3e2   : > { %v11897_v19 = vpop.f32.mrf.mxu1  ;;  %12172 = vmatmul.mubr.msk.f32.gmra.mxu1 %vm2347_vm1, %v5768_v53 }
 0x3e3   : > { %16669 = vst [vmem:[#allocation27_spill] sm:$0xff] %v14783_v52  ;;  %v14788_v11 = vadd.f32 %v11897_v19, %v4052_v2  ;;  %12174 = vmatprep.mubr.msk.f32.mxu1 %vm2347_vm1, %v5769_v29  ;;  %v4056_v2 = vadd.f32 %v14582_v25, %v14635_v28  ;;  %v5773_v29 = vld [vmem:[#allocation4 + $0x114] sm:$0xff]  ;;  %v5775_v25 = vld [vmem:[#allocation4 + $0x124] sm:$0xff] }
 0x3e4   : > { %v4480_v30 = vpop.f32.mrf.mxu1 }
 0x3e5   : > { %v14793_v50 = vadd.f32 %v4480_v30, %v4051_v21  ;;  %v4058_v30 = vadd.f32 %v14590_v56, %v14635_v28 }
 0x3e6   : > { %v11900_v41 = vpop.f32.mrf.mxu1  ;;  %12175 = vmatmul.mubr.msk.f32.gmra.mxu1 %vm2347_vm1, %v5770_v16 }
 0x3e7   : > { %16670 = vst [vmem:[#allocation28_spill] sm:$0xff] %v14793_v50  ;;  %v14798_v54 = vadd.f32 %v11900_v41, %v4054_v43  ;;  %12177 = vmatprep.mubr.msk.f32.mxu1 %vm2347_vm1, %v5771_v44  ;;  %v5774_v43 = vld [vmem:[#allocation4 + $0x11c] sm:$0xff] }
 0x3e8   : > { %v4490_v10 = vpop.f32.mrf.mxu1 }
 0x3e9   : > { %v14803_v53 = vadd.f32 %v4490_v10, %v4053_v13  ;;  %v4060_v13 = vadd.f32 %v14598_v61, %v14635_v28  ;;  %v5776_v10 = vld [vmem:[#allocation4 + $0x12c] sm:$0xff] }
 0x3ea   : > { %v11903_v19 = vpop.f32.mrf.mxu1  ;;  %12178 = vmatmul.mubr.msk.f32.gmra.mxu1 %vm2347_vm1, %v5772_v15  ;;  %v5777_v15 = vld [vmem:[#allocation4 + $0x134] sm:$0xff] }
 0x3eb   : > { %16671 = vst [vmem:[#allocation29_spill] sm:$0xff] %v14803_v53  ;;  %v14806_v21 = vadd.f32 %v11903_v19, %v4056_v2  ;;  %12180 = vmatprep.mubr.msk.f32.mxu1 %vm2347_vm1, %v5773_v29  ;;  %v4062_v29 = vadd.f32 %v14604_v39, %v14635_v28 }
 0x3ec   : > { %v14809_v42 = vpop.f32.mrf.mxu1 }
 0x3ed   : > { %16672 = vst [vmem:[#allocation30_spill] sm:$0xff] %v14809_v42 }
 0x3ee   : > { %v11906_v16 = vpop.f32.mrf.mxu1  ;;  %12181 = vmatmul.mubr.msk.f32.gmra.mxu1 %vm2347_vm1, %v5774_v43 }
 0x3ef   : > { %v14814_v41 = vadd.f32 %v11906_v16, %v4058_v30  ;;  %12183 = vmatprep.mubr.msk.f32.mxu1 %vm2347_vm1, %v5775_v25  ;;  %v5778_v30 = vld [vmem:[#allocation4 + $0x13c] sm:$0xff]  ;;  %v5779_v16 = vld [vmem:[#allocation4 + $0x144] sm:$0xff] }
 0x3f0   : > { %v14817_v44 = vpop.f32.mrf.mxu1 }
 0x3f1   : > { %16673 = vst [vmem:[#allocation31_spill] sm:$0xff] %v14817_v44 }
 0x3f2   : > { %v11909_v2 = vpop.f32.mrf.mxu1  ;;  %12184 = vmatmul.mubr.msk.f32.gmra.mxu1 %vm2347_vm1, %v5776_v10  ;;  %v5780_v10 = vld [vmem:[#allocation4 + $0x14c] sm:$0xff] }
 0x3f3   : > { %v14822_v56 = vadd.f32 %v11909_v2, %v4060_v13  ;;  %12186 = vmatprep.mubr.msk.f32.mxu1 %vm2347_vm1, %v5777_v15  ;;  %v4064_v13 = vadd.f32 %v14612_v57, %v14635_v28  ;;  %v5781_v15 = vld [vmem:[#allocation4 + $0x154] sm:$0xff] }
 0x3f4   : > { %v14825_v19 = vpop.f32.mrf.mxu1 }
 0x3f5   : > { %16674 = vst [vmem:[#allocation32_spill] sm:$0xff] %v14825_v19 }
 0x3f6   : > { %v11912_v43 = vpop.f32.mrf.mxu1  ;;  %12187 = vmatmul.mubr.msk.f32.gmra.mxu1 %vm2347_vm1, %v5778_v30 }
 0x3f7   : > { %v14830_v61 = vadd.f32 %v11912_v43, %v4062_v29  ;;  %12189 = vmatprep.mubr.msk.f32.mxu1 %vm2347_vm1, %v5779_v16  ;;  %v4066_v29 = vadd.f32 %v14618_v46, %v14635_v28  ;;  %v5782_v43 = vld [vmem:[#allocation4 + $0x15c] sm:$0xff] }
 0x3f8   : > { %v14833_v25 = vpop.f32.mrf.mxu1 }
 0x3f9   : > { %16675 = vst [vmem:[#allocation33_spill] sm:$0xff] %v14833_v25 }
 0x3fa   : > { %v11915_v2 = vpop.f32.mrf.mxu1  ;;  %12190 = vmatmul.mubr.msk.f32.gmra.mxu1 %vm2347_vm1, %v5780_v10 }
 0x3fb   : > { %v14838_v39 = vadd.f32 %v11915_v2, %v4064_v13  ;;  %12192 = vmatprep.mubr.msk.f32.mxu1 %vm2347_vm1, %v5781_v15  ;;  %v4068_v13 = vadd.f32 %v14626_v35, %v14635_v28  ;;  %v5784_v2 = vld [vmem:[#allocation4 + $0x16c] sm:$0xff] }
 0x3fc   : > { %v14841_v30 = vpop.f32.mrf.mxu1  ;;  %v7098_v15 = vld [vmem:[%s16638_s8 + $0x38] sm:$0xf] }
 0x3fd   : > { %16676 = vst [vmem:[#allocation34_spill] sm:$0xff] %v14841_v30  ;;  %12201 = vmatprep.subr.msk.mxu0 %vm7243_vm7, %v7098_v15 }
 0x3fe   : > { %v11918_v16 = vpop.f32.mrf.mxu1  ;;  %12193 = vmatmul.mubr.msk.f32.gmra.mxu1 %vm2347_vm1, %v5782_v43  ;;  %v5785_v43 = vld [vmem:[#allocation4 + $0x174] sm:$0xff]  ;;  %12202 = vmatpush3.msk.msra.mxu0 %vm7243_vm7, %v7098_v15 }
 0x3ff   : > { %v14846_v57 = vadd.f32 %v11918_v16, %v4066_v29  ;;  %12195 = vmatprep.mubr.msk.f32.mxu1 %vm2347_vm1, %v5783_v36  ;;  %v16678_v29 = vmov 0.0   ;;  %v4070_v16 = vadd.f32 %v14637_v7, %v14635_v28 }
 0x400   : > { %v14849_v10 = vpop.f32.mrf.mxu1  ;;  %448 = vst.msk [vmem:[#allocation9] sm:$0x1] %vm447_vm8, %v16678_v29  ;;  %449 = vst.msk [vmem:[#allocation10] sm:$0x1] %vm447_vm8, %v16678_v29 }
 0x401   : > { %16677 = vst [vmem:[#allocation35_spill] sm:$0xff] %v14849_v10  ;;  %450 = vst.msk [vmem:[#allocation11] sm:$0x1] %vm447_vm8, %v16678_v29 }
 0x402   : > { %v11921_v46 = vpop.f32.mrf.mxu1  ;;  %12196 = vmatmul.mubr.msk.f32.gmra.mxu1 %vm2347_vm1, %v5784_v2  ;;  %451 = vst.msk [vmem:[#allocation12] sm:$0x1] %vm447_vm8, %v16678_v29  ;;  %v5786_v2 = vld [vmem:[#allocation4 + $0x17c] sm:$0xff]  ;;  %v14879_v29 = vpop.f32.mrf.mxu0 }
 0x403   : > { %v14866_v36 = vadd.f32 %v11921_v46, %v4068_v13  ;;  %12198 = vmatprep.mubr.msk.f32.mxu1 %vm2347_vm1, %v5785_v43 }
 0x404   : > { %v14870_v35 = vpop.f32.mrf.mxu1  ;;  %v14886_v43 = vpop.f32.mrf.mxu0 }
 0x405   : > { %16679 = vst [vmem:[#allocation36_spill] sm:$0xff] %v14870_v35 }
 0x406   : > { %v11924_v10 = vpop.f32.mrf.mxu1  ;;  %12199 = vmatmul.mubr.msk.f32.gmra.mxu1 %vm2347_vm1, %v5786_v2  ;;  %vm6295_vm1 = vcmask 490496  }
 0x407   : > { %v14875_v30 = vadd.f32 %v11924_v10, %v4070_v16  ;;  %v14893_v10 = vpop.f32.mrf.mxu0 }
 0x408   : > { %v14877_v5 = vpop.f32.mrf.mxu1 }
 0x409   : > { %16680 = vst [vmem:[#allocation37_spill] sm:$0xff] %v14877_v5 }
 0x40a   : > { %v11947_v13 = vpop.f32.mrf.mxu1 }
 0x40b   : > { %v14882_v46 = vadd.f32 %v11947_v13, %v14648_v40  ;;  %v14900_v40 = vpop.f32.mrf.mxu0 }
 0x40c   : > { %v14884_v15 = vpop.f32.mrf.mxu1 }
 0x40e   : > { %v11950_v35 = vpop.f32.mrf.mxu1 }
 0x40f   : > { %v14889_v28 = vadd.f32 %v11950_v35, %v14658_v55  ;;  %v14907_v55 = vpop.f32.mrf.mxu0 }
 0x410   : > { %v14891_v7 = vpop.f32.mrf.mxu1 }
 0x412   : > { %v11953_v16 = vpop.f32.mrf.mxu1 }
 0x413   : > { %v14896_v2 = vadd.f32 %v11953_v16, %v14668_v17  ;;  %v14914_v17 = vpop.f32.mrf.mxu0 }
 0x414   : > { %v14898_v5 = vpop.f32.mrf.mxu1 }
 0x416   : > { %v11956_v13 = vpop.f32.mrf.mxu1 }
 0x417   : > { %v14903_v20 = vadd.f32 %v11956_v13, %v14678_v47  ;;  %v14921_v47 = vpop.f32.mrf.mxu0 }
 0x418   : > { %v14905_v25 = vpop.f32.mrf.mxu1 }
 0x41a   : > { %v11959_v35 = vpop.f32.mrf.mxu1 }
 0x41b   : > { %v14910_v24 = vadd.f32 %v11959_v35, %v14688_v27  ;;  %v14928_v27 = vpop.f32.mrf.mxu0 }
 0x41c   : > { %v14912_v18 = vpop.f32.mrf.mxu1 }
 0x41e   : > { %v11962_v16 = vpop.f32.mrf.mxu1 }
 0x41f   : > { %v14917_v19 = vadd.f32 %v11962_v16, %v14698_v49  ;;  %v14935_v49 = vpop.f32.mrf.mxu0 }
 0x420   : > { %v14919_v31 = vpop.f32.mrf.mxu1 }
 0x422   : > { %v11965_v13 = vpop.f32.mrf.mxu1 }
 0x423   : > { %v14924_v37 = vadd.f32 %v11965_v13, %v14708_v26  ;;  %v14942_v26 = vpop.f32.mrf.mxu0 }
 0x424   : > { %v14926_v44 = vpop.f32.mrf.mxu1 }
 0x426   : > { %v11968_v35 = vpop.f32.mrf.mxu1 }
 0x427   : > { %v14931_v32 = vadd.f32 %v11968_v35, %v14718_v60  ;;  %v14949_v60 = vpop.f32.mrf.mxu0 }
 0x428   : > { %v14933_v42 = vpop.f32.mrf.mxu1 }
 0x42a   : > { %v11971_v16 = vpop.f32.mrf.mxu1 }
 0x42b   : > { %v14938_v53 = vadd.f32 %v11971_v16, %v14728_v48  ;;  %v14956_v48 = vpop.f32.mrf.mxu0 }
 0x42c   : > { %v14940_v59 = vpop.f32.mrf.mxu1 }
 0x42e   : > { %v11974_v13 = vpop.f32.mrf.mxu1 }
 0x42f   : > { %v14945_v50 = vadd.f32 %v11974_v13, %v14738_v51  ;;  %v14963_v51 = vpop.f32.mrf.mxu0 }
 0x430   : > { %v14947_v52 = vpop.f32.mrf.mxu1 }
 0x431   : > { %16681 = vst [vmem:[#allocation38_spill] sm:$0xff] %v14945_v50 }
 0x432   : > { %v11977_v35 = vpop.f32.mrf.mxu1 }
 0x433   : > { %v14952_v23 = vadd.f32 %v11977_v35, %v14748_v62  ;;  %v7097_v62 = vld [vmem:[%s16638_s8 + $0x30] sm:$0xff]  ;;  %v7096_v35 = vld [vmem:[%s16638_s8 + $0x28] sm:$0xff] }
 0x434   : > { %v14954_v14 = vpop.f32.mrf.mxu1  ;;  %12203 = vmatprep.subr.mxu0 %v7097_v62 }
 0x435   : > { %16682 = vst [vmem:[#allocation39_spill] sm:$0xff] %v14952_v23  ;;  %12204 = vmatpush3.msra.mxu0 %v7097_v62  ;;  %v7093_v62 = vld [vmem:[%s16638_s8 + $0x10] sm:$0xff] }
 0x436   : > { %v11980_v16 = vpop.f32.mrf.mxu1  ;;  %12205 = vmatprep.subr.mxu0 %v7096_v35 }
 0x437   : > { %v14959_v6 = vadd.f32 %v11980_v16, %v14758_v63  ;;  %v14976_v63 = vpop.f32.mrf.mxu0  ;;  %v7095_v16 = vld [vmem:[%s16638_s8 + $0x20] sm:$0xff]  ;;  %12206 = vmatpush3.msra.mxu0 %v7096_v35 }
 0x438   : > { %v14961_v58 = vpop.f32.mrf.mxu1  ;;  %12207 = vmatprep.subr.mxu0 %v7095_v16 }
 0x439   : > { %16683 = vst [vmem:[#allocation40_spill] sm:$0xff] %v14959_v6  ;;  %16684 = vst [vmem:[#allocation41_spill] sm:$0xff] %v14961_v58  ;;  %12208 = vmatpush3.msra.mxu0 %v7095_v16  ;;  %v7092_v16 = vld [vmem:[%s16638_s8 + $0x8] sm:$0xff] }
 0x43a   : > { %v11983_v13 = vpop.f32.mrf.mxu1 }
 0x43b   : > { %v14966_v50 = vadd.f32 %v11983_v13, %v14768_v8 }
 0x43c   : > { %v14974_v23 = vpop.f32.mrf.mxu1 }
 0x43d   : > { %16685 = vst [vmem:[#allocation42_spill] sm:$0xff] %v14966_v50  ;;  %16686 = vst [vmem:[#allocation43_spill] sm:$0xff] %v14974_v23  ;;  %v7094_v50 = vld [vmem:[%s16638_s8 + $0x18] sm:$0xff]  ;;  %v14989_v23 = vpop.f32.mrf.mxu0 }
 0x43e   : > { %v11986_v8 = vpop.f32.mrf.mxu1  ;;  %12209 = vmatprep.subr.mxu0 %v7094_v50 }
 0x43f   : > { %v14982_v13 = vadd.f32 %v11986_v8, %v14778_v4  ;;  %12210 = vmatpush3.msra.mxu0 %v7094_v50  ;;  %v14999_v8 = vpop.f32.mrf.mxu0 }
 0x440   : > { %v14987_v6 = vpop.f32.mrf.mxu1  ;;  %12211 = vmatprep.subr.mxu0 %v7093_v62 }
 0x441   : > { %16687 = vst [vmem:[#allocation44_spill] sm:$0xff] %v14982_v13  ;;  %16688 = vst [vmem:[#allocation45_spill] sm:$0xff] %v14987_v6  ;;  %12212 = vmatpush3.msra.mxu0 %v7093_v62  ;;  %v15013_v50 = vpop.f32.mrf.mxu0  ;;  %v10946_v62 = vld [vmem:[%s16638_s8 + $0x70] sm:$0xff] }
 0x442   : > { %v11989_v58 = vpop.f32.mrf.mxu1  ;;  %12213 = vmatprep.subr.mxu0 %v7092_v16 }
 0x443   : > { %v14995_v4 = vadd.f32 %v11989_v58, %v14788_v11  ;;  %v10947_v58 = vld [vmem:[%s16638_s8 + $0x78] sm:$0xf]  ;;  %12214 = vmatpush3.msra.mxu0 %v7092_v16  ;;  %v10944_v16 = vld [vmem:[%s16638_s8 + $0x60] sm:$0xff] }
 0x444   : > { %v14997_v35 = vpop.f32.mrf.mxu1  ;;  %12289 = vmatprep.subr.msk.mxu1 %vm7243_vm7, %v10947_v58 }
 0x445   : > { %16689 = vst [vmem:[#allocation46_spill] sm:$0xff] %v14995_v4  ;;  %16690 = vst [vmem:[#allocation47_spill] sm:$0xff] %v14997_v35  ;;  %12290 = vmatpush3.msk.msra.mxu1 %vm7243_vm7, %v10947_v58  ;;  %v15027_v4 = vpop.f32.mrf.mxu0 }
 0x446   : > { %v11992_v13 = vpop.f32.mrf.mxu1  ;;  %12291 = vmatprep.subr.mxu1 %v10946_v62 }
 0x447   : > { %v15002_v6 = vadd.f32 %v11992_v13, %v14798_v54  ;;  %12292 = vmatpush3.msra.mxu1 %v10946_v62 }
 0x448   : > { %v15010_v11 = vpop.f32.mrf.mxu1 }
 0x449   : > { %16691 = vst [vmem:[#allocation48_spill] sm:$0xff] %v15002_v6  ;;  %16692 = vst [vmem:[#allocation49_spill] sm:$0xff] %v15010_v11  ;;  %v10945_v6 = vld [vmem:[%s16638_s8 + $0x68] sm:$0xff] }
 0x44a   : > { %v11995_v54 = vpop.f32.mrf.mxu1  ;;  %12293 = vmatprep.subr.mxu1 %v10945_v6 }
 0x44b   : > { %v15017_v13 = vadd.f32 %v11995_v54, %v14806_v21  ;;  %12294 = vmatpush3.msra.mxu1 %v10945_v6  ;;  %v10943_v54 = vld [vmem:[%s16638_s8 + $0x58] sm:$0xff]  ;;  %v10942_v6 = vld [vmem:[%s16638_s8 + $0x50] sm:$0xff] }
 0x44c   : > { %v15025_v11 = vpop.f32.mrf.mxu1  ;;  %12295 = vmatprep.subr.mxu1 %v10944_v16 }
 0x44d   : > { %16693 = vst [vmem:[#allocation50_spill] sm:$0xff] %v15017_v13  ;;  %16694 = vst [vmem:[#allocation51_spill] sm:$0xff] %v15025_v11  ;;  %v15040_v11 = vpop.f32.mrf.mxu0  ;;  %12296 = vmatpush3.msra.mxu1 %v10944_v16 }
 0x44e   : > { %v11998_v21 = vpop.f32.mrf.mxu1  ;;  %12297 = vmatprep.subr.mxu1 %v10943_v54 }
 0x44f   : > { %v15033_v58 = vadd.f32 %v11998_v21, %v14814_v41  ;;  %12298 = vmatpush3.msra.mxu1 %v10943_v54  ;;  %v7091_v41 = vld [vmem:[%s16638_s8] sm:$0xff]  ;;  %v10941_v21 = vld [vmem:[%s16638_s8 + $0x48] sm:$0xff]  ;;  %v15056_v16 = vpop.f32.mrf.mxu0 }
 0x450   : > { %v15038_v13 = vpop.f32.mrf.mxu1  ;;  %12299 = vmatprep.subr.mxu1 %v10942_v6  ;;  %12215 = vmatprep.subr.mxu0 %v7091_v41  ;;  %16699 = vst [vmem:[#allocation56_spill] sm:$0xff] %v15056_v16 }
 0x451   : > { %16695 = vst [vmem:[#allocation52_spill] sm:$0xff] %v15033_v58  ;;  %16696 = vst [vmem:[#allocation53_spill] sm:$0xff] %v15038_v13  ;;  %12300 = vmatpush3.msra.mxu1 %v10942_v6  ;;  %12216 = vmatpush3.msra.mxu0 %v7091_v41  ;;  %v15070_v6 = vpop.f32.mrf.mxu0 }
 0x452   : > { %v12001_v62 = vpop.f32.mrf.mxu1  ;;  %12301 = vmatprep.subr.mxu1 %v10941_v21  ;;  %16702 = vst [vmem:[#allocation59_spill] sm:$0xff] %v15070_v6 }
 0x453   : > { %v15043_v35 = vadd.f32 %v12001_v62, %v14822_v56  ;;  %12302 = vmatpush3.msra.mxu1 %v10941_v21  ;;  %v10940_v62 = vld [vmem:[%s16638_s8 + $0x40] sm:$0xff] }
 0x454   : > { %v15054_v58 = vpop.f32.mrf.mxu1  ;;  %12303 = vmatprep.subr.mxu1 %v10940_v62 }
 0x455   : > { %16697 = vst [vmem:[#allocation54_spill] sm:$0xff] %v15043_v35  ;;  %16698 = vst [vmem:[#allocation55_spill] sm:$0xff] %v15054_v58  ;;  %v11004_v35 = vld [vmem:[%s16638_s8 + $0xb8] sm:$0xf]  ;;  %12304 = vmatpush3.msra.mxu1 %v10940_v62 }
 0x456   : > { %v12004_v56 = vpop.f32.mrf.mxu1  ;;  %12377 = vmatprep.subr.msk.mxu0 %vm7243_vm7, %v11004_v35 }
 0x457   : > { %v15059_v54 = vadd.f32 %v12004_v56, %v14830_v61  ;;  %v15077_v56 = vpop.f32.mrf.mxu0 }
 0x458   : > { %v15067_v58 = vpop.f32.mrf.mxu1 }
 0x459   : > { %16700 = vst [vmem:[#allocation57_spill] sm:$0xff] %v15059_v54  ;;  %16701 = vst [vmem:[#allocation58_spill] sm:$0xff] %v15067_v58  ;;  %v15084_v58 = vpop.f32.mrf.mxu0 }
 0x45a   : > { %v12007_v41 = vpop.f32.mrf.mxu1 }
 0x45b   : > { %v15073_v61 = vadd.f32 %v12007_v41, %v14838_v39  ;;  %v15091_v39 = vpop.f32.mrf.mxu0 }
 0x45c   : > { %v15075_v21 = vpop.f32.mrf.mxu1 }
 0x45d   : > { %16703 = vst [vmem:[#allocation60_spill] sm:$0xff] %v15073_v61  ;;  %16704 = vst [vmem:[#allocation61_spill] sm:$0xff] %v15075_v21  ;;  %v5135_v61 = vadd.f32 %v14884_v15, %v14653_v22  ;;  %v5694_v15 = vadd.f32 %v14893_v10, %v14889_v28  ;;  %v5141_v28 = vadd.f32 %v14905_v25, %v14683_v3 }
 0x45e   : > { %v12010_v54 = vpop.f32.mrf.mxu1 }
 0x45f   : > { %v15080_v13 = vadd.f32 %v12010_v54, %v14846_v57  ;;  %v15100_v54 = vpop.f32.mrf.mxu0  ;;  %v5697_v25 = vadd.f32 %v14928_v27, %v5141_v28 }
 0x460   : > { %v15082_v16 = vpop.f32.mrf.mxu1 }
 0x461   : > { %16705 = vst [vmem:[#allocation62_spill] sm:$0xff] %v15080_v13  ;;  %16706 = vst [vmem:[#allocation63_spill] sm:$0xff] %v15082_v16  ;;  %v5692_v13 = vadd.f32 %v14879_v29, %v14882_v46  ;;  %v15107_v22 = vpop.f32.mrf.mxu0  ;;  %v5139_v29 = vadd.f32 %v14898_v5, %v14673_v1 }
 0x462   : > { %v12013_v35 = vpop.f32.mrf.mxu1 }
 0x463   : > { %v15087_v6 = vadd.f32 %v12013_v35, %v14866_v36  ;;  %v5137_v35 = vadd.f32 %v14891_v7, %v14663_v34  ;;  %v5695_v1 = vadd.f32 %v14914_v17, %v5139_v29  ;;  %v2414_v29 = vadd.s32 8, %v13839_v45 }
 0x464   : > { %v15089_v62 = vpop.f32.mrf.mxu1 }
 0x465   : > { %16707 = vst [vmem:[#allocation64_spill] sm:$0xff] %v15087_v6  ;;  %16708 = vst [vmem:[#allocation65_spill] sm:$0xff] %v15089_v62  ;;  %v5691_v62 = vadd.f32 %v14886_v43, %v5135_v61  ;;  %v5693_v34 = vadd.f32 %v14900_v40, %v5137_v35  ;;  %v15116_v43 = vpop.f32.mrf.mxu0  ;;  %vm6505_vm9 = vcmp.lt.s32.totalorder %v2414_v29, 15 }
 0x466   : > { %v12016_v41 = vpop.f32.mrf.mxu1 }
 0x467   : > { %v15096_v21 = vadd.f32 %v12016_v41, %v14875_v30  ;;  %v15125_v40 = vpop.f32.mrf.mxu0 }
 0x468   : > { %v15098_v57 = vpop.f32.mrf.mxu1 }
 0x469   : > { %v15134_v17 = vpop.f32.mrf.mxu0 }
 0x46a   : > { %v12131_v36 = vpop.f32.mrf.mxu1 }
 0x46b   : > { %v6248_v6 = vadd.f32 %v12131_v36, %v5692_v13 }
 0x46c   : > { %v6008_v16 = vpop.f32.mrf.mxu1 }
 0x46d   : > { %6297 = vst.msk [vmem:[#allocation6 + $0x8] sm:$0xff] %vm6295_vm1, %v6248_v6  ;;  %v6247_v30 = vadd.f32 %v6008_v16, %v5691_v62  ;;  %v5696_v16 = vadd.f32 %v14907_v55, %v14896_v2  ;;  %v5698_v62 = vadd.f32 %v14921_v47, %v14903_v20  ;;  %v5143_v2 = vadd.f32 %v14912_v18, %v14693_v38 }
 0x46e   : > { %v12134_v41 = vpop.f32.mrf.mxu1  ;;  %v5145_v18 = vadd.f32 %v14919_v31, %v14703_v0 }
 0x46f   : > { %6296 = vst.msk [vmem:[#allocation6] sm:$0xff] %vm6295_vm1, %v6247_v30  ;;  %v6250_v46 = vadd.f32 %v12134_v41, %v5694_v15  ;;  %v5700_v30 = vadd.f32 %v14935_v49, %v14910_v24  ;;  %v5699_v27 = vadd.f32 %v14942_v26, %v5143_v2  ;;  %v5702_v49 = vadd.f32 %v14949_v60, %v14917_v19 }
 0x470   : > { %v6018_v7 = vpop.f32.mrf.mxu1 }
 0x471   : > { %6299 = vst.msk [vmem:[#allocation6 + $0x18] sm:$0xff] %vm6295_vm1, %v6250_v46  ;;  %v6249_v13 = vadd.f32 %v6018_v7, %v5693_v34  ;;  %v15144_v7 = vpop.f32.mrf.mxu0 }
 0x472   : > { %v12137_v6 = vpop.f32.mrf.mxu1 }
 0x473   : > { %6298 = vst.msk [vmem:[#allocation6 + $0x10] sm:$0xff] %vm6295_vm1, %v6249_v13  ;;  %v6252_v5 = vadd.f32 %v12137_v6, %v5696_v16  ;;  %v5147_v6 = vadd.f32 %v14926_v44, %v14713_v9  ;;  %v5704_v9 = vadd.f32 %v14963_v51, %v14924_v37  ;;  %v5149_v44 = vadd.f32 %v14933_v42, %v14723_v12 }
 0x474   : > { %v6028_v10 = vpop.f32.mrf.mxu1  ;;  %v5706_v42 = vadd.f32 %v14989_v23, %v14931_v32 }
 0x475   : > { %6301 = vst.msk [vmem:[#allocation6 + $0x28] sm:$0xff] %vm6295_vm1, %v6252_v5  ;;  %v6251_v61 = vadd.f32 %v6028_v10, %v5695_v1  ;;  %v5701_v5 = vadd.f32 %v14956_v48, %v5145_v18 }
 0x476   : > { %v12140_v36 = vpop.f32.mrf.mxu1 }
 0x477   : > { %6300 = vst.msk [vmem:[#allocation6 + $0x20] sm:$0xff] %vm6295_vm1, %v6251_v61  ;;  %v6254_v3 = vadd.f32 %v12140_v36, %v5698_v62  ;;  %v15154_v61 = vpop.f32.mrf.mxu0 }
 0x478   : > { %v6038_v55 = vpop.f32.mrf.mxu1 }
 0x479   : > { %6303 = vst.msk [vmem:[#allocation6 + $0x38] sm:$0xff] %vm6295_vm1, %v6254_v3  ;;  %v6253_v35 = vadd.f32 %v6038_v55, %v5697_v25  ;;  %v5703_v3 = vadd.f32 %v14976_v63, %v5147_v6  ;;  %v15166_v37 = vpop.f32.mrf.mxu0 }
 0x47a   : > { %v6344_v15 = vld [vmem:[#allocation6] ss:$3 sm:$0xff]  ;;  %v6376_v20 = vld [vmem:[#allocation6 + $0x1] ss:$3 sm:$0xff]  ;;  %v12143_v47 = vpop.f32.mrf.mxu1  ;;  %v6424_v46 = vld [vmem:[#allocation6 + $0x2] ss:$3 sm:$0xff] }
 0x47b   : > { %v6407_v38 = vmax.f32 %v6344_v15, %v6376_v20  ;;  %6302 = vst.msk [vmem:[#allocation6 + $0x30] sm:$0xff] %vm6295_vm1, %v6253_v35  ;;  %v6256_v41 = vadd.f32 %v12143_v47, %v5700_v30  ;;  %v5151_v15 = vadd.f32 %v14940_v59, %v14733_v33  ;;  %v5708_v59 = vadd.f32 %v15013_v50, %v14938_v53  ;;  %v15179_v33 = vpop.f32.mrf.mxu0 }
 0x47c   : > { %v6048_v34 = vpop.f32.mrf.mxu1 }
 0x47d   : > { %v6455_v13 = vmax.f32 %v6407_v38, %v6424_v46  ;;  %6305 = vst.msk [vmem:[#allocation6 + $0x48] sm:$0xff] %vm6295_vm1, %v6256_v41  ;;  %v6255_v24 = vadd.f32 %v6048_v34, %v5699_v27  ;;  %v5705_v41 = vadd.f32 %v14999_v8, %v5149_v44  ;;  %v16709_v8 = vld [vmem:[#allocation23_spill] sm:$0xff]  ;;  %v15189_v44 = vpop.f32.mrf.mxu0 }
 0x47e   : > { %v6346_v31 = vld [vmem:[#allocation6 + $0x18] ss:$3 sm:$0xff]  ;;  %v6378_v0 = vld [vmem:[#allocation6 + $0x19] ss:$3 sm:$0xff]  ;;  %v12146_v16 = vpop.f32.mrf.mxu1  ;;  %v6426_v1 = vld [vmem:[#allocation6 + $0x1a] ss:$3 sm:$0xff] }
 0x47f   : > { %6471 = vst.msk [vmem:[#allocation3] sm:$0xff] %vm6295_vm1, %v6455_v13  ;;  %v6408_v26 = vmax.f32 %v6346_v31, %v6378_v0  ;;  %6304 = vst.msk [vmem:[#allocation6 + $0x40] sm:$0xff] %vm6295_vm1, %v6255_v24  ;;  %v6258_v28 = vadd.f32 %v12146_v16, %v5702_v49  ;;  %v6610_v62 = vmul.f32 %v6455_v13, %v6455_v13  ;;  %v6569_v25 = vsel %vm6295_vm1, %v6455_v13, 0.0 }
 0x480   : > { %v6058_v10 = vpop.f32.mrf.mxu1  ;;  %v5153_v0 = vadd.f32 %v14947_v52, %v16709_v8 }
 0x481   : > { %v6456_v19 = vmax.f32 %v6408_v26, %v6426_v1  ;;  %6307 = vst.msk [vmem:[#allocation6 + $0x58] sm:$0xff] %vm6295_vm1, %v6258_v28  ;;  %v6257_v60 = vadd.f32 %v6058_v10, %v5701_v5  ;;  %v6626_v63 = vsel %vm6295_vm1, %v6610_v62, 0.0  ;;  %v5707_v28 = vadd.f32 %v15027_v4, %v5151_v15 }
 0x482   : > { %v12149_v36 = vpop.f32.mrf.mxu1 }
 0x483   : > { %6472 = vst.msk [vmem:[#allocation3 + $0x8] sm:$0xff] %vm6295_vm1, %v6456_v19  ;;  %v6553_v48 = vsel %vm6505_vm9, %v6456_v19, 0.0  ;;  %6306 = vst.msk [vmem:[#allocation6 + $0x50] sm:$0xff] %vm6295_vm1, %v6257_v60  ;;  %v6260_v2 = vadd.f32 %v12149_v36, %v5704_v9  ;;  %v16710_v60 = vld [vmem:[#allocation38_spill] sm:$0xff] }
 0x484   : > { %v6570_v55 = vsel %vm6295_vm1, %v6553_v48, 0.0  ;;  %v6611_v35 = vmul.f32 %v6553_v48, %v6553_v48  ;;  %v6068_v30 = vpop.f32.mrf.mxu1  ;;  %v5710_v9 = vadd.f32 %v15040_v11, %v16710_v60  ;;  %v16711_v48 = vld [vmem:[#allocation24_spill] sm:$0xff] }
 0x485   : > { %v6571_v51 = vadd.f32 %v6570_v55, %v6569_v25  ;;  %6309 = vst.msk [vmem:[#allocation6 + $0x68] sm:$0xff] %vm6295_vm1, %v6260_v2  ;;  %v6259_v12 = vadd.f32 %v6068_v30, %v5703_v3  ;;  %v5155_v2 = vadd.f32 %v14954_v14, %v16711_v48  ;;  %v15194_v25 = vpop.f32.mrf.mxu0  ;;  %v16712_v30 = vld [vmem:[#allocation56_spill] sm:$0xff]  ;;  %v16713_v14 = vld [vmem:[#allocation39_spill] sm:$0xff] }
 0x486   : > { %v6627_v20 = vsel %vm6295_vm1, %v6611_v35, 0.0  ;;  %v6348_v47 = vld [vmem:[#allocation6 + $0x30] ss:$3 sm:$0xff]  ;;  %v6380_v18 = vld [vmem:[#allocation6 + $0x31] ss:$3 sm:$0xff]  ;;  %v12152_v38 = vpop.f32.mrf.mxu1 }
 0x487   : > { %v6600_v27 = vrot.slane %v6571_v51, 4  ;;  %v6628_v29 = vadd.f32 %v6627_v20, %v6626_v63  ;;  %v6409_v46 = vmax.f32 %v6348_v47, %v6380_v18  ;;  %6308 = vst.msk [vmem:[#allocation6 + $0x60] sm:$0xff] %vm6295_vm1, %v6259_v12  ;;  %v6262_v34 = vadd.f32 %v12152_v38, %v5706_v42  ;;  %v6428_v13 = vld [vmem:[#allocation6 + $0x32] ss:$3 sm:$0xff]  ;;  %v6568_v12 = vld [vmem:[#allocation9] sm:$0x1] }
 0x488   : > { %v6078_v32 = vpop.f32.mrf.mxu1  ;;  %v16714_v47 = vld [vmem:[#allocation59_spill] sm:$0xff]  ;;  %v16715_v38 = vld [vmem:[#allocation25_spill] sm:$0xff] }
 0x489   : > { %v6601_v23 = vadd.f32 %v6600_v27, %v6571_v51  ;;  %v6657_v24 = vrot.slane %v6628_v29, 4  ;;  %v6457_v49 = vmax.f32 %v6409_v46, %v6428_v13  ;;  %6311 = vst.msk [vmem:[#allocation6 + $0x78] sm:$0xff] %vm6295_vm1, %v6262_v34  ;;  %v6261_v31 = vadd.f32 %v6078_v32, %v5705_v41  ;;  %v16716_v41 = vld [vmem:[#allocation41_spill] sm:$0xff] }
 0x48a   : > { %v6350_v16 = vld [vmem:[#allocation6 + $0x48] ss:$3 sm:$0xff]  ;;  %v6382_v6 = vld [vmem:[#allocation6 + $0x49] ss:$3 sm:$0xff]  ;;  %v12155_v26 = vpop.f32.mrf.mxu1  ;;  %v6430_v10 = vld [vmem:[#allocation6 + $0x4a] ss:$3 sm:$0xff]  ;;  %v5709_v51 = vadd.f32 %v16712_v30, %v5153_v0  ;;  %v5712_v18 = vadd.f32 %v16714_v47, %v16713_v14  ;;  %v5157_v27 = vadd.f32 %v16716_v41, %v16715_v38  ;;  %v5711_v32 = vadd.f32 %v15077_v56, %v5155_v2 }
 0x48b   : > { %v6602_v5 = vrot.slane %v6601_v23, 2  ;;  %v6658_v1 = vadd.f32 %v6657_v24, %v6628_v29  ;;  %6473 = vst.msk [vmem:[#allocation3 + $0x10] sm:$0xff] %vm6295_vm1, %v6457_v49  ;;  %v6410_v53 = vmax.f32 %v6350_v16, %v6382_v6  ;;  %6310 = vst.msk [vmem:[#allocation6 + $0x70] sm:$0xff] %vm6295_vm1, %v6261_v31  ;;  %v6264_v50 = vadd.f32 %v12155_v26, %v5708_v59  ;;  %v6609_v29 = vld [vmem:[#allocation10] sm:$0x1]  ;;  %v15205_v59 = vpop.f32.mrf.mxu0  ;;  %v16725_v38 = vld [vmem:[#allocation47_spill] sm:$0xff] }
 0x48c   : > { %v6088_v19 = vpop.f32.mrf.mxu1  ;;  %v16717_v56 = vld [vmem:[#allocation40_spill] sm:$0xff] }
 0x48d   : > { %v6603_v52 = vadd.f32 %v6602_v5, %v6601_v23  ;;  %v6659_v62 = vrot.slane %v6658_v1, 2  ;;  %v6458_v36 = vmax.f32 %v6410_v53, %v6430_v10  ;;  %6313 = vst.msk [vmem:[#allocation6 + $0x88] sm:$0xff] %vm6295_vm1, %v6264_v50  ;;  %v6263_v4 = vadd.f32 %v6088_v19, %v5707_v28  ;;  %v15208_v16 = vpop.f32.mrf.mxu0  ;;  %v16718_v10 = vld [vmem:[#allocation26_spill] sm:$0xff]  ;;  %v16719_v19 = vld [vmem:[#allocation43_spill] sm:$0xff]  ;;  %v16723_v14 = vld [vmem:[#allocation44_spill] sm:$0xff] }
 0x48e   : > { %v12158_v3 = vpop.f32.mrf.mxu1  ;;  %v5714_v5 = vadd.f32 %v15084_v58, %v16717_v56  ;;  %v5159_v60 = vadd.f32 %v16719_v19, %v16718_v10  ;;  %v5718_v47 = vadd.f32 %v15116_v43, %v16723_v14  ;;  %v15253_v56 = vld [vmem:[%s16635_s5] ss:$0 sm:$0xff]  ;;  %v16733_v14 = vld [vmem:[#allocation51_spill] sm:$0xff] }
 0x48f   : > { %v6604_v55 = vrot.slane %v6603_v52, 1  ;;  %v6660_v35 = vadd.f32 %v6659_v62, %v6658_v1  ;;  %6474 = vst.msk [vmem:[#allocation3 + $0x18] sm:$0xff] %vm6295_vm1, %v6458_v36  ;;  %6312 = vst.msk [vmem:[#allocation6 + $0x80] sm:$0xff] %vm6295_vm1, %v6263_v4  ;;  %v6266_v11 = vadd.f32 %v12158_v3, %v5710_v9  ;;  %v5713_v62 = vadd.f32 %v15091_v39, %v5157_v27  ;;  %v15220_v48 = vpop.f32.mrf.mxu0  ;;  %v16720_v3 = vld [vmem:[#allocation42_spill] sm:$0xff] }
 0x490   : > { %v6098_v42 = vpop.f32.mrf.mxu1 }
 0x491   : > { %v6605_v15 = vadd.f32 %v6604_v55, %v6603_v52  ;;  %v6661_v63 = vrot.slane %v6660_v35, 1  ;;  %6315 = vst.msk [vmem:[#allocation6 + $0x98] sm:$0xff] %vm6295_vm1, %v6266_v11  ;;  %v6265_v20 = vadd.f32 %v6098_v42, %v5709_v51  ;;  %v5716_v55 = vadd.f32 %v15100_v54, %v16720_v3  ;;  %v16722_v11 = vld [vmem:[#allocation45_spill] sm:$0xff] }
 0x492   : > { %v6352_v46 = vld [vmem:[#allocation6 + $0x60] ss:$3 sm:$0xff]  ;;  %v6384_v34 = vld [vmem:[#allocation6 + $0x61] ss:$3 sm:$0xff]  ;;  %v12161_v13 = vpop.f32.mrf.mxu1  ;;  %v6432_v8 = vld [vmem:[#allocation6 + $0x62] ss:$3 sm:$0xff]  ;;  %v5715_v42 = vadd.f32 %v15107_v22, %v5159_v60 }
 0x493   : > { %v6606_v23 = vadd.f32 %v6605_v15, %v6568_v12  ;;  %v6662_v24 = vadd.f32 %v6661_v63, %v6660_v35  ;;  %v6411_v49 = vmax.f32 %v6352_v46, %v6384_v34  ;;  %6314 = vst.msk [vmem:[#allocation6 + $0x90] sm:$0xff] %vm6295_vm1, %v6265_v20  ;;  %v6268_v31 = vadd.f32 %v12161_v13, %v5712_v18  ;;  %v16721_v35 = vld [vmem:[#allocation27_spill] sm:$0xff]  ;;  %v15227_v12 = vpop.f32.mrf.mxu0  ;;  %v16724_v18 = vld [vmem:[#allocation28_spill] sm:$0xff]  ;;  %v16728_v60 = vld [vmem:[#allocation29_spill] sm:$0xff] }
 0x494   : > { %v6108_v0 = vpop.f32.mrf.mxu1  ;;  %v5161_v30 = vadd.f32 %v16722_v11, %v16721_v35  ;;  %v5163_v41 = vadd.f32 %v16725_v38, %v16724_v18 }
 0x495   : > { %6608 = vst.msk [vmem:[#allocation9] sm:$0x1] %vm447_vm8, %v6606_v23  ;;  %v6663_v6 = vadd.f32 %v6662_v24, %v6609_v29  ;;  %v6459_v26 = vmax.f32 %v6411_v49, %v6432_v8  ;;  %v6267_v28 = vadd.f32 %v6108_v0, %v5711_v32  ;;  %v15240_v22 = vpop.f32.mrf.mxu0 }
 0x496   : > { %6317 = vst.msk [vmem:[#allocation6 + $0xa8] sm:$0xff] %vm6295_vm1, %v6268_v31  ;;  %v6354_v1 = vld [vmem:[#allocation6 + $0x78] ss:$3 sm:$0xff]  ;;  %v6386_v53 = vld [vmem:[#allocation6 + $0x79] ss:$3 sm:$0xff]  ;;  %v12164_v50 = vpop.f32.mrf.mxu1  ;;  %v5717_v13 = vadd.f32 %v15125_v40, %v5161_v30  ;;  %v5719_v19 = vadd.f32 %v15144_v7, %v5163_v41 }
 0x497   : > { %6664 = vst.msk [vmem:[#allocation10] sm:$0x1] %vm447_vm8, %v6663_v6  ;;  %v6412_v9 = vmax.f32 %v6354_v1, %v6386_v53  ;;  %v6270_v52 = vadd.f32 %v12164_v50, %v5714_v5  ;;  %v6434_v36 = vld [vmem:[#allocation6 + $0x7a] ss:$3 sm:$0xff]  ;;  %v15245_v8 = vpop.f32.mrf.mxu0 }
 0x498   : > { %6475 = vst.msk [vmem:[#allocation3 + $0x20] sm:$0xff] %vm6295_vm1, %v6459_v26  ;;  %6316 = vst.msk [vmem:[#allocation6 + $0xa0] sm:$0xff] %vm6295_vm1, %v6267_v28  ;;  %v6118_v4 = vpop.f32.mrf.mxu1  ;;  %v16726_v40 = vld [vmem:[#allocation46_spill] sm:$0xff]  ;;  %v16727_v5 = vld [vmem:[#allocation13_spill] sm:$0xff] }
 0x499   : > { %v6460_v58 = vmax.f32 %v6412_v9, %v6434_v36  ;;  %6319 = vst.msk [vmem:[#allocation6 + $0xb8] sm:$0xff] %vm6295_vm1, %v6270_v52  ;;  %v6269_v2 = vadd.f32 %v6118_v4, %v5713_v62  ;;  %v5720_v28 = vadd.f32 %v15134_v17, %v16726_v40  ;;  %v4055_v1 = vadd.f32 %v15253_v56, %v16727_v5  ;;  %v16729_v9 = vld [vmem:[#allocation49_spill] sm:$0xff]  ;;  %v15265_v4 = vld [vmem:[%s16638_s8 + $0xf8] sm:$0xf]  ;;  %v15270_v7 = vpop.f32.mrf.mxu0  ;;  %v16738_v40 = vld [vmem:[#allocation18_spill] sm:$0xff] }
 0x49a   : > { %v12167_v51 = vpop.f32.mrf.mxu1  ;;  %v5165_v52 = vadd.f32 %v16729_v9, %v16728_v60  ;;  %12465 = vmatprep.subr.msk.mxu1 %vm7243_vm7, %v15265_v4  ;;  %v16740_v60 = vld [vmem:[#allocation52_spill] sm:$0xff] }
 0x49b   : > { %6476 = vst.msk [vmem:[#allocation3 + $0x28] sm:$0xff] %vm6295_vm1, %v6460_v58  ;;  %6318 = vst.msk [vmem:[#allocation6 + $0xb0] sm:$0xff] %vm6295_vm1, %v6269_v2  ;;  %v6272_v39 = vadd.f32 %v12167_v51, %v5716_v55  ;;  %v16730_v58 = vld [vmem:[#allocation30_spill] sm:$0xff]  ;;  %v16731_v51 = vld [vmem:[#allocation48_spill] sm:$0xff]  ;;  %v5726_v9 = vadd.f32 %v15194_v25, %v16740_v60 }
 0x49c   : > { %v6665_v15 = vld [vmem:[#allocation9] sm:$0x1]  ;;  %v6128_v63 = vpop.f32.mrf.mxu1  ;;  %v4611_v2 = vadd.f32 %v16730_v58, %v4055_v1  ;;  %v5721_v38 = vadd.f32 %v15166_v37, %v5165_v52  ;;  %v16741_v52 = vld [vmem:[#allocation19_spill] sm:$0xff] }
 0x49d   : > { %v15232_v20 = vmul.f32 0.06666667, %v6665_v15  ;;  %6321 = vst.msk [vmem:[#allocation6 + $0xc8] sm:$0xff] %vm6295_vm1, %v6272_v39  ;;  %v6271_v54 = vadd.f32 %v6128_v63, %v5715_v42  ;;  %v5722_v39 = vadd.f32 %v15154_v61, %v16731_v51  ;;  %v16732_v42 = vld [vmem:[#allocation14_spill] sm:$0xff] }
 0x49e   : > { %v6668_v27 = vld [vmem:[#allocation10] sm:$0x1]  ;;  %v12170_v34 = vpop.f32.mrf.mxu1  ;;  %v4057_v15 = vadd.f32 %v15253_v56, %v16732_v42 }
 0x49f   : > { %v6356_v29 = vld [vmem:[#allocation6 + $0x90] ss:$3 sm:$0xff]  ;;  %v6388_v46 = vld [vmem:[#allocation6 + $0x91] ss:$3 sm:$0xff]  ;;  %v6669_v32 = vmul.f32 0.06666667, %v6668_v27  ;;  %v6670_v23 = vmul.f32 %v15232_v20, %v15232_v20  ;;  %v6274_v49 = vadd.f32 %v12170_v34, %v5718_v47  ;;  %v5167_v47 = vadd.f32 %v16733_v14, %v4611_v2 }
 0x4a0   : > { %v6413_v24 = vmax.f32 %v6356_v29, %v6388_v46  ;;  %6320 = vst.msk [vmem:[#allocation6 + $0xc0] sm:$0xff] %vm6295_vm1, %v6271_v54  ;;  %v6436_v43 = vld [vmem:[#allocation6 + $0x92] ss:$3 sm:$0xff]  ;;  %v6138_v31 = vpop.f32.mrf.mxu1  ;;  %v15277_v54 = vpop.f32.mrf.mxu0 }
 0x4a1   : > { %v6671_v0 = vsub.f32 %v6669_v32, %v6670_v23  ;;  %6323 = vst.msk [vmem:[#allocation6 + $0xd8] sm:$0xff] %vm6295_vm1, %v6274_v49  ;;  %v6273_v26 = vadd.f32 %v6138_v31, %v5717_v13  ;;  %v16734_v27 = vld [vmem:[#allocation31_spill] sm:$0xff]  ;;  %v16735_v46 = vld [vmem:[#allocation50_spill] sm:$0xff]  ;;  %v16737_v31 = vld [vmem:[#allocation53_spill] sm:$0xff] }
 0x4a2   : > { %v6461_v6 = vmax.f32 %v6413_v24, %v6436_v43  ;;  %v6358_v53 = vld [vmem:[#allocation6 + $0xa8] ss:$3 sm:$0xff]  ;;  %v6390_v50 = vld [vmem:[#allocation6 + $0xa9] ss:$3 sm:$0xff]  ;;  %v12173_v10 = vpop.f32.mrf.mxu1  ;;  %v6438_v3 = vld [vmem:[#allocation6 + $0xaa] ss:$3 sm:$0xff]  ;;  %v4613_v29 = vadd.f32 %v16734_v27, %v4057_v15  ;;  %v5724_v34 = vadd.f32 %v15179_v33, %v16735_v46  ;;  %v15289_v43 = vpop.f32.mrf.mxu0 }
 0x4a3   : > { %v6672_v62 = vmax.f32 %v6671_v0, 0.0  ;;  %v6414_v17 = vmax.f32 %v6358_v53, %v6390_v50  ;;  %6322 = vst.msk [vmem:[#allocation6 + $0xd0] sm:$0xff] %vm6295_vm1, %v6273_v26  ;;  %v6276_v36 = vadd.f32 %v12173_v10, %v5720_v28  ;;  %v16736_v13 = vld [vmem:[#allocation15_spill] sm:$0xff]  ;;  %v5723_v26 = vadd.f32 %v15189_v44, %v5167_v47  ;;  %v16739_v53 = vld [vmem:[#allocation32_spill] sm:$0xff]  ;;  %v16746_v15 = vld [vmem:[#allocation22_spill] sm:$0xff] }
 0x4a4   : > { %6477 = vst.msk [vmem:[#allocation3 + $0x30] sm:$0xff] %vm6295_vm1, %v6461_v6  ;;  %v6148_v55 = vpop.f32.mrf.mxu1  ;;  %v4059_v32 = vadd.f32 %v15253_v56, %v16736_v13  ;;  %v5169_v0 = vadd.f32 %v16737_v31, %v4613_v29  ;;  %v4061_v28 = vadd.f32 %v15253_v56, %v16738_v40  ;;  %v15296_v1 = vpop.f32.mrf.mxu0  ;;  %v16742_v44 = vld [vmem:[#allocation20_spill] sm:$0xff]  ;;  %v16747_v14 = vld [vmem:[#allocation34_spill] sm:$0xff]  ;;  %v16753_v31 = vld [vmem:[#allocation61_spill] sm:$0xff] }
 0x4a5   : > { %v6673_v35 = vadd.f32 1e-05, %v6672_v62  ;;  %v6462_v11 = vmax.f32 %v6414_v17, %v6438_v3  ;;  %6325 = vst.msk [vmem:[#allocation6 + $0xe8] sm:$0xff] %vm6295_vm1, %v6276_v36  ;;  %v6275_v30 = vadd.f32 %v6148_v55, %v5719_v19  ;;  %v4063_v62 = vadd.f32 %v15253_v56, %v16741_v52  ;;  %v16743_v36 = vld [vmem:[#allocation33_spill] sm:$0xff] }
 0x4a6   : > { %v12176_v63 = vpop.f32.mrf.mxu1  ;;  %v4615_v50 = vadd.f32 %v16739_v53, %v4059_v32  ;;  %v4065_v17 = vadd.f32 %v15253_v56, %v16742_v44  ;;  %v4617_v58 = vadd.f32 %v16743_v36, %v4061_v28  ;;  %v5725_v25 = vadd.f32 %v15205_v59, %v5169_v0  ;;  %v5672_v29 = vpop.f32.mrf.mxu0  ;;  %v16750_v59 = vld [vmem:[#allocation54_spill] sm:$0xff]  ;;  %v16755_v53 = vld [vmem:[#allocation65_spill] sm:$0xff] }
 0x4a7   : > { %12733 = vrsqrt.f32 %v6673_v35  ;;  %6478 = vst.msk [vmem:[#allocation3 + $0x38] sm:$0xff] %vm6295_vm1, %v6462_v11  ;;  %6324 = vst.msk [vmem:[#allocation6 + $0xe0] sm:$0xff] %vm6295_vm1, %v6275_v30  ;;  %v6278_v18 = vadd.f32 %v12176_v63, %v5722_v39  ;;  %v16744_v35 = vld [vmem:[#allocation55_spill] sm:$0xff]  ;;  %v16745_v39 = vld [vmem:[#allocation21_spill] sm:$0xff]  ;;  %v4069_v63 = vadd.f32 %v15253_v56, %v16746_v15  ;;  %v4619_v47 = vadd.f32 %v16747_v14, %v4063_v62 }
 0x4a8   : > { %v6158_v41 = vpop.f32.mrf.mxu1  ;;  %v5171_v11 = vadd.f32 %v16744_v35, %v4615_v50  ;;  %v4067_v42 = vadd.f32 %v15253_v56, %v16745_v39  ;;  %v5728_v32 = vadd.f32 %v15208_v16, %v16750_v59  ;;  %v12108_v28 = vpop.f32.mrf.mxu0  ;;  %v16756_v52 = vld [vmem:[#allocation57_spill] sm:$0xff]  ;;  %v6681_v14 = vld [vmem:[#allocation3 + $0x8] sm:$0xff] }
 0x4a9   : > { %6327 = vst.msk [vmem:[#allocation6 + $0xf8] sm:$0xff] %vm6295_vm1, %v6278_v18  ;;  %v6277_v61 = vadd.f32 %v6158_v41, %v5721_v38  ;;  %v16748_v18 = vld [vmem:[#allocation35_spill] sm:$0xff]  ;;  %v5175_v0 = vadd.f32 %v16753_v31, %v4619_v47  ;;  %v5730_v62 = vadd.f32 %v15227_v12, %v16756_v52 }
 0x4aa   : > { %v6360_v23 = vld [vmem:[#allocation6 + $0xc0] ss:$3 sm:$0xff]  ;;  %v6392_v24 = vld [vmem:[#allocation6 + $0xc1] ss:$3 sm:$0xff]  ;;  %v12179_v49 = vpop.f32.mrf.mxu1  ;;  %v6440_v33 = vld [vmem:[#allocation6 + $0xc2] ss:$3 sm:$0xff]  ;;  %v4621_v38 = vadd.f32 %v16748_v18, %v4065_v17  ;;  %v5727_v16 = vadd.f32 %v15220_v48, %v5171_v11  ;;  %v5682_v12 = vpop.f32.mrf.mxu0 }
 0x4ab   : > { %v6415_v37 = vmax.f32 %v6360_v23, %v6392_v24  ;;  %6326 = vst.msk [vmem:[#allocation6 + $0xf0] sm:$0xff] %vm6295_vm1, %v6277_v61  ;;  %v6280_v6 = vadd.f32 %v12179_v49, %v5724_v34  ;;  %v16749_v61 = vld [vmem:[#allocation58_spill] sm:$0xff]  ;;  %v16751_v23 = vld [vmem:[#allocation36_spill] sm:$0xff]  ;;  %v16752_v49 = vld [vmem:[#allocation37_spill] sm:$0xff] }
 0x4ac   : > { %v6168_v5 = vpop.f32.mrf.mxu1  ;;  %v5173_v46 = vadd.f32 %v16749_v61, %v4617_v58  ;;  %v4623_v24 = vadd.f32 %v16751_v23, %v4067_v42  ;;  %v4625_v56 = vadd.f32 %v16752_v49, %v4069_v63  ;;  %v6677_v17 = vld [vmem:[%s16637_s7] sm:$0x1]  ;;  %v6682_v47 = vld [vmem:[#allocation3 + $0x10] sm:$0xff]  ;;  %v6683_v61 = vld [vmem:[#allocation3 + $0x18] sm:$0xff] }
 0x4ad   : > { %v6463_v10 = vmax.f32 %v6415_v37, %v6440_v33  ;;  %6329 = vst.msk [vmem:[#allocation6 + $0x108] sm:$0xff] %vm6295_vm1, %v6280_v6  ;;  %v6279_v19 = vadd.f32 %v6168_v5, %v5723_v26  ;;  %v16754_v37 = vld [vmem:[#allocation63_spill] sm:$0xff]  ;;  %v6675_v26 = vld [vmem:[%s16636_s6] sm:$0x1] }
 0x4ae   : > { %v6362_v2 = vld [vmem:[#allocation6 + $0xd8] ss:$3 sm:$0xff]  ;;  %v6394_v3 = vld [vmem:[#allocation6 + $0xd9] ss:$3 sm:$0xff]  ;;  %v12182_v55 = vpop.f32.mrf.mxu1  ;;  %v6442_v41 = vld [vmem:[#allocation6 + $0xda] ss:$3 sm:$0xff]  ;;  %v5177_v6 = vadd.f32 %v16754_v37, %v4621_v38  ;;  %v5179_v50 = vadd.f32 %v16755_v53, %v4623_v24  ;;  %v5729_v44 = vadd.f32 %v15240_v22, %v5173_v46 }
 0x4af   : > { %6479 = vst.msk [vmem:[#allocation3 + $0x40] sm:$0xff] %vm6295_vm1, %v6463_v10  ;;  %v6416_v30 = vmax.f32 %v6362_v2, %v6394_v3  ;;  %6328 = vst.msk [vmem:[#allocation6 + $0x100] sm:$0xff] %vm6295_vm1, %v6279_v19  ;;  %v6282_v51 = vadd.f32 %v12182_v55, %v5726_v9  ;;  %v5181_v10 = vadd.f32 %v15098_v57, %v4625_v56  ;;  %v16757_v2 = vld [vmem:[#allocation60_spill] sm:$0xff]  ;;  %v16758_v55 = vld [vmem:[#allocation62_spill] sm:$0xff] }
 0x4b0   : > { %v6178_v27 = vpop.f32.mrf.mxu1  ;;  %v5732_v57 = vadd.f32 %v15245_v8, %v16757_v2  ;;  %v5731_v3 = vadd.f32 %v15270_v7, %v5175_v0  ;;  %v5734_v35 = vadd.f32 %v15277_v54, %v16758_v55  ;;  %v15346_v11 = vadd.f32 %v15289_v43, %v5177_v6  ;;  %v6680_v42 = vld [vmem:[#allocation3] sm:$0xff]  ;;  %v16760_v7 = vld [vmem:[#allocation64_spill] sm:$0xff] }
 0x4b1   : > { %v6464_v34 = vmax.f32 %v6416_v30, %v6442_v41  ;;  %6331 = vst.msk [vmem:[#allocation6 + $0x118] sm:$0xff] %vm6295_vm1, %v6282_v51  ;;  %v6281_v13 = vadd.f32 %v6178_v27, %v5725_v25  ;;  %v16759_v30 = vld [vmem:[#allocation17_spill] sm:$0xff]  ;;  %v15355_v63 = vadd.f32 %v15296_v1, %v16760_v7  ;;  %v15357_v54 = vadd.f32 %v5672_v29, %v5179_v50  ;;  %v6685_v1 = vld [vmem:[#allocation3 + $0x28] sm:$0xff]  ;;  %v6686_v24 = vld [vmem:[#allocation3 + $0x30] sm:$0xff] }
 0x4b2   : > { %v12185_v40 = vpop.f32.mrf.mxu1  ;;  %v15360_v43 = vadd.f32 %v12108_v28, %v15096_v21  ;;  %v6684_v46 = vld [vmem:[#allocation3 + $0x20] sm:$0xff]  ;;  %v6687_v37 = vld [vmem:[#allocation3 + $0x38] sm:$0xff] }
 0x4b3   : > { %6480 = vst.msk [vmem:[#allocation3 + $0x48] sm:$0xff] %vm6295_vm1, %v6464_v34  ;;  %6330 = vst.msk [vmem:[#allocation6 + $0x110] sm:$0xff] %vm6295_vm1, %v6281_v13  ;;  %v6284_v33 = vadd.f32 %v12185_v40, %v5728_v32 }
 0x4b4   : > { %v12734_v5 = vpop.eup %12733  ;;  %v6188_v19 = vpop.f32.mrf.mxu1 }
 0x4b5   : > { %v6676_v60 = vmul.f32 %v12734_v5, %v6675_v26  ;;  %6333 = vst.msk [vmem:[#allocation6 + $0x128] sm:$0xff] %vm6295_vm1, %v6284_v33  ;;  %v6283_v9 = vadd.f32 %v6188_v19, %v5727_v16 }
 0x4b6   : > { %v6364_v48 = vld [vmem:[#allocation6 + $0xf0] ss:$3 sm:$0xff]  ;;  %v6396_v36 = vld [vmem:[#allocation6 + $0xf1] ss:$3 sm:$0xff]  ;;  %v12188_v58 = vpop.f32.mrf.mxu1  ;;  %v6444_v8 = vld [vmem:[#allocation6 + $0xf2] ss:$3 sm:$0xff] }
 0x4b7   : > { %v6678_v22 = vmul.f32 %v6676_v60, %v15232_v20  ;;  %v15350_v51 = vrot.slane %v6676_v60, %v16759_v30  ;;  %v6417_v25 = vmax.f32 %v6364_v48, %v6396_v36  ;;  %6332 = vst.msk [vmem:[#allocation6 + $0x120] sm:$0xff] %vm6295_vm1, %v6283_v9  ;;  %v6286_v39 = vadd.f32 %v12188_v58, %v5730_v62  ;;  %v6688_v6 = vld [vmem:[#allocation3 + $0x40] sm:$0xff] }
 0x4b8   : > { %v6198_v15 = vpop.f32.mrf.mxu1  ;;  %v15362_v20 = vadd.f32 %v5682_v12, %v5181_v10 }
 0x4b9   : > { %v6679_v18 = vsub.f32 %v6677_v17, %v6678_v22  ;;  %v6465_v38 = vmax.f32 %v6417_v25, %v6444_v8  ;;  %6335 = vst.msk [vmem:[#allocation6 + $0x138] sm:$0xff] %vm6295_vm1, %v6286_v39  ;;  %v6285_v41 = vadd.f32 %v6198_v15, %v5729_v44  ;;  %v6735_v27 = vmul.f32 %v15350_v51, %v6680_v42 }
 0x4ba   : > { %v6366_v34 = vld [vmem:[#allocation6 + $0x108] ss:$3 sm:$0xff]  ;;  %v6398_v29 = vld [vmem:[#allocation6 + $0x109] ss:$3 sm:$0xff]  ;;  %v12191_v13 = vpop.f32.mrf.mxu1  ;;  %v6736_v21 = vmul.f32 %v15350_v51, %v6681_v14  ;;  %v6737_v59 = vmul.f32 %v15350_v51, %v6682_v47  ;;  %v6738_v32 = vmul.f32 %v15350_v51, %v6683_v61  ;;  %v6739_v23 = vmul.f32 %v15350_v51, %v6684_v46  ;;  %v6446_v40 = vld [vmem:[#allocation6 + $0x10a] ss:$3 sm:$0xff] }
 0x4bb   : > { %v15371_v49 = vrot.slane %v6679_v18, %v16759_v30  ;;  %6481 = vst.msk [vmem:[#allocation3 + $0x50] sm:$0xff] %vm6295_vm1, %v6465_v38  ;;  %v6418_v56 = vmax.f32 %v6366_v34, %v6398_v29  ;;  %6334 = vst.msk [vmem:[#allocation6 + $0x130] sm:$0xff] %vm6295_vm1, %v6285_v41  ;;  %v6288_v31 = vadd.f32 %v12191_v13, %v5732_v57  ;;  %v6689_v26 = vld [vmem:[#allocation3 + $0x48] sm:$0xff]  ;;  %v6696_v34 = vld [vmem:[#allocation3 + $0x80] sm:$0xff] }
 0x4bc   : > { %v6740_v0 = vmul.f32 %v15350_v51, %v6685_v1  ;;  %v6208_v28 = vpop.f32.mrf.mxu1  ;;  %v6741_v33 = vmul.f32 %v15350_v51, %v6686_v24  ;;  %v6742_v16 = vmul.f32 %v15350_v51, %v6687_v37  ;;  %v15379_v5 = vmul.f32 %v15350_v51, %v6688_v6 }
 0x4bd   : > { %v15382_v53 = vmul.f32 %v15350_v51, %v6689_v26  ;;  %v6466_v50 = vmax.f32 %v6418_v56, %v6446_v40  ;;  %6337 = vst.msk [vmem:[#allocation6 + $0x148] sm:$0xff] %vm6295_vm1, %v6288_v31  ;;  %v6287_v10 = vadd.f32 %v6208_v28, %v5731_v3  ;;  %v6790_v19 = vadd.f32 %v15371_v49, %v6735_v27  ;;  %v6697_v56 = vld [vmem:[#allocation3 + $0x88] sm:$0xff]  ;;  %v6698_v40 = vld [vmem:[#allocation3 + $0x90] sm:$0xff] }
 0x4be   : > { %v6791_v60 = vadd.f32 %v15371_v49, %v6736_v21  ;;  %v12194_v9 = vpop.f32.mrf.mxu1  ;;  %v6792_v52 = vadd.f32 %v15371_v49, %v6737_v59  ;;  %v6793_v62 = vadd.f32 %v15371_v49, %v6738_v32  ;;  %v6794_v44 = vadd.f32 %v15371_v49, %v6739_v23 }
 0x4bf   : > { %v6795_v17 = vadd.f32 %v15371_v49, %v6740_v0  ;;  %6482 = vst.msk [vmem:[#allocation3 + $0x58] sm:$0xff] %vm6295_vm1, %v6466_v50  ;;  %6336 = vst.msk [vmem:[#allocation6 + $0x140] sm:$0xff] %vm6295_vm1, %v6287_v10  ;;  %v6290_v48 = vadd.f32 %v12194_v9, %v5734_v35  ;;  %vm6839_vm10 = vcmp.ge.f32.partialorder %v6790_v19, 0.0  ;;  %v6888_v36 = vmul.f32 0.01, %v6790_v19  ;;  %v6700_v9 = vld [vmem:[#allocation3 + $0xa0] sm:$0xff] }
 0x4c0   : > { %vm6840_vm11 = vcmp.ge.f32.partialorder %v6791_v60, 0.0  ;;  %v6218_v58 = vpop.f32.mrf.mxu1  ;;  %v6889_v2 = vmul.f32 0.01, %v6791_v60  ;;  %vm6841_vm12 = vcmp.ge.f32.partialorder %v6792_v52, 0.0  ;;  %v6890_v57 = vmul.f32 0.01, %v6792_v52 }
 0x4c1   : > { %vm6842_vm13 = vcmp.ge.f32.partialorder %v6793_v62, 0.0  ;;  %6339 = vst.msk [vmem:[#allocation6 + $0x158] sm:$0xff] %vm6295_vm1, %v6290_v48  ;;  %v6289_v3 = vadd.f32 %v6218_v58, %v15346_v11  ;;  %v6937_v55 = vsel %vm6839_vm10, %v6790_v19, %v6888_v36  ;;  %v6891_v12 = vmul.f32 0.01, %v6793_v62  ;;  %v15425_v19 = vld [vmem:[%s16638_s8 + $0xb0] sm:$0xff] }
 0x4c2   : > { %vm6843_vm14 = vcmp.ge.f32.partialorder %v6794_v44, 0.0  ;;  %v6368_v22 = vld [vmem:[#allocation6 + $0x120] ss:$3 sm:$0xff]  ;;  %v6400_v25 = vld [vmem:[#allocation6 + $0x121] ss:$3 sm:$0xff]  ;;  %v12197_v39 = vpop.f32.mrf.mxu1  ;;  %6986 = vst.msk [vmem:[#allocation5] sm:$0xff] %vm6295_vm1, %v6937_v55  ;;  %v6938_v35 = vsel %vm6840_vm11, %v6791_v60, %v6889_v2  ;;  %v6939_v42 = vsel %vm6841_vm12, %v6792_v52, %v6890_v57  ;;  %v6796_v8 = vadd.f32 %v15371_v49, %v6741_v33 }
 0x4c3   : > { %v6797_v15 = vadd.f32 %v15371_v49, %v6742_v16  ;;  %v6419_v7 = vmax.f32 %v6368_v22, %v6400_v25  ;;  %v6448_v14 = vld [vmem:[#allocation6 + $0x122] ss:$3 sm:$0xff]  ;;  %6338 = vst.msk [vmem:[#allocation6 + $0x150] sm:$0xff] %vm6295_vm1, %v6289_v3  ;;  %v6292_v11 = vadd.f32 %v12197_v39, %v15355_v63  ;;  %6987 = vst.msk [vmem:[#allocation5 + $0x8] sm:$0xff] %vm6295_vm1, %v6938_v35  ;;  %v6892_v18 = vmul.f32 0.01, %v6794_v44 }
 0x4c4   : > { %6988 = vst.msk [vmem:[#allocation5 + $0x10] sm:$0xff] %vm6295_vm1, %v6939_v42  ;;  %v6940_v47 = vsel %vm6842_vm13, %v6793_v62, %v6891_v12  ;;  %v6690_v38 = vld [vmem:[#allocation3 + $0x50] sm:$0xff]  ;;  %v6228_v41 = vpop.f32.mrf.mxu1  ;;  %vm6844_vm15 = vcmp.ge.f32.partialorder %v6795_v17, 0.0  ;;  %v6893_v27 = vmul.f32 0.01, %v6795_v17  ;;  %vm6845_vm0 = vcmp.ge.f32.partialorder %v6796_v8, 0.0 }
 0x4c5   : > { %6989 = vst.msk [vmem:[#allocation5 + $0x18] sm:$0xff] %vm6295_vm1, %v6940_v47  ;;  %v6894_v61 = vmul.f32 0.01, %v6796_v8  ;;  %v6467_v46 = vmax.f32 %v6419_v7, %v6448_v14  ;;  %6341 = vst.msk [vmem:[#allocation6 + $0x168] sm:$0xff] %vm6295_vm1, %v6292_v11  ;;  %v6291_v63 = vadd.f32 %v6228_v41, %v15357_v54  ;;  %v6941_v1 = vsel %vm6843_vm14, %v6794_v44, %v6892_v18  ;;  %v6699_v60 = vld [vmem:[#allocation3 + $0x98] sm:$0xff]  ;;  %v6701_v55 = vld [vmem:[#allocation3 + $0xa8] sm:$0xff] }
 0x4c6   : > { %vm6846_vm2 = vcmp.ge.f32.partialorder %v6797_v15, 0.0  ;;  %v6370_v29 = vld [vmem:[#allocation6 + $0x138] ss:$3 sm:$0xff]  ;;  %v6402_v13 = vld [vmem:[#allocation6 + $0x139] ss:$3 sm:$0xff]  ;;  %v12200_v21 = vpop.f32.mrf.mxu1  ;;  %6990 = vst.msk [vmem:[#allocation5 + $0x20] sm:$0xff] %vm6295_vm1, %v6941_v1  ;;  %v6942_v59 = vsel %vm6844_vm15, %v6795_v17, %v6893_v27  ;;  %v6798_v23 = vadd.f32 %v15371_v49, %v15379_v5  ;;  %v6799_v24 = vadd.f32 %v15371_v49, %v15382_v53 }
 0x4c7   : > { %v6943_v32 = vsel %vm6845_vm0, %v6796_v8, %v6894_v61  ;;  %6483 = vst.msk [vmem:[#allocation3 + $0x60] sm:$0xff] %vm6295_vm1, %v6467_v46  ;;  %v6420_v54 = vmax.f32 %v6370_v29, %v6402_v13  ;;  %v6450_v31 = vld [vmem:[#allocation6 + $0x13a] ss:$3 sm:$0xff]  ;;  %6340 = vst.msk [vmem:[#allocation6 + $0x160] sm:$0xff] %vm6295_vm1, %v6291_v63  ;;  %v6294_v0 = vadd.f32 %v12200_v21, %v15360_v43  ;;  %v6895_v37 = vmul.f32 0.01, %v6797_v15 }
 0x4c8   : > { %6991 = vst.msk [vmem:[#allocation5 + $0x28] sm:$0xff] %vm6295_vm1, %v6942_v59  ;;  %6992 = vst.msk [vmem:[#allocation5 + $0x30] sm:$0xff] %vm6295_vm1, %v6943_v32  ;;  %v6745_v6 = vmul.f32 %v15350_v51, %v6690_v38  ;;  %v6691_v26 = vld [vmem:[#allocation3 + $0x58] sm:$0xff]  ;;  %v6238_v28 = vpop.f32.mrf.mxu1  ;;  %vm6847_vm3 = vcmp.ge.f32.partialorder %v6798_v23, 0.0  ;;  %v6896_v33 = vmul.f32 0.01, %v6798_v23  ;;  %v6751_v36 = vmul.f32 %v15350_v51, %v6696_v34 }
 0x4c9   : > { %vm6848_vm4 = vcmp.ge.f32.partialorder %v6799_v24, 0.0  ;;  %v6897_v16 = vmul.f32 0.01, %v6799_v24  ;;  %v6468_v5 = vmax.f32 %v6420_v54, %v6450_v31  ;;  %6343 = vst.msk [vmem:[#allocation6 + $0x178] sm:$0xff] %vm6295_vm1, %v6294_v0  ;;  %v6293_v53 = vadd.f32 %v6238_v28, %v15362_v20  ;;  %v7043_v43 = vld [vmem:[#allocation5] sm:$0xff]  ;;  %v6703_v42 = vld [vmem:[#allocation3 + $0xb8] sm:$0xff] }
 0x4ca   : > { %v6944_v50 = vsel %vm6846_vm2, %v6797_v15, %v6895_v37  ;;  %v6800_v10 = vadd.f32 %v15371_v49, %v6745_v6  ;;  %12217 = vmatprep.mubr.msk.f32.mxu0 %vm6295_vm1, %v7043_v43  ;;  %v7600_v52 = vld [vmem:[#allocation5 + $0x1] sm:$0xff]  ;;  %v6945_v20 = vsel %vm6847_vm3, %v6798_v23, %v6896_v33  ;;  %v6746_v48 = vmul.f32 %v15350_v51, %v6691_v26  ;;  %v15455_v14 = vld [vmem:[%s16638_s8 + $0xa8] sm:$0xff]  ;;  %v15489_v37 = vld [vmem:[%s16638_s8 + $0xa0] sm:$0xff] }
 0x4cb   : > { %v7044_v62 = vld [vmem:[#allocation5 + $0x8] sm:$0xff]  ;;  %6993 = vst.msk [vmem:[#allocation5 + $0x38] sm:$0xff] %vm6295_vm1, %v6944_v50  ;;  %v6946_v17 = vsel %vm6848_vm4, %v6799_v24, %v6897_v16  ;;  %6484 = vst.msk [vmem:[#allocation3 + $0x68] sm:$0xff] %vm6295_vm1, %v6468_v5  ;;  %12305 = vmatprep.mubr.msk.f32.mxu1 %vm6295_vm1, %v7600_v52  ;;  %v7045_v58 = vld [vmem:[#allocation5 + $0x10] sm:$0xff]  ;;  %v6752_v57 = vmul.f32 %v15350_v51, %v6697_v56  ;;  %v6753_v3 = vmul.f32 %v15350_v51, %v6698_v40 }
 0x4cc   : > { %v7601_v44 = vld [vmem:[#allocation5 + $0x9] sm:$0xff]  ;;  %6342 = vst.msk [vmem:[#allocation6 + $0x170] sm:$0xff] %vm6295_vm1, %v6293_v53  ;;  %12218 = vmatmul.mubr.msk.f32.vlgmr.msra.gmra.mxu0 %vm6295_vm1, %v7044_v62  ;;  %6994 = vst.msk [vmem:[#allocation5 + $0x40] sm:$0xff] %vm6295_vm1, %v6945_v20  ;;  %vm6849_vm5 = vcmp.ge.f32.partialorder %v6800_v10, 0.0  ;;  %v6898_v2 = vmul.f32 0.01, %v6800_v10  ;;  %v6801_v25 = vadd.f32 %v15371_v49, %v6746_v48  ;;  %v6806_v39 = vadd.f32 %v15371_v49, %v6751_v36 }
 0x4cd   : > { %6995 = vst.msk [vmem:[#allocation5 + $0x48] sm:$0xff] %vm6295_vm1, %v6946_v17  ;;  %v6702_v12 = vld [vmem:[#allocation3 + $0xb0] sm:$0xff]  ;;  %12306 = vmatmul.mubr.msk.f32.vlgmr.msra.gmra.mxu1 %vm6295_vm1, %v7601_v44  ;;  %12220 = vmatprep.mubr.msk.f32.mxu0 %vm6295_vm1, %v7045_v58  ;;  %v7602_v22 = vld [vmem:[#allocation5 + $0x11] sm:$0xff]  ;;  %v6754_v35 = vmul.f32 %v15350_v51, %v6699_v60  ;;  %v12738_v15 = vld [vmem:[%s16638_s8 + $0xb8] sm:$0xf]  ;;  %v6807_v11 = vadd.f32 %v15371_v49, %v6752_v57 }
 0x4ce   : > { %12308 = vmatprep.mubr.msk.f32.mxu1 %vm6295_vm1, %v7602_v22  ;;  %v7046_v8 = vld [vmem:[#allocation5 + $0x18] sm:$0xff]  ;;  %12378 = vmatpush3.msk.msra.mxu0 %vm7243_vm7, %v12738_v15  ;;  %v6947_v7 = vsel %vm6849_vm5, %v6800_v10, %v6898_v2  ;;  %v15459_v47 = vadd.f32 %v15371_v49, %v6753_v3  ;;  %v6755_v61 = vmul.f32 %v15350_v51, %v6700_v9  ;;  %v15472_v1 = vld [vmem:[%s16638_s8 + $0xf0] sm:$0xff]  ;;  %vm6850_vm6 = vcmp.ge.f32.partialorder %v6801_v25, 0.0  ;;  %v6692_v23 = vld [vmem:[#allocation3 + $0x60] sm:$0xff] }
 0x4cf   : > { %v6372_v18 = vld [vmem:[#allocation6 + $0x150] ss:$3 sm:$0xff]  ;;  %v6404_v38 = vld [vmem:[#allocation6 + $0x151] ss:$3 sm:$0xff]  ;;  %6996 = vst.msk [vmem:[#allocation5 + $0x50] sm:$0xff] %vm6295_vm1, %v6947_v7  ;;  %12379 = vmatprep.subr.mxu0 %v15425_v19  ;;  %v15464_v27 = vadd.f32 %v15371_v49, %v6754_v35  ;;  %v6756_v46 = vmul.f32 %v15350_v51, %v6701_v55  ;;  %v6757_v63 = vmul.f32 %v15350_v51, %v6702_v12  ;;  %vm6855_vm9 = vcmp.ge.f32.partialorder %v6806_v39, 0.0 }
 0x4d0   : > { %v7603_v41 = vld [vmem:[#allocation5 + $0x19] sm:$0xff]  ;;  %v6421_v34 = vmax.f32 %v6372_v18, %v6404_v38  ;;  %12221 = vmatmul.mubr.msk.f32.gmra.mxu0 %vm6295_vm1, %v7046_v8  ;;  %v6899_v21 = vmul.f32 0.01, %v6801_v25  ;;  %v6758_v59 = vmul.f32 %v15350_v51, %v6703_v42  ;;  %12466 = vmatpush3.msk.msra.mxu1 %vm7243_vm7, %v15265_v4  ;;  %v7604_v32 = vld [vmem:[#allocation5 + $0x21] sm:$0xff]  ;;  %v6904_v24 = vmul.f32 0.01, %v6806_v39 }
 0x4d1   : > { %v6452_v29 = vld [vmem:[#allocation6 + $0x152] ss:$3 sm:$0xff]  ;;  %12309 = vmatmul.mubr.msk.f32.gmra.mxu1 %vm6295_vm1, %v7603_v41  ;;  %vm6856_vm10 = vcmp.ge.f32.partialorder %v6807_v11, 0.0  ;;  %v15481_v56 = vadd.f32 %v15371_v49, %v6755_v61  ;;  %v6747_v0 = vmul.f32 %v15350_v51, %v6692_v23  ;;  %12380 = vmatpush3.msra.mxu0 %v15425_v19  ;;  %v6905_v4 = vmul.f32 0.01, %v6807_v11  ;;  %v6704_v6 = vld [vmem:[#allocation3 + $0xc0] sm:$0xff] }
 0x4d2   : > { %v7047_v13 = vld [vmem:[#allocation5 + $0x20] sm:$0xff]  ;;  %v6469_v54 = vmax.f32 %v6421_v34, %v6452_v29  ;;  %12311 = vmatprep.mubr.msk.f32.mxu1 %vm6295_vm1, %v7604_v32  ;;  %v6948_v31 = vsel %vm6850_vm6, %v6801_v25, %v6899_v21  ;;  %v7048_v28 = vld [vmem:[#allocation5 + $0x28] sm:$0xff]  ;;  %12381 = vmatprep.subr.mxu0 %v15455_v14  ;;  %v6953_v33 = vsel %vm6855_vm9, %v6806_v39, %v6904_v24  ;;  %v15506_v43 = vld [vmem:[%s16638_s8 + $0xe8] sm:$0xff]  ;;  %vm6857_vm11 = vcmp.ge.f32.partialorder %v15459_v47, 0.0 }
 0x4d3   : > { %12223 = vmatprep.mubr.msk.f32.mxu0 %vm6295_vm1, %v7047_v13  ;;  %v6374_v26 = vld [vmem:[#allocation6 + $0x168] ss:$3 sm:$0xff]  ;;  %v6406_v40 = vld [vmem:[#allocation6 + $0x169] ss:$3 sm:$0xff]  ;;  %6997 = vst.msk [vmem:[#allocation5 + $0x58] sm:$0xff] %vm6295_vm1, %v6948_v31  ;;  %v15495_v16 = vadd.f32 %v15371_v49, %v6756_v46  ;;  %v15498_v5 = vadd.f32 %v15371_v49, %v6757_v63  ;;  %v15501_v53 = vadd.f32 %v15371_v49, %v6758_v59  ;;  %7002 = vst.msk [vmem:[#allocation5 + $0x80] sm:$0xff] %vm6295_vm1, %v6953_v33 }
 0x4d4   : > { %6485 = vst.msk [vmem:[#allocation3 + $0x70] sm:$0xff] %vm6295_vm1, %v6469_v54  ;;  %v6422_v50 = vmax.f32 %v6374_v26, %v6406_v40  ;;  %v6454_v10 = vld [vmem:[#allocation6 + $0x16a] ss:$3 sm:$0xff]  ;;  %12224 = vmatmul.mubr.msk.f32.gmra.mxu0 %vm6295_vm1, %v7048_v28  ;;  %v7605_v19 = vld [vmem:[#allocation5 + $0x29] sm:$0xff]  ;;  %v6802_v9 = vadd.f32 %v15371_v49, %v6747_v0  ;;  %v6954_v52 = vsel %vm6856_vm10, %v6807_v11, %v6905_v4  ;;  %v6906_v20 = vmul.f32 0.01, %v15459_v47 }
 0x4d5   : > { %v7049_v60 = vld [vmem:[#allocation5 + $0x30] sm:$0xff]  ;;  %12467 = vmatprep.subr.mxu1 %v15472_v1  ;;  %12312 = vmatmul.mubr.msk.f32.gmra.mxu1 %vm6295_vm1, %v7605_v19  ;;  %v6693_v44 = vld [vmem:[#allocation3 + $0x68] sm:$0xff]  ;;  %7003 = vst.msk [vmem:[#allocation5 + $0x88] sm:$0xff] %vm6295_vm1, %v6954_v52  ;;  %vm6858_vm12 = vcmp.ge.f32.partialorder %v15464_v27, 0.0  ;;  %vm6859_vm13 = vcmp.ge.f32.partialorder %v15481_v56, 0.0  ;;  %v6759_v17 = vmul.f32 %v15350_v51, %v6704_v6  ;;  %v15528_v57 = vld [vmem:[%s16638_s8 + $0x98] sm:$0xff] }
 0x4d6   : > { %12226 = vmatprep.mubr.msk.f32.mxu0 %vm6295_vm1, %v7049_v60  ;;  %v7606_v62 = vld [vmem:[#allocation5 + $0x31] sm:$0xff]  ;;  %v6470_v48 = vmax.f32 %v6422_v50, %v6454_v10  ;;  %vm6851_vm14 = vcmp.ge.f32.partialorder %v6802_v9, 0.0  ;;  %v6900_v36 = vmul.f32 0.01, %v6802_v9  ;;  %v6748_v58 = vmul.f32 %v15350_v51, %v6693_v44  ;;  %12382 = vmatpush3.msra.mxu0 %v15455_v14  ;;  %v7607_v25 = vld [vmem:[#allocation5 + $0x39] sm:$0xff]  ;;  %v7608_v7 = vld [vmem:[#allocation5 + $0x41] sm:$0xff] }
 0x4d7   : > { %12314 = vmatprep.mubr.msk.f32.mxu1 %vm6295_vm1, %v7606_v62  ;;  %v6705_v2 = vld [vmem:[#allocation3 + $0xc8] sm:$0xff]  ;;  %v6955_v55 = vsel %vm6857_vm11, %v15459_v47, %v6906_v20  ;;  %v6907_v12 = vmul.f32 0.01, %v15464_v27  ;;  %12383 = vmatprep.subr.mxu0 %v15489_v37  ;;  %v6908_v22 = vmul.f32 0.01, %v15481_v56  ;;  %vm6860_vm15 = vcmp.ge.f32.partialorder %v15495_v16, 0.0 }
 0x4d8   : > { %v7050_v3 = vld [vmem:[#allocation5 + $0x38] sm:$0xff]  ;;  %12468 = vmatpush3.msra.mxu1 %v15472_v1  ;;  %6486 = vst.msk [vmem:[#allocation3 + $0x78] sm:$0xff] %vm6295_vm1, %v6470_v48  ;;  %v7051_v39 = vld [vmem:[#allocation5 + $0x40] sm:$0xff]  ;;  %v6949_v35 = vsel %vm6851_vm14, %v6802_v9, %v6900_v36  ;;  %v6803_v42 = vadd.f32 %v15371_v49, %v6748_v58  ;;  %7004 = vst.msk [vmem:[#allocation5 + $0x90] sm:$0xff] %vm6295_vm1, %v6955_v55  ;;  %v6909_v8 = vmul.f32 0.01, %v15495_v16  ;;  %12384 = vmatpush3.msra.mxu0 %v15489_v37 }
 0x4d9   : > { %12227 = vmatmul.mubr.msk.f32.gmra.mxu0 %vm6295_vm1, %v7050_v3  ;;  %vm6861_vm0 = vcmp.ge.f32.partialorder %v15498_v5, 0.0  ;;  %v6706_v15 = vld [vmem:[#allocation3 + $0xd0] sm:$0xff]  ;;  %12469 = vmatprep.subr.mxu1 %v15506_v43  ;;  %6998 = vst.msk [vmem:[#allocation5 + $0x60] sm:$0xff] %vm6295_vm1, %v6949_v35  ;;  %v6956_v14 = vsel %vm6858_vm12, %v15464_v27, %v6907_v12  ;;  %v6957_v11 = vsel %vm6859_vm13, %v15481_v56, %v6908_v22  ;;  %v6910_v47 = vmul.f32 0.01, %v15498_v5  ;;  %v11058_v18 = vld [vmem:[%s16638_s8 + $0xe0] sm:$0xff] }
 0x4da   : > { %12315 = vmatmul.mubr.msk.f32.gmra.mxu1 %vm6295_vm1, %v7607_v25  ;;  %12229 = vmatprep.mubr.msk.f32.mxu0 %vm6295_vm1, %v7051_v39  ;;  %vm6862_vm2 = vcmp.ge.f32.partialorder %v15501_v53, 0.0  ;;  %vm6852_vm3 = vcmp.ge.f32.partialorder %v6803_v42, 0.0  ;;  %v6901_v38 = vmul.f32 0.01, %v6803_v42  ;;  %7005 = vst.msk [vmem:[#allocation5 + $0x98] sm:$0xff] %vm6295_vm1, %v6956_v14  ;;  %7006 = vst.msk [vmem:[#allocation5 + $0xa0] sm:$0xff] %vm6295_vm1, %v6957_v11  ;;  %v6958_v41 = vsel %vm6860_vm15, %v15495_v16, %v6909_v8 }
 0x4db   : > { %12317 = vmatprep.mubr.msk.f32.mxu1 %vm6295_vm1, %v7608_v7  ;;  %v6814_v27 = vadd.f32 %v15371_v49, %v6759_v17  ;;  %v6707_v61 = vld [vmem:[#allocation3 + $0xd8] sm:$0xff]  ;;  %v6708_v46 = vld [vmem:[#allocation3 + $0xe0] sm:$0xff]  ;;  %v6694_v1 = vld [vmem:[#allocation3 + $0x70] sm:$0xff]  ;;  %7007 = vst.msk [vmem:[#allocation5 + $0xa8] sm:$0xff] %vm6295_vm1, %v6958_v41  ;;  %v6959_v34 = vsel %vm6861_vm0, %v15498_v5, %v6910_v47  ;;  %v6911_v29 = vmul.f32 0.01, %v15501_v53  ;;  %v6760_v13 = vmul.f32 %v15350_v51, %v6705_v2 }
 0x4dc   : > { %v7052_v63 = vld [vmem:[#allocation5 + $0x48] sm:$0xff]  ;;  %12385 = vmatprep.subr.mxu0 %v15528_v57  ;;  %v6761_v21 = vmul.f32 %v15350_v51, %v6706_v15  ;;  %v6709_v59 = vld [vmem:[#allocation3 + $0xe8] sm:$0xff]  ;;  %12470 = vmatpush3.msra.mxu1 %v15506_v43  ;;  %v7053_v23 = vld [vmem:[#allocation5 + $0x50] sm:$0xff]  ;;  %v6950_v24 = vsel %vm6852_vm3, %v6803_v42, %v6901_v38  ;;  %v6749_v56 = vmul.f32 %v15350_v51, %v6694_v1 }
 0x4dd   : > { %12230 = vmatmul.mubr.msk.f32.gmra.mxu0 %vm6295_vm1, %v7052_v63  ;;  %v7609_v32 = vld [vmem:[#allocation5 + $0x49] sm:$0xff]  ;;  %7008 = vst.msk [vmem:[#allocation5 + $0xb0] sm:$0xff] %vm6295_vm1, %v6959_v34  ;;  %vm6863_vm4 = vcmp.ge.f32.partialorder %v6814_v27, 0.0  ;;  %v6912_v54 = vmul.f32 0.01, %v6814_v27  ;;  %v10999_v31 = vld [vmem:[%s16638_s8 + $0x90] sm:$0xff]  ;;  %12471 = vmatprep.subr.mxu1 %v11058_v18  ;;  %v6960_v4 = vsel %vm6862_vm2, %v15501_v53, %v6911_v29  ;;  %v6815_v37 = vadd.f32 %v15371_v49, %v6760_v13 }
 0x4de   : > { %12318 = vmatmul.mubr.msk.f32.gmra.mxu1 %vm6295_vm1, %v7609_v32  ;;  %12232 = vmatprep.mubr.msk.f32.mxu0 %vm6295_vm1, %v7053_v23  ;;  %v7610_v0 = vld [vmem:[#allocation5 + $0x51] sm:$0xff]  ;;  %6999 = vst.msk [vmem:[#allocation5 + $0x68] sm:$0xff] %vm6295_vm1, %v6950_v24  ;;  %v6816_v6 = vadd.f32 %v15371_v49, %v6761_v21  ;;  %v11057_v26 = vld [vmem:[%s16638_s8 + $0xd8] sm:$0xff]  ;;  %v6804_v40 = vadd.f32 %v15371_v49, %v6749_v56  ;;  %7009 = vst.msk [vmem:[#allocation5 + $0xb8] sm:$0xff] %vm6295_vm1, %v6960_v4 }
 0x4df   : > { %12320 = vmatprep.mubr.msk.f32.mxu1 %vm6295_vm1, %v7610_v0  ;;  %v6961_v28 = vsel %vm6863_vm4, %v6814_v27, %v6912_v54  ;;  %12386 = vmatpush3.msra.mxu0 %v15528_v57  ;;  %v6762_v33 = vmul.f32 %v15350_v51, %v6707_v61  ;;  %v6710_v16 = vld [vmem:[#allocation3 + $0xf0] sm:$0xff]  ;;  %v7054_v5 = vld [vmem:[#allocation5 + $0x58] sm:$0xff]  ;;  %v6695_v53 = vld [vmem:[#allocation3 + $0x78] sm:$0xff]  ;;  %vm6864_vm5 = vcmp.ge.f32.partialorder %v6815_v37, 0.0  ;;  %v6913_v43 = vmul.f32 0.01, %v6815_v37 }
 0x4e0   : > { %7010 = vst.msk [vmem:[#allocation5 + $0xc0] sm:$0xff] %vm6295_vm1, %v6961_v28  ;;  %v6763_v50 = vmul.f32 %v15350_v51, %v6708_v46  ;;  %v6764_v10 = vmul.f32 %v15350_v51, %v6709_v59  ;;  %12387 = vmatprep.subr.mxu0 %v10999_v31  ;;  %v10998_v19 = vld [vmem:[%s16638_s8 + $0x88] sm:$0xff]  ;;  %12472 = vmatpush3.msra.mxu1 %v11058_v18  ;;  %v7055_v9 = vld [vmem:[#allocation5 + $0x60] sm:$0xff]  ;;  %vm6853_vm6 = vcmp.ge.f32.partialorder %v6804_v40, 0.0  ;;  %v6902_v52 = vmul.f32 0.01, %v6804_v40 }
 0x4e1   : > { %12233 = vmatmul.mubr.msk.f32.gmra.mxu0 %vm6295_vm1, %v7054_v5  ;;  %v7611_v60 = vld [vmem:[#allocation5 + $0x59] sm:$0xff]  ;;  %v6750_v62 = vmul.f32 %v15350_v51, %v6695_v53  ;;  %vm6865_vm9 = vcmp.ge.f32.partialorder %v6816_v6, 0.0  ;;  %12473 = vmatprep.subr.mxu1 %v11057_v26  ;;  %v6962_v44 = vsel %vm6864_vm5, %v6815_v37, %v6913_v43  ;;  %v6914_v20 = vmul.f32 0.01, %v6816_v6  ;;  %v6711_v55 = vld [vmem:[#allocation3 + $0xf8] sm:$0xff]  ;;  %v6712_v12 = vld [vmem:[#allocation3 + $0x100] sm:$0xff] }
 0x4e2   : > { %12321 = vmatmul.mubr.msk.f32.gmra.mxu1 %vm6295_vm1, %v7611_v60  ;;  %12235 = vmatprep.mubr.msk.f32.mxu0 %vm6295_vm1, %v7055_v9  ;;  %v6817_v17 = vadd.f32 %v15371_v49, %v6762_v33  ;;  %v6818_v48 = vadd.f32 %v15371_v49, %v6763_v50  ;;  %v11056_v36 = vld [vmem:[%s16638_s8 + $0xd0] sm:$0xff]  ;;  %v6951_v58 = vsel %vm6853_vm6, %v6804_v40, %v6902_v52  ;;  %v6713_v22 = vld [vmem:[#allocation3 + $0x108] sm:$0xff]  ;;  %v10997_v42 = vld [vmem:[%s16638_s8 + $0x80] sm:$0xff] }
 0x4e3   : > { %v6805_v2 = vadd.f32 %v15371_v49, %v6750_v62  ;;  %7011 = vst.msk [vmem:[#allocation5 + $0xc8] sm:$0xff] %vm6295_vm1, %v6962_v44  ;;  %v6819_v57 = vadd.f32 %v15371_v49, %v6764_v10  ;;  %v6765_v3 = vmul.f32 %v15350_v51, %v6710_v16  ;;  %12388 = vmatpush3.msra.mxu0 %v10999_v31  ;;  %7000 = vst.msk [vmem:[#allocation5 + $0x70] sm:$0xff] %vm6295_vm1, %v6951_v58  ;;  %v6714_v35 = vld [vmem:[#allocation3 + $0x110] sm:$0xff]  ;;  %v6715_v41 = vld [vmem:[#allocation3 + $0x118] sm:$0xff] }
 0x4e4   : > { %v6963_v25 = vsel %vm6865_vm9, %v6816_v6, %v6914_v20  ;;  %vm6866_vm10 = vcmp.ge.f32.partialorder %v6817_v17, 0.0  ;;  %v6915_v39 = vmul.f32 0.01, %v6817_v17  ;;  %vm6867_vm11 = vcmp.ge.f32.partialorder %v6818_v48, 0.0  ;;  %12389 = vmatprep.subr.mxu0 %v10998_v19  ;;  %12474 = vmatpush3.msra.mxu1 %v11057_v26  ;;  %v11055_v27 = vld [vmem:[%s16638_s8 + $0xc8] sm:$0xff]  ;;  %v6716_v1 = vld [vmem:[#allocation3 + $0x120] sm:$0xff] }
 0x4e5   : > { %v7612_v8 = vld [vmem:[#allocation5 + $0x61] sm:$0xff]  ;;  %vm6854_vm12 = vcmp.ge.f32.partialorder %v6805_v2, 0.0  ;;  %v6903_v7 = vmul.f32 0.01, %v6805_v2  ;;  %7012 = vst.msk [vmem:[#allocation5 + $0xd0] sm:$0xff] %vm6295_vm1, %v6963_v25  ;;  %vm6868_vm13 = vcmp.ge.f32.partialorder %v6819_v57, 0.0  ;;  %v6820_v14 = vadd.f32 %v15371_v49, %v6765_v3  ;;  %12390 = vmatpush3.msra.mxu0 %v10998_v19  ;;  %12475 = vmatprep.subr.mxu1 %v11056_v36 }
 0x4e6   : > { %v7056_v15 = vld [vmem:[#allocation5 + $0x68] sm:$0xff]  ;;  %12323 = vmatprep.mubr.msk.f32.mxu1 %vm6295_vm1, %v7612_v8  ;;  %v6964_v11 = vsel %vm6866_vm10, %v6817_v17, %v6915_v39  ;;  %v6916_v47 = vmul.f32 0.01, %v6818_v48  ;;  %v6917_v18 = vmul.f32 0.01, %v6819_v57  ;;  %v6766_v38 = vmul.f32 %v15350_v51, %v6711_v55  ;;  %12391 = vmatprep.subr.mxu0 %v10997_v42  ;;  %v11054_v32 = vld [vmem:[%s16638_s8 + $0xc0] sm:$0xff] }
 0x4e7   : > { %12236 = vmatmul.mubr.msk.f32.gmra.mxu0 %vm6295_vm1, %v7056_v15  ;;  %v6952_v61 = vsel %vm6854_vm12, %v6805_v2, %v6903_v7  ;;  %7013 = vst.msk [vmem:[#allocation5 + $0xd8] sm:$0xff] %vm6295_vm1, %v6964_v11  ;;  %vm6869_vm14 = vcmp.ge.f32.partialorder %v6820_v14, 0.0  ;;  %v6918_v46 = vmul.f32 0.01, %v6820_v14  ;;  %v6767_v63 = vmul.f32 %v15350_v51, %v6712_v12  ;;  %12476 = vmatpush3.msra.mxu1 %v11056_v36  ;;  %v15639_v34 = vld [vmem:[%s16638_s8 + $0x138] sm:$0xf] }
 0x4e8   : > { %7001 = vst.msk [vmem:[#allocation5 + $0x78] sm:$0xff] %vm6295_vm1, %v6952_v61  ;;  %v6965_v29 = vsel %vm6867_vm11, %v6818_v48, %v6916_v47  ;;  %v6966_v13 = vsel %vm6868_vm13, %v6819_v57, %v6917_v18  ;;  %v6821_v21 = vadd.f32 %v15371_v49, %v6766_v38  ;;  %v6768_v59 = vmul.f32 %v15350_v51, %v6713_v22  ;;  %v6717_v33 = vld [vmem:[#allocation3 + $0x128] sm:$0xff]  ;;  %v6718_v43 = vld [vmem:[#allocation3 + $0x130] sm:$0xff]  ;;  %v6719_v50 = vld [vmem:[#allocation3 + $0x138] sm:$0xff] }
 0x4e9   : > { %12392 = vmatpush3.msra.mxu0 %v10997_v42  ;;  %7014 = vst.msk [vmem:[#allocation5 + $0xe0] sm:$0xff] %vm6295_vm1, %v6965_v29  ;;  %7015 = vst.msk [vmem:[#allocation5 + $0xe8] sm:$0xff] %vm6295_vm1, %v6966_v13  ;;  %v6967_v23 = vsel %vm6869_vm14, %v6820_v14, %v6918_v46  ;;  %v6822_v24 = vadd.f32 %v15371_v49, %v6767_v63  ;;  %v6769_v56 = vmul.f32 %v15350_v51, %v6714_v35  ;;  %v6720_v60 = vld [vmem:[#allocation3 + $0x140] sm:$0xff]  ;;  %v6721_v44 = vld [vmem:[#allocation3 + $0x148] sm:$0xff] }
 0x4ea   : > { %v6770_v54 = vmul.f32 %v15350_v51, %v6715_v41  ;;  %12477 = vmatprep.subr.mxu1 %v11055_v27  ;;  %7016 = vst.msk [vmem:[#allocation5 + $0xf0] sm:$0xff] %vm6295_vm1, %v6967_v23  ;;  %vm6870_vm15 = vcmp.ge.f32.partialorder %v6821_v21, 0.0  ;;  %v6919_v31 = vmul.f32 0.01, %v6821_v21  ;;  %v6823_v0 = vadd.f32 %v15371_v49, %v6768_v59  ;;  %12553 = vmatprep.subr.msk.mxu0 %vm7243_vm7, %v15639_v34  ;;  %v7057_v37 = vld [vmem:[#allocation5 + $0x70] sm:$0xff]  ;;  %v7059_v3 = vld [vmem:[#allocation5 + $0x80] sm:$0xff] }
 0x4eb   : > { %v6771_v4 = vmul.f32 %v15350_v51, %v6716_v1  ;;  %12478 = vmatpush3.msra.mxu1 %v11055_v27  ;;  %v7613_v6 = vld [vmem:[#allocation5 + $0x69] sm:$0xff]  ;;  %vm6871_vm0 = vcmp.ge.f32.partialorder %v6822_v24, 0.0  ;;  %v6920_v26 = vmul.f32 0.01, %v6822_v24  ;;  %v6824_v40 = vadd.f32 %v15371_v49, %v6769_v56  ;;  %12238 = vmatprep.mubr.msk.f32.mxu0 %vm6295_vm1, %v7057_v37  ;;  %v7616_v25 = vld [vmem:[#allocation5 + $0x81] sm:$0xff]  ;;  %v6725_v38 = vld [vmem:[#allocation3 + $0x168] sm:$0xff] }
 0x4ec   : > { %v6825_v28 = vadd.f32 %v15371_v49, %v6770_v54  ;;  %12479 = vmatprep.subr.mxu1 %v11054_v32  ;;  %12324 = vmatmul.mubr.msk.f32.gmra.mxu1 %vm6295_vm1, %v7613_v6  ;;  %v6968_v16 = vsel %vm6870_vm15, %v6821_v21, %v6919_v31  ;;  %vm6872_vm2 = vcmp.ge.f32.partialorder %v6823_v0, 0.0  ;;  %v6921_v5 = vmul.f32 0.01, %v6823_v0  ;;  %v6722_v8 = vld [vmem:[#allocation3 + $0x150] sm:$0xff]  ;;  %v6723_v15 = vld [vmem:[#allocation3 + $0x158] sm:$0xff]  ;;  %v6724_v18 = vld [vmem:[#allocation3 + $0x160] sm:$0xff] }
 0x4ed   : > { %v6826_v53 = vadd.f32 %v15371_v49, %v6771_v4  ;;  %7017 = vst.msk [vmem:[#allocation5 + $0xf8] sm:$0xff] %vm6295_vm1, %v6968_v16  ;;  %v6969_v10 = vsel %vm6871_vm0, %v6822_v24, %v6920_v26  ;;  %vm6873_vm3 = vcmp.ge.f32.partialorder %v6824_v40, 0.0  ;;  %v6922_v19 = vmul.f32 0.01, %v6824_v40  ;;  %12480 = vmatpush3.msra.mxu1 %v11054_v32  ;;  %v7060_v7 = vld [vmem:[#allocation5 + $0x88] sm:$0xff]  ;;  %v7061_v61 = vld [vmem:[#allocation5 + $0x90] sm:$0xff] }
 0x4ee   : > { %vm6874_vm4 = vcmp.ge.f32.partialorder %v6825_v28, 0.0  ;;  %7018 = vst.msk [vmem:[#allocation5 + $0x100] sm:$0xff] %vm6295_vm1, %v6969_v10  ;;  %v6970_v9 = vsel %vm6872_vm2, %v6823_v0, %v6921_v5  ;;  %v6923_v52 = vmul.f32 0.01, %v6825_v28  ;;  %v6772_v62 = vmul.f32 %v15350_v51, %v6717_v33  ;;  %v7617_v46 = vld [vmem:[#allocation5 + $0x89] sm:$0xff]  ;;  %v6726_v13 = vld [vmem:[#allocation3 + $0x170] sm:$0xff] }
 0x4ef   : > { %vm6875_vm5 = vcmp.ge.f32.partialorder %v6826_v53, 0.0  ;;  %v7058_v20 = vld [vmem:[#allocation5 + $0x78] sm:$0xff]  ;;  %7019 = vst.msk [vmem:[#allocation5 + $0x108] sm:$0xff] %vm6295_vm1, %v6970_v9  ;;  %v6971_v36 = vsel %vm6873_vm3, %v6824_v40, %v6922_v19  ;;  %v6924_v58 = vmul.f32 0.01, %v6826_v53  ;;  %v6773_v2 = vmul.f32 %v15350_v51, %v6718_v43  ;;  %v6727_v24 = vld [vmem:[#allocation3 + $0x178] sm:$0xff] }
 0x4f0   : > { %v7614_v17 = vld [vmem:[#allocation5 + $0x71] sm:$0xff]  ;;  %v7615_v48 = vld [vmem:[#allocation5 + $0x79] sm:$0xff]  ;;  %v6774_v57 = vmul.f32 %v15350_v51, %v6719_v50  ;;  %12239 = vmatmul.mubr.msk.f32.gmra.mxu0 %vm6295_vm1, %v7058_v20  ;;  %7020 = vst.msk [vmem:[#allocation5 + $0x110] sm:$0xff] %vm6295_vm1, %v6971_v36  ;;  %v6972_v55 = vsel %vm6874_vm4, %v6825_v28, %v6923_v52  ;;  %v6827_v12 = vadd.f32 %v15371_v49, %v6772_v62  ;;  %v7620_v50 = vld [vmem:[#allocation5 + $0xa1] sm:$0xff] }
 0x4f1   : > { %12326 = vmatprep.mubr.msk.f32.mxu1 %vm6295_vm1, %v7614_v17  ;;  %v6775_v22 = vmul.f32 %v15350_v51, %v6720_v60  ;;  %12241 = vmatprep.mubr.msk.f32.mxu0 %vm6295_vm1, %v7059_v3  ;;  %7021 = vst.msk [vmem:[#allocation5 + $0x118] sm:$0xff] %vm6295_vm1, %v6972_v55  ;;  %v6973_v39 = vsel %vm6875_vm5, %v6826_v53, %v6924_v58  ;;  %v7618_v21 = vld [vmem:[#allocation5 + $0x91] sm:$0xff]  ;;  %v7063_v28 = vld [vmem:[#allocation5 + $0xa0] sm:$0xff]  ;;  %v7064_v62 = vld [vmem:[#allocation5 + $0xa8] sm:$0xff] }
 0x4f2   : > { %12327 = vmatmul.mubr.msk.f32.gmra.mxu1 %vm6295_vm1, %v7615_v48  ;;  %v6828_v35 = vadd.f32 %v15371_v49, %v6773_v2  ;;  %v6829_v42 = vadd.f32 %v15371_v49, %v6774_v57  ;;  %7022 = vst.msk [vmem:[#allocation5 + $0x120] sm:$0xff] %vm6295_vm1, %v6973_v39  ;;  %vm6876_vm6 = vcmp.ge.f32.partialorder %v6827_v12, 0.0  ;;  %v6925_v14 = vmul.f32 0.01, %v6827_v12  ;;  %v6728_v56 = vld [vmem:[#allocation3 + $0x180] sm:$0xff]  ;;  %v7062_v4 = vld [vmem:[#allocation5 + $0x98] sm:$0xff] }
 0x4f3   : > { %12329 = vmatprep.mubr.msk.f32.mxu1 %vm6295_vm1, %v7616_v25  ;;  %v6830_v11 = vadd.f32 %v15371_v49, %v6775_v22  ;;  %v6776_v47 = vmul.f32 %v15350_v51, %v6721_v44  ;;  %v6777_v23 = vmul.f32 %v15350_v51, %v6722_v8  ;;  %v6778_v0 = vmul.f32 %v15350_v51, %v6723_v15  ;;  %v7619_v33 = vld [vmem:[#allocation5 + $0x99] sm:$0xff]  ;;  %v7065_v17 = vld [vmem:[#allocation5 + $0xb0] sm:$0xff]  ;;  %v7624_v15 = vld [vmem:[#allocation5 + $0xc1] sm:$0xff] }
 0x4f4   : > { %vm6877_vm9 = vcmp.ge.f32.partialorder %v6828_v35, 0.0  ;;  %v6926_v41 = vmul.f32 0.01, %v6828_v35  ;;  %vm6878_vm10 = vcmp.ge.f32.partialorder %v6829_v42, 0.0  ;;  %v6927_v27 = vmul.f32 0.01, %v6829_v42  ;;  %12242 = vmatmul.mubr.msk.f32.gmra.mxu0 %vm6295_vm1, %v7060_v7 }
 0x4f5   : > { %v6974_v63 = vsel %vm6876_vm6, %v6827_v12, %v6925_v14  ;;  %vm6879_vm11 = vcmp.ge.f32.partialorder %v6830_v11, 0.0  ;;  %v6928_v1 = vmul.f32 0.01, %v6830_v11  ;;  %v6831_v29 = vadd.f32 %v15371_v49, %v6776_v47  ;;  %12244 = vmatprep.mubr.msk.f32.mxu0 %vm6295_vm1, %v7061_v61  ;;  %v7621_v48 = vld [vmem:[#allocation5 + $0xa9] sm:$0xff]  ;;  %v7622_v2 = vld [vmem:[#allocation5 + $0xb1] sm:$0xff]  ;;  %v7623_v8 = vld [vmem:[#allocation5 + $0xb9] sm:$0xff] }
 0x4f6   : > { %12330 = vmatmul.mubr.msk.f32.gmra.mxu1 %vm6295_vm1, %v7617_v46  ;;  %7023 = vst.msk [vmem:[#allocation5 + $0x128] sm:$0xff] %vm6295_vm1, %v6974_v63  ;;  %v6975_v59 = vsel %vm6877_vm9, %v6828_v35, %v6926_v41  ;;  %v6976_v32 = vsel %vm6878_vm10, %v6829_v42, %v6927_v27  ;;  %v6832_v37 = vadd.f32 %v15371_v49, %v6777_v23  ;;  %v7066_v25 = vld [vmem:[#allocation5 + $0xb8] sm:$0xff]  ;;  %v7067_v42 = vld [vmem:[#allocation5 + $0xc0] sm:$0xff]  ;;  %v7068_v14 = vld [vmem:[#allocation5 + $0xc8] sm:$0xff] }
 0x4f7   : > { %12332 = vmatprep.mubr.msk.f32.mxu1 %vm6295_vm1, %v7618_v21  ;;  %7024 = vst.msk [vmem:[#allocation5 + $0x130] sm:$0xff] %vm6295_vm1, %v6975_v59  ;;  %7025 = vst.msk [vmem:[#allocation5 + $0x138] sm:$0xff] %vm6295_vm1, %v6976_v32  ;;  %v6977_v54 = vsel %vm6879_vm11, %v6830_v11, %v6928_v1  ;;  %vm6880_vm12 = vcmp.ge.f32.partialorder %v6831_v29, 0.0  ;;  %v6929_v31 = vmul.f32 0.01, %v6831_v29  ;;  %v6779_v6 = vmul.f32 %v15350_v51, %v6724_v18  ;;  %v7069_v11 = vld [vmem:[#allocation5 + $0xd0] sm:$0xff] }
 0x4f8   : > { %7026 = vst.msk [vmem:[#allocation5 + $0x140] sm:$0xff] %vm6295_vm1, %v6977_v54  ;;  %v6780_v26 = vmul.f32 %v15350_v51, %v6725_v38  ;;  %v6781_v40 = vmul.f32 %v15350_v51, %v6726_v13  ;;  %12245 = vmatmul.mubr.msk.f32.gmra.mxu0 %vm6295_vm1, %v7062_v4  ;;  %v6833_v5 = vadd.f32 %v15371_v49, %v6778_v0  ;;  %vm6881_vm13 = vcmp.ge.f32.partialorder %v6832_v37, 0.0  ;;  %v7625_v47 = vld [vmem:[#allocation5 + $0xc9] sm:$0xff]  ;;  %v7626_v18 = vld [vmem:[#allocation5 + $0xd1] sm:$0xff]  ;;  %v7071_v41 = vld [vmem:[#allocation5 + $0xe0] sm:$0xff] }
 0x4f9   : > { %v6978_v16 = vsel %vm6880_vm12, %v6831_v29, %v6929_v31  ;;  %v6782_v53 = vmul.f32 %v15350_v51, %v6727_v24  ;;  %v6783_v43 = vmul.f32 %v15350_v51, %v6728_v56  ;;  %12247 = vmatprep.mubr.msk.f32.mxu0 %vm6295_vm1, %v7063_v28  ;;  %v6930_v10 = vmul.f32 0.01, %v6832_v37  ;;  %v7070_v38 = vld [vmem:[#allocation5 + $0xd8] sm:$0xff]  ;;  %v7628_v61 = vld [vmem:[#allocation5 + $0xe1] sm:$0xff]  ;;  %v7073_v63 = vld [vmem:[#allocation5 + $0xf0] sm:$0xff] }
 0x4fa   : > { %12333 = vmatmul.mubr.msk.f32.gmra.mxu1 %vm6295_vm1, %v7619_v33  ;;  %7027 = vst.msk [vmem:[#allocation5 + $0x148] sm:$0xff] %vm6295_vm1, %v6978_v16  ;;  %v6834_v19 = vadd.f32 %v15371_v49, %v6779_v6  ;;  %v6835_v60 = vadd.f32 %v15371_v49, %v6780_v26  ;;  %vm6882_vm14 = vcmp.ge.f32.partialorder %v6833_v5, 0.0  ;;  %v6931_v9 = vmul.f32 0.01, %v6833_v5  ;;  %v7627_v27 = vld [vmem:[#allocation5 + $0xd9] sm:$0xff]  ;;  %v7072_v46 = vld [vmem:[#allocation5 + $0xe8] sm:$0xff] }
 0x4fb   : > { %12335 = vmatprep.mubr.msk.f32.mxu1 %vm6295_vm1, %v7620_v50  ;;  %v6836_v52 = vadd.f32 %v15371_v49, %v6781_v40  ;;  %v6837_v51 = vadd.f32 %v15371_v49, %v6782_v53  ;;  %v6979_v44 = vsel %vm6881_vm13, %v6832_v37, %v6930_v10  ;;  %v6838_v55 = vadd.f32 %v15371_v49, %v6783_v43  ;;  %v7629_v1 = vld [vmem:[#allocation5 + $0xe9] sm:$0xff]  ;;  %v7630_v29 = vld [vmem:[#allocation5 + $0xf1] sm:$0xff]  ;;  %v7075_v21 = vld [vmem:[#allocation5 + $0x100] sm:$0xff] }
 0x4fc   : > { %vm6883_vm15 = vcmp.ge.f32.partialorder %v6834_v19, 0.0  ;;  %v6932_v20 = vmul.f32 0.01, %v6834_v19  ;;  %vm6884_vm0 = vcmp.ge.f32.partialorder %v6835_v60, 0.0  ;;  %12248 = vmatmul.mubr.msk.f32.gmra.mxu0 %vm6295_vm1, %v7064_v62  ;;  %7028 = vst.msk [vmem:[#allocation5 + $0x150] sm:$0xff] %vm6295_vm1, %v6979_v44  ;;  %v6980_v36 = vsel %vm6882_vm14, %v6833_v5, %v6931_v9  ;;  %v7074_v13 = vld [vmem:[#allocation5 + $0xf8] sm:$0xff] }
 0x4fd   : > { %v6933_v58 = vmul.f32 0.01, %v6835_v60  ;;  %vm6885_vm2 = vcmp.ge.f32.partialorder %v6836_v52, 0.0  ;;  %12250 = vmatprep.mubr.msk.f32.mxu0 %vm6295_vm1, %v7065_v17  ;;  %7029 = vst.msk [vmem:[#allocation5 + $0x158] sm:$0xff] %vm6295_vm1, %v6980_v36  ;;  %v6934_v3 = vmul.f32 0.01, %v6836_v52 }
 0x4fe   : > { %12336 = vmatmul.mubr.msk.f32.gmra.mxu1 %vm6295_vm1, %v7621_v48  ;;  %v6981_v57 = vsel %vm6883_vm15, %v6834_v19, %v6932_v20  ;;  %vm6886_vm3 = vcmp.ge.f32.partialorder %v6837_v51, 0.0  ;;  %v6935_v22 = vmul.f32 0.01, %v6837_v51  ;;  %vm6887_vm4 = vcmp.ge.f32.partialorder %v6838_v55, 0.0  ;;  %v7631_v59 = vld [vmem:[#allocation5 + $0xf9] sm:$0xff]  ;;  %v7632_v32 = vld [vmem:[#allocation5 + $0x101] sm:$0xff] }
 0x4ff   : > { %12338 = vmatprep.mubr.msk.f32.mxu1 %vm6295_vm1, %v7622_v2  ;;  %7030 = vst.msk [vmem:[#allocation5 + $0x160] sm:$0xff] %vm6295_vm1, %v6981_v57  ;;  %v6982_v12 = vsel %vm6884_vm0, %v6835_v60, %v6933_v58  ;;  %v6983_v39 = vsel %vm6885_vm2, %v6836_v52, %v6934_v3  ;;  %v6936_v35 = vmul.f32 0.01, %v6838_v55  ;;  %v7076_v23 = vld [vmem:[#allocation5 + $0x108] sm:$0xff]  ;;  %v7077_v24 = vld [vmem:[#allocation5 + $0x110] sm:$0xff]  ;;  %v7078_v31 = vld [vmem:[#allocation5 + $0x118] sm:$0xff] }
 0x500   : > { %7031 = vst.msk [vmem:[#allocation5 + $0x168] sm:$0xff] %vm6295_vm1, %v6982_v12  ;;  %12251 = vmatmul.mubr.msk.f32.gmra.mxu0 %vm6295_vm1, %v7066_v25  ;;  %7032 = vst.msk [vmem:[#allocation5 + $0x170] sm:$0xff] %vm6295_vm1, %v6983_v39  ;;  %v6984_v49 = vsel %vm6886_vm3, %v6837_v51, %v6935_v22  ;;  %v7633_v56 = vld [vmem:[#allocation5 + $0x109] sm:$0xff]  ;;  %v7634_v54 = vld [vmem:[#allocation5 + $0x111] sm:$0xff] }
 0x501   : > { %12253 = vmatprep.mubr.msk.f32.mxu0 %vm6295_vm1, %v7067_v42  ;;  %7033 = vst.msk [vmem:[#allocation5 + $0x178] sm:$0xff] %vm6295_vm1, %v6984_v49  ;;  %v6985_v7 = vsel %vm6887_vm4, %v6838_v55, %v6936_v35  ;;  %v7079_v0 = vld [vmem:[#allocation5 + $0x120] sm:$0xff]  ;;  %v7080_v6 = vld [vmem:[#allocation5 + $0x128] sm:$0xff]  ;;  %v7081_v26 = vld [vmem:[#allocation5 + $0x130] sm:$0xff] }
 0x502   : > { %12339 = vmatmul.mubr.msk.f32.gmra.mxu1 %vm6295_vm1, %v7623_v8  ;;  %7034 = vst.msk [vmem:[#allocation5 + $0x180] sm:$0xff] %vm6295_vm1, %v6985_v7  ;;  %v7635_v4 = vld [vmem:[#allocation5 + $0x119] sm:$0xff]  ;;  %v7636_v37 = vld [vmem:[#allocation5 + $0x121] sm:$0xff]  ;;  %v7637_v40 = vld [vmem:[#allocation5 + $0x129] sm:$0xff] }
 0x503   : > { %12341 = vmatprep.mubr.msk.f32.mxu1 %vm6295_vm1, %v7624_v15  ;;  %v7638_v28 = vld [vmem:[#allocation5 + $0x131] sm:$0xff]  ;;  %v7083_v16 = vld [vmem:[#allocation5 + $0x140] sm:$0xff]  ;;  %v7084_v43 = vld [vmem:[#allocation5 + $0x148] sm:$0xff] }
 0x504   : > { %12254 = vmatmul.mubr.msk.f32.gmra.mxu0 %vm6295_vm1, %v7068_v14  ;;  %v7082_v33 = vld [vmem:[#allocation5 + $0x138] sm:$0xff]  ;;  %v7640_v53 = vld [vmem:[#allocation5 + $0x141] sm:$0xff]  ;;  %v7085_v50 = vld [vmem:[#allocation5 + $0x150] sm:$0xff] }
 0x505   : > { %12256 = vmatprep.mubr.msk.f32.mxu0 %vm6295_vm1, %v7069_v11  ;;  %v7639_v5 = vld [vmem:[#allocation5 + $0x139] sm:$0xff]  ;;  %v7641_v10 = vld [vmem:[#allocation5 + $0x149] sm:$0xff]  ;;  %v7642_v19 = vld [vmem:[#allocation5 + $0x151] sm:$0xff] }
 0x506   : > { %12342 = vmatmul.mubr.msk.f32.gmra.mxu1 %vm6295_vm1, %v7625_v47  ;;  %v7086_v60 = vld [vmem:[#allocation5 + $0x158] sm:$0xff]  ;;  %v7087_v9 = vld [vmem:[#allocation5 + $0x160] sm:$0xff]  ;;  %v8158_v57 = vld [vmem:[#allocation5 + $0xa] sm:$0xff] }
 0x507   : > { %12344 = vmatprep.mubr.msk.f32.mxu1 %vm6295_vm1, %v7626_v18  ;;  %v7643_v52 = vld [vmem:[#allocation5 + $0x159] sm:$0xff]  ;;  %v7644_v51 = vld [vmem:[#allocation5 + $0x161] sm:$0xff]  ;;  %v7089_v44 = vld [vmem:[#allocation5 + $0x170] sm:$0xff] }
 0x508   : > { %12257 = vmatmul.mubr.msk.f32.gmra.mxu0 %vm6295_vm1, %v7070_v38  ;;  %v7088_v62 = vld [vmem:[#allocation5 + $0x168] sm:$0xff]  ;;  %v7646_v17 = vld [vmem:[#allocation5 + $0x171] sm:$0xff]  ;;  %v11117_v12 = vld [vmem:[%s16638_s8 + $0x130] sm:$0xff] }
 0x509   : > { %12259 = vmatprep.mubr.msk.f32.mxu0 %vm6295_vm1, %v7071_v41  ;;  %v7645_v20 = vld [vmem:[#allocation5 + $0x169] sm:$0xff]  ;;  %v7090_v48 = vld [vmem:[#allocation5 + $0x178] sm:$0xff] }
 0x50a   : > { %12345 = vmatmul.mubr.msk.f32.gmra.mxu1 %vm6295_vm1, %v7627_v27  ;;  %v7647_v36 = vld [vmem:[#allocation5 + $0x179] sm:$0xff]  ;;  %v8157_v58 = vld [vmem:[#allocation5 + $0x2] sm:$0xff]  ;;  %v8715_v55 = vld [vmem:[#allocation5 + $0xb] sm:$0xff] }
 0x50b   : > { %12347 = vmatprep.mubr.msk.f32.mxu1 %vm6295_vm1, %v7628_v61  ;;  %v8714_v2 = vld [vmem:[#allocation5 + $0x3] sm:$0xff]  ;;  %v8159_v3 = vld [vmem:[#allocation5 + $0x12] sm:$0xff]  ;;  %v8160_v25 = vld [vmem:[#allocation5 + $0x1a] sm:$0xff] }
 0x50c   : > { %12260 = vmatmul.mubr.msk.f32.gmra.mxu0 %vm6295_vm1, %v7072_v46  ;;  %v8716_v22 = vld [vmem:[#allocation5 + $0x13] sm:$0xff]  ;;  %v8161_v39 = vld [vmem:[#allocation5 + $0x22] sm:$0xff]  ;;  %v8719_v15 = vld [vmem:[#allocation5 + $0x2b] sm:$0xff] }
 0x50d   : > { %12262 = vmatprep.mubr.msk.f32.mxu0 %vm6295_vm1, %v7073_v63  ;;  %v8717_v35 = vld [vmem:[#allocation5 + $0x1b] sm:$0xff]  ;;  %v8718_v8 = vld [vmem:[#allocation5 + $0x23] sm:$0xff]  ;;  %v8163_v49 = vld [vmem:[#allocation5 + $0x32] sm:$0xff] }
 0x50e   : > { %12348 = vmatmul.mubr.msk.f32.gmra.mxu1 %vm6295_vm1, %v7629_v1  ;;  %v11116_v42 = vld [vmem:[%s16638_s8 + $0x128] sm:$0xff]  ;;  %v11115_v7 = vld [vmem:[%s16638_s8 + $0x120] sm:$0xff]  ;;  %v8165_v47 = vld [vmem:[#allocation5 + $0x42] sm:$0xff] }
 0x50f   : > { %12350 = vmatprep.mubr.msk.f32.mxu1 %vm6295_vm1, %v7630_v29  ;;  %v8720_v14 = vld [vmem:[#allocation5 + $0x33] sm:$0xff]  ;;  %v8721_v18 = vld [vmem:[#allocation5 + $0x3b] sm:$0xff]  ;;  %v11114_v38 = vld [vmem:[%s16638_s8 + $0x118] sm:$0xff] }
 0x510   : > { %12263 = vmatmul.mubr.msk.f32.gmra.mxu0 %vm6295_vm1, %v7074_v13  ;;  %v8164_v11 = vld [vmem:[#allocation5 + $0x3a] sm:$0xff]  ;;  %v8722_v41 = vld [vmem:[#allocation5 + $0x43] sm:$0xff]  ;;  %v8167_v61 = vld [vmem:[#allocation5 + $0x52] sm:$0xff] }
 0x511   : > { %12265 = vmatprep.mubr.msk.f32.mxu0 %vm6295_vm1, %v7075_v21  ;;  %v8166_v27 = vld [vmem:[#allocation5 + $0x4a] sm:$0xff]  ;;  %v11113_v63 = vld [vmem:[%s16638_s8 + $0x110] sm:$0xff]  ;;  %v8724_v1 = vld [vmem:[#allocation5 + $0x53] sm:$0xff] }
 0x512   : > { %12351 = vmatmul.mubr.msk.f32.gmra.mxu1 %vm6295_vm1, %v7631_v59  ;;  %v8723_v46 = vld [vmem:[#allocation5 + $0x4b] sm:$0xff]  ;;  %v8168_v29 = vld [vmem:[#allocation5 + $0x5a] sm:$0xff]  ;;  %v8169_v13 = vld [vmem:[#allocation5 + $0x62] sm:$0xff] }
 0x513   : > { %12353 = vmatprep.mubr.msk.f32.mxu1 %vm6295_vm1, %v7632_v32  ;;  %v8725_v21 = vld [vmem:[#allocation5 + $0x5b] sm:$0xff]  ;;  %v8726_v32 = vld [vmem:[#allocation5 + $0x63] sm:$0xff] }
 0x514   : > { %12266 = vmatmul.mubr.msk.f32.gmra.mxu0 %vm6295_vm1, %v7076_v23  ;;  %v11112_v59 = vld [vmem:[%s16638_s8 + $0x108] sm:$0xff]  ;;  %v8170_v23 = vld [vmem:[#allocation5 + $0x6a] sm:$0xff] }
 0x515   : > { %12268 = vmatprep.mubr.msk.f32.mxu0 %vm6295_vm1, %v7077_v24  ;;  %v8171_v24 = vld [vmem:[#allocation5 + $0x72] sm:$0xff] }
 0x516   : > { %12354 = vmatmul.mubr.msk.f32.gmra.mxu1 %vm6295_vm1, %v7633_v56  ;;  %v8727_v56 = vld [vmem:[#allocation5 + $0x6b] sm:$0xff] }
 0x517   : > { %12356 = vmatprep.mubr.msk.f32.mxu1 %vm6295_vm1, %v7634_v54  ;;  %v11111_v54 = vld [vmem:[%s16638_s8 + $0x100] sm:$0xff] }
 0x518   : > { %12269 = vmatmul.mubr.msk.f32.gmra.mxu0 %vm6295_vm1, %v7078_v31  ;;  %v8728_v31 = vld [vmem:[#allocation5 + $0x73] sm:$0xff] }
 0x519   : > { %12271 = vmatprep.mubr.msk.f32.mxu0 %vm6295_vm1, %v7079_v0  ;;  %v8172_v0 = vld [vmem:[#allocation5 + $0x7a] sm:$0xff] }
 0x51a   : > { %12357 = vmatmul.mubr.msk.f32.gmra.mxu1 %vm6295_vm1, %v7635_v4  ;;  %v8173_v4 = vld [vmem:[#allocation5 + $0x82] sm:$0xff] }
 0x51b   : > { %12359 = vmatprep.mubr.msk.f32.mxu1 %vm6295_vm1, %v7636_v37  ;;  %v8729_v37 = vld [vmem:[#allocation5 + $0x7b] sm:$0xff] }
 0x51c   : > { %12272 = vmatmul.mubr.msk.f32.gmra.mxu0 %vm6295_vm1, %v7080_v6  ;;  %v8730_v6 = vld [vmem:[#allocation5 + $0x83] sm:$0xff] }
 0x51d   : > { %12274 = vmatprep.mubr.msk.f32.mxu0 %vm6295_vm1, %v7081_v26  ;;  %v8174_v26 = vld [vmem:[#allocation5 + $0x8a] sm:$0xff] }
 0x51e   : > { %12360 = vmatmul.mubr.msk.f32.gmra.mxu1 %vm6295_vm1, %v7637_v40  ;;  %v8175_v40 = vld [vmem:[#allocation5 + $0x92] sm:$0xff] }
 0x51f   : > { %12362 = vmatprep.mubr.msk.f32.mxu1 %vm6295_vm1, %v7638_v28  ;;  %v8731_v28 = vld [vmem:[#allocation5 + $0x8b] sm:$0xff] }
 0x520   : > { %12275 = vmatmul.mubr.msk.f32.gmra.mxu0 %vm6295_vm1, %v7082_v33  ;;  %v8732_v33 = vld [vmem:[#allocation5 + $0x93] sm:$0xff] }
 0x521   : > { %12277 = vmatprep.mubr.msk.f32.mxu0 %vm6295_vm1, %v7083_v16  ;;  %v8176_v16 = vld [vmem:[#allocation5 + $0x9a] sm:$0xff] }
 0x522   : > { %12363 = vmatmul.mubr.msk.f32.gmra.mxu1 %vm6295_vm1, %v7639_v5  ;;  %v8177_v5 = vld [vmem:[#allocation5 + $0xa2] sm:$0xff] }
 0x523   : > { %12365 = vmatprep.mubr.msk.f32.mxu1 %vm6295_vm1, %v7640_v53  ;;  %v8733_v53 = vld [vmem:[#allocation5 + $0x9b] sm:$0xff] }
 0x524   : > { %12278 = vmatmul.mubr.msk.f32.gmra.mxu0 %vm6295_vm1, %v7084_v43  ;;  %v8734_v43 = vld [vmem:[#allocation5 + $0xa3] sm:$0xff] }
 0x525   : > { %12280 = vmatprep.mubr.msk.f32.mxu0 %vm6295_vm1, %v7085_v50  ;;  %v8178_v50 = vld [vmem:[#allocation5 + $0xaa] sm:$0xff] }
 0x526   : > { %12366 = vmatmul.mubr.msk.f32.gmra.mxu1 %vm6295_vm1, %v7641_v10  ;;  %v8179_v10 = vld [vmem:[#allocation5 + $0xb2] sm:$0xff] }
 0x527   : > { %12368 = vmatprep.mubr.msk.f32.mxu1 %vm6295_vm1, %v7642_v19  ;;  %v8735_v19 = vld [vmem:[#allocation5 + $0xab] sm:$0xff] }
 0x528   : > { %12281 = vmatmul.mubr.msk.f32.gmra.mxu0 %vm6295_vm1, %v7086_v60  ;;  %v8736_v60 = vld [vmem:[#allocation5 + $0xb3] sm:$0xff] }
 0x529   : > { %12283 = vmatprep.mubr.msk.f32.mxu0 %vm6295_vm1, %v7087_v9  ;;  %v8180_v9 = vld [vmem:[#allocation5 + $0xba] sm:$0xff] }
 0x52a   : > { %12369 = vmatmul.mubr.msk.f32.gmra.mxu1 %vm6295_vm1, %v7643_v52  ;;  %v8181_v52 = vld [vmem:[#allocation5 + $0xc2] sm:$0xff] }
 0x52b   : > { %12371 = vmatprep.mubr.msk.f32.mxu1 %vm6295_vm1, %v7644_v51  ;;  %v8737_v51 = vld [vmem:[#allocation5 + $0xbb] sm:$0xff] }
 0x52c   : > { %12284 = vmatmul.mubr.msk.f32.gmra.mxu0 %vm6295_vm1, %v7088_v62  ;;  %v8738_v62 = vld [vmem:[#allocation5 + $0xc3] sm:$0xff] }
 0x52d   : > { %12286 = vmatprep.mubr.msk.f32.mxu0 %vm6295_vm1, %v7089_v44  ;;  %v8182_v44 = vld [vmem:[#allocation5 + $0xca] sm:$0xff] }
 0x52e   : > { %12372 = vmatmul.mubr.msk.f32.gmra.mxu1 %vm6295_vm1, %v7645_v20  ;;  %v8183_v20 = vld [vmem:[#allocation5 + $0xd2] sm:$0xff] }
 0x52f   : > { %12374 = vmatprep.mubr.msk.f32.mxu1 %vm6295_vm1, %v7646_v17  ;;  %v8739_v17 = vld [vmem:[#allocation5 + $0xcb] sm:$0xff] }
 0x530   : > { %12287 = vmatmul.mubr.msk.f32.gmra.mxu0 %vm6295_vm1, %v7090_v48  ;;  %v8740_v48 = vld [vmem:[#allocation5 + $0xd3] sm:$0xff] }
 0x531   : > { %12393 = vmatprep.mubr.msk.f32.mxu0 %vm6295_vm1, %v8157_v58  ;;  %v8185_v58 = vld [vmem:[#allocation5 + $0xe2] sm:$0xff] }
 0x532   : > { %12375 = vmatmul.mubr.msk.f32.gmra.mxu1 %vm6295_vm1, %v7647_v36  ;;  %v8184_v36 = vld [vmem:[#allocation5 + $0xda] sm:$0xff] }
 0x533   : > { %12481 = vmatprep.mubr.msk.f32.mxu1 %vm6295_vm1, %v8714_v2  ;;  %v8741_v2 = vld [vmem:[#allocation5 + $0xdb] sm:$0xff] }
 0x534   : > { %12394 = vmatmul.mubr.msk.f32.vlgmr.msra.gmra.mxu0 %vm6295_vm1, %v8158_v57  ;;  %v8742_v57 = vld [vmem:[#allocation5 + $0xe3] sm:$0xff] }
 0x535   : > { %12396 = vmatprep.mubr.msk.f32.mxu0 %vm6295_vm1, %v8159_v3  ;;  %12554 = vmatpush3.msk.msra.mxu0 %vm7243_vm7, %v15639_v34  ;;  %v8162_v34 = vld [vmem:[#allocation5 + $0x2a] sm:$0xff] }
 0x536   : > { %12482 = vmatmul.mubr.msk.f32.vlgmr.msra.gmra.mxu1 %vm6295_vm1, %v8715_v55  ;;  %12555 = vmatprep.subr.mxu0 %v11117_v12  ;;  %v8186_v3 = vld [vmem:[#allocation5 + $0xea] sm:$0xff]  ;;  %v8187_v55 = vld [vmem:[#allocation5 + $0xf2] sm:$0xff] }
 0x537   : > { %12484 = vmatprep.mubr.msk.f32.mxu1 %vm6295_vm1, %v8716_v22  ;;  %12556 = vmatpush3.msra.mxu0 %v11117_v12  ;;  %v8743_v12 = vld [vmem:[#allocation5 + $0xeb] sm:$0xff]  ;;  %v8744_v22 = vld [vmem:[#allocation5 + $0xf3] sm:$0xff] }
 0x538   : > { %12397 = vmatmul.mubr.msk.f32.gmra.mxu0 %vm6295_vm1, %v8160_v25  ;;  %12557 = vmatprep.subr.mxu0 %v11116_v42  ;;  %v8188_v25 = vld [vmem:[#allocation5 + $0xfa] sm:$0xff] }
 0x539   : > { %12399 = vmatprep.mubr.msk.f32.mxu0 %vm6295_vm1, %v8161_v39  ;;  %12558 = vmatpush3.msra.mxu0 %v11116_v42  ;;  %v8189_v39 = vld [vmem:[#allocation5 + $0x102] sm:$0xff] }
 0x53a   : > { %12485 = vmatmul.mubr.msk.f32.gmra.mxu1 %vm6295_vm1, %v8717_v35  ;;  %12559 = vmatprep.subr.mxu0 %v11115_v7  ;;  %v8745_v35 = vld [vmem:[#allocation5 + $0xfb] sm:$0xff]  ;;  %v8746_v42 = vld [vmem:[#allocation5 + $0x103] sm:$0xff] }
 0x53b   : > { %12487 = vmatprep.mubr.msk.f32.mxu1 %vm6295_vm1, %v8718_v8  ;;  %12560 = vmatpush3.msra.mxu0 %v11115_v7  ;;  %v8190_v8 = vld [vmem:[#allocation5 + $0x10a] sm:$0xff]  ;;  %v8192_v7 = vld [vmem:[#allocation5 + $0x11a] sm:$0xff] }
 0x53c   : > { %12400 = vmatmul.mubr.msk.f32.gmra.mxu0 %vm6295_vm1, %v8162_v34  ;;  %12561 = vmatprep.subr.mxu0 %v11114_v38  ;;  %v8191_v34 = vld [vmem:[#allocation5 + $0x112] sm:$0xff] }
 0x53d   : > { %12402 = vmatprep.mubr.msk.f32.mxu0 %vm6295_vm1, %v8163_v49  ;;  %12562 = vmatpush3.msra.mxu0 %v11114_v38  ;;  %v8747_v49 = vld [vmem:[#allocation5 + $0x10b] sm:$0xff] }
 0x53e   : > { %12488 = vmatmul.mubr.msk.f32.gmra.mxu1 %vm6295_vm1, %v8719_v15  ;;  %12563 = vmatprep.subr.mxu0 %v11113_v63  ;;  %v8748_v15 = vld [vmem:[#allocation5 + $0x113] sm:$0xff] }
 0x53f   : > { %12490 = vmatprep.mubr.msk.f32.mxu1 %vm6295_vm1, %v8720_v14  ;;  %12564 = vmatpush3.msra.mxu0 %v11113_v63  ;;  %v8193_v14 = vld [vmem:[#allocation5 + $0x122] sm:$0xff]  ;;  %v8195_v38 = vld [vmem:[#allocation5 + $0x132] sm:$0xff] }
 0x540   : > { %12403 = vmatmul.mubr.msk.f32.gmra.mxu0 %vm6295_vm1, %v8164_v11  ;;  %12565 = vmatprep.subr.mxu0 %v11112_v59  ;;  %v8749_v11 = vld [vmem:[#allocation5 + $0x11b] sm:$0xff] }
 0x541   : > { %12405 = vmatprep.mubr.msk.f32.mxu0 %vm6295_vm1, %v8165_v47  ;;  %12566 = vmatpush3.msra.mxu0 %v11112_v59  ;;  %v8750_v47 = vld [vmem:[#allocation5 + $0x123] sm:$0xff]  ;;  %v8753_v63 = vld [vmem:[#allocation5 + $0x13b] sm:$0xff]  ;;  %v8756_v59 = vld [vmem:[#allocation5 + $0x153] sm:$0xff] }
 0x542   : > { %12491 = vmatmul.mubr.msk.f32.gmra.mxu1 %vm6295_vm1, %v8721_v18  ;;  %12567 = vmatprep.subr.mxu0 %v11111_v54  ;;  %v8194_v18 = vld [vmem:[#allocation5 + $0x12a] sm:$0xff] }
 0x543   : > { %12493 = vmatprep.mubr.msk.f32.mxu1 %vm6295_vm1, %v8722_v41  ;;  %12568 = vmatpush3.msra.mxu0 %v11111_v54  ;;  %v8751_v41 = vld [vmem:[#allocation5 + $0x12b] sm:$0xff] }
 0x544   : > { %12406 = vmatmul.mubr.msk.f32.gmra.mxu0 %vm6295_vm1, %v8166_v27  ;;  %v8752_v27 = vld [vmem:[#allocation5 + $0x133] sm:$0xff]  ;;  %v8202_v54 = vld [vmem:[#allocation5 + $0x16a] sm:$0xff] }
 0x545   : > { %12408 = vmatprep.mubr.msk.f32.mxu0 %vm6295_vm1, %v8167_v61  ;;  %v8196_v61 = vld [vmem:[#allocation5 + $0x13a] sm:$0xff] }
 0x546   : > { %12494 = vmatmul.mubr.msk.f32.gmra.mxu1 %vm6295_vm1, %v8723_v46  ;;  %v8197_v46 = vld [vmem:[#allocation5 + $0x142] sm:$0xff] }
 0x547   : > { %12496 = vmatprep.mubr.msk.f32.mxu1 %vm6295_vm1, %v8724_v1  ;;  %v8754_v1 = vld [vmem:[#allocation5 + $0x143] sm:$0xff] }
 0x548   : > { %12409 = vmatmul.mubr.msk.f32.gmra.mxu0 %vm6295_vm1, %v8168_v29  ;;  %v8198_v29 = vld [vmem:[#allocation5 + $0x14a] sm:$0xff] }
 0x549   : > { %12411 = vmatprep.mubr.msk.f32.mxu0 %vm6295_vm1, %v8169_v13  ;;  %v8199_v13 = vld [vmem:[#allocation5 + $0x152] sm:$0xff] }
 0x54a   : > { %12497 = vmatmul.mubr.msk.f32.gmra.mxu1 %vm6295_vm1, %v8725_v21  ;;  %v8755_v21 = vld [vmem:[#allocation5 + $0x14b] sm:$0xff] }
 0x54b   : > { %12499 = vmatprep.mubr.msk.f32.mxu1 %vm6295_vm1, %v8726_v32  ;;  %v8200_v32 = vld [vmem:[#allocation5 + $0x15a] sm:$0xff] }
 0x54c   : > { %12412 = vmatmul.mubr.msk.f32.gmra.mxu0 %vm6295_vm1, %v8170_v23  ;;  %v8201_v23 = vld [vmem:[#allocation5 + $0x162] sm:$0xff] }
 0x54d   : > { %12414 = vmatprep.mubr.msk.f32.mxu0 %vm6295_vm1, %v8171_v24  ;;  %v8757_v24 = vld [vmem:[#allocation5 + $0x15b] sm:$0xff] }
 0x54e   : > { %12500 = vmatmul.mubr.msk.f32.gmra.mxu1 %vm6295_vm1, %v8727_v56  ;;  %v8758_v56 = vld [vmem:[#allocation5 + $0x163] sm:$0xff] }
 0x54f   : > { %12502 = vmatprep.mubr.msk.f32.mxu1 %vm6295_vm1, %v8728_v31  ;;  %v15896_v31 = vld [vmem:[%s16639_s9] ss:$0 sm:$0xff] }
 0x550   : > { %12415 = vmatmul.mubr.msk.f32.gmra.mxu0 %vm6295_vm1, %v8172_v0  ;;  %v8203_v0 = vld [vmem:[#allocation5 + $0x172] sm:$0xff] }
 0x551   : > { %12417 = vmatprep.mubr.msk.f32.mxu0 %vm6295_vm1, %v8173_v4  ;;  %v8759_v4 = vld [vmem:[#allocation5 + $0x16b] sm:$0xff] }
 0x552   : > { %12503 = vmatmul.mubr.msk.f32.gmra.mxu1 %vm6295_vm1, %v8729_v37 }
 0x553   : > { %12505 = vmatprep.mubr.msk.f32.mxu1 %vm6295_vm1, %v8730_v6  ;;  %v8760_v6 = vld [vmem:[#allocation5 + $0x173] sm:$0xff] }
 0x554   : > { %12418 = vmatmul.mubr.msk.f32.gmra.mxu0 %vm6295_vm1, %v8174_v26 }
 0x555   : > { %12420 = vmatprep.mubr.msk.f32.mxu0 %vm6295_vm1, %v8175_v40 }
 0x556   : > { %12506 = vmatmul.mubr.msk.f32.gmra.mxu1 %vm6295_vm1, %v8731_v28 }
 0x557   : > { %12508 = vmatprep.mubr.msk.f32.mxu1 %vm6295_vm1, %v8732_v33  ;;  %v8204_v33 = vld [vmem:[#allocation5 + $0x17a] sm:$0xff] }
 0x558   : > { %12421 = vmatmul.mubr.msk.f32.gmra.mxu0 %vm6295_vm1, %v8176_v16 }
 0x559   : > { %12423 = vmatprep.mubr.msk.f32.mxu0 %vm6295_vm1, %v8177_v5 }
 0x55a   : > { %12509 = vmatmul.mubr.msk.f32.gmra.mxu1 %vm6295_vm1, %v8733_v53 }
 0x55b   : > { %12511 = vmatprep.mubr.msk.f32.mxu1 %vm6295_vm1, %v8734_v43  ;;  %v8761_v43 = vld [vmem:[#allocation5 + $0x17b] sm:$0xff] }
 0x55c   : > { %12424 = vmatmul.mubr.msk.f32.gmra.mxu0 %vm6295_vm1, %v8178_v50  ;;  %v9271_v50 = vld [vmem:[#allocation5 + $0x4] sm:$0xff] }
 0x55d   : > { %12426 = vmatprep.mubr.msk.f32.mxu0 %vm6295_vm1, %v8179_v10 }
 0x55e   : > { %12512 = vmatmul.mubr.msk.f32.gmra.mxu1 %vm6295_vm1, %v8735_v19 }
 0x55f   : > { %12514 = vmatprep.mubr.msk.f32.mxu1 %vm6295_vm1, %v8736_v60 }
 0x560   : > { %12427 = vmatmul.mubr.msk.f32.gmra.mxu0 %vm6295_vm1, %v8180_v9 }
 0x561   : > { %12429 = vmatprep.mubr.msk.f32.mxu0 %vm6295_vm1, %v8181_v52 }
 0x562   : > { %12515 = vmatmul.mubr.msk.f32.gmra.mxu1 %vm6295_vm1, %v8737_v51  ;;  %v9272_v51 = vld [vmem:[#allocation5 + $0xc] sm:$0xff] }
 0x563   : > { %12517 = vmatprep.mubr.msk.f32.mxu1 %vm6295_vm1, %v8738_v62 }
 0x564   : > { %12430 = vmatmul.mubr.msk.f32.gmra.mxu0 %vm6295_vm1, %v8182_v44 }
 0x565   : > { %12432 = vmatprep.mubr.msk.f32.mxu0 %vm6295_vm1, %v8183_v20 }
 0x566   : > { %12518 = vmatmul.mubr.msk.f32.gmra.mxu1 %vm6295_vm1, %v8739_v17  ;;  %v9273_v17 = vld [vmem:[#allocation5 + $0x14] sm:$0xff] }
 0x567   : > { %12520 = vmatprep.mubr.msk.f32.mxu1 %vm6295_vm1, %v8740_v48 }
 0x568   : > { %12433 = vmatmul.mubr.msk.f32.gmra.mxu0 %vm6295_vm1, %v8184_v36 }
 0x569   : > { %12435 = vmatprep.mubr.msk.f32.mxu0 %vm6295_vm1, %v8185_v58 }
 0x56a   : > { %12521 = vmatmul.mubr.msk.f32.gmra.mxu1 %vm6295_vm1, %v8741_v2 }
 0x56b   : > { %12523 = vmatprep.mubr.msk.f32.mxu1 %vm6295_vm1, %v8742_v57 }
 0x56c   : > { %12436 = vmatmul.mubr.msk.f32.gmra.mxu0 %vm6295_vm1, %v8186_v3  ;;  %v9274_v3 = vld [vmem:[#allocation5 + $0x1c] sm:$0xff] }
 0x56d   : > { %12438 = vmatprep.mubr.msk.f32.mxu0 %vm6295_vm1, %v8187_v55 }
 0x56e   : > { %12524 = vmatmul.mubr.msk.f32.gmra.mxu1 %vm6295_vm1, %v8743_v12 }
 0x56f   : > { %12526 = vmatprep.mubr.msk.f32.mxu1 %vm6295_vm1, %v8744_v22 }
 0x570   : > { %12439 = vmatmul.mubr.msk.f32.gmra.mxu0 %vm6295_vm1, %v8188_v25  ;;  %v9275_v25 = vld [vmem:[#allocation5 + $0x24] sm:$0xff] }
 0x571   : > { %12441 = vmatprep.mubr.msk.f32.mxu0 %vm6295_vm1, %v8189_v39 }
 0x572   : > { %12527 = vmatmul.mubr.msk.f32.gmra.mxu1 %vm6295_vm1, %v8745_v35 }
 0x573   : > { %12529 = vmatprep.mubr.msk.f32.mxu1 %vm6295_vm1, %v8746_v42 }
 0x574   : > { %12442 = vmatmul.mubr.msk.f32.gmra.mxu0 %vm6295_vm1, %v8190_v8 }
 0x575   : > { %12444 = vmatprep.mubr.msk.f32.mxu0 %vm6295_vm1, %v8191_v34 }
 0x576   : > { %12530 = vmatmul.mubr.msk.f32.gmra.mxu1 %vm6295_vm1, %v8747_v49  ;;  %v9276_v49 = vld [vmem:[#allocation5 + $0x2c] sm:$0xff] }
 0x577   : > { %12532 = vmatprep.mubr.msk.f32.mxu1 %vm6295_vm1, %v8748_v15 }
 0x578   : > { %12445 = vmatmul.mubr.msk.f32.gmra.mxu0 %vm6295_vm1, %v8192_v7 }
 0x579   : > { %12447 = vmatprep.mubr.msk.f32.mxu0 %vm6295_vm1, %v8193_v14 }
 0x57a   : > { %12533 = vmatmul.mubr.msk.f32.gmra.mxu1 %vm6295_vm1, %v8749_v11  ;;  %v9277_v11 = vld [vmem:[#allocation5 + $0x34] sm:$0xff] }
 0x57b   : > { %12535 = vmatprep.mubr.msk.f32.mxu1 %vm6295_vm1, %v8750_v47 }
 0x57c   : > { %12448 = vmatmul.mubr.msk.f32.gmra.mxu0 %vm6295_vm1, %v8194_v18 }
 0x57d   : > { %12450 = vmatprep.mubr.msk.f32.mxu0 %vm6295_vm1, %v8195_v38 }
 0x57e   : > { %12536 = vmatmul.mubr.msk.f32.gmra.mxu1 %vm6295_vm1, %v8751_v41 }
 0x57f   : > { %12538 = vmatprep.mubr.msk.f32.mxu1 %vm6295_vm1, %v8752_v27 }
 0x580   : > { %12451 = vmatmul.mubr.msk.f32.gmra.mxu0 %vm6295_vm1, %v8196_v61  ;;  %v9278_v61 = vld [vmem:[#allocation5 + $0x3c] sm:$0xff] }
 0x581   : > { %12453 = vmatprep.mubr.msk.f32.mxu0 %vm6295_vm1, %v8197_v46 }
 0x582   : > { %12539 = vmatmul.mubr.msk.f32.gmra.mxu1 %vm6295_vm1, %v8753_v63 }
 0x583   : > { %12541 = vmatprep.mubr.msk.f32.mxu1 %vm6295_vm1, %v8754_v1 }
 0x584   : > { %12454 = vmatmul.mubr.msk.f32.gmra.mxu0 %vm6295_vm1, %v8198_v29  ;;  %v9279_v29 = vld [vmem:[#allocation5 + $0x44] sm:$0xff] }
 0x585   : > { %12456 = vmatprep.mubr.msk.f32.mxu0 %vm6295_vm1, %v8199_v13 }
 0x586   : > { %12542 = vmatmul.mubr.msk.f32.gmra.mxu1 %vm6295_vm1, %v8755_v21 }
 0x587   : > { %12544 = vmatprep.mubr.msk.f32.mxu1 %vm6295_vm1, %v8756_v59 }
 0x588   : > { %12457 = vmatmul.mubr.msk.f32.gmra.mxu0 %vm6295_vm1, %v8200_v32 }
 0x589   : > { %12459 = vmatprep.mubr.msk.f32.mxu0 %vm6295_vm1, %v8201_v23 }
 0x58a   : > { %12545 = vmatmul.mubr.msk.f32.gmra.mxu1 %vm6295_vm1, %v8757_v24  ;;  %v9280_v24 = vld [vmem:[#allocation5 + $0x4c] sm:$0xff] }
 0x58b   : > { %12547 = vmatprep.mubr.msk.f32.mxu1 %vm6295_vm1, %v8758_v56 }
 0x58c   : > { %12460 = vmatmul.mubr.msk.f32.gmra.mxu0 %vm6295_vm1, %v8202_v54  ;;  %v12219_v37 = vpop.f32.mrf.mxu0 }
 0x58d   : > { %12462 = vmatprep.mubr.msk.f32.mxu0 %vm6295_vm1, %v8203_v0  ;;  %v7553_v26 = vadd.f32 %v12219_v37, %v15896_v31  ;;  %v12307_v40 = vpop.f32.mrf.mxu1  ;;  %v9281_v0 = vld [vmem:[#allocation5 + $0x54] sm:$0xff] }
 0x58e   : > { %12548 = vmatmul.mubr.msk.f32.gmra.mxu1 %vm6295_vm1, %v8759_v4  ;;  %v7313_v28 = vpop.f32.mrf.mxu0 }
 0x58f   : > { %12550 = vmatprep.mubr.msk.f32.mxu1 %vm6295_vm1, %v8760_v6  ;;  %v15903_v16 = vadd.f32 %v12307_v40, %v7553_v26  ;;  %v7552_v5 = vadd.f32 %v15896_v31, %v7313_v28  ;;  %v7870_v53 = vpop.f32.mrf.mxu1  ;;  %v9282_v26 = vld [vmem:[#allocation5 + $0x5c] sm:$0xff]  ;;  %v9283_v40 = vld [vmem:[#allocation5 + $0x64] sm:$0xff] }
 0x590   : > { %12463 = vmatmul.mubr.msk.f32.gmra.mxu0 %vm6295_vm1, %v8204_v33  ;;  %v12222_v10 = vpop.f32.mrf.mxu0 }
 0x591   : > { %12569 = vmatprep.mubr.msk.f32.mxu0 %vm6295_vm1, %v9271_v50  ;;  %v15909_v19 = vadd.f32 %v7870_v53, %v7552_v5  ;;  %v7555_v60 = vadd.f32 %v12222_v10, %v15896_v31  ;;  %v12310_v9 = vpop.f32.mrf.mxu1  ;;  %v9284_v5 = vld [vmem:[#allocation5 + $0x6c] sm:$0xff] }
 0x592   : > { %12551 = vmatmul.mubr.msk.f32.gmra.mxu1 %vm6295_vm1, %v8761_v43  ;;  %v7323_v52 = vpop.f32.mrf.mxu0  ;;  %v9285_v43 = vld [vmem:[#allocation5 + $0x74] sm:$0xff] }
 0x593   : > { %v15912_v62 = vadd.f32 %v12310_v9, %v7555_v60  ;;  %v7554_v44 = vadd.f32 %v15896_v31, %v7323_v52  ;;  %v7880_v20 = vpop.f32.mrf.mxu1  ;;  %v9286_v52 = vld [vmem:[#allocation5 + $0x7c] sm:$0xff] }
 0x594   : > { %12570 = vmatmul.mubr.msk.f32.vlgmr.msra.gmra.mxu0 %vm6295_vm1, %v9272_v51  ;;  %v12225_v48 = vpop.f32.mrf.mxu0 }
 0x595   : > { %12572 = vmatprep.mubr.msk.f32.mxu0 %vm6295_vm1, %v9273_v17  ;;  %v15917_v36 = vadd.f32 %v7880_v20, %v7554_v44  ;;  %v7557_v58 = vadd.f32 %v12225_v48, %v15896_v31  ;;  %v12313_v2 = vpop.f32.mrf.mxu1  ;;  %v9287_v44 = vld [vmem:[#allocation5 + $0x84] sm:$0xff] }
 0x596   : > { %v7333_v57 = vpop.f32.mrf.mxu0 }
 0x597   : > { %v15920_v55 = vadd.f32 %v12313_v2, %v7557_v58  ;;  %v7556_v12 = vadd.f32 %v15896_v31, %v7333_v57  ;;  %v7890_v22 = vpop.f32.mrf.mxu1 }
 0x598   : > { %12573 = vmatmul.mubr.msk.f32.gmra.mxu0 %vm6295_vm1, %v9274_v3  ;;  %v9288_v3 = vld [vmem:[#allocation5 + $0x8c] sm:$0xff] }
 0x599   : > { %v12228_v39 = vpop.f32.mrf.mxu0  ;;  %12575 = vmatprep.mubr.msk.f32.mxu0 %vm6295_vm1, %v9275_v25  ;;  %v15925_v35 = vadd.f32 %v7890_v22, %v7556_v12  ;;  %v9289_v22 = vld [vmem:[#allocation5 + $0x94] sm:$0xff] }
 0x59a   : > { %v7559_v42 = vadd.f32 %v12228_v39, %v15896_v31  ;;  %v12316_v8 = vpop.f32.mrf.mxu1 }
 0x59b   : > { %v7343_v34 = vpop.f32.mrf.mxu0 }
 0x59c   : > { %v15928_v15 = vadd.f32 %v12316_v8, %v7559_v42  ;;  %v7558_v7 = vadd.f32 %v15896_v31, %v7343_v34  ;;  %v7900_v14 = vpop.f32.mrf.mxu1  ;;  %12576 = vmatmul.mubr.msk.f32.gmra.mxu0 %vm6295_vm1, %v9276_v49 }
 0x59d   : > { %v12231_v47 = vpop.f32.mrf.mxu0  ;;  %12578 = vmatprep.mubr.msk.f32.mxu0 %vm6295_vm1, %v9277_v11 }
 0x59e   : > { %v15933_v18 = vadd.f32 %v7900_v14, %v7558_v7  ;;  %v7561_v38 = vadd.f32 %v12231_v47, %v15896_v31  ;;  %v12319_v41 = vpop.f32.mrf.mxu1  ;;  %v9290_v14 = vld [vmem:[#allocation5 + $0x9c] sm:$0xff]  ;;  %v9291_v47 = vld [vmem:[#allocation5 + $0xa4] sm:$0xff] }
 0x59f   : > { %v7353_v27 = vpop.f32.mrf.mxu0 }
 0x5a0   : > { %v15936_v46 = vadd.f32 %v12319_v41, %v7561_v38  ;;  %v7560_v63 = vadd.f32 %v15896_v31, %v7353_v27  ;;  %v7910_v1 = vpop.f32.mrf.mxu1  ;;  %12579 = vmatmul.mubr.msk.f32.gmra.mxu0 %vm6295_vm1, %v9278_v61 }
 0x5a1   : > { %v12234_v13 = vpop.f32.mrf.mxu0  ;;  %12581 = vmatprep.mubr.msk.f32.mxu0 %vm6295_vm1, %v9279_v29 }
 0x5a2   : > { %v15941_v21 = vadd.f32 %v7910_v1, %v7560_v63  ;;  %v7563_v59 = vadd.f32 %v12234_v13, %v15896_v31  ;;  %v12322_v32 = vpop.f32.mrf.mxu1  ;;  %v9292_v13 = vld [vmem:[#allocation5 + $0xac] sm:$0xff] }
 0x5a3   : > { %v7363_v23 = vpop.f32.mrf.mxu0 }
 0x5a4   : > { %v15944_v56 = vadd.f32 %v12322_v32, %v7563_v59  ;;  %v7562_v54 = vadd.f32 %v15896_v31, %v7363_v23  ;;  %12582 = vmatmul.mubr.msk.f32.gmra.mxu0 %vm6295_vm1, %v9280_v24  ;;  %v7920_v4 = vpop.f32.mrf.mxu1  ;;  %v9293_v32 = vld [vmem:[#allocation5 + $0xb4] sm:$0xff] }
 0x5a5   : > { %12584 = vmatprep.mubr.msk.f32.mxu0 %vm6295_vm1, %v9281_v0 }
 0x5a6   : > { %v15949_v37 = vadd.f32 %v7920_v4, %v7562_v54 }
 0x5a7   : > { %v12237_v6 = vpop.f32.mrf.mxu0 }
 0x5a8   : > { %12585 = vmatmul.mubr.msk.f32.gmra.mxu0 %vm6295_vm1, %v9282_v26  ;;  %v7565_v33 = vadd.f32 %v12237_v6, %v15896_v31 }
 0x5a9   : > { %12587 = vmatprep.mubr.msk.f32.mxu0 %vm6295_vm1, %v9283_v40  ;;  %v7373_v28 = vpop.f32.mrf.mxu0  ;;  %v9294_v40 = vld [vmem:[#allocation5 + $0xbc] sm:$0xff] }
 0x5aa   : > { %v7564_v50 = vadd.f32 %v15896_v31, %v7373_v28 }
 0x5ac   : > { %v12325_v53 = vpop.f32.mrf.mxu1  ;;  %12588 = vmatmul.mubr.msk.f32.gmra.mxu0 %vm6295_vm1, %v9284_v5 }
 0x5ad   : > { %v15956_v10 = vadd.f32 %v12325_v53, %v7565_v33  ;;  %12590 = vmatprep.mubr.msk.f32.mxu0 %vm6295_vm1, %v9285_v43  ;;  %v9295_v33 = vld [vmem:[#allocation5 + $0xc4] sm:$0xff] }
 0x5ae   : > { %v7930_v60 = vpop.f32.mrf.mxu1 }
 0x5af   : > { %v15959_v9 = vadd.f32 %v7930_v60, %v7564_v50 }
 0x5b0   : > { %v12240_v51 = vpop.f32.mrf.mxu0  ;;  %12591 = vmatmul.mubr.msk.f32.gmra.mxu0 %vm6295_vm1, %v9286_v52 }
 0x5b1   : > { %v7567_v20 = vadd.f32 %v12240_v51, %v15896_v31  ;;  %12593 = vmatprep.mubr.msk.f32.mxu0 %vm6295_vm1, %v9287_v44  ;;  %v9296_v44 = vld [vmem:[#allocation5 + $0xcc] sm:$0xff] }
 0x5b2   : > { %v12328_v17 = vpop.f32.mrf.mxu1  ;;  %v7383_v48 = vpop.f32.mrf.mxu0 }
 0x5b3   : > { %v15964_v58 = vadd.f32 %v12328_v17, %v7567_v20  ;;  %v7566_v2 = vadd.f32 %v15896_v31, %v7383_v48  ;;  %v9297_v17 = vld [vmem:[#allocation5 + $0xd4] sm:$0xff] }
 0x5b4   : > { %v7940_v57 = vpop.f32.mrf.mxu1  ;;  %v12243_v12 = vpop.f32.mrf.mxu0  ;;  %12594 = vmatmul.mubr.msk.f32.gmra.mxu0 %vm6295_vm1, %v9288_v3 }
 0x5b5   : > { %v15968_v25 = vadd.f32 %v7940_v57, %v7566_v2  ;;  %v7569_v39 = vadd.f32 %v12243_v12, %v15896_v31  ;;  %12596 = vmatprep.mubr.msk.f32.mxu0 %vm6295_vm1, %v9289_v22 }
 0x5b6   : > { %v12331_v42 = vpop.f32.mrf.mxu1  ;;  %v7393_v8 = vpop.f32.mrf.mxu0 }
 0x5b7   : > { %v15972_v34 = vadd.f32 %v12331_v42, %v7569_v39  ;;  %v7568_v49 = vadd.f32 %v15896_v31, %v7393_v8  ;;  %v9298_v42 = vld [vmem:[#allocation5 + $0xdc] sm:$0xff] }
 0x5b8   : > { %v7950_v7 = vpop.f32.mrf.mxu1  ;;  %v12246_v11 = vpop.f32.mrf.mxu0  ;;  %12597 = vmatmul.mubr.msk.f32.gmra.mxu0 %vm6295_vm1, %v9290_v14 }
 0x5b9   : > { %v15976_v38 = vadd.f32 %v7950_v7, %v7568_v49  ;;  %v7571_v41 = vadd.f32 %v12246_v11, %v15896_v31  ;;  %12599 = vmatprep.mubr.msk.f32.mxu0 %vm6295_vm1, %v9291_v47  ;;  %v9299_v49 = vld [vmem:[#allocation5 + $0xe4] sm:$0xff] }
 0x5ba   : > { %v12334_v27 = vpop.f32.mrf.mxu1  ;;  %v7403_v61 = vpop.f32.mrf.mxu0 }
 0x5bb   : > { %v15980_v63 = vadd.f32 %v12334_v27, %v7571_v41  ;;  %v7570_v1 = vadd.f32 %v15896_v31, %v7403_v61 }
 0x5bc   : > { %v7960_v29 = vpop.f32.mrf.mxu1  ;;  %v12249_v59 = vpop.f32.mrf.mxu0  ;;  %12600 = vmatmul.mubr.msk.f32.gmra.mxu0 %vm6295_vm1, %v9292_v13  ;;  %v9301_v13 = vld [vmem:[#allocation5 + $0xf4] sm:$0xff] }
 0x5bd   : > { %v15984_v23 = vadd.f32 %v7960_v29, %v7570_v1  ;;  %v7573_v24 = vadd.f32 %v12249_v59, %v15896_v31  ;;  %12602 = vmatprep.mubr.msk.f32.mxu0 %vm6295_vm1, %v9293_v32  ;;  %v9300_v1 = vld [vmem:[#allocation5 + $0xec] sm:$0xff] }
 0x5be   : > { %v12337_v54 = vpop.f32.mrf.mxu1  ;;  %v7413_v0 = vpop.f32.mrf.mxu0 }
 0x5bf   : > { %v15988_v4 = vadd.f32 %v12337_v54, %v7573_v24  ;;  %v7572_v6 = vadd.f32 %v15896_v31, %v7413_v0 }
 0x5c0   : > { %v7970_v26 = vpop.f32.mrf.mxu1  ;;  %v12252_v28 = vpop.f32.mrf.mxu0  ;;  %12603 = vmatmul.mubr.msk.f32.gmra.mxu0 %vm6295_vm1, %v9294_v40  ;;  %v9302_v40 = vld [vmem:[#allocation5 + $0xfc] sm:$0xff] }
 0x5c1   : > { %v15992_v5 = vadd.f32 %v7970_v26, %v7572_v6  ;;  %v7575_v53 = vadd.f32 %v12252_v28, %v15896_v31  ;;  %12605 = vmatprep.mubr.msk.f32.mxu0 %vm6295_vm1, %v9295_v33  ;;  %v9303_v33 = vld [vmem:[#allocation5 + $0x104] sm:$0xff] }
 0x5c2   : > { %v12340_v43 = vpop.f32.mrf.mxu1  ;;  %v7423_v50 = vpop.f32.mrf.mxu0 }
 0x5c3   : > { %v15996_v60 = vadd.f32 %v12340_v43, %v7575_v53  ;;  %v7574_v52 = vadd.f32 %v15896_v31, %v7423_v50 }
 0x5c4   : > { %v7980_v51 = vpop.f32.mrf.mxu1  ;;  %v12255_v20 = vpop.f32.mrf.mxu0  ;;  %12606 = vmatmul.mubr.msk.f32.gmra.mxu0 %vm6295_vm1, %v9296_v44 }
 0x5c5   : > { %v16000_v48 = vadd.f32 %v7980_v51, %v7574_v52  ;;  %v7577_v2 = vadd.f32 %v12255_v20, %v15896_v31  ;;  %12608 = vmatprep.mubr.msk.f32.mxu0 %vm6295_vm1, %v9297_v17  ;;  %v9304_v17 = vld [vmem:[#allocation5 + $0x10c] sm:$0xff] }
 0x5c6   : > { %v12343_v57 = vpop.f32.mrf.mxu1  ;;  %v7433_v3 = vpop.f32.mrf.mxu0 }
 0x5c7   : > { %v16004_v12 = vadd.f32 %v12343_v57, %v7577_v2  ;;  %v7576_v22 = vadd.f32 %v15896_v31, %v7433_v3  ;;  %v9305_v57 = vld [vmem:[#allocation5 + $0x114] sm:$0xff] }
 0x5c8   : > { %v7990_v39 = vpop.f32.mrf.mxu1  ;;  %v12258_v8 = vpop.f32.mrf.mxu0  ;;  %12609 = vmatmul.mubr.msk.f32.gmra.mxu0 %vm6295_vm1, %v9298_v42 }
 0x5c9   : > { %v16008_v7 = vadd.f32 %v7990_v39, %v7576_v22  ;;  %v7579_v14 = vadd.f32 %v12258_v8, %v15896_v31  ;;  %12611 = vmatprep.mubr.msk.f32.mxu0 %vm6295_vm1, %v9299_v49 }
 0x5ca   : > { %v12346_v11 = vpop.f32.mrf.mxu1  ;;  %v7443_v47 = vpop.f32.mrf.mxu0 }
 0x5cb   : > { %v16012_v41 = vadd.f32 %v12346_v11, %v7579_v14  ;;  %v7578_v27 = vadd.f32 %v15896_v31, %v7443_v47  ;;  %v9306_v11 = vld [vmem:[#allocation5 + $0x11c] sm:$0xff] }
 0x5cc   : > { %v8000_v61 = vpop.f32.mrf.mxu1  ;;  %v12261_v29 = vpop.f32.mrf.mxu0  ;;  %12612 = vmatmul.mubr.msk.f32.gmra.mxu0 %vm6295_vm1, %v9300_v1 }
 0x5cd   : > { %v16016_v59 = vadd.f32 %v8000_v61, %v7578_v27  ;;  %v7581_v32 = vadd.f32 %v12261_v29, %v15896_v31  ;;  %12614 = vmatprep.mubr.msk.f32.mxu0 %vm6295_vm1, %v9301_v13  ;;  %v9307_v27 = vld [vmem:[#allocation5 + $0x124] sm:$0xff] }
 0x5ce   : > { %v12349_v24 = vpop.f32.mrf.mxu1  ;;  %v7453_v54 = vpop.f32.mrf.mxu0 }
 0x5cf   : > { %v16020_v0 = vadd.f32 %v12349_v24, %v7581_v32  ;;  %v7580_v6 = vadd.f32 %v15896_v31, %v7453_v54 }
 0x5d0   : > { %v8010_v26 = vpop.f32.mrf.mxu1  ;;  %v12264_v28 = vpop.f32.mrf.mxu0  ;;  %12615 = vmatmul.mubr.msk.f32.gmra.mxu0 %vm6295_vm1, %v9302_v40  ;;  %v9309_v40 = vld [vmem:[#allocation5 + $0x134] sm:$0xff] }
 0x5d1   : > { %v16024_v53 = vadd.f32 %v8010_v26, %v7580_v6  ;;  %v7583_v43 = vadd.f32 %v12264_v28, %v15896_v31  ;;  %12617 = vmatprep.mubr.msk.f32.mxu0 %vm6295_vm1, %v9303_v33  ;;  %v9308_v6 = vld [vmem:[#allocation5 + $0x12c] sm:$0xff] }
 0x5d2   : > { %v12352_v50 = vpop.f32.mrf.mxu1  ;;  %v7463_v52 = vpop.f32.mrf.mxu0 }
 0x5d3   : > { %v16028_v51 = vadd.f32 %v12352_v50, %v7583_v43  ;;  %v7582_v44 = vadd.f32 %v15896_v31, %v7463_v52 }
 0x5d4   : > { %v8020_v20 = vpop.f32.mrf.mxu1  ;;  %v12267_v2 = vpop.f32.mrf.mxu0  ;;  %12618 = vmatmul.mubr.msk.f32.gmra.mxu0 %vm6295_vm1, %v9304_v17  ;;  %v9310_v17 = vld [vmem:[#allocation5 + $0x13c] sm:$0xff] }
 0x5d5   : > { %v16032_v3 = vadd.f32 %v8020_v20, %v7582_v44  ;;  %v7585_v22 = vadd.f32 %v12267_v2, %v15896_v31  ;;  %12620 = vmatprep.mubr.msk.f32.mxu0 %vm6295_vm1, %v9305_v57  ;;  %v9311_v57 = vld [vmem:[#allocation5 + $0x144] sm:$0xff] }
 0x5d6   : > { %v12355_v39 = vpop.f32.mrf.mxu1  ;;  %v7473_v42 = vpop.f32.mrf.mxu0 }
 0x5d7   : > { %v16036_v8 = vadd.f32 %v12355_v39, %v7585_v22  ;;  %v7584_v49 = vadd.f32 %v15896_v31, %v7473_v42 }
 0x5d8   : > { %v8030_v14 = vpop.f32.mrf.mxu1  ;;  %v12270_v47 = vpop.f32.mrf.mxu0  ;;  %12621 = vmatmul.mubr.msk.f32.gmra.mxu0 %vm6295_vm1, %v9306_v11 }
 0x5d9   : > { %v16040_v61 = vadd.f32 %v8030_v14, %v7584_v49  ;;  %v7587_v1 = vadd.f32 %v12270_v47, %v15896_v31  ;;  %12623 = vmatprep.mubr.msk.f32.mxu0 %vm6295_vm1, %v9307_v27  ;;  %v9312_v27 = vld [vmem:[#allocation5 + $0x14c] sm:$0xff] }
 0x5da   : > { %v12358_v29 = vpop.f32.mrf.mxu1  ;;  %v7483_v13 = vpop.f32.mrf.mxu0 }
 0x5db   : > { %v16044_v32 = vadd.f32 %v12358_v29, %v7587_v1  ;;  %v7586_v24 = vadd.f32 %v15896_v31, %v7483_v13  ;;  %v9313_v29 = vld [vmem:[#allocation5 + $0x154] sm:$0xff] }
 0x5dc   : > { %v8040_v54 = vpop.f32.mrf.mxu1  ;;  %v12273_v26 = vpop.f32.mrf.mxu0  ;;  %12624 = vmatmul.mubr.msk.f32.gmra.mxu0 %vm6295_vm1, %v9308_v6 }
 0x5dd   : > { %v16048_v28 = vadd.f32 %v8040_v54, %v7586_v24  ;;  %v7589_v33 = vadd.f32 %v12273_v26, %v15896_v31  ;;  %12626 = vmatprep.mubr.msk.f32.mxu0 %vm6295_vm1, %v9309_v40 }
 0x5de   : > { %v12361_v43 = vpop.f32.mrf.mxu1  ;;  %v7493_v50 = vpop.f32.mrf.mxu0 }
 0x5df   : > { %v16052_v52 = vadd.f32 %v12361_v43, %v7589_v33  ;;  %v7588_v44 = vadd.f32 %v15896_v31, %v7493_v50  ;;  %v9314_v43 = vld [vmem:[#allocation5 + $0x15c] sm:$0xff] }
 0x5e0   : > { %v8050_v20 = vpop.f32.mrf.mxu1  ;;  %v12276_v2 = vpop.f32.mrf.mxu0  ;;  %12627 = vmatmul.mubr.msk.f32.gmra.mxu0 %vm6295_vm1, %v9310_v17 }
 0x5e1   : > { %v16056_v22 = vadd.f32 %v8050_v20, %v7588_v44  ;;  %v7591_v39 = vadd.f32 %v12276_v2, %v15896_v31  ;;  %12629 = vmatprep.mubr.msk.f32.mxu0 %vm6295_vm1, %v9311_v57  ;;  %v9315_v44 = vld [vmem:[#allocation5 + $0x164] sm:$0xff] }
 0x5e2   : > { %v12364_v42 = vpop.f32.mrf.mxu1  ;;  %v7503_v49 = vpop.f32.mrf.mxu0 }
 0x5e3   : > { %v16060_v14 = vadd.f32 %v12364_v42, %v7591_v39  ;;  %v7590_v11 = vadd.f32 %v15896_v31, %v7503_v49 }
 0x5e4   : > { %v8060_v47 = vpop.f32.mrf.mxu1  ;;  %v12279_v1 = vpop.f32.mrf.mxu0  ;;  %12630 = vmatmul.mubr.msk.f32.gmra.mxu0 %vm6295_vm1, %v9312_v27  ;;  %v9317_v27 = vld [vmem:[#allocation5 + $0x174] sm:$0xff] }
 0x5e5   : > { %v16064_v13 = vadd.f32 %v8060_v47, %v7590_v11  ;;  %v7593_v24 = vadd.f32 %v12279_v1, %v15896_v31  ;;  %12632 = vmatprep.mubr.msk.f32.mxu0 %vm6295_vm1, %v9313_v29  ;;  %v9316_v11 = vld [vmem:[#allocation5 + $0x16c] sm:$0xff] }
 0x5e6   : > { %v12367_v54 = vpop.f32.mrf.mxu1  ;;  %v7513_v6 = vpop.f32.mrf.mxu0 }
 0x5e7   : > { %v16068_v26 = vadd.f32 %v12367_v54, %v7593_v24  ;;  %v7592_v40 = vadd.f32 %v15896_v31, %v7513_v6 }
 0x5e8   : > { %v8070_v33 = vpop.f32.mrf.mxu1  ;;  %v12282_v50 = vpop.f32.mrf.mxu0  ;;  %12633 = vmatmul.mubr.msk.f32.gmra.mxu0 %vm6295_vm1, %v9314_v43  ;;  %v9318_v43 = vld [vmem:[#allocation5 + $0x17c] sm:$0xff] }
 0x5e9   : > { %v16072_v20 = vadd.f32 %v8070_v33, %v7592_v40  ;;  %v7595_v17 = vadd.f32 %v12282_v50, %v15896_v31  ;;  %12635 = vmatprep.mubr.msk.f32.mxu0 %vm6295_vm1, %v9315_v44 }
 0x5ea   : > { %v12370_v2 = vpop.f32.mrf.mxu1  ;;  %v7523_v57 = vpop.f32.mrf.mxu0 }
 0x5eb   : > { %v16076_v39 = vadd.f32 %v12370_v2, %v7595_v17  ;;  %v7594_v42 = vadd.f32 %v15896_v31, %v7523_v57 }
 0x5ec   : > { %v8080_v49 = vpop.f32.mrf.mxu1  ;;  %v12285_v47 = vpop.f32.mrf.mxu0  ;;  %12636 = vmatmul.mubr.msk.f32.gmra.mxu0 %vm6295_vm1, %v9316_v11 }
 0x5ed   : > { %v16080_v1 = vadd.f32 %v8080_v49, %v7594_v42  ;;  %v7597_v29 = vadd.f32 %v12285_v47, %v15896_v31  ;;  %12638 = vmatprep.mubr.msk.f32.mxu0 %vm6295_vm1, %v9317_v27 }
 0x5ee   : > { %v12373_v24 = vpop.f32.mrf.mxu1  ;;  %v7533_v54 = vpop.f32.mrf.mxu0 }
 0x5ef   : > { %v16084_v6 = vadd.f32 %v12373_v24, %v7597_v29  ;;  %v7596_v40 = vadd.f32 %v15896_v31, %v7533_v54 }
 0x5f0   : > { %v8090_v33 = vpop.f32.mrf.mxu1  ;;  %v12288_v50 = vpop.f32.mrf.mxu0  ;;  %12639 = vmatmul.mubr.msk.f32.gmra.mxu0 %vm6295_vm1, %v9318_v43 }
 0x5f1   : > { %v16088_v44 = vadd.f32 %v8090_v33, %v7596_v40  ;;  %v7599_v17 = vadd.f32 %v12288_v50, %v15896_v31 }
 0x5f2   : > { %v12376_v2 = vpop.f32.mrf.mxu1  ;;  %v7543_v57 = vpop.f32.mrf.mxu0 }
 0x5f3   : > { %v16091_v42 = vadd.f32 %v12376_v2, %v7599_v17  ;;  %v7598_v49 = vadd.f32 %v15896_v31, %v7543_v57 }
 0x5f4   : > { %v8100_v11 = vpop.f32.mrf.mxu1  ;;  %v12395_v47 = vpop.f32.mrf.mxu0 }
 0x5f5   : > { %v16094_v27 = vadd.f32 %v8100_v11, %v7598_v49  ;;  %v16097_v29 = vadd.f32 %v12395_v47, %v15903_v16 }
 0x5f6   : > { %v16099_v24 = vpop.f32.mrf.mxu1  ;;  %v8427_v54 = vpop.f32.mrf.mxu0 }
 0x5f7   : > { %v16102_v40 = vadd.f32 %v8427_v54, %v15909_v19 }
 0x5f8   : > { %v16104_v33 = vpop.f32.mrf.mxu1  ;;  %v12398_v43 = vpop.f32.mrf.mxu0 }
 0x5f9   : > { %v16107_v50 = vadd.f32 %v12398_v43, %v15912_v62 }
 0x5fa   : > { %v16109_v31 = vpop.f32.mrf.mxu1  ;;  %v8437_v17 = vpop.f32.mrf.mxu0 }
 0x5fb   : > { %v16112_v2 = vadd.f32 %v8437_v17, %v15917_v36 }
 0x5fc   : > { %v16114_v16 = vpop.f32.mrf.mxu1  ;;  %v12401_v57 = vpop.f32.mrf.mxu0 }
 0x5fd   : > { %v16117_v49 = vadd.f32 %v12401_v57, %v15920_v55 }
 0x5fe   : > { %v16119_v19 = vpop.f32.mrf.mxu1  ;;  %v8447_v11 = vpop.f32.mrf.mxu0 }
 0x5ff   : > { %16761 = vst [vmem:[#allocation23_spill] sm:$0xff] %v16119_v19  ;;  %v16122_v47 = vadd.f32 %v8447_v11, %v15925_v35 }
 0x600   : > { %v16124_v62 = vpop.f32.mrf.mxu1  ;;  %v12404_v54 = vpop.f32.mrf.mxu0 }
 0x601   : > { %v16127_v43 = vadd.f32 %v12404_v54, %v15928_v15 }
 0x602   : > { %v8457_v36 = vpop.f32.mrf.mxu0  ;;  %v16129_v17 = vpop.f32.mrf.mxu1 }
 0x603   : > { %16762 = vst [vmem:[#allocation38_spill] sm:$0xff] %v16127_v43  ;;  %v16132_v30 = vadd.f32 %v8457_v36, %v15933_v18 }
 0x604   : > { %v12407_v55 = vpop.f32.mrf.mxu0  ;;  %v16137_v19 = vpop.f32.mrf.mxu1 }
 0x605   : > { %v16135_v57 = vadd.f32 %v12407_v55, %v15936_v46 }
 0x606   : > { %v8467_v45 = vpop.f32.mrf.mxu0  ;;  %v16145_v43 = vpop.f32.mrf.mxu1 }
 0x607   : > { %16763 = vst [vmem:[#allocation24_spill] sm:$0xff] %v16135_v57  ;;  %v16140_v35 = vadd.f32 %v8467_v45, %v15941_v21 }
 0x608   : > { %v12410_v11 = vpop.f32.mrf.mxu0  ;;  %v16153_v57 = vpop.f32.mrf.mxu1 }
 0x609   : > { %v16143_v15 = vadd.f32 %v12410_v11, %v15944_v56 }
 0x60a   : > { %v8477_v54 = vpop.f32.mrf.mxu0 }
 0x60b   : > { %16764 = vst [vmem:[#allocation56_spill] sm:$0xff] %v16143_v15  ;;  %v16148_v18 = vadd.f32 %v8477_v54, %v15949_v37  ;;  %v16161_v15 = vpop.f32.mrf.mxu1 }
 0x60c   : > { %v12413_v36 = vpop.f32.mrf.mxu0 }
 0x60d   : > { %v16151_v46 = vadd.f32 %v12413_v36, %v15956_v10 }
 0x60e   : > { %v8487_v55 = vpop.f32.mrf.mxu0 }
 0x60f   : > { %16765 = vst [vmem:[#allocation39_spill] sm:$0xff] %v16151_v46  ;;  %v16156_v45 = vadd.f32 %v8487_v55, %v15959_v9  ;;  %v16169_v46 = vpop.f32.mrf.mxu1 }
 0x610   : > { %v12416_v21 = vpop.f32.mrf.mxu0 }
 0x611   : > { %v16159_v56 = vadd.f32 %v12416_v21, %v15964_v58 }
 0x612   : > { %v8497_v11 = vpop.f32.mrf.mxu0 }
 0x613   : > { %16766 = vst [vmem:[#allocation59_spill] sm:$0xff] %v16159_v56  ;;  %v16164_v37 = vadd.f32 %v8497_v11, %v15968_v25  ;;  %v16177_v56 = vpop.f32.mrf.mxu1 }
 0x614   : > { %v12419_v54 = vpop.f32.mrf.mxu0 }
 0x615   : > { %v16167_v10 = vadd.f32 %v12419_v54, %v15972_v34 }
 0x616   : > { %v8507_v36 = vpop.f32.mrf.mxu0 }
 0x617   : > { %16767 = vst [vmem:[#allocation25_spill] sm:$0xff] %v16167_v10  ;;  %v16172_v9 = vadd.f32 %v8507_v36, %v15976_v38  ;;  %v16185_v10 = vpop.f32.mrf.mxu1 }
 0x618   : > { %v12422_v55 = vpop.f32.mrf.mxu0 }
 0x619   : > { %v16175_v58 = vadd.f32 %v12422_v55, %v15980_v63 }
 0x61a   : > { %v8517_v21 = vpop.f32.mrf.mxu0 }
 0x61b   : > { %16768 = vst [vmem:[#allocation41_spill] sm:$0xff] %v16175_v58  ;;  %v16180_v25 = vadd.f32 %v8517_v21, %v15984_v23  ;;  %v16193_v58 = vpop.f32.mrf.mxu1 }
 0x61c   : > { %v12425_v11 = vpop.f32.mrf.mxu0 }
 0x61d   : > { %v16183_v34 = vadd.f32 %v12425_v11, %v15988_v4 }
 0x61e   : > { %v8527_v54 = vpop.f32.mrf.mxu0 }
 0x61f   : > { %16769 = vst [vmem:[#allocation40_spill] sm:$0xff] %v16183_v34  ;;  %v16188_v38 = vadd.f32 %v8527_v54, %v15992_v5  ;;  %v16201_v34 = vpop.f32.mrf.mxu1 }
 0x620   : > { %v12428_v36 = vpop.f32.mrf.mxu0 }
 0x621   : > { %v16191_v63 = vadd.f32 %v12428_v36, %v15996_v60 }
 0x622   : > { %v8537_v55 = vpop.f32.mrf.mxu0 }
 0x623   : > { %16770 = vst [vmem:[#allocation26_spill] sm:$0xff] %v16191_v63  ;;  %v16196_v23 = vadd.f32 %v8537_v55, %v16000_v48  ;;  %v16209_v63 = vpop.f32.mrf.mxu1 }
 0x624   : > { %v12431_v21 = vpop.f32.mrf.mxu0 }
 0x625   : > { %v16199_v4 = vadd.f32 %v12431_v21, %v16004_v12 }
 0x626   : > { %v8547_v11 = vpop.f32.mrf.mxu0 }
 0x627   : > { %16771 = vst [vmem:[#allocation43_spill] sm:$0xff] %v16199_v4  ;;  %v16204_v5 = vadd.f32 %v8547_v11, %v16008_v7  ;;  %v16217_v4 = vpop.f32.mrf.mxu1 }
 0x628   : > { %v12434_v54 = vpop.f32.mrf.mxu0 }
 0x629   : > { %v16207_v60 = vadd.f32 %v12434_v54, %v16012_v41 }
 0x62a   : > { %v8557_v36 = vpop.f32.mrf.mxu0 }
 0x62b   : > { %16772 = vst [vmem:[#allocation42_spill] sm:$0xff] %v16207_v60  ;;  %v16212_v48 = vadd.f32 %v8557_v36, %v16016_v59  ;;  %v16225_v60 = vpop.f32.mrf.mxu1 }
 0x62c   : > { %v12437_v55 = vpop.f32.mrf.mxu0 }
 0x62d   : > { %v16215_v12 = vadd.f32 %v12437_v55, %v16020_v0 }
 0x62e   : > { %v8567_v21 = vpop.f32.mrf.mxu0 }
 0x62f   : > { %16773 = vst [vmem:[#allocation27_spill] sm:$0xff] %v16215_v12  ;;  %v16220_v7 = vadd.f32 %v8567_v21, %v16024_v53  ;;  %v16233_v12 = vpop.f32.mrf.mxu1 }
 0x630   : > { %v12440_v11 = vpop.f32.mrf.mxu0 }
 0x631   : > { %v16223_v41 = vadd.f32 %v12440_v11, %v16028_v51 }
 0x632   : > { %v8577_v54 = vpop.f32.mrf.mxu0 }
 0x633   : > { %16774 = vst [vmem:[#allocation45_spill] sm:$0xff] %v16223_v41  ;;  %v16228_v59 = vadd.f32 %v8577_v54, %v16032_v3  ;;  %v16241_v41 = vpop.f32.mrf.mxu1 }
 0x634   : > { %v12443_v36 = vpop.f32.mrf.mxu0 }
 0x635   : > { %v16231_v0 = vadd.f32 %v12443_v36, %v16036_v8 }
 0x636   : > { %v8587_v55 = vpop.f32.mrf.mxu0 }
 0x637   : > { %16775 = vst [vmem:[#allocation44_spill] sm:$0xff] %v16231_v0  ;;  %v16236_v53 = vadd.f32 %v8587_v55, %v16040_v61  ;;  %v16249_v0 = vpop.f32.mrf.mxu1 }
 0x638   : > { %v12446_v21 = vpop.f32.mrf.mxu0 }
 0x639   : > { %v16239_v51 = vadd.f32 %v12446_v21, %v16044_v32 }
 0x63a   : > { %v8597_v11 = vpop.f32.mrf.mxu0 }
 0x63b   : > { %16776 = vst [vmem:[#allocation28_spill] sm:$0xff] %v16239_v51  ;;  %v16244_v3 = vadd.f32 %v8597_v11, %v16048_v28  ;;  %v16257_v51 = vpop.f32.mrf.mxu1 }
 0x63c   : > { %v12449_v54 = vpop.f32.mrf.mxu0 }
 0x63d   : > { %v16247_v8 = vadd.f32 %v12449_v54, %v16052_v52 }
 0x63e   : > { %v8607_v36 = vpop.f32.mrf.mxu0 }
 0x63f   : > { %16777 = vst [vmem:[#allocation47_spill] sm:$0xff] %v16247_v8  ;;  %v16252_v61 = vadd.f32 %v8607_v36, %v16056_v22  ;;  %v16265_v8 = vpop.f32.mrf.mxu1 }
 0x640   : > { %v12452_v55 = vpop.f32.mrf.mxu0 }
 0x641   : > { %v16255_v32 = vadd.f32 %v12452_v55, %v16060_v14 }
 0x642   : > { %v8617_v21 = vpop.f32.mrf.mxu0 }
 0x643   : > { %16778 = vst [vmem:[#allocation46_spill] sm:$0xff] %v16255_v32  ;;  %v16260_v28 = vadd.f32 %v8617_v21, %v16064_v13  ;;  %v16273_v32 = vpop.f32.mrf.mxu1 }
 0x644   : > { %v12455_v11 = vpop.f32.mrf.mxu0 }
 0x645   : > { %v16263_v52 = vadd.f32 %v12455_v11, %v16068_v26 }
 0x646   : > { %v8627_v54 = vpop.f32.mrf.mxu0 }
 0x647   : > { %16779 = vst [vmem:[#allocation13_spill] sm:$0xff] %v16263_v52  ;;  %v16268_v22 = vadd.f32 %v8627_v54, %v16072_v20  ;;  %v16281_v52 = vpop.f32.mrf.mxu1 }
 0x648   : > { %v12458_v36 = vpop.f32.mrf.mxu0 }
 0x649   : > { %v16271_v14 = vadd.f32 %v12458_v36, %v16076_v39 }
 0x64a   : > { %v8637_v55 = vpop.f32.mrf.mxu0 }
 0x64b   : > { %16780 = vst [vmem:[#allocation29_spill] sm:$0xff] %v16271_v14  ;;  %v16276_v13 = vadd.f32 %v8637_v55, %v16080_v1  ;;  %v9224_v14 = vadd.f32 %v16099_v24, %v16097_v29  ;;  %v16291_v1 = vpop.f32.mrf.mxu1  ;;  %v9225_v24 = vadd.f32 %v16114_v16, %v16112_v2 }
 0x64c   : > { %v12461_v21 = vpop.f32.mrf.mxu0 }
 0x64d   : > { %v16279_v26 = vadd.f32 %v12461_v21, %v16084_v6  ;;  %v9223_v21 = vadd.f32 %v16104_v33, %v16102_v40  ;;  %v16782_v40 = vld [vmem:[#allocation23_spill] sm:$0xff] }
 0x64e   : > { %v8647_v11 = vpop.f32.mrf.mxu0  ;;  %v9228_v33 = vadd.f32 %v16782_v40, %v16117_v49 }
 0x64f   : > { %16781 = vst [vmem:[#allocation49_spill] sm:$0xff] %v16279_v26  ;;  %v16284_v20 = vadd.f32 %v8647_v11, %v16088_v44  ;;  %v9226_v11 = vadd.f32 %v16109_v31, %v16107_v50 }
 0x650   : > { %v12464_v54 = vpop.f32.mrf.mxu0 }
 0x651   : > { %v16287_v39 = vadd.f32 %v12464_v54, %v16091_v42  ;;  %v16300_v42 = vpop.f32.mrf.mxu1 }
 0x652   : > { %v8657_v36 = vpop.f32.mrf.mxu0 }
 0x653   : > { %v16294_v55 = vadd.f32 %v8657_v36, %v16094_v27 }
 0x654   : > { %v12571_v6 = vpop.f32.mrf.mxu0 }
 0x655   : > { %v9781_v26 = vadd.f32 %v12571_v6, %v9224_v14  ;;  %v16308_v14 = vpop.f32.mrf.mxu1  ;;  %v16783_v6 = vld [vmem:[#allocation38_spill] sm:$0xff] }
 0x656   : > { %v9541_v44 = vpop.f32.mrf.mxu0 }
 0x657   : > { %9829 = vst.msk [vmem:[#allocation6 + $0x8] sm:$0xff] %vm6295_vm1, %v9781_v26  ;;  %v9780_v54 = vadd.f32 %v9541_v44, %v9223_v21  ;;  %v9227_v26 = vadd.f32 %v16124_v62, %v16122_v47  ;;  %v9230_v21 = vadd.f32 %v16129_v17, %v16783_v6  ;;  %v16316_v44 = vpop.f32.mrf.mxu1  ;;  %v16784_v62 = vld [vmem:[#allocation24_spill] sm:$0xff] }
 0x658   : > { %v12574_v29 = vpop.f32.mrf.mxu0 }
 0x659   : > { %9828 = vst.msk [vmem:[#allocation6] sm:$0xff] %vm6295_vm1, %v9780_v54  ;;  %v9783_v27 = vadd.f32 %v12574_v29, %v9226_v11  ;;  %v9229_v54 = vadd.f32 %v16137_v19, %v16132_v30 }
 0x65a   : > { %v9551_v36 = vpop.f32.mrf.mxu0 }
 0x65b   : > { %9831 = vst.msk [vmem:[#allocation6 + $0x18] sm:$0xff] %vm6295_vm1, %v9783_v27  ;;  %v9782_v50 = vadd.f32 %v9551_v36, %v9225_v24  ;;  %v9232_v24 = vadd.f32 %v16145_v43, %v16784_v62  ;;  %v16324_v27 = vpop.f32.mrf.mxu1 }
 0x65c   : > { %v12577_v31 = vpop.f32.mrf.mxu0 }
 0x65d   : > { %9830 = vst.msk [vmem:[#allocation6 + $0x10] sm:$0xff] %vm6295_vm1, %v9782_v50  ;;  %v9785_v2 = vadd.f32 %v12577_v31, %v9228_v33  ;;  %v9231_v50 = vadd.f32 %v16153_v57, %v16140_v35  ;;  %v16785_v31 = vld [vmem:[#allocation16_spill] sm:$0xff]  ;;  %v16339_v6 = vpop.f32.mrf.mxu1 }
 0x65e   : > { %v9561_v16 = vpop.f32.mrf.mxu0  ;;  %vm9972_vm7 = vcmp.lt.s32.totalorder %v16785_v31, 3 }
 0x65f   : > { %9833 = vst.msk [vmem:[#allocation6 + $0x28] sm:$0xff] %vm6295_vm1, %v9785_v2  ;;  %v9784_v49 = vadd.f32 %v9561_v16, %v9227_v26  ;;  %v16786_v2 = vld [vmem:[#allocation56_spill] sm:$0xff] }
 0x660   : > { %v12580_v11 = vpop.f32.mrf.mxu0  ;;  %v9234_v16 = vadd.f32 %v16161_v15, %v16786_v2 }
 0x661   : > { %9832 = vst.msk [vmem:[#allocation6 + $0x20] sm:$0xff] %vm6295_vm1, %v9784_v49  ;;  %v9787_v29 = vadd.f32 %v12580_v11, %v9230_v21 }
 0x662   : > { %v9571_v47 = vpop.f32.mrf.mxu0 }
 0x663   : > { %9835 = vst.msk [vmem:[#allocation6 + $0x38] sm:$0xff] %vm6295_vm1, %v9787_v29  ;;  %v9786_v17 = vadd.f32 %v9571_v47, %v9229_v54  ;;  %v9233_v54 = vadd.f32 %v16169_v46, %v16148_v18 }
 0x664   : > { %v9876_v36 = vld [vmem:[#allocation6] ss:$3 sm:$0xff]  ;;  %v9892_v40 = vld [vmem:[#allocation6 + $0x1] ss:$3 sm:$0xff]  ;;  %v12583_v33 = vpop.f32.mrf.mxu0  ;;  %v9924_v43 = vld [vmem:[#allocation6 + $0x2] ss:$3 sm:$0xff] }
 0x665   : > { %v9908_v30 = vmax.f32 %v9876_v36, %v9892_v40  ;;  %9834 = vst.msk [vmem:[#allocation6 + $0x30] sm:$0xff] %vm6295_vm1, %v9786_v17  ;;  %v9789_v19 = vadd.f32 %v12583_v33, %v9232_v24  ;;  %v16787_v40 = vld [vmem:[#allocation39_spill] sm:$0xff] }
 0x666   : > { %v9581_v26 = vpop.f32.mrf.mxu0  ;;  %v9236_v33 = vadd.f32 %v16177_v56, %v16787_v40 }
 0x667   : > { %v9940_v57 = vmax.f32 %v9908_v30, %v9924_v43  ;;  %9837 = vst.msk [vmem:[#allocation6 + $0x48] sm:$0xff] %vm6295_vm1, %v9789_v19  ;;  %v9788_v35 = vadd.f32 %v9581_v26, %v9231_v50  ;;  %v16350_v50 = vpop.f32.mrf.mxu1  ;;  %v9235_v43 = vadd.f32 %v16185_v10, %v16156_v45  ;;  %v9237_v45 = vadd.f32 %v16201_v34, %v16164_v37 }
 0x668   : > { %v9877_v21 = vld [vmem:[#allocation6 + $0x18] ss:$3 sm:$0xff]  ;;  %v9893_v49 = vld [vmem:[#allocation6 + $0x19] ss:$3 sm:$0xff]  ;;  %v12586_v11 = vpop.f32.mrf.mxu0  ;;  %v9925_v17 = vld [vmem:[#allocation6 + $0x1a] ss:$3 sm:$0xff] }
 0x669   : > { %9956 = vst.msk [vmem:[%s16335_s28] sm:$0xff] %vm6295_vm1, %v9940_v57  ;;  %v10020_v29 = vsel %vm9972_vm7, %v9940_v57, 0.0  ;;  %v9909_v47 = vmax.f32 %v9877_v21, %v9893_v49  ;;  %9836 = vst.msk [vmem:[#allocation6 + $0x40] sm:$0xff] %vm6295_vm1, %v9788_v35  ;;  %v9791_v62 = vadd.f32 %v12586_v11, %v9234_v16  ;;  %v16788_v57 = vld [vmem:[#allocation59_spill] sm:$0xff]  ;;  %v16361_v21 = vpop.f32.mrf.mxu1 }
 0x66a   : > { %v10037_v15 = vsel %vm6295_vm1, %v10020_v29, 0.0  ;;  %v10077_v24 = vmul.f32 %v10020_v29, %v10020_v29  ;;  %v9591_v36 = vpop.f32.mrf.mxu0  ;;  %v9238_v35 = vadd.f32 %v16193_v58, %v16788_v57  ;;  %v16789_v58 = vld [vmem:[#allocation25_spill] sm:$0xff] }
 0x66b   : > { %v10068_v30 = vrot.slane %v10037_v15, 4  ;;  %v9941_v18 = vmax.f32 %v9909_v47, %v9925_v17  ;;  %9839 = vst.msk [vmem:[#allocation6 + $0x58] sm:$0xff] %vm6295_vm1, %v9791_v62  ;;  %v9790_v46 = vadd.f32 %v9591_v36, %v9233_v54  ;;  %v9240_v36 = vadd.f32 %v16209_v63, %v16789_v58  ;;  %v16791_v58 = vld [vmem:[#allocation40_spill] sm:$0xff] }
 0x66c   : > { %v10093_v19 = vsel %vm6295_vm1, %v10077_v24, 0.0  ;;  %v12589_v31 = vpop.f32.mrf.mxu0 }
 0x66d   : > { %v10069_v26 = vadd.f32 %v10068_v30, %v10037_v15  ;;  %v10124_v2 = vrot.slane %v10093_v19, 4  ;;  %9957 = vst.msk [vmem:[%s16335_s28 + $0x8] sm:$0xff] %vm6295_vm1, %v9941_v18  ;;  %9838 = vst.msk [vmem:[#allocation6 + $0x50] sm:$0xff] %vm6295_vm1, %v9790_v46  ;;  %v9793_v56 = vadd.f32 %v12589_v31, %v9236_v33  ;;  %v16369_v30 = vpop.f32.mrf.mxu1  ;;  %v10036_v31 = vld [vmem:[#allocation11] sm:$0x1] }
 0x66e   : > { %v9601_v16 = vpop.f32.mrf.mxu0 }
 0x66f   : > { %v10070_v49 = vrot.slane %v10069_v26, 2  ;;  %v10125_v11 = vadd.f32 %v10124_v2, %v10093_v19  ;;  %9841 = vst.msk [vmem:[#allocation6 + $0x68] sm:$0xff] %vm6295_vm1, %v9793_v56  ;;  %v9792_v54 = vadd.f32 %v9601_v16, %v9235_v43  ;;  %v9239_v19 = vadd.f32 %v16217_v4, %v16172_v9  ;;  %v16379_v9 = vpop.f32.mrf.mxu1 }
 0x670   : > { %v9878_v10 = vld [vmem:[#allocation6 + $0x30] ss:$3 sm:$0xff]  ;;  %v9894_v29 = vld [vmem:[#allocation6 + $0x31] ss:$3 sm:$0xff]  ;;  %v12592_v47 = vpop.f32.mrf.mxu0  ;;  %v9926_v40 = vld [vmem:[#allocation6 + $0x32] ss:$3 sm:$0xff] }
 0x671   : > { %v10071_v62 = vadd.f32 %v10070_v49, %v10069_v26  ;;  %v10126_v15 = vrot.slane %v10125_v11, 2  ;;  %v9910_v24 = vmax.f32 %v9878_v10, %v9894_v29  ;;  %9840 = vst.msk [vmem:[#allocation6 + $0x60] sm:$0xff] %vm6295_vm1, %v9792_v54  ;;  %v9795_v17 = vadd.f32 %v12592_v47, %v9238_v35  ;;  %v16790_v35 = vld [vmem:[#allocation41_spill] sm:$0xff] }
 0x672   : > { %v9611_v33 = vpop.f32.mrf.mxu0  ;;  %v9242_v49 = vadd.f32 %v16225_v60, %v16790_v35 }
 0x673   : > { %v10072_v18 = vrot.slane %v10071_v62, 1  ;;  %v10127_v46 = vadd.f32 %v10126_v15, %v10125_v11  ;;  %v9942_v37 = vmax.f32 %v9910_v24, %v9926_v40  ;;  %9843 = vst.msk [vmem:[#allocation6 + $0x78] sm:$0xff] %vm6295_vm1, %v9795_v17  ;;  %v9794_v34 = vadd.f32 %v9611_v33, %v9237_v45  ;;  %v10076_v11 = vld [vmem:[#allocation12] sm:$0x1]  ;;  %v16390_v40 = vpop.f32.mrf.mxu1 }
 0x674   : > { %v9879_v43 = vld [vmem:[#allocation6 + $0x48] ss:$3 sm:$0xff]  ;;  %v9895_v26 = vld [vmem:[#allocation6 + $0x49] ss:$3 sm:$0xff]  ;;  %v12595_v2 = vpop.f32.mrf.mxu0  ;;  %v9927_v54 = vld [vmem:[#allocation6 + $0x4a] ss:$3 sm:$0xff]  ;;  %v9241_v15 = vadd.f32 %v16233_v12, %v16180_v25 }
 0x675   : > { %v10073_v56 = vadd.f32 %v10072_v18, %v10071_v62  ;;  %v10128_v63 = vrot.slane %v10127_v46, 1  ;;  %9958 = vst.msk [vmem:[%s16335_s28 + $0x10] sm:$0xff] %vm6295_vm1, %v9942_v37  ;;  %v9911_v16 = vmax.f32 %v9879_v43, %v9895_v26  ;;  %9842 = vst.msk [vmem:[#allocation6 + $0x70] sm:$0xff] %vm6295_vm1, %v9794_v34  ;;  %v9797_v57 = vadd.f32 %v12595_v2, %v9240_v36  ;;  %v16399_v26 = vpop.f32.mrf.mxu1 }
 0x676   : > { %v9621_v45 = vpop.f32.mrf.mxu0  ;;  %v9244_v36 = vadd.f32 %v16241_v41, %v16791_v58  ;;  %v16794_v58 = vld [vmem:[#allocation42_spill] sm:$0xff] }
 0x677   : > { %v10074_v4 = vadd.f32 %v10073_v56, %v10036_v31  ;;  %v10129_v10 = vadd.f32 %v10128_v63, %v10127_v46  ;;  %v9943_v29 = vmax.f32 %v9911_v16, %v9927_v54  ;;  %9845 = vst.msk [vmem:[#allocation6 + $0x88] sm:$0xff] %vm6295_vm1, %v9797_v57  ;;  %v9796_v47 = vadd.f32 %v9621_v45, %v9239_v19  ;;  %v16792_v31 = vld [vmem:[#allocation26_spill] sm:$0xff]  ;;  %v16793_v45 = vld [vmem:[#allocation43_spill] sm:$0xff] }
 0x678   : > { %v12598_v62 = vpop.f32.mrf.mxu0  ;;  %v9243_v46 = vadd.f32 %v16249_v0, %v16188_v38  ;;  %v9246_v43 = vadd.f32 %v16257_v51, %v16792_v31  ;;  %v9245_v38 = vadd.f32 %v16265_v8, %v16196_v23  ;;  %v16795_v31 = vld [vmem:[#allocation27_spill] sm:$0xff] }
 0x679   : > { %10075 = vst.msk [vmem:[#allocation11] sm:$0x1] %vm447_vm8, %v10074_v4  ;;  %v10130_v24 = vadd.f32 %v10129_v10, %v10076_v11  ;;  %v9799_v60 = vadd.f32 %v12598_v62, %v9242_v49  ;;  %v9248_v4 = vadd.f32 %v16273_v32, %v16793_v45  ;;  %v16411_v10 = vpop.f32.mrf.mxu1 }
 0x67a   : > { %9959 = vst.msk [vmem:[%s16335_s28 + $0x18] sm:$0xff] %vm6295_vm1, %v9943_v29  ;;  %9844 = vst.msk [vmem:[#allocation6 + $0x80] sm:$0xff] %vm6295_vm1, %v9796_v47  ;;  %v9631_v17 = vpop.f32.mrf.mxu0 }
 0x67b   : > { %10131 = vst.msk [vmem:[#allocation12] sm:$0x1] %vm447_vm8, %v10130_v24  ;;  %v9798_v33 = vadd.f32 %v9631_v17, %v9241_v15  ;;  %v9247_v24 = vadd.f32 %v16281_v52, %v16204_v5  ;;  %v9249_v5 = vadd.f32 %v16300_v42, %v16212_v48 }
 0x67c   : > { %9847 = vst.msk [vmem:[#allocation6 + $0x98] sm:$0xff] %vm6295_vm1, %v9799_v60  ;;  %v9880_v25 = vld [vmem:[#allocation6 + $0x60] ss:$3 sm:$0xff]  ;;  %v9896_v12 = vld [vmem:[#allocation6 + $0x61] ss:$3 sm:$0xff]  ;;  %v12601_v18 = vpop.f32.mrf.mxu0 }
 0x67d   : > { %v9912_v37 = vmax.f32 %v9880_v25, %v9896_v12  ;;  %9846 = vst.msk [vmem:[#allocation6 + $0x90] sm:$0xff] %vm6295_vm1, %v9798_v33  ;;  %v9801_v34 = vadd.f32 %v12601_v18, %v9244_v36  ;;  %v9928_v19 = vld [vmem:[#allocation6 + $0x62] ss:$3 sm:$0xff]  ;;  %v9250_v36 = vadd.f32 %v16291_v1, %v16794_v58  ;;  %v16423_v33 = vpop.f32.mrf.mxu1 }
 0x67e   : > { %v9641_v41 = vpop.f32.mrf.mxu0 }
 0x67f   : > { %v9944_v2 = vmax.f32 %v9912_v37, %v9928_v19  ;;  %9849 = vst.msk [vmem:[#allocation6 + $0xa8] sm:$0xff] %vm6295_vm1, %v9801_v34  ;;  %v9800_v56 = vadd.f32 %v9641_v41, %v9243_v46 }
 0x680   : > { %v10132_v63 = vld [vmem:[#allocation11] sm:$0x1]  ;;  %v12604_v57 = vpop.f32.mrf.mxu0 }
 0x681   : > { %v9881_v16 = vld [vmem:[#allocation6 + $0x78] ss:$3 sm:$0xff]  ;;  %v16404_v0 = vmul.f32 0.33333334, %v10132_v63  ;;  %9960 = vst.msk [vmem:[%s16335_s28 + $0x20] sm:$0xff] %vm6295_vm1, %v9944_v2  ;;  %9848 = vst.msk [vmem:[#allocation6 + $0xa0] sm:$0xff] %vm6295_vm1, %v9800_v56  ;;  %v9803_v51 = vadd.f32 %v12604_v57, %v9246_v43  ;;  %v9252_v43 = vadd.f32 %v16308_v14, %v16795_v31  ;;  %v16431_v2 = vpop.f32.mrf.mxu1  ;;  %v9251_v57 = vadd.f32 %v16316_v44, %v16220_v7 }
 0x682   : > { %v9897_v35 = vld [vmem:[#allocation6 + $0x79] ss:$3 sm:$0xff]  ;;  %v9651_v54 = vpop.f32.mrf.mxu0  ;;  %v9929_v8 = vld [vmem:[#allocation6 + $0x7a] ss:$3 sm:$0xff]  ;;  %v9253_v7 = vadd.f32 %v16339_v6, %v16228_v59 }
 0x683   : > { %v10135_v49 = vld [vmem:[#allocation12] sm:$0x1]  ;;  %v9913_v11 = vmax.f32 %v9881_v16, %v9897_v35  ;;  %v10137_v23 = vmul.f32 %v16404_v0, %v16404_v0  ;;  %9851 = vst.msk [vmem:[#allocation6 + $0xb8] sm:$0xff] %vm6295_vm1, %v9803_v51  ;;  %v9802_v47 = vadd.f32 %v9651_v54, %v9245_v38  ;;  %v9184_v54 = vpop.f32.mrf.mxu1  ;;  %v10144_v31 = vld [vmem:[%s16641_s11] sm:$0x1] }
 0x684   : > { %v10136_v29 = vmul.f32 0.33333334, %v10135_v49  ;;  %v12607_v15 = vpop.f32.mrf.mxu0  ;;  %v16796_v49 = vld [vmem:[#allocation45_spill] sm:$0xff] }
 0x685   : > { %v9945_v62 = vmax.f32 %v9913_v11, %v9929_v8  ;;  %9850 = vst.msk [vmem:[#allocation6 + $0xb0] sm:$0xff] %vm6295_vm1, %v9802_v47  ;;  %v9805_v17 = vadd.f32 %v12607_v15, %v9248_v4  ;;  %v9254_v11 = vadd.f32 %v16324_v27, %v16796_v49  ;;  %v16797_v8 = vld [vmem:[#allocation44_spill] sm:$0xff]  ;;  %v16489_v49 = vadd.f32 %v9184_v54, %v16268_v22 }
 0x686   : > { %v10138_v60 = vsub.f32 %v10136_v29, %v10137_v23  ;;  %v9661_v32 = vpop.f32.mrf.mxu0  ;;  %v9256_v47 = vadd.f32 %v16350_v50, %v16797_v8 }
 0x687   : > { %9961 = vst.msk [vmem:[%s16335_s28 + $0x28] sm:$0xff] %vm6295_vm1, %v9945_v62  ;;  %9853 = vst.msk [vmem:[#allocation6 + $0xc8] sm:$0xff] %vm6295_vm1, %v9805_v17  ;;  %v9804_v12 = vadd.f32 %v9661_v32, %v9247_v24  ;;  %v12546_v62 = vpop.f32.mrf.mxu1  ;;  %v9255_v17 = vadd.f32 %v16361_v21, %v16236_v53  ;;  %v10142_v32 = vld [vmem:[%s16640_s10] sm:$0x1] }
 0x688   : > { %v10139_v25 = vmax.f32 %v10138_v60, 0.0  ;;  %v9882_v18 = vld [vmem:[#allocation6 + $0x90] ss:$3 sm:$0xff]  ;;  %v9898_v46 = vld [vmem:[#allocation6 + $0x91] ss:$3 sm:$0xff]  ;;  %v12610_v37 = vpop.f32.mrf.mxu0 }
 0x689   : > { %v9914_v34 = vmax.f32 %v9882_v18, %v9898_v46  ;;  %9852 = vst.msk [vmem:[#allocation6 + $0xc0] sm:$0xff] %vm6295_vm1, %v9804_v12  ;;  %v9807_v19 = vadd.f32 %v12610_v37, %v9250_v36  ;;  %v9930_v41 = vld [vmem:[#allocation6 + $0x92] ss:$3 sm:$0xff]  ;;  %v9194_v12 = vpop.f32.mrf.mxu1 }
 0x68a   : > { %v10140_v52 = vadd.f32 1e-05, %v10139_v25  ;;  %v9671_v1 = vpop.f32.mrf.mxu0  ;;  %v16798_v36 = vld [vmem:[#allocation28_spill] sm:$0xff] }
 0x68b   : > { %v9946_v56 = vmax.f32 %v9914_v34, %v9930_v41  ;;  %9855 = vst.msk [vmem:[#allocation6 + $0xd8] sm:$0xff] %vm6295_vm1, %v9807_v19  ;;  %v9806_v63 = vadd.f32 %v9671_v1, %v9249_v5  ;;  %v9258_v25 = vadd.f32 %v16369_v30, %v16798_v36  ;;  %v16799_v30 = vld [vmem:[#allocation47_spill] sm:$0xff] }
 0x68c   : > { %12735 = vrsqrt.f32 %v10140_v52  ;;  %v9883_v16 = vld [vmem:[#allocation6 + $0xa8] ss:$3 sm:$0xff]  ;;  %v9899_v48 = vld [vmem:[#allocation6 + $0xa9] ss:$3 sm:$0xff]  ;;  %v12613_v42 = vpop.f32.mrf.mxu0  ;;  %v9931_v35 = vld [vmem:[#allocation6 + $0xaa] ss:$3 sm:$0xff]  ;;  %v9257_v52 = vadd.f32 %v16379_v9, %v16244_v3  ;;  %v9260_v1 = vadd.f32 %v16390_v40, %v16799_v30 }
 0x68d   : > { %9962 = vst.msk [vmem:[%s16335_s28 + $0x30] sm:$0xff] %vm6295_vm1, %v9946_v56  ;;  %v9915_v38 = vmax.f32 %v9883_v16, %v9899_v48  ;;  %9854 = vst.msk [vmem:[#allocation6 + $0xd0] sm:$0xff] %vm6295_vm1, %v9806_v63  ;;  %v9809_v14 = vadd.f32 %v12613_v42, %v9252_v43  ;;  %v12549_v63 = vpop.f32.mrf.mxu1  ;;  %v16800_v9 = vld [vmem:[#allocation17_spill] sm:$0xff]  ;;  %v9259_v42 = vadd.f32 %v16399_v26, %v16252_v61 }
 0x68e   : > { %v9681_v51 = vpop.f32.mrf.mxu0  ;;  %v16495_v26 = vadd.f32 %v9194_v12, %v16276_v13 }
 0x68f   : > { %v9947_v45 = vmax.f32 %v9915_v38, %v9931_v35  ;;  %9857 = vst.msk [vmem:[#allocation6 + $0xe8] sm:$0xff] %vm6295_vm1, %v9809_v14  ;;  %v9808_v4 = vadd.f32 %v9681_v51, %v9251_v57  ;;  %v16801_v57 = vld [vmem:[#allocation46_spill] sm:$0xff]  ;;  %v16482_v14 = vadd.f32 %v16423_v33, %v16260_v28 }
 0x690   : > { %v12616_v29 = vpop.f32.mrf.mxu0  ;;  %v16478_v38 = vadd.f32 %v16411_v10, %v16801_v57  ;;  %v10147_v28 = vld [vmem:[%s16335_s28] sm:$0xff]  ;;  %v10148_v33 = vld [vmem:[%s16335_s28 + $0x8] sm:$0xff] }
 0x691   : > { %9963 = vst.msk [vmem:[%s16335_s28 + $0x38] sm:$0xff] %vm6295_vm1, %v9947_v45  ;;  %9856 = vst.msk [vmem:[#allocation6 + $0xe0] sm:$0xff] %vm6295_vm1, %v9808_v4  ;;  %v9811_v44 = vadd.f32 %v12616_v29, %v9254_v11  ;;  %v16803_v11 = vld [vmem:[#allocation29_spill] sm:$0xff]  ;;  %v10149_v45 = vld [vmem:[%s16335_s28 + $0x10] sm:$0xff] }
 0x692   : > { %v9691_v23 = vpop.f32.mrf.mxu0  ;;  %v16492_v61 = vadd.f32 %v12546_v62, %v16803_v11  ;;  %v10150_v29 = vld [vmem:[%s16335_s28 + $0x18] sm:$0xff] }
 0x693   : > { %9859 = vst.msk [vmem:[#allocation6 + $0xf8] sm:$0xff] %vm6295_vm1, %v9811_v44  ;;  %v9810_v27 = vadd.f32 %v9691_v23, %v9253_v7  ;;  %v10151_v7 = vld [vmem:[%s16335_s28 + $0x20] sm:$0xff] }
 0x694   : > { %v9884_v15 = vld [vmem:[#allocation6 + $0xc0] ss:$3 sm:$0xff]  ;;  %v9900_v24 = vld [vmem:[#allocation6 + $0xc1] ss:$3 sm:$0xff]  ;;  %v12619_v60 = vpop.f32.mrf.mxu0  ;;  %v9932_v50 = vld [vmem:[#allocation6 + $0xc2] ss:$3 sm:$0xff] }
 0x695   : > { %v9916_v59 = vmax.f32 %v9884_v15, %v9900_v24  ;;  %9858 = vst.msk [vmem:[#allocation6 + $0xf0] sm:$0xff] %vm6295_vm1, %v9810_v27  ;;  %v9813_v6 = vadd.f32 %v12619_v60, %v9256_v47  ;;  %v10152_v47 = vld [vmem:[%s16335_s28 + $0x28] sm:$0xff]  ;;  %v10153_v62 = vld [vmem:[%s16335_s28 + $0x30] sm:$0xff] }
 0x696   : > { %v9701_v58 = vpop.f32.mrf.mxu0 }
 0x697   : > { %v9948_v18 = vmax.f32 %v9916_v59, %v9932_v50  ;;  %9861 = vst.msk [vmem:[#allocation6 + $0x108] sm:$0xff] %vm6295_vm1, %v9813_v6  ;;  %v9812_v46 = vadd.f32 %v9701_v58, %v9255_v17 }
 0x698   : > { %v9885_v21 = vld [vmem:[#allocation6 + $0xd8] ss:$3 sm:$0xff]  ;;  %v9901_v37 = vld [vmem:[#allocation6 + $0xd9] ss:$3 sm:$0xff]  ;;  %v12622_v5 = vpop.f32.mrf.mxu0  ;;  %v9933_v43 = vld [vmem:[#allocation6 + $0xda] ss:$3 sm:$0xff] }
 0x699   : > { %v12736_v53 = vpop.eup %12735  ;;  %9964 = vst.msk [vmem:[%s16335_s28 + $0x40] sm:$0xff] %vm6295_vm1, %v9948_v18  ;;  %v9917_v19 = vmax.f32 %v9885_v21, %v9901_v37  ;;  %9860 = vst.msk [vmem:[#allocation6 + $0x100] sm:$0xff] %vm6295_vm1, %v9812_v46  ;;  %v9815_v41 = vadd.f32 %v12622_v5, %v9258_v25  ;;  %v10154_v27 = vld [vmem:[%s16335_s28 + $0x38] sm:$0xff] }
 0x69a   : > { %v10143_v34 = vmul.f32 %v12736_v53, %v10142_v32  ;;  %v9711_v56 = vpop.f32.mrf.mxu0 }
 0x69b   : > { %v9949_v48 = vmax.f32 %v9917_v19, %v9933_v43  ;;  %9863 = vst.msk [vmem:[#allocation6 + $0x118] sm:$0xff] %vm6295_vm1, %v9815_v41  ;;  %v9814_v40 = vadd.f32 %v9711_v56, %v9257_v52 }
 0x69c   : > { %v10145_v3 = vmul.f32 %v10143_v34, %v16404_v0  ;;  %v16471_v16 = vrot.slane %v10143_v34, %v16800_v9  ;;  %v16802_v0 = vld [vmem:[#allocation13_spill] sm:$0xff]  ;;  %v12625_v51 = vpop.f32.mrf.mxu0 }
 0x69d   : > { %v16486_v35 = vadd.f32 %v16431_v2, %v16802_v0  ;;  %9965 = vst.msk [vmem:[%s16335_s28 + $0x48] sm:$0xff] %vm6295_vm1, %v9949_v48  ;;  %9862 = vst.msk [vmem:[#allocation6 + $0x110] sm:$0xff] %vm6295_vm1, %v9814_v40  ;;  %v16804_v2 = vld [vmem:[#allocation49_spill] sm:$0xff]  ;;  %v9817_v15 = vadd.f32 %v12625_v51, %v9260_v1 }
 0x69e   : > { %v10146_v10 = vsub.f32 %v10144_v31, %v10145_v3  ;;  %v16504_v22 = vadd.f32 %v12549_v63, %v16804_v2  ;;  %v10169_v54 = vmul.f32 %v16471_v16, %v10147_v28  ;;  %v10170_v4 = vmul.f32 %v16471_v16, %v10148_v33  ;;  %v9721_v44 = vpop.f32.mrf.mxu0 }
 0x69f   : > { %v10171_v13 = vmul.f32 %v16471_v16, %v10149_v45  ;;  %v10172_v8 = vmul.f32 %v16471_v16, %v10150_v29  ;;  %v9816_v24 = vadd.f32 %v9721_v44, %v9259_v42  ;;  %v10173_v60 = vmul.f32 %v16471_v16, %v10151_v7  ;;  %9865 = vst.msk [vmem:[#allocation6 + $0x128] sm:$0xff] %vm6295_vm1, %v9817_v15 }
 0x6a0   : > { %v16512_v23 = vrot.slane %v10146_v10, %v16800_v9  ;;  %v10174_v17 = vmul.f32 %v16471_v16, %v10152_v47  ;;  %v10175_v59 = vmul.f32 %v16471_v16, %v10153_v62  ;;  %v10176_v6 = vmul.f32 %v16471_v16, %v10154_v27  ;;  %v12628_v32 = vpop.f32.mrf.mxu0  ;;  %v10155_v52 = vld [vmem:[%s16335_s28 + $0x40] sm:$0xff]  ;;  %v9886_v41 = vld [vmem:[#allocation6 + $0xf0] ss:$3 sm:$0xff]  ;;  %v9902_v30 = vld [vmem:[#allocation6 + $0xf1] ss:$3 sm:$0xff]  ;;  %v9204_v9 = vpop.f32.mrf.mxu1 }
 0x6a1   : > { %9864 = vst.msk [vmem:[#allocation6 + $0x120] sm:$0xff] %vm6295_vm1, %v9816_v24  ;;  %v10177_v33 = vmul.f32 %v16471_v16, %v10155_v52  ;;  %v9819_v29 = vadd.f32 %v12628_v32, %v16478_v38  ;;  %v9934_v62 = vld [vmem:[#allocation6 + $0xf2] ss:$3 sm:$0xff] }
 0x6a2   : > { %v10191_v50 = vadd.f32 %v16512_v23, %v10169_v54  ;;  %v10192_v58 = vadd.f32 %v16512_v23, %v10170_v4  ;;  %v10193_v36 = vadd.f32 %v16512_v23, %v10171_v13  ;;  %v10194_v25 = vadd.f32 %v16512_v23, %v10172_v8  ;;  %v9731_v21 = vpop.f32.mrf.mxu0  ;;  %v12552_v7 = vpop.f32.mrf.mxu1 }
 0x6a3   : > { %v10195_v12 = vadd.f32 %v16512_v23, %v10173_v60  ;;  %v10196_v18 = vadd.f32 %v16512_v23, %v10174_v17  ;;  %v10197_v46 = vadd.f32 %v16512_v23, %v10175_v59  ;;  %v10198_v53 = vadd.f32 %v16512_v23, %v10176_v6  ;;  %9867 = vst.msk [vmem:[#allocation6 + $0x138] sm:$0xff] %vm6295_vm1, %v9819_v29 }
 0x6a4   : > { %vm10207_vm8 = vcmp.ge.f32.partialorder %v10191_v50, 0.0  ;;  %v10223_v37 = vmul.f32 0.01, %v10191_v50  ;;  %vm10208_vm5 = vcmp.ge.f32.partialorder %v10192_v58, 0.0  ;;  %v10224_v5 = vmul.f32 0.01, %v10192_v58  ;;  %v12631_v1 = vpop.f32.mrf.mxu0 }
 0x6a5   : > { %vm10209_vm6 = vcmp.ge.f32.partialorder %v10193_v36, 0.0  ;;  %v10225_v34 = vmul.f32 0.01, %v10193_v36  ;;  %vm10210_vm9 = vcmp.ge.f32.partialorder %v10194_v25, 0.0  ;;  %v10226_v19 = vmul.f32 0.01, %v10194_v25 }
 0x6a6   : > { %v10239_v31 = vsel %vm10207_vm8, %v10191_v50, %v10223_v37  ;;  %v10240_v43 = vsel %vm10208_vm5, %v10192_v58, %v10224_v5  ;;  %vm10211_vm10 = vcmp.ge.f32.partialorder %v10195_v12, 0.0  ;;  %v10227_v56 = vmul.f32 0.01, %v10195_v12  ;;  %v10156_v63 = vld [vmem:[%s16335_s28 + $0x48] sm:$0xff]  ;;  %v9741_v0 = vpop.f32.mrf.mxu0 }
 0x6a7   : > { %v9887_v3 = vld [vmem:[#allocation6 + $0x108] ss:$3 sm:$0xff]  ;;  %10255 = vst.msk [vmem:[%s16335_s28] sm:$0xff] %vm6295_vm1, %v10239_v31  ;;  %10256 = vst.msk [vmem:[%s16335_s28 + $0x8] sm:$0xff] %vm6295_vm1, %v10240_v43  ;;  %v10241_v48 = vsel %vm10209_vm6, %v10193_v36, %v10225_v34  ;;  %v10242_v40 = vsel %vm10210_vm9, %v10194_v25, %v10226_v19  ;;  %vm10212_vm11 = vcmp.ge.f32.partialorder %v10196_v18, 0.0  ;;  %vm10213_vm12 = vcmp.ge.f32.partialorder %v10197_v46, 0.0  ;;  %v9214_v36 = vpop.f32.mrf.mxu1 }
 0x6a8   : > { %v10228_v42 = vmul.f32 0.01, %v10196_v18  ;;  %v9903_v57 = vld [vmem:[#allocation6 + $0x109] ss:$3 sm:$0xff]  ;;  %10257 = vst.msk [vmem:[%s16335_s28 + $0x10] sm:$0xff] %vm6295_vm1, %v10241_v48  ;;  %10258 = vst.msk [vmem:[%s16335_s28 + $0x18] sm:$0xff] %vm6295_vm1, %v10242_v40  ;;  %v10243_v51 = vsel %vm10211_vm10, %v10195_v12, %v10227_v56  ;;  %v10178_v45 = vmul.f32 %v16471_v16, %v10156_v63  ;;  %v12634_v2 = vpop.f32.mrf.mxu0  ;;  %v9918_v4 = vmax.f32 %v9886_v41, %v9902_v30 }
 0x6a9   : > { %v10229_v11 = vmul.f32 0.01, %v10197_v46  ;;  %vm10214_vm13 = vcmp.ge.f32.partialorder %v10198_v53, 0.0  ;;  %10259 = vst.msk [vmem:[%s16335_s28 + $0x20] sm:$0xff] %vm6295_vm1, %v10243_v51  ;;  %v10230_v28 = vmul.f32 0.01, %v10198_v53  ;;  %v9919_v13 = vmax.f32 %v9887_v3, %v9903_v57 }
 0x6aa   : > { %v10244_v10 = vsel %vm10212_vm11, %v10196_v18, %v10228_v42  ;;  %v10199_v8 = vadd.f32 %v16512_v23, %v10177_v33  ;;  %v10200_v47 = vadd.f32 %v16512_v23, %v10178_v45  ;;  %v9935_v27 = vld [vmem:[#allocation6 + $0x10a] ss:$3 sm:$0xff]  ;;  %v9818_v15 = vadd.f32 %v9731_v21, %v16482_v14  ;;  %v9751_v24 = vpop.f32.mrf.mxu0 }
 0x6ab   : > { %10260 = vst.msk [vmem:[%s16335_s28 + $0x28] sm:$0xff] %vm6295_vm1, %v10244_v10  ;;  %v10245_v54 = vsel %vm10213_vm12, %v10197_v46, %v10229_v11  ;;  %v10246_v44 = vsel %vm10214_vm13, %v10198_v53, %v10230_v28  ;;  %v9950_v60 = vmax.f32 %v9918_v4, %v9934_v62  ;;  %v9951_v17 = vmax.f32 %v9919_v13, %v9935_v27 }
 0x6ac   : > { %10261 = vst.msk [vmem:[%s16335_s28 + $0x30] sm:$0xff] %vm6295_vm1, %v10245_v54  ;;  %10262 = vst.msk [vmem:[%s16335_s28 + $0x38] sm:$0xff] %vm6295_vm1, %v10246_v44  ;;  %v9821_v38 = vadd.f32 %v12631_v1, %v16486_v35  ;;  %v9820_v59 = vadd.f32 %v9741_v0, %v16489_v49  ;;  %vm10215_vm14 = vcmp.ge.f32.partialorder %v10199_v8, 0.0  ;;  %v10231_v6 = vmul.f32 0.01, %v10199_v8  ;;  %v12637_v14 = vpop.f32.mrf.mxu0 }
 0x6ad   : > { %vm10216_vm15 = vcmp.ge.f32.partialorder %v10200_v47, 0.0  ;;  %v10232_v32 = vmul.f32 0.01, %v10200_v47  ;;  %9866 = vst.msk [vmem:[#allocation6 + $0x130] sm:$0xff] %vm6295_vm1, %v9818_v15  ;;  %v9267_v50 = vadd.f32 %v9204_v9, %v16284_v20  ;;  %9966 = vst.msk [vmem:[%s16335_s28 + $0x50] sm:$0xff] %vm6295_vm1, %v9950_v60  ;;  %v9823_v35 = vadd.f32 %v12634_v2, %v16492_v61 }
 0x6ae   : > { %9967 = vst.msk [vmem:[%s16335_s28 + $0x58] sm:$0xff] %vm6295_vm1, %v9951_v17  ;;  %9869 = vst.msk [vmem:[#allocation6 + $0x148] sm:$0xff] %vm6295_vm1, %v9821_v38  ;;  %v9822_v49 = vadd.f32 %v9751_v24, %v16495_v26  ;;  %v9825_v58 = vadd.f32 %v12637_v14, %v16504_v22  ;;  %v10247_v25 = vsel %vm10215_vm14, %v10199_v8, %v10231_v6  ;;  %v9761_v18 = vpop.f32.mrf.mxu0 }
 0x6af   : > { %9868 = vst.msk [vmem:[#allocation6 + $0x140] sm:$0xff] %vm6295_vm1, %v9820_v59  ;;  %v10248_v12 = vsel %vm10216_vm15, %v10200_v47, %v10232_v32  ;;  %v9270_v20 = vadd.f32 %v12552_v7, %v16287_v39  ;;  %10263 = vst.msk [vmem:[%s16335_s28 + $0x40] sm:$0xff] %vm6295_vm1, %v10247_v25  ;;  %v9824_v61 = vadd.f32 %v9761_v18, %v9267_v50 }
 0x6b0   : > { %10264 = vst.msk [vmem:[%s16335_s28 + $0x48] sm:$0xff] %vm6295_vm1, %v10248_v12  ;;  %9871 = vst.msk [vmem:[#allocation6 + $0x158] sm:$0xff] %vm6295_vm1, %v9823_v35  ;;  %v12640_v26 = vpop.f32.mrf.mxu0  ;;  %v9269_v22 = vadd.f32 %v9214_v36, %v16294_v55 }
 0x6b1   : > { %9870 = vst.msk [vmem:[#allocation6 + $0x150] sm:$0xff] %vm6295_vm1, %v9822_v49  ;;  %9873 = vst.msk [vmem:[#allocation6 + $0x168] sm:$0xff] %vm6295_vm1, %v9825_v58  ;;  %v9827_v46 = vadd.f32 %v12640_v26, %v9270_v20 }
 0x6b2   : > { %9872 = vst.msk [vmem:[#allocation6 + $0x160] sm:$0xff] %vm6295_vm1, %v9824_v61  ;;  %v9771_v39 = vpop.f32.mrf.mxu0 }
 0x6b3   : > { %9875 = vst.msk [vmem:[#allocation6 + $0x178] sm:$0xff] %vm6295_vm1, %v9827_v46  ;;  %v9826_v37 = vadd.f32 %v9771_v39, %v9269_v22 }
 0x6b4   : > { %v9888_v53 = vld [vmem:[#allocation6 + $0x120] ss:$3 sm:$0xff]  ;;  %v9904_v21 = vld [vmem:[#allocation6 + $0x121] ss:$3 sm:$0xff]  ;;  %v10157_v5 = vld [vmem:[%s16335_s28 + $0x50] sm:$0xff] }
 0x6b5   : > { %v10158_v52 = vld [vmem:[%s16335_s28 + $0x58] sm:$0xff]  ;;  %v9920_v34 = vmax.f32 %v9888_v53, %v9904_v21  ;;  %v10179_v41 = vmul.f32 %v16471_v16, %v10157_v5  ;;  %9874 = vst.msk [vmem:[#allocation6 + $0x170] sm:$0xff] %vm6295_vm1, %v9826_v37 }
 0x6b6   : > { %v9889_v19 = vld [vmem:[#allocation6 + $0x138] ss:$3 sm:$0xff]  ;;  %v10180_v30 = vmul.f32 %v16471_v16, %v10158_v52  ;;  %v9936_v1 = vld [vmem:[#allocation6 + $0x122] ss:$3 sm:$0xff]  ;;  %v9937_v3 = vld [vmem:[#allocation6 + $0x13a] ss:$3 sm:$0xff] }
 0x6b7   : > { %v9905_v55 = vld [vmem:[#allocation6 + $0x139] ss:$3 sm:$0xff]  ;;  %v9952_v31 = vmax.f32 %v9920_v34, %v9936_v1  ;;  %v10201_v56 = vadd.f32 %v16512_v23, %v10179_v41 }
 0x6b8   : > { %v9921_v43 = vmax.f32 %v9889_v19, %v9905_v55  ;;  %v10202_v63 = vadd.f32 %v16512_v23, %v10180_v30 }
 0x6b9   : > { %9968 = vst.msk [vmem:[%s16335_s28 + $0x60] sm:$0xff] %vm6295_vm1, %v9952_v31  ;;  %v9890_v48 = vld [vmem:[#allocation6 + $0x150] ss:$3 sm:$0xff]  ;;  %v9906_v40 = vld [vmem:[#allocation6 + $0x151] ss:$3 sm:$0xff]  ;;  %vm10217_vm0 = vcmp.ge.f32.partialorder %v10201_v56, 0.0 }
 0x6ba   : > { %v9953_v9 = vmax.f32 %v9921_v43, %v9937_v3  ;;  %v10233_v42 = vmul.f32 0.01, %v10201_v56  ;;  %vm10218_vm2 = vcmp.ge.f32.partialorder %v10202_v63, 0.0  ;;  %v10234_v57 = vmul.f32 0.01, %v10202_v63 }
 0x6bb   : > { %v9922_v0 = vmax.f32 %v9890_v48, %v9906_v40  ;;  %v9938_v10 = vld [vmem:[#allocation6 + $0x152] ss:$3 sm:$0xff] }
 0x6bc   : > { %9969 = vst.msk [vmem:[%s16335_s28 + $0x68] sm:$0xff] %vm6295_vm1, %v9953_v9  ;;  %v10249_v51 = vsel %vm10217_vm0, %v10201_v56, %v10233_v42  ;;  %v10250_v11 = vsel %vm10218_vm2, %v10202_v63, %v10234_v57  ;;  %v9891_v33 = vld [vmem:[#allocation6 + $0x168] ss:$3 sm:$0xff]  ;;  %v9907_v45 = vld [vmem:[#allocation6 + $0x169] ss:$3 sm:$0xff] }
 0x6bd   : > { %10265 = vst.msk [vmem:[%s16335_s28 + $0x50] sm:$0xff] %vm6295_vm1, %v10249_v51  ;;  %10266 = vst.msk [vmem:[%s16335_s28 + $0x58] sm:$0xff] %vm6295_vm1, %v10250_v11  ;;  %v9954_v28 = vmax.f32 %v9922_v0, %v9938_v10  ;;  %v9923_v2 = vmax.f32 %v9891_v33, %v9907_v45  ;;  %v9939_v54 = vld [vmem:[#allocation6 + $0x16a] ss:$3 sm:$0xff] }
 0x6bf   : > { %9970 = vst.msk [vmem:[%s16335_s28 + $0x70] sm:$0xff] %vm6295_vm1, %v9954_v28  ;;  %v9955_v13 = vmax.f32 %v9923_v2, %v9939_v54 }
 0x6c0   : > { %v10159_v4 = vld [vmem:[%s16335_s28 + $0x60] sm:$0xff] }
 0x6c1   : > { %v10181_v29 = vmul.f32 %v16471_v16, %v10159_v4  ;;  %9971 = vst.msk [vmem:[%s16335_s28 + $0x78] sm:$0xff] %vm6295_vm1, %v9955_v13 }
 0x6c3   : > { %v10160_v7 = vld [vmem:[%s16335_s28 + $0x68] sm:$0xff]  ;;  %v10203_v44 = vadd.f32 %v16512_v23, %v10181_v29 }
 0x6c4   : > { %v10182_v8 = vmul.f32 %v16471_v16, %v10160_v7 }
 0x6c5   : > { %vm10219_vm3 = vcmp.ge.f32.partialorder %v10203_v44, 0.0  ;;  %v10235_v47 = vmul.f32 0.01, %v10203_v44 }
 0x6c6   : > { %v10204_v62 = vadd.f32 %v16512_v23, %v10182_v8  ;;  %v10161_v27 = vld [vmem:[%s16335_s28 + $0x70] sm:$0xff] }
 0x6c7   : > { %v10251_v15 = vsel %vm10219_vm3, %v10203_v44, %v10235_v47  ;;  %v10183_v60 = vmul.f32 %v16471_v16, %v10161_v27 }
 0x6c8   : > { %vm10220_vm4 = vcmp.ge.f32.partialorder %v10204_v62, 0.0  ;;  %v10236_v24 = vmul.f32 0.01, %v10204_v62  ;;  %10267 = vst.msk [vmem:[%s16335_s28 + $0x60] sm:$0xff] %vm6295_vm1, %v10251_v15  ;;  %v10162_v59 = vld [vmem:[%s16335_s28 + $0x78] sm:$0xff] }
 0x6c9   : > { %v10205_v38 = vadd.f32 %v16512_v23, %v10183_v60  ;;  %v10184_v6 = vmul.f32 %v16471_v16, %v10162_v59 }
 0x6ca   : > { %v10252_v17 = vsel %vm10220_vm4, %v10204_v62, %v10236_v24 }
 0x6cb   : > { %10268 = vst.msk [vmem:[%s16335_s28 + $0x68] sm:$0xff] %vm6295_vm1, %v10252_v17  ;;  %vm10221_vm7 = vcmp.ge.f32.partialorder %v10205_v38, 0.0  ;;  %v10237_v32 = vmul.f32 0.01, %v10205_v38  ;;  %v10206_v14 = vadd.f32 %v16512_v23, %v10184_v6 }
 0x6cd   : > { %v10253_v50 = vsel %vm10221_vm7, %v10205_v38, %v10237_v32  ;;  %vm10222_vm8 = vcmp.ge.f32.partialorder %v10206_v14, 0.0  ;;  %v10238_v35 = vmul.f32 0.01, %v10206_v14 }
 0x6ce   : > { %10269 = vst.msk [vmem:[%s16335_s28 + $0x70] sm:$0xff] %vm6295_vm1, %v10253_v50 }
 0x6cf   : > { %v10254_v49 = vsel %vm10222_vm8, %v10206_v14, %v10238_v35 }
 0x6d0   : > { %10270 = vst.msk [vmem:[%s16335_s28 + $0x78] sm:$0xff] %vm6295_vm1, %v10254_v49 }
 0x6d1 PF: > { %s22_s23 = sadd.s32 1, %s12761_s23   ;;  %s16805_s21 = smov %s12757_s22 }
 0x6d2   : > { %p19_p5 = scmp.ge.s32.totalorder %s22_s23, 4   ;;  %s16806_s22 = smov %s16808_s24 }
 0x6d4   :  { %21 = sbr.rel (!%p19_p5) target bundleno = 2 (0x2), region = 164 }

</bundles_post_ra>
